<compile_context>
chip_gen: v5e
topology: v5e:2x2
jax: 0.10.0
libtpu: 0.0.40
codegen_flags: <defaults>
</compile_context>

<pallas_src>
import functools

import jax
import jax.numpy as jnp
from jax.experimental import pallas as pl
from jax.experimental.pallas import tpu as pltpu


# -----------------------------------------------------------------------------
# Tiled bf16 matmul with f32 accumulation (the conv hot path)
# -----------------------------------------------------------------------------

_TM, _TN, _TK = 256, 256, 512      # per-step VMEM ~1 MiB incl. double buffering


def _round_up(x, m):
    return (x + m - 1) // m * m


def _mm_kernel(*refs, has_bias, act):
    if has_bias:
        a_ref, b_ref, bias_ref, o_ref, acc_ref = refs
    else:
        a_ref, b_ref, o_ref, acc_ref = refs
        bias_ref = None

    @pl.when(pl.program_id(2) == 0)
    def _init():
        acc_ref[...] = jnp.zeros_like(acc_ref)

    acc_ref[...] += jnp.dot(a_ref[...], b_ref[...],
                            preferred_element_type=jnp.float32)

    @pl.when(pl.program_id(2) == pl.num_programs(2) - 1)
    def _finalize():
        y = acc_ref[...]
        if has_bias:
            y = y + bias_ref[...]
        if act == "tanh":
            y = jnp.tanh(y)
        o_ref[...] = y.astype(o_ref.dtype)


def pallas_matmul(a, b, bias=None, act=None):
    """a: [M, K], b: [K, N] -> f32 [M, N] = a @ b (+ bias) (+ activation).

    Operands are cast to bf16 (MXU-native); accumulation is f32 in VMEM scratch.
    N (and tiled K) are padded to multiples of 128 so output stores are lane-dense.
    """
    M, K = a.shape
    N = b.shape[1]
    a = a.astype(jnp.bfloat16)
    b = b.astype(jnp.bfloat16)

    # --- tile selection ---
    tm = min(_TM, _round_up(M, 8))
    Mp = _round_up(M, tm)
    Np = _round_up(N, 128)
    tn = _TN if (Np % _TN == 0) else 128
    tn = min(tn, Np)
    if K <= _TK:                      # no K tiling: full-K block (exempt from 128 rule)
        tk, Kp = K, K
    else:
        kp128 = _round_up(K, 128)
        nk = -(-kp128 // _TK)
        tk = _round_up(-(-kp128 // nk), 128)
        Kp = tk * nk

    if (Mp, Kp) != (M, K):
        a = jnp.pad(a, ((0, Mp - M), (0, Kp - K)))
    if (Kp, Np) != (K, N):
        b = jnp.pad(b, ((0, Kp - K), (0, Np - N)))

    has_bias = bias is not None
    inputs = [a, b]
    in_specs = [
        pl.BlockSpec((tm, tk), lambda i, j, k: (i, k)),
        pl.BlockSpec((tk, tn), lambda i, j, k: (k, j)),
    ]
    if has_bias:
        bias2 = bias.reshape(1, N).astype(jnp.float32)
        if Np != N:
            bias2 = jnp.pad(bias2, ((0, 0), (0, Np - N)))
        inputs.append(bias2)
        in_specs.append(pl.BlockSpec((1, tn), lambda i, j, k: (0, j)))

    out = pl.pallas_call(
        functools.partial(_mm_kernel, has_bias=has_bias, act=act),
        out_shape=jax.ShapeDtypeStruct((Mp, Np), jnp.float32),
        grid=(Mp // tm, Np // tn, Kp // tk),
        in_specs=in_specs,
        out_specs=pl.BlockSpec((tm, tn), lambda i, j, k: (i, j)),
        scratch_shapes=[pltpu.VMEM((tm, tn), jnp.float32)],
        compiler_params=pltpu.CompilerParams(
            dimension_semantics=("parallel", "parallel", "arbitrary")),
    )(*inputs)
    return out[:M, :N]


# -----------------------------------------------------------------------------
# Instance norm (affine=False) on NHWC, with fused ReLU / residual add
# -----------------------------------------------------------------------------

_IN_EPS = 1e-5
_IN_SINGLE_PASS_BYTES = 4 * 1024 * 1024    # per-sample f32 block threshold


def _in_fused_kernel(*refs, relu, has_add):
    # Single pass: x block = one whole sample [1, HW, C].
    if has_add:
        x_ref, r_ref, o_ref = refs
    else:
        x_ref, o_ref = refs
        r_ref = None
    x = x_ref[...]
    mean = jnp.mean(x, axis=1, keepdims=True)
    xc = x - mean
    var = jnp.mean(xc * xc, axis=1, keepdims=True)
    y = xc * jax.lax.rsqrt(var + _IN_EPS)
    if relu:
        y = jnp.maximum(y, 0.0)
    if has_add:
        y = y + r_ref[...]
    o_ref[...] = y


def _in_stats_kernel(x_ref, s_ref, ss_ref):
    # Pass 1 of the tiled path: accumulate per-(sample, channel) sum / sum-of-squares.
    @pl.when(pl.program_id(1) == 0)
    def _init():
        s_ref[...] = jnp.zeros_like(s_ref)
        ss_ref[...] = jnp.zeros_like(ss_ref)

    x = x_ref[...]
    s_ref[...] += jnp.sum(x, axis=1, keepdims=True)
    ss_ref[...] += jnp.sum(x * x, axis=1, keepdims=True)


def _in_apply_kernel(*refs, inv_hw, relu, has_add):
    # Pass 2 of the tiled path: normalize (+ optional relu, + optional add).
    if has_add:
        x_ref, s_ref, ss_ref, r_ref, o_ref = refs
    else:
        x_ref, s_ref, ss_ref, o_ref = refs
        r_ref = None
    mean = s_ref[...] * inv_hw
    var = ss_ref[...] * inv_hw - mean * mean
    y = (x_ref[...] - mean) * jax.lax.rsqrt(var + _IN_EPS)
    if relu:
        y = jnp.maximum(y, 0.0)
    if has_add:
        y = y + r_ref[...]
    o_ref[...] = y


def _pick_hw_tile(hw, c):
    """Largest multiple-of-8 divisor of hw with a ~2 MiB f32 block budget."""
    target = max(8, (2 * 1024 * 1024) // (4 * c))
    t = (min(hw, target) // 8) * 8
    while t >= 8:
        if hw % t == 0:
            return t
        t -= 8
    return hw


def pallas_instance_norm(x, relu=False, add=None):
    """InstanceNorm2d(affine=False, eps=1e-5) on NHWC x; optional fused ReLU then add."""
    N, H, W, C = x.shape
    HW = H * W
    x3 = x.reshape(N, HW, C)
    r3 = None if add is None else add.reshape(N, HW, C)
    has_add = add is not None

    if HW * C * 4 <= _IN_SINGLE_PASS_BYTES:
        # Fast path: one whole sample per grid step (1 read + 1 write).
        inputs = (x3,) if not has_add else (x3, r3)
        spec = pl.BlockSpec((1, HW, C), lambda n: (n, 0, 0))
        y3 = pl.pallas_call(
            functools.partial(_in_fused_kernel, relu=relu, has_add=has_add),
            out_shape=jax.ShapeDtypeStruct((N, HW, C), jnp.float32),
            grid=(N,),
            in_specs=[spec] * len(inputs),
            out_specs=spec,
            compiler_params=pltpu.CompilerParams(dimension_semantics=("parallel",)),
        )(*inputs)
    else:
        # Scalable path: tiled two-pass (stats accumulate, then normalize).
        thw = _pick_hw_tile(HW, C)
        nt = HW // thw
        x_spec = pl.BlockSpec((1, thw, C), lambda n, t: (n, t, 0))
        s_spec = pl.BlockSpec((1, 1, C), lambda n, t: (n, 0, 0))
        s, ss = pl.pallas_call(
            _in_stats_kernel,
            out_shape=(jax.ShapeDtypeStruct((N, 1, C), jnp.float32),
                       jax.ShapeDtypeStruct((N, 1, C), jnp.float32)),
            grid=(N, nt),
            in_specs=[x_spec],
            out_specs=(s_spec, s_spec),
            compiler_params=pltpu.CompilerParams(
                dimension_semantics=("parallel", "arbitrary")),
        )(x3)
        inputs = (x3, s, ss) if not has_add else (x3, s, ss, r3)
        in_specs = [x_spec, s_spec, s_spec] + ([x_spec] if has_add else [])
        y3 = pl.pallas_call(
            functools.partial(_in_apply_kernel, inv_hw=1.0 / HW,
                              relu=relu, has_add=has_add),
            out_shape=jax.ShapeDtypeStruct((N, HW, C), jnp.float32),
            grid=(N, nt),
            in_specs=in_specs,
            out_specs=x_spec,
            compiler_params=pltpu.CompilerParams(
                dimension_semantics=("parallel", "parallel")),
        )(*inputs)
    return y3.reshape(N, H, W, C)


# -----------------------------------------------------------------------------
# Convolution / pooling helpers (XLA glue around the Pallas matmul)
# -----------------------------------------------------------------------------

def _extract_patches(x, kh, kw, stride):
    """x: [N, H, W, C] (already padded). Returns ([N, Ho, Wo, kh*kw, C], Ho, Wo)."""
    N, H, W, C = x.shape
    Ho = (H - kh) // stride + 1
    Wo = (W - kw) // stride + 1
    cols = []
    for i in range(kh):
        for j in range(kw):
            cols.append(x[:, i:i + stride * (Ho - 1) + 1:stride,
                          j:j + stride * (Wo - 1) + 1:stride, :])
    return jnp.stack(cols, axis=3), Ho, Wo


# TODO(synk): replace host-side im2col with an implicit-GEMM Pallas kernel
# (halo-window DMA + per-tap MXU accumulation into the f32 scratch) so the
# kh*kw-times patch matrix never touches HBM; kept explicit here (now in bf16,
# halving that traffic) for lowering robustness.
def conv2d(x, w, bias=None, stride=1, padding=0, pad_mode="zero", act=None):
    """x: NHWC, w: [Cout, Cin, kh, kw] (PyTorch layout), bias: [Cout] or None."""
    Cout, Cin, kh, kw = w.shape
    N = x.shape[0]
    x = x.astype(jnp.bfloat16)     # bf16 im2col: half the HBM bytes, MXU-native
    if padding > 0:
        mode = "reflect" if pad_mode == "reflect" else "constant"
        x = jnp.pad(x, ((0, 0), (padding, padding), (padding, padding), (0, 0)),
                    mode=mode)
    p, Ho, Wo = _extract_patches(x, kh, kw, stride)
    A = p.reshape(N * Ho * Wo, kh * kw * Cin)
    B = jnp.transpose(w, (2, 3, 1, 0)).reshape(kh * kw * Cin, Cout)
    out = pallas_matmul(A, B, bias=bias, act=act)
    return out.reshape(N, Ho, Wo, Cout)


def conv_transpose2d_s2(x, w, bias=None):
    """ConvTranspose2d(k=3, stride=2, padding=1, output_padding=1) as a 4-phase
    subpixel decomposition: a single matmul on the un-dilated input (no 75%-zero
    dilated image, ~4x fewer MACs / input bytes than zero-insertion).
    x: NHWC, w: [Cin, Cout, 3, 3] (PyTorch layout)."""
    N, H, W, Cin = x.shape
    Cout = w.shape[1]
    xe = jnp.pad(x.astype(jnp.bfloat16), ((0, 0), (0, 1), (0, 1), (0, 0)))
    # taps: x[i,j], x[i,j+1], x[i+1,j], x[i+1,j+1] (zero beyond the border)
    taps = [xe[:, :H, :W, :], xe[:, :H, 1:, :], xe[:, 1:, :W, :], xe[:, 1:, 1:, :]]
    A = jnp.concatenate(taps, axis=-1).reshape(N * H * W, 4 * Cin)

    def wt(ky, kx):                 # flipped/transposed tap as a [Cin, Cout] matrix
        return w[:, :, 2 - ky, 2 - kx]

    Z = jnp.zeros((Cin, Cout), w.dtype)
    # rows = taps above; cols = output phases [(2i,2j), (2i,2j+1), (2i+1,2j), (2i+1,2j+1)]
    B = jnp.block([
        [wt(1, 1), wt(1, 0), wt(0, 1), wt(0, 0)],
        [Z,        wt(1, 2), Z,        wt(0, 2)],
        [Z,        Z,        wt(2, 1), wt(2, 0)],
        [Z,        Z,        Z,        wt(2, 2)],
    ])
    bias4 = None if bias is None else jnp.tile(bias, 4)
    out = pallas_matmul(A, B, bias=bias4)                       # [N*H*W, 4*Cout]
    out = out.reshape(N, H, W, 2, 2, Cout)
    out = jnp.transpose(out, (0, 1, 3, 2, 4, 5)).reshape(N, 2 * H, 2 * W, Cout)
    return out


def avg_pool_3x3_s2(x):
    """nn.AvgPool2d(3, stride=2, padding=1, count_include_pad=False), NHWC.
    Kept as an XLA 9-shifted-slice sum: C (= in_channels, 3) is far below the
    128-lane vreg width, so a Pallas kernel here would be >97% lane-sparse."""
    N, H, W, C = x.shape
    Ho, Wo = (H + 1) // 2, (W + 1) // 2
    xp = jnp.pad(x, ((0, 0), (1, 1), (1, 1), (0, 0)))
    op = jnp.pad(jnp.ones((1, H, W, 1), jnp.float32), ((0, 0), (1, 1), (1, 1), (0, 0)))
    s = jnp.zeros((N, Ho, Wo, C), jnp.float32)
    cnt = jnp.zeros((1, Ho, Wo, 1), jnp.float32)
    for di in range(3):
        for dj in range(3):
            s = s + xp[:, di:di + 2 * (Ho - 1) + 1:2, dj:dj + 2 * (Wo - 1) + 1:2, :]
            cnt = cnt + op[:, di:di + 2 * (Ho - 1) + 1:2, dj:dj + 2 * (Wo - 1) + 1:2, :]
    return s / cnt


# -----------------------------------------------------------------------------
# Parameter init (deterministic, synthetic) and forward pass
# -----------------------------------------------------------------------------

def init_params(key, in_ch, out_ch, base, g1_front, g1_res, g2_res):
    g1b = base * 2
    keys = iter(jax.random.split(key, 256))

    def conv(cin, cout, k):
        return {"w": 0.02 * jax.random.normal(next(keys), (cout, cin, k, k), jnp.float32),
                "b": jnp.zeros((cout,), jnp.float32)}

    def convT(cin, cout, k):
        return {"w": 0.02 * jax.random.normal(next(keys), (cin, cout, k, k), jnp.float32),
                "b": jnp.zeros((cout,), jnp.float32)}

    def resblock(ch):
        return {"c1": conv(ch, ch, 3), "c2": conv(ch, ch, 3)}

    g1 = {"head": conv(in_ch, g1b, 7), "down": [], "res": [], "up": []}
    ch = g1b
    for _ in range(g1_front):
        g1["down"].append(conv(ch, ch * 2, 3))
        ch *= 2
    g1["res"] = [resblock(ch) for _ in range(g1_res)]
    for _ in range(g1_front):
        g1["up"].append(convT(ch, ch // 2, 3))
        ch //= 2

    return {
        "g1": g1,
        "g2_0": {"c1": conv(in_ch, base, 7), "c2": conv(base, 2 * base, 3)},
        "g2_1": {"res": [resblock(2 * base) for _ in range(g2_res)],
                 "up": convT(2 * base, base, 3),
                 "tail": conv(base, out_ch, 7)},
    }


# NOTE: every conv below that is immediately followed by InstanceNorm(affine=False)
# runs WITHOUT its bias — a per-channel bias is exactly cancelled by the IN mean
# subtraction, so dropping it is a mathematical no-op (and removes a DMA + VPU add).

def residual_block(x, rb):
    h = conv2d(x, rb["c1"]["w"], stride=1, padding=1, pad_mode="reflect")
    h = pallas_instance_norm(h, relu=True)
    h = conv2d(h, rb["c2"]["w"], stride=1, padding=1, pad_mode="reflect")
    return pallas_instance_norm(h, relu=False, add=x)        # IN + skip, fused


def local_enhancer_forward(x_nchw, p):
    x = jnp.transpose(x_nchw, (0, 2, 3, 1)).astype(jnp.float32)   # NCHW -> NHWC

    # ---- downsample branch + GlobalGenerator body (g1) ----
    h = avg_pool_3x3_s2(x)
    h = conv2d(h, p["g1"]["head"]["w"], padding=3, pad_mode="reflect")
    h = pallas_instance_norm(h, relu=True)
    for blk in p["g1"]["down"]:
        h = conv2d(h, blk["w"], stride=2, padding=1)
        h = pallas_instance_norm(h, relu=True)
    for rb in p["g1"]["res"]:
        h = residual_block(h, rb)
    for blk in p["g1"]["up"]:
        h = conv_transpose2d_s2(h, blk["w"])
        h = pallas_instance_norm(h, relu=True)
    x_g1 = h

    # ---- local front end g2[0] ----
    h = conv2d(x, p["g2_0"]["c1"]["w"], padding=3, pad_mode="reflect")
    h = pallas_instance_norm(h, relu=True)
    h = conv2d(h, p["g2_0"]["c2"]["w"], stride=2, padding=1)
    h = pallas_instance_norm(h, relu=True, add=x_g1)   # (x_g1 + x_g2) fused into IN epilogue

    # ---- local back end g2[1] ----
    for rb in p["g2_1"]["res"]:
        h = residual_block(h, rb)
    h = conv_transpose2d_s2(h, p["g2_1"]["up"]["w"])
    h = pallas_instance_norm(h, relu=True)
    h = conv2d(h, p["g2_1"]["tail"]["w"], bias=p["g2_1"]["tail"]["b"],
               padding=3, pad_mode="reflect", act="tanh")   # bias + tanh fused in matmul
    return jnp.transpose(h, (0, 3, 1, 2))                   # NHWC -> NCHW


# -----------------------------------------------------------------------------
# Demo
# -----------------------------------------------------------------------------

if __name__ == "__main__":
    in_ch, out_ch, base = 3, 3, 4
    g1_front, g1_res, g2_res = 2, 2, 2       # small but structurally faithful config

    root = jax.random.PRNGKey(0)
    pkey, xkey = jax.random.split(root)
    params = init_params(pkey, in_ch, out_ch, base, g1_front, g1_res, g2_res)
    x = jax.random.normal(xkey, (2, in_ch, 32, 32), jnp.float32)

    fwd = jax.jit(lambda xx: local_enhancer_forward(xx, params))
    y = fwd(x)
    jax.block_until_ready(y)
    assert y.shape == (2, out_ch, 32, 32) and y.dtype == jnp.float32
    assert bool(jnp.all(jnp.isfinite(y)))
    print("KERNEL_OK")
</pallas_src>

<mosaic_0001>
module attributes {stable_mosaic.version = 11 : i64} {
  func.func @_mm_kernel(%arg0: i32, %arg1: i32, %arg2: i32, %arg3: memref<256x147xbf16, #tpu.memory_space<vmem>>, %arg4: memref<147x128xbf16, #tpu.memory_space<vmem>>, %arg5: memref<256x128xf32, #tpu.memory_space<vmem>>, %arg6: memref<256x128xf32, #tpu.memory_space<vmem>>) attributes {dimension_semantics = [#tpu.dimension_semantics<parallel>, #tpu.dimension_semantics<parallel>, #tpu.dimension_semantics<arbitrary>], iteration_bounds = array<i64: 2, 1, 1>, scalar_prefetch = 0 : i64, scratch_operands = 1 : i64, tpu.core_type = #tpu.core_type<tc>, window_params = [{transform_indices = @transform_0, window_bounds = array<i64: 256, 147>}, {transform_indices = @transform_1, window_bounds = array<i64: 147, 128>}, {transform_indices = @transform_2, window_bounds = array<i64: 256, 128>}]} {
    %c0_i32 = arith.constant 0 : i32
    %0 = arith.cmpi eq, %arg2, %c0_i32 : i32
    %1 = arith.extui %0 : i1 to i32
    %c0_i32_0 = arith.constant 0 : i32
    %2 = arith.cmpi ne, %1, %c0_i32_0 : i32
    scf.if %2 {
      %cst_10 = arith.constant 0.000000e+00 : f32
      %12 = vector.broadcast %cst_10 : f32 to vector<256x128xf32>
      %c0_11 = arith.constant 0 : index
      %c0_12 = arith.constant 0 : index
      %13 = vector.load %arg6[%c0_11, %c0_12] : memref<256x128xf32, #tpu.memory_space<vmem>>, vector<256x128xf32>
      tpu.vector_store %arg6[%c0_11, %c0_12], %12 {strides = array<i32>} : memref<256x128xf32, #tpu.memory_space<vmem>>, vector<256x128xf32>,
    } else {
    }
    %c0 = arith.constant 0 : index
    %c0_1 = arith.constant 0 : index
    %3 = vector.load %arg6[%c0, %c0_1] : memref<256x128xf32, #tpu.memory_space<vmem>>, vector<256x128xf32>
    %c0_2 = arith.constant 0 : index
    %c0_3 = arith.constant 0 : index
    %4 = vector.load %arg3[%c0_2, %c0_3] : memref<256x147xbf16, #tpu.memory_space<vmem>>, vector<256x147xbf16>
    %c0_4 = arith.constant 0 : index
    %c0_5 = arith.constant 0 : index
    %5 = vector.load %arg4[%c0_4, %c0_5] : memref<147x128xbf16, #tpu.memory_space<vmem>>, vector<147x128xbf16>
    %cst = arith.constant dense<0.000000e+00> : vector<256x128xf32>
    %6 = tpu.matmul %4, %5, %cst {dimension_numbers = #tpu.dot_dimension_numbers<[1], [0], [0], [1], [0, 0, 1, 1], [], []>} : vector<256x147xbf16>, vector<147x128xbf16>, vector<256x128xf32> -> vector<256x128xf32>
    %7 = arith.addf %3, %6 : vector<256x128xf32>
    %c0_6 = arith.constant 0 : index
    %c0_7 = arith.constant 0 : index
    %8 = vector.load %arg6[%c0_6, %c0_7] : memref<256x128xf32, #tpu.memory_space<vmem>>, vector<256x128xf32>
    tpu.vector_store %arg6[%c0_6, %c0_7], %7 {strides = array<i32>} : memref<256x128xf32, #tpu.memory_space<vmem>>, vector<256x128xf32>,
    %c0_i32_8 = arith.constant 0 : i32
    %9 = arith.cmpi eq, %arg2, %c0_i32_8 : i32
    %10 = arith.extui %9 : i1 to i32
    %c0_i32_9 = arith.constant 0 : i32
    %11 = arith.cmpi ne, %10, %c0_i32_9 : i32
    scf.if %11 {
      %c0_10 = arith.constant 0 : index
      %c0_11 = arith.constant 0 : index
      %12 = vector.load %arg6[%c0_10, %c0_11] : memref<256x128xf32, #tpu.memory_space<vmem>>, vector<256x128xf32>
      %c0_12 = arith.constant 0 : index
      %c0_13 = arith.constant 0 : index
      %13 = vector.load %arg5[%c0_12, %c0_13] : memref<256x128xf32, #tpu.memory_space<vmem>>, vector<256x128xf32>
      tpu.vector_store %arg5[%c0_12, %c0_13], %12 {strides = array<i32>} : memref<256x128xf32, #tpu.memory_space<vmem>>, vector<256x128xf32>,
    } else {
    }
    return
  }
  func.func @transform_0(%arg0: i32, %arg1: i32, %arg2: i32) -> (i32, i32) {
    %c0_i32 = arith.constant 0 : i32
    return %arg0, %arg2 : i32, i32
  }
  func.func @transform_1(%arg0: i32, %arg1: i32, %arg2: i32) -> (i32, i32) {
    %c0_i32 = arith.constant 0 : i32
    return %arg2, %arg1 : i32, i32
  }
  func.func @transform_2(%arg0: i32, %arg1: i32, %arg2: i32) -> (i32, i32) {
    %c0_i32 = arith.constant 0 : i32
    return %arg0, %arg1 : i32, i32
  }
}

module attributes {stable_mosaic.version = 11 : i64} {
  func.func @_in_fused_kernel(%arg0: i32, %arg1: memref<1x256x8xf32, #tpu.memory_space<vmem>>, %arg2: memref<1x256x8xf32, #tpu.memory_space<vmem>>) attributes {dimension_semantics = [#tpu.dimension_semantics<parallel>], iteration_bounds = array<i64: 2>, scalar_prefetch = 0 : i64, scratch_operands = 0 : i64, tpu.core_type = #tpu.core_type<tc>, window_params = [{transform_indices = @transform_0, window_bounds = array<i64: 1, 256, 8>}, {transform_indices = @transform_1, window_bounds = array<i64: 1, 256, 8>}]} {
    %c0 = arith.constant 0 : index
    %c0_0 = arith.constant 0 : index
    %c0_1 = arith.constant 0 : index
    %0 = vector.load %arg1[%c0, %c0_0, %c0_1] : memref<1x256x8xf32, #tpu.memory_space<vmem>>, vector<1x256x8xf32>
    %cst = arith.constant dense<0.000000e+00> : vector<1x8xf32>
    %1 = vector.multi_reduction <add>, %0, %cst [1] : vector<1x256x8xf32> to vector<1x8xf32>
    %2 = vector.shape_cast %1 : vector<1x8xf32> to vector<1x1x8xf32>
    %cst_2 = arith.constant 2.560000e+02 : f32
    %3 = vector.broadcast %cst_2 : f32 to vector<1x1x8xf32>
    %4 = arith.divf %2, %3 : vector<1x1x8xf32>
    %5 = vector.broadcast %4 : vector<1x1x8xf32> to vector<1x256x8xf32>
    %6 = arith.subf %0, %5 : vector<1x256x8xf32>
    %7 = arith.mulf %6, %6 : vector<1x256x8xf32>
    %cst_3 = arith.constant dense<0.000000e+00> : vector<1x8xf32>
    %8 = vector.multi_reduction <add>, %7, %cst_3 [1] : vector<1x256x8xf32> to vector<1x8xf32>
    %9 = vector.shape_cast %8 : vector<1x8xf32> to vector<1x1x8xf32>
    %cst_4 = arith.constant 2.560000e+02 : f32
    %10 = vector.broadcast %cst_4 : f32 to vector<1x1x8xf32>
    %11 = arith.divf %9, %10 : vector<1x1x8xf32>
    %cst_5 = arith.constant 9.99999974E-6 : f32
    %12 = vector.broadcast %cst_5 : f32 to vector<1x1x8xf32>
    %13 = arith.addf %11, %12 : vector<1x1x8xf32>
    %14 = math.rsqrt %13 : vector<1x1x8xf32>
    %15 = vector.broadcast %14 : vector<1x1x8xf32> to vector<1x256x8xf32>
    %16 = arith.mulf %6, %15 : vector<1x256x8xf32>
    %cst_6 = arith.constant 0.000000e+00 : f32
    %17 = vector.broadcast %cst_6 : f32 to vector<1x256x8xf32>
    %18 = arith.maximumf %16, %17 : vector<1x256x8xf32>
    %c0_7 = arith.constant 0 : index
    %c0_8 = arith.constant 0 : index
    %c0_9 = arith.constant 0 : index
    %19 = vector.load %arg2[%c0_7, %c0_8, %c0_9] : memref<1x256x8xf32, #tpu.memory_space<vmem>>, vector<1x256x8xf32>
    tpu.vector_store %arg2[%c0_7, %c0_8, %c0_9], %18 {strides = array<i32>} : memref<1x256x8xf32, #tpu.memory_space<vmem>>, vector<1x256x8xf32>,
    return
  }
  func.func @transform_0(%arg0: i32) -> (i32, i32, i32) {
    %c0_i32 = arith.constant 0 : i32
    %c0_i32_0 = arith.constant 0 : i32
    %c0_i32_1 = arith.constant 0 : i32
    return %arg0, %c0_i32, %c0_i32_0 : i32, i32, i32
  }
  func.func @transform_1(%arg0: i32) -> (i32, i32, i32) {
    %c0_i32 = arith.constant 0 : i32
    %c0_i32_0 = arith.constant 0 : i32
    %c0_i32_1 = arith.constant 0 : i32
    return %arg0, %c0_i32, %c0_i32_0 : i32, i32, i32
  }
}

module attributes {stable_mosaic.version = 11 : i64} {
  func.func @_mm_kernel(%arg0: i32, %arg1: i32, %arg2: i32, %arg3: memref<128x72xbf16, #tpu.memory_space<vmem>>, %arg4: memref<72x128xbf16, #tpu.memory_space<vmem>>, %arg5: memref<128x128xf32, #tpu.memory_space<vmem>>, %arg6: memref<128x128xf32, #tpu.memory_space<vmem>>) attributes {dimension_semantics = [#tpu.dimension_semantics<parallel>, #tpu.dimension_semantics<parallel>, #tpu.dimension_semantics<arbitrary>], iteration_bounds = array<i64: 1, 1, 1>, scalar_prefetch = 0 : i64, scratch_operands = 1 : i64, tpu.core_type = #tpu.core_type<tc>, window_params = [{transform_indices = @transform_0, window_bounds = array<i64: 128, 72>}, {transform_indices = @transform_1, window_bounds = array<i64: 72, 128>}, {transform_indices = @transform_2, window_bounds = array<i64: 128, 128>}]} {
    %c0_i32 = arith.constant 0 : i32
    %0 = arith.cmpi eq, %arg2, %c0_i32 : i32
    %1 = arith.extui %0 : i1 to i32
    %c0_i32_0 = arith.constant 0 : i32
    %2 = arith.cmpi ne, %1, %c0_i32_0 : i32
    scf.if %2 {
      %cst_10 = arith.constant 0.000000e+00 : f32
      %12 = vector.broadcast %cst_10 : f32 to vector<128x128xf32>
      %c0_11 = arith.constant 0 : index
      %c0_12 = arith.constant 0 : index
      %13 = vector.load %arg6[%c0_11, %c0_12] : memref<128x128xf32, #tpu.memory_space<vmem>>, vector<128x128xf32>
      tpu.vector_store %arg6[%c0_11, %c0_12], %12 {strides = array<i32>} : memref<128x128xf32, #tpu.memory_space<vmem>>, vector<128x128xf32>,
    } else {
    }
    %c0 = arith.constant 0 : index
    %c0_1 = arith.constant 0 : index
    %3 = vector.load %arg6[%c0, %c0_1] : memref<128x128xf32, #tpu.memory_space<vmem>>, vector<128x128xf32>
    %c0_2 = arith.constant 0 : index
    %c0_3 = arith.constant 0 : index
    %4 = vector.load %arg3[%c0_2, %c0_3] : memref<128x72xbf16, #tpu.memory_space<vmem>>, vector<128x72xbf16>
    %c0_4 = arith.constant 0 : index
    %c0_5 = arith.constant 0 : index
    %5 = vector.load %arg4[%c0_4, %c0_5] : memref<72x128xbf16, #tpu.memory_space<vmem>>, vector<72x128xbf16>
    %cst = arith.constant dense<0.000000e+00> : vector<128x128xf32>
    %6 = tpu.matmul %4, %5, %cst {dimension_numbers = #tpu.dot_dimension_numbers<[1], [0], [0], [1], [0, 0, 1, 1], [], []>} : vector<128x72xbf16>, vector<72x128xbf16>, vector<128x128xf32> -> vector<128x128xf32>
    %7 = arith.addf %3, %6 : vector<128x128xf32>
    %c0_6 = arith.constant 0 : index
    %c0_7 = arith.constant 0 : index
    %8 = vector.load %arg6[%c0_6, %c0_7] : memref<128x128xf32, #tpu.memory_space<vmem>>, vector<128x128xf32>
    tpu.vector_store %arg6[%c0_6, %c0_7], %7 {strides = array<i32>} : memref<128x128xf32, #tpu.memory_space<vmem>>, vector<128x128xf32>,
    %c0_i32_8 = arith.constant 0 : i32
    %9 = arith.cmpi eq, %arg2, %c0_i32_8 : i32
    %10 = arith.extui %9 : i1 to i32
    %c0_i32_9 = arith.constant 0 : i32
    %11 = arith.cmpi ne, %10, %c0_i32_9 : i32
    scf.if %11 {
      %c0_10 = arith.constant 0 : index
      %c0_11 = arith.constant 0 : index
      %12 = vector.load %arg6[%c0_10, %c0_11] : memref<128x128xf32, #tpu.memory_space<vmem>>, vector<128x128xf32>
      %c0_12 = arith.constant 0 : index
      %c0_13 = arith.constant 0 : index
      %13 = vector.load %arg5[%c0_12, %c0_13] : memref<128x128xf32, #tpu.memory_space<vmem>>, vector<128x128xf32>
      tpu.vector_store %arg5[%c0_12, %c0_13], %12 {strides = array<i32>} : memref<128x128xf32, #tpu.memory_space<vmem>>, vector<128x128xf32>,
    } else {
    }
    return
  }
  func.func @transform_0(%arg0: i32, %arg1: i32, %arg2: i32) -> (i32, i32) {
    %c0_i32 = arith.constant 0 : i32
    return %arg0, %arg2 : i32, i32
  }
  func.func @transform_1(%arg0: i32, %arg1: i32, %arg2: i32) -> (i32, i32) {
    %c0_i32 = arith.constant 0 : i32
    return %arg2, %arg1 : i32, i32
  }
  func.func @transform_2(%arg0: i32, %arg1: i32, %arg2: i32) -> (i32, i32) {
    %c0_i32 = arith.constant 0 : i32
    return %arg0, %arg1 : i32, i32
  }
}

module attributes {stable_mosaic.version = 11 : i64} {
  func.func @_in_fused_kernel(%arg0: i32, %arg1: memref<1x64x16xf32, #tpu.memory_space<vmem>>, %arg2: memref<1x64x16xf32, #tpu.memory_space<vmem>>) attributes {dimension_semantics = [#tpu.dimension_semantics<parallel>], iteration_bounds = array<i64: 2>, scalar_prefetch = 0 : i64, scratch_operands = 0 : i64, tpu.core_type = #tpu.core_type<tc>, window_params = [{transform_indices = @transform_0, window_bounds = array<i64: 1, 64, 16>}, {transform_indices = @transform_1, window_bounds = array<i64: 1, 64, 16>}]} {
    %c0 = arith.constant 0 : index
    %c0_0 = arith.constant 0 : index
    %c0_1 = arith.constant 0 : index
    %0 = vector.load %arg1[%c0, %c0_0, %c0_1] : memref<1x64x16xf32, #tpu.memory_space<vmem>>, vector<1x64x16xf32>
    %cst = arith.constant dense<0.000000e+00> : vector<1x16xf32>
    %1 = vector.multi_reduction <add>, %0, %cst [1] : vector<1x64x16xf32> to vector<1x16xf32>
    %2 = vector.shape_cast %1 : vector<1x16xf32> to vector<1x1x16xf32>
    %cst_2 = arith.constant 6.400000e+01 : f32
    %3 = vector.broadcast %cst_2 : f32 to vector<1x1x16xf32>
    %4 = arith.divf %2, %3 : vector<1x1x16xf32>
    %5 = vector.broadcast %4 : vector<1x1x16xf32> to vector<1x64x16xf32>
    %6 = arith.subf %0, %5 : vector<1x64x16xf32>
    %7 = arith.mulf %6, %6 : vector<1x64x16xf32>
    %cst_3 = arith.constant dense<0.000000e+00> : vector<1x16xf32>
    %8 = vector.multi_reduction <add>, %7, %cst_3 [1] : vector<1x64x16xf32> to vector<1x16xf32>
    %9 = vector.shape_cast %8 : vector<1x16xf32> to vector<1x1x16xf32>
    %cst_4 = arith.constant 6.400000e+01 : f32
    %10 = vector.broadcast %cst_4 : f32 to vector<1x1x16xf32>
    %11 = arith.divf %9, %10 : vector<1x1x16xf32>
    %cst_5 = arith.constant 9.99999974E-6 : f32
    %12 = vector.broadcast %cst_5 : f32 to vector<1x1x16xf32>
    %13 = arith.addf %11, %12 : vector<1x1x16xf32>
    %14 = math.rsqrt %13 : vector<1x1x16xf32>
    %15 = vector.broadcast %14 : vector<1x1x16xf32> to vector<1x64x16xf32>
    %16 = arith.mulf %6, %15 : vector<1x64x16xf32>
    %cst_6 = arith.constant 0.000000e+00 : f32
    %17 = vector.broadcast %cst_6 : f32 to vector<1x64x16xf32>
    %18 = arith.maximumf %16, %17 : vector<1x64x16xf32>
    %c0_7 = arith.constant 0 : index
    %c0_8 = arith.constant 0 : index
    %c0_9 = arith.constant 0 : index
    %19 = vector.load %arg2[%c0_7, %c0_8, %c0_9] : memref<1x64x16xf32, #tpu.memory_space<vmem>>, vector<1x64x16xf32>
    tpu.vector_store %arg2[%c0_7, %c0_8, %c0_9], %18 {strides = array<i32>} : memref<1x64x16xf32, #tpu.memory_space<vmem>>, vector<1x64x16xf32>,
    return
  }
  func.func @transform_0(%arg0: i32) -> (i32, i32, i32) {
    %c0_i32 = arith.constant 0 : i32
    %c0_i32_0 = arith.constant 0 : i32
    %c0_i32_1 = arith.constant 0 : i32
    return %arg0, %c0_i32, %c0_i32_0 : i32, i32, i32
  }
  func.func @transform_1(%arg0: i32) -> (i32, i32, i32) {
    %c0_i32 = arith.constant 0 : i32
    %c0_i32_0 = arith.constant 0 : i32
    %c0_i32_1 = arith.constant 0 : i32
    return %arg0, %c0_i32, %c0_i32_0 : i32, i32, i32
  }
}

module attributes {stable_mosaic.version = 11 : i64} {
  func.func @_mm_kernel(%arg0: i32, %arg1: i32, %arg2: i32, %arg3: memref<32x144xbf16, #tpu.memory_space<vmem>>, %arg4: memref<144x128xbf16, #tpu.memory_space<vmem>>, %arg5: memref<32x128xf32, #tpu.memory_space<vmem>>, %arg6: memref<32x128xf32, #tpu.memory_space<vmem>>) attributes {dimension_semantics = [#tpu.dimension_semantics<parallel>, #tpu.dimension_semantics<parallel>, #tpu.dimension_semantics<arbitrary>], iteration_bounds = array<i64: 1, 1, 1>, scalar_prefetch = 0 : i64, scratch_operands = 1 : i64, tpu.core_type = #tpu.core_type<tc>, window_params = [{transform_indices = @transform_0, window_bounds = array<i64: 32, 144>}, {transform_indices = @transform_1, window_bounds = array<i64: 144, 128>}, {transform_indices = @transform_2, window_bounds = array<i64: 32, 128>}]} {
    %c0_i32 = arith.constant 0 : i32
    %0 = arith.cmpi eq, %arg2, %c0_i32 : i32
    %1 = arith.extui %0 : i1 to i32
    %c0_i32_0 = arith.constant 0 : i32
    %2 = arith.cmpi ne, %1, %c0_i32_0 : i32
    scf.if %2 {
      %cst_10 = arith.constant 0.000000e+00 : f32
      %12 = vector.broadcast %cst_10 : f32 to vector<32x128xf32>
      %c0_11 = arith.constant 0 : index
      %c0_12 = arith.constant 0 : index
      %13 = vector.load %arg6[%c0_11, %c0_12] : memref<32x128xf32, #tpu.memory_space<vmem>>, vector<32x128xf32>
      tpu.vector_store %arg6[%c0_11, %c0_12], %12 {strides = array<i32>} : memref<32x128xf32, #tpu.memory_space<vmem>>, vector<32x128xf32>,
    } else {
    }
    %c0 = arith.constant 0 : index
    %c0_1 = arith.constant 0 : index
    %3 = vector.load %arg6[%c0, %c0_1] : memref<32x128xf32, #tpu.memory_space<vmem>>, vector<32x128xf32>
    %c0_2 = arith.constant 0 : index
    %c0_3 = arith.constant 0 : index
    %4 = vector.load %arg3[%c0_2, %c0_3] : memref<32x144xbf16, #tpu.memory_space<vmem>>, vector<32x144xbf16>
    %c0_4 = arith.constant 0 : index
    %c0_5 = arith.constant 0 : index
    %5 = vector.load %arg4[%c0_4, %c0_5] : memref<144x128xbf16, #tpu.memory_space<vmem>>, vector<144x128xbf16>
    %cst = arith.constant dense<0.000000e+00> : vector<32x128xf32>
    %6 = tpu.matmul %4, %5, %cst {dimension_numbers = #tpu.dot_dimension_numbers<[1], [0], [0], [1], [0, 0, 1, 1], [], []>} : vector<32x144xbf16>, vector<144x128xbf16>, vector<32x128xf32> -> vector<32x128xf32>
    %7 = arith.addf %3, %6 : vector<32x128xf32>
    %c0_6 = arith.constant 0 : index
    %c0_7 = arith.constant 0 : index
    %8 = vector.load %arg6[%c0_6, %c0_7] : memref<32x128xf32, #tpu.memory_space<vmem>>, vector<32x128xf32>
    tpu.vector_store %arg6[%c0_6, %c0_7], %7 {strides = array<i32>} : memref<32x128xf32, #tpu.memory_space<vmem>>, vector<32x128xf32>,
    %c0_i32_8 = arith.constant 0 : i32
    %9 = arith.cmpi eq, %arg2, %c0_i32_8 : i32
    %10 = arith.extui %9 : i1 to i32
    %c0_i32_9 = arith.constant 0 : i32
    %11 = arith.cmpi ne, %10, %c0_i32_9 : i32
    scf.if %11 {
      %c0_10 = arith.constant 0 : index
      %c0_11 = arith.constant 0 : index
      %12 = vector.load %arg6[%c0_10, %c0_11] : memref<32x128xf32, #tpu.memory_space<vmem>>, vector<32x128xf32>
      %c0_12 = arith.constant 0 : index
      %c0_13 = arith.constant 0 : index
      %13 = vector.load %arg5[%c0_12, %c0_13] : memref<32x128xf32, #tpu.memory_space<vmem>>, vector<32x128xf32>
      tpu.vector_store %arg5[%c0_12, %c0_13], %12 {strides = array<i32>} : memref<32x128xf32, #tpu.memory_space<vmem>>, vector<32x128xf32>,
    } else {
    }
    return
  }
  func.func @transform_0(%arg0: i32, %arg1: i32, %arg2: i32) -> (i32, i32) {
    %c0_i32 = arith.constant 0 : i32
    return %arg0, %arg2 : i32, i32
  }
  func.func @transform_1(%arg0: i32, %arg1: i32, %arg2: i32) -> (i32, i32) {
    %c0_i32 = arith.constant 0 : i32
    return %arg2, %arg1 : i32, i32
  }
  func.func @transform_2(%arg0: i32, %arg1: i32, %arg2: i32) -> (i32, i32) {
    %c0_i32 = arith.constant 0 : i32
    return %arg0, %arg1 : i32, i32
  }
}

module attributes {stable_mosaic.version = 11 : i64} {
  func.func @_in_fused_kernel(%arg0: i32, %arg1: memref<1x16x32xf32, #tpu.memory_space<vmem>>, %arg2: memref<1x16x32xf32, #tpu.memory_space<vmem>>) attributes {dimension_semantics = [#tpu.dimension_semantics<parallel>], iteration_bounds = array<i64: 2>, scalar_prefetch = 0 : i64, scratch_operands = 0 : i64, tpu.core_type = #tpu.core_type<tc>, window_params = [{transform_indices = @transform_0, window_bounds = array<i64: 1, 16, 32>}, {transform_indices = @transform_1, window_bounds = array<i64: 1, 16, 32>}]} {
    %c0 = arith.constant 0 : index
    %c0_0 = arith.constant 0 : index
    %c0_1 = arith.constant 0 : index
    %0 = vector.load %arg1[%c0, %c0_0, %c0_1] : memref<1x16x32xf32, #tpu.memory_space<vmem>>, vector<1x16x32xf32>
    %cst = arith.constant dense<0.000000e+00> : vector<1x32xf32>
    %1 = vector.multi_reduction <add>, %0, %cst [1] : vector<1x16x32xf32> to vector<1x32xf32>
    %2 = vector.shape_cast %1 : vector<1x32xf32> to vector<1x1x32xf32>
    %cst_2 = arith.constant 1.600000e+01 : f32
    %3 = vector.broadcast %cst_2 : f32 to vector<1x1x32xf32>
    %4 = arith.divf %2, %3 : vector<1x1x32xf32>
    %5 = vector.broadcast %4 : vector<1x1x32xf32> to vector<1x16x32xf32>
    %6 = arith.subf %0, %5 : vector<1x16x32xf32>
    %7 = arith.mulf %6, %6 : vector<1x16x32xf32>
    %cst_3 = arith.constant dense<0.000000e+00> : vector<1x32xf32>
    %8 = vector.multi_reduction <add>, %7, %cst_3 [1] : vector<1x16x32xf32> to vector<1x32xf32>
    %9 = vector.shape_cast %8 : vector<1x32xf32> to vector<1x1x32xf32>
    %cst_4 = arith.constant 1.600000e+01 : f32
    %10 = vector.broadcast %cst_4 : f32 to vector<1x1x32xf32>
    %11 = arith.divf %9, %10 : vector<1x1x32xf32>
    %cst_5 = arith.constant 9.99999974E-6 : f32
    %12 = vector.broadcast %cst_5 : f32 to vector<1x1x32xf32>
    %13 = arith.addf %11, %12 : vector<1x1x32xf32>
    %14 = math.rsqrt %13 : vector<1x1x32xf32>
    %15 = vector.broadcast %14 : vector<1x1x32xf32> to vector<1x16x32xf32>
    %16 = arith.mulf %6, %15 : vector<1x16x32xf32>
    %cst_6 = arith.constant 0.000000e+00 : f32
    %17 = vector.broadcast %cst_6 : f32 to vector<1x16x32xf32>
    %18 = arith.maximumf %16, %17 : vector<1x16x32xf32>
    %c0_7 = arith.constant 0 : index
    %c0_8 = arith.constant 0 : index
    %c0_9 = arith.constant 0 : index
    %19 = vector.load %arg2[%c0_7, %c0_8, %c0_9] : memref<1x16x32xf32, #tpu.memory_space<vmem>>, vector<1x16x32xf32>
    tpu.vector_store %arg2[%c0_7, %c0_8, %c0_9], %18 {strides = array<i32>} : memref<1x16x32xf32, #tpu.memory_space<vmem>>, vector<1x16x32xf32>,
    return
  }
  func.func @transform_0(%arg0: i32) -> (i32, i32, i32) {
    %c0_i32 = arith.constant 0 : i32
    %c0_i32_0 = arith.constant 0 : i32
    %c0_i32_1 = arith.constant 0 : i32
    return %arg0, %c0_i32, %c0_i32_0 : i32, i32, i32
  }
  func.func @transform_1(%arg0: i32) -> (i32, i32, i32) {
    %c0_i32 = arith.constant 0 : i32
    %c0_i32_0 = arith.constant 0 : i32
    %c0_i32_1 = arith.constant 0 : i32
    return %arg0, %c0_i32, %c0_i32_0 : i32, i32, i32
  }
}

module attributes {stable_mosaic.version = 11 : i64} {
  func.func @_mm_kernel(%arg0: i32, %arg1: i32, %arg2: i32, %arg3: memref<32x288xbf16, #tpu.memory_space<vmem>>, %arg4: memref<288x128xbf16, #tpu.memory_space<vmem>>, %arg5: memref<32x128xf32, #tpu.memory_space<vmem>>, %arg6: memref<32x128xf32, #tpu.memory_space<vmem>>) attributes {dimension_semantics = [#tpu.dimension_semantics<parallel>, #tpu.dimension_semantics<parallel>, #tpu.dimension_semantics<arbitrary>], iteration_bounds = array<i64: 1, 1, 1>, scalar_prefetch = 0 : i64, scratch_operands = 1 : i64, tpu.core_type = #tpu.core_type<tc>, window_params = [{transform_indices = @transform_0, window_bounds = array<i64: 32, 288>}, {transform_indices = @transform_1, window_bounds = array<i64: 288, 128>}, {transform_indices = @transform_2, window_bounds = array<i64: 32, 128>}]} {
    %c0_i32 = arith.constant 0 : i32
    %0 = arith.cmpi eq, %arg2, %c0_i32 : i32
    %1 = arith.extui %0 : i1 to i32
    %c0_i32_0 = arith.constant 0 : i32
    %2 = arith.cmpi ne, %1, %c0_i32_0 : i32
    scf.if %2 {
      %cst_10 = arith.constant 0.000000e+00 : f32
      %12 = vector.broadcast %cst_10 : f32 to vector<32x128xf32>
      %c0_11 = arith.constant 0 : index
      %c0_12 = arith.constant 0 : index
      %13 = vector.load %arg6[%c0_11, %c0_12] : memref<32x128xf32, #tpu.memory_space<vmem>>, vector<32x128xf32>
      tpu.vector_store %arg6[%c0_11, %c0_12], %12 {strides = array<i32>} : memref<32x128xf32, #tpu.memory_space<vmem>>, vector<32x128xf32>,
    } else {
    }
    %c0 = arith.constant 0 : index
    %c0_1 = arith.constant 0 : index
    %3 = vector.load %arg6[%c0, %c0_1] : memref<32x128xf32, #tpu.memory_space<vmem>>, vector<32x128xf32>
    %c0_2 = arith.constant 0 : index
    %c0_3 = arith.constant 0 : index
    %4 = vector.load %arg3[%c0_2, %c0_3] : memref<32x288xbf16, #tpu.memory_space<vmem>>, vector<32x288xbf16>
    %c0_4 = arith.constant 0 : index
    %c0_5 = arith.constant 0 : index
    %5 = vector.load %arg4[%c0_4, %c0_5] : memref<288x128xbf16, #tpu.memory_space<vmem>>, vector<288x128xbf16>
    %cst = arith.constant dense<0.000000e+00> : vector<32x128xf32>
    %6 = tpu.matmul %4, %5, %cst {dimension_numbers = #tpu.dot_dimension_numbers<[1], [0], [0], [1], [0, 0, 1, 1], [], []>} : vector<32x288xbf16>, vector<288x128xbf16>, vector<32x128xf32> -> vector<32x128xf32>
    %7 = arith.addf %3, %6 : vector<32x128xf32>
    %c0_6 = arith.constant 0 : index
    %c0_7 = arith.constant 0 : index
    %8 = vector.load %arg6[%c0_6, %c0_7] : memref<32x128xf32, #tpu.memory_space<vmem>>, vector<32x128xf32>
    tpu.vector_store %arg6[%c0_6, %c0_7], %7 {strides = array<i32>} : memref<32x128xf32, #tpu.memory_space<vmem>>, vector<32x128xf32>,
    %c0_i32_8 = arith.constant 0 : i32
    %9 = arith.cmpi eq, %arg2, %c0_i32_8 : i32
    %10 = arith.extui %9 : i1 to i32
    %c0_i32_9 = arith.constant 0 : i32
    %11 = arith.cmpi ne, %10, %c0_i32_9 : i32
    scf.if %11 {
      %c0_10 = arith.constant 0 : index
      %c0_11 = arith.constant 0 : index
      %12 = vector.load %arg6[%c0_10, %c0_11] : memref<32x128xf32, #tpu.memory_space<vmem>>, vector<32x128xf32>
      %c0_12 = arith.constant 0 : index
      %c0_13 = arith.constant 0 : index
      %13 = vector.load %arg5[%c0_12, %c0_13] : memref<32x128xf32, #tpu.memory_space<vmem>>, vector<32x128xf32>
      tpu.vector_store %arg5[%c0_12, %c0_13], %12 {strides = array<i32>} : memref<32x128xf32, #tpu.memory_space<vmem>>, vector<32x128xf32>,
    } else {
    }
    return
  }
  func.func @transform_0(%arg0: i32, %arg1: i32, %arg2: i32) -> (i32, i32) {
    %c0_i32 = arith.constant 0 : i32
    return %arg0, %arg2 : i32, i32
  }
  func.func @transform_1(%arg0: i32, %arg1: i32, %arg2: i32) -> (i32, i32) {
    %c0_i32 = arith.constant 0 : i32
    return %arg2, %arg1 : i32, i32
  }
  func.func @transform_2(%arg0: i32, %arg1: i32, %arg2: i32) -> (i32, i32) {
    %c0_i32 = arith.constant 0 : i32
    return %arg0, %arg1 : i32, i32
  }
}

module attributes {stable_mosaic.version = 11 : i64} {
  func.func @_in_fused_kernel(%arg0: i32, %arg1: memref<1x16x32xf32, #tpu.memory_space<vmem>>, %arg2: memref<1x16x32xf32, #tpu.memory_space<vmem>>, %arg3: memref<1x16x32xf32, #tpu.memory_space<vmem>>) attributes {dimension_semantics = [#tpu.dimension_semantics<parallel>], iteration_bounds = array<i64: 2>, scalar_prefetch = 0 : i64, scratch_operands = 0 : i64, tpu.core_type = #tpu.core_type<tc>, window_params = [{transform_indices = @transform_0, window_bounds = array<i64: 1, 16, 32>}, {transform_indices = @transform_1, window_bounds = array<i64: 1, 16, 32>}, {transform_indices = @transform_2, window_bounds = array<i64: 1, 16, 32>}]} {
    %c0 = arith.constant 0 : index
    %c0_0 = arith.constant 0 : index
    %c0_1 = arith.constant 0 : index
    %0 = vector.load %arg1[%c0, %c0_0, %c0_1] : memref<1x16x32xf32, #tpu.memory_space<vmem>>, vector<1x16x32xf32>
    %cst = arith.constant dense<0.000000e+00> : vector<1x32xf32>
    %1 = vector.multi_reduction <add>, %0, %cst [1] : vector<1x16x32xf32> to vector<1x32xf32>
    %2 = vector.shape_cast %1 : vector<1x32xf32> to vector<1x1x32xf32>
    %cst_2 = arith.constant 1.600000e+01 : f32
    %3 = vector.broadcast %cst_2 : f32 to vector<1x1x32xf32>
    %4 = arith.divf %2, %3 : vector<1x1x32xf32>
    %5 = vector.broadcast %4 : vector<1x1x32xf32> to vector<1x16x32xf32>
    %6 = arith.subf %0, %5 : vector<1x16x32xf32>
    %7 = arith.mulf %6, %6 : vector<1x16x32xf32>
    %cst_3 = arith.constant dense<0.000000e+00> : vector<1x32xf32>
    %8 = vector.multi_reduction <add>, %7, %cst_3 [1] : vector<1x16x32xf32> to vector<1x32xf32>
    %9 = vector.shape_cast %8 : vector<1x32xf32> to vector<1x1x32xf32>
    %cst_4 = arith.constant 1.600000e+01 : f32
    %10 = vector.broadcast %cst_4 : f32 to vector<1x1x32xf32>
    %11 = arith.divf %9, %10 : vector<1x1x32xf32>
    %cst_5 = arith.constant 9.99999974E-6 : f32
    %12 = vector.broadcast %cst_5 : f32 to vector<1x1x32xf32>
    %13 = arith.addf %11, %12 : vector<1x1x32xf32>
    %14 = math.rsqrt %13 : vector<1x1x32xf32>
    %15 = vector.broadcast %14 : vector<1x1x32xf32> to vector<1x16x32xf32>
    %16 = arith.mulf %6, %15 : vector<1x16x32xf32>
    %c0_6 = arith.constant 0 : index
    %c0_7 = arith.constant 0 : index
    %c0_8 = arith.constant 0 : index
    %17 = vector.load %arg2[%c0_6, %c0_7, %c0_8] : memref<1x16x32xf32, #tpu.memory_space<vmem>>, vector<1x16x32xf32>
    %18 = arith.addf %16, %17 : vector<1x16x32xf32>
    %c0_9 = arith.constant 0 : index
    %c0_10 = arith.constant 0 : index
    %c0_11 = arith.constant 0 : index
    %19 = vector.load %arg3[%c0_9, %c0_10, %c0_11] : memref<1x16x32xf32, #tpu.memory_space<vmem>>, vector<1x16x32xf32>
    tpu.vector_store %arg3[%c0_9, %c0_10, %c0_11], %18 {strides = array<i32>} : memref<1x16x32xf32, #tpu.memory_space<vmem>>, vector<1x16x32xf32>,
    return
  }
  func.func @transform_0(%arg0: i32) -> (i32, i32, i32) {
    %c0_i32 = arith.constant 0 : i32
    %c0_i32_0 = arith.constant 0 : i32
    %c0_i32_1 = arith.constant 0 : i32
    return %arg0, %c0_i32, %c0_i32_0 : i32, i32, i32
  }
  func.func @transform_1(%arg0: i32) -> (i32, i32, i32) {
    %c0_i32 = arith.constant 0 : i32
    %c0_i32_0 = arith.constant 0 : i32
    %c0_i32_1 = arith.constant 0 : i32
    return %arg0, %c0_i32, %c0_i32_0 : i32, i32, i32
  }
  func.func @transform_2(%arg0: i32) -> (i32, i32, i32) {
    %c0_i32 = arith.constant 0 : i32
    %c0_i32_0 = arith.constant 0 : i32
    %c0_i32_1 = arith.constant 0 : i32
    return %arg0, %c0_i32, %c0_i32_0 : i32, i32, i32
  }
}

module attributes {stable_mosaic.version = 11 : i64} {
  func.func @_mm_kernel(%arg0: i32, %arg1: i32, %arg2: i32, %arg3: memref<32x128xbf16, #tpu.memory_space<vmem>>, %arg4: memref<128x128xbf16, #tpu.memory_space<vmem>>, %arg5: memref<32x128xf32, #tpu.memory_space<vmem>>, %arg6: memref<32x128xf32, #tpu.memory_space<vmem>>) attributes {dimension_semantics = [#tpu.dimension_semantics<parallel>, #tpu.dimension_semantics<parallel>, #tpu.dimension_semantics<arbitrary>], iteration_bounds = array<i64: 1, 1, 1>, scalar_prefetch = 0 : i64, scratch_operands = 1 : i64, tpu.core_type = #tpu.core_type<tc>, window_params = [{transform_indices = @transform_0, window_bounds = array<i64: 32, 128>}, {transform_indices = @transform_1, window_bounds = array<i64: 128, 128>}, {transform_indices = @transform_2, window_bounds = array<i64: 32, 128>}]} {
    %c0_i32 = arith.constant 0 : i32
    %0 = arith.cmpi eq, %arg2, %c0_i32 : i32
    %1 = arith.extui %0 : i1 to i32
    %c0_i32_0 = arith.constant 0 : i32
    %2 = arith.cmpi ne, %1, %c0_i32_0 : i32
    scf.if %2 {
      %cst_10 = arith.constant 0.000000e+00 : f32
      %12 = vector.broadcast %cst_10 : f32 to vector<32x128xf32>
      %c0_11 = arith.constant 0 : index
      %c0_12 = arith.constant 0 : index
      %13 = vector.load %arg6[%c0_11, %c0_12] : memref<32x128xf32, #tpu.memory_space<vmem>>, vector<32x128xf32>
      tpu.vector_store %arg6[%c0_11, %c0_12], %12 {strides = array<i32>} : memref<32x128xf32, #tpu.memory_space<vmem>>, vector<32x128xf32>,
    } else {
    }
    %c0 = arith.constant 0 : index
    %c0_1 = arith.constant 0 : index
    %3 = vector.load %arg6[%c0, %c0_1] : memref<32x128xf32, #tpu.memory_space<vmem>>, vector<32x128xf32>
    %c0_2 = arith.constant 0 : index
    %c0_3 = arith.constant 0 : index
    %4 = vector.load %arg3[%c0_2, %c0_3] : memref<32x128xbf16, #tpu.memory_space<vmem>>, vector<32x128xbf16>
    %c0_4 = arith.constant 0 : index
    %c0_5 = arith.constant 0 : index
    %5 = vector.load %arg4[%c0_4, %c0_5] : memref<128x128xbf16, #tpu.memory_space<vmem>>, vector<128x128xbf16>
    %cst = arith.constant dense<0.000000e+00> : vector<32x128xf32>
    %6 = tpu.matmul %4, %5, %cst {dimension_numbers = #tpu.dot_dimension_numbers<[1], [0], [0], [1], [0, 0, 1, 1], [], []>} : vector<32x128xbf16>, vector<128x128xbf16>, vector<32x128xf32> -> vector<32x128xf32>
    %7 = arith.addf %3, %6 : vector<32x128xf32>
    %c0_6 = arith.constant 0 : index
    %c0_7 = arith.constant 0 : index
    %8 = vector.load %arg6[%c0_6, %c0_7] : memref<32x128xf32, #tpu.memory_space<vmem>>, vector<32x128xf32>
    tpu.vector_store %arg6[%c0_6, %c0_7], %7 {strides = array<i32>} : memref<32x128xf32, #tpu.memory_space<vmem>>, vector<32x128xf32>,
    %c0_i32_8 = arith.constant 0 : i32
    %9 = arith.cmpi eq, %arg2, %c0_i32_8 : i32
    %10 = arith.extui %9 : i1 to i32
    %c0_i32_9 = arith.constant 0 : i32
    %11 = arith.cmpi ne, %10, %c0_i32_9 : i32
    scf.if %11 {
      %c0_10 = arith.constant 0 : index
      %c0_11 = arith.constant 0 : index
      %12 = vector.load %arg6[%c0_10, %c0_11] : memref<32x128xf32, #tpu.memory_space<vmem>>, vector<32x128xf32>
      %c0_12 = arith.constant 0 : index
      %c0_13 = arith.constant 0 : index
      %13 = vector.load %arg5[%c0_12, %c0_13] : memref<32x128xf32, #tpu.memory_space<vmem>>, vector<32x128xf32>
      tpu.vector_store %arg5[%c0_12, %c0_13], %12 {strides = array<i32>} : memref<32x128xf32, #tpu.memory_space<vmem>>, vector<32x128xf32>,
    } else {
    }
    return
  }
  func.func @transform_0(%arg0: i32, %arg1: i32, %arg2: i32) -> (i32, i32) {
    %c0_i32 = arith.constant 0 : i32
    return %arg0, %arg2 : i32, i32
  }
  func.func @transform_1(%arg0: i32, %arg1: i32, %arg2: i32) -> (i32, i32) {
    %c0_i32 = arith.constant 0 : i32
    return %arg2, %arg1 : i32, i32
  }
  func.func @transform_2(%arg0: i32, %arg1: i32, %arg2: i32) -> (i32, i32) {
    %c0_i32 = arith.constant 0 : i32
    return %arg0, %arg1 : i32, i32
  }
}

module attributes {stable_mosaic.version = 11 : i64} {
  func.func @_mm_kernel(%arg0: i32, %arg1: i32, %arg2: i32, %arg3: memref<128x64xbf16, #tpu.memory_space<vmem>>, %arg4: memref<64x128xbf16, #tpu.memory_space<vmem>>, %arg5: memref<128x128xf32, #tpu.memory_space<vmem>>, %arg6: memref<128x128xf32, #tpu.memory_space<vmem>>) attributes {dimension_semantics = [#tpu.dimension_semantics<parallel>, #tpu.dimension_semantics<parallel>, #tpu.dimension_semantics<arbitrary>], iteration_bounds = array<i64: 1, 1, 1>, scalar_prefetch = 0 : i64, scratch_operands = 1 : i64, tpu.core_type = #tpu.core_type<tc>, window_params = [{transform_indices = @transform_0, window_bounds = array<i64: 128, 64>}, {transform_indices = @transform_1, window_bounds = array<i64: 64, 128>}, {transform_indices = @transform_2, window_bounds = array<i64: 128, 128>}]} {
    %c0_i32 = arith.constant 0 : i32
    %0 = arith.cmpi eq, %arg2, %c0_i32 : i32
    %1 = arith.extui %0 : i1 to i32
    %c0_i32_0 = arith.constant 0 : i32
    %2 = arith.cmpi ne, %1, %c0_i32_0 : i32
    scf.if %2 {
      %cst_10 = arith.constant 0.000000e+00 : f32
      %12 = vector.broadcast %cst_10 : f32 to vector<128x128xf32>
      %c0_11 = arith.constant 0 : index
      %c0_12 = arith.constant 0 : index
      %13 = vector.load %arg6[%c0_11, %c0_12] : memref<128x128xf32, #tpu.memory_space<vmem>>, vector<128x128xf32>
      tpu.vector_store %arg6[%c0_11, %c0_12], %12 {strides = array<i32>} : memref<128x128xf32, #tpu.memory_space<vmem>>, vector<128x128xf32>,
    } else {
    }
    %c0 = arith.constant 0 : index
    %c0_1 = arith.constant 0 : index
    %3 = vector.load %arg6[%c0, %c0_1] : memref<128x128xf32, #tpu.memory_space<vmem>>, vector<128x128xf32>
    %c0_2 = arith.constant 0 : index
    %c0_3 = arith.constant 0 : index
    %4 = vector.load %arg3[%c0_2, %c0_3] : memref<128x64xbf16, #tpu.memory_space<vmem>>, vector<128x64xbf16>
    %c0_4 = arith.constant 0 : index
    %c0_5 = arith.constant 0 : index
    %5 = vector.load %arg4[%c0_4, %c0_5] : memref<64x128xbf16, #tpu.memory_space<vmem>>, vector<64x128xbf16>
    %cst = arith.constant dense<0.000000e+00> : vector<128x128xf32>
    %6 = tpu.matmul %4, %5, %cst {dimension_numbers = #tpu.dot_dimension_numbers<[1], [0], [0], [1], [0, 0, 1, 1], [], []>} : vector<128x64xbf16>, vector<64x128xbf16>, vector<128x128xf32> -> vector<128x128xf32>
    %7 = arith.addf %3, %6 : vector<128x128xf32>
    %c0_6 = arith.constant 0 : index
    %c0_7 = arith.constant 0 : index
    %8 = vector.load %arg6[%c0_6, %c0_7] : memref<128x128xf32, #tpu.memory_space<vmem>>, vector<128x128xf32>
    tpu.vector_store %arg6[%c0_6, %c0_7], %7 {strides = array<i32>} : memref<128x128xf32, #tpu.memory_space<vmem>>, vector<128x128xf32>,
    %c0_i32_8 = arith.constant 0 : i32
    %9 = arith.cmpi eq, %arg2, %c0_i32_8 : i32
    %10 = arith.extui %9 : i1 to i32
    %c0_i32_9 = arith.constant 0 : i32
    %11 = arith.cmpi ne, %10, %c0_i32_9 : i32
    scf.if %11 {
      %c0_10 = arith.constant 0 : index
      %c0_11 = arith.constant 0 : index
      %12 = vector.load %arg6[%c0_10, %c0_11] : memref<128x128xf32, #tpu.memory_space<vmem>>, vector<128x128xf32>
      %c0_12 = arith.constant 0 : index
      %c0_13 = arith.constant 0 : index
      %13 = vector.load %arg5[%c0_12, %c0_13] : memref<128x128xf32, #tpu.memory_space<vmem>>, vector<128x128xf32>
      tpu.vector_store %arg5[%c0_12, %c0_13], %12 {strides = array<i32>} : memref<128x128xf32, #tpu.memory_space<vmem>>, vector<128x128xf32>,
    } else {
    }
    return
  }
  func.func @transform_0(%arg0: i32, %arg1: i32, %arg2: i32) -> (i32, i32) {
    %c0_i32 = arith.constant 0 : i32
    return %arg0, %arg2 : i32, i32
  }
  func.func @transform_1(%arg0: i32, %arg1: i32, %arg2: i32) -> (i32, i32) {
    %c0_i32 = arith.constant 0 : i32
    return %arg2, %arg1 : i32, i32
  }
  func.func @transform_2(%arg0: i32, %arg1: i32, %arg2: i32) -> (i32, i32) {
    %c0_i32 = arith.constant 0 : i32
    return %arg0, %arg1 : i32, i32
  }
}

module attributes {stable_mosaic.version = 11 : i64} {
  func.func @_mm_kernel(%arg0: i32, %arg1: i32, %arg2: i32, %arg3: memref<256x147xbf16, #tpu.memory_space<vmem>>, %arg4: memref<147x128xbf16, #tpu.memory_space<vmem>>, %arg5: memref<256x128xf32, #tpu.memory_space<vmem>>, %arg6: memref<256x128xf32, #tpu.memory_space<vmem>>) attributes {dimension_semantics = [#tpu.dimension_semantics<parallel>, #tpu.dimension_semantics<parallel>, #tpu.dimension_semantics<arbitrary>], iteration_bounds = array<i64: 8, 1, 1>, scalar_prefetch = 0 : i64, scratch_operands = 1 : i64, tpu.core_type = #tpu.core_type<tc>, window_params = [{transform_indices = @transform_0, window_bounds = array<i64: 256, 147>}, {transform_indices = @transform_1, window_bounds = array<i64: 147, 128>}, {transform_indices = @transform_2, window_bounds = array<i64: 256, 128>}]} {
    %c0_i32 = arith.constant 0 : i32
    %0 = arith.cmpi eq, %arg2, %c0_i32 : i32
    %1 = arith.extui %0 : i1 to i32
    %c0_i32_0 = arith.constant 0 : i32
    %2 = arith.cmpi ne, %1, %c0_i32_0 : i32
    scf.if %2 {
      %cst_10 = arith.constant 0.000000e+00 : f32
      %12 = vector.broadcast %cst_10 : f32 to vector<256x128xf32>
      %c0_11 = arith.constant 0 : index
      %c0_12 = arith.constant 0 : index
      %13 = vector.load %arg6[%c0_11, %c0_12] : memref<256x128xf32, #tpu.memory_space<vmem>>, vector<256x128xf32>
      tpu.vector_store %arg6[%c0_11, %c0_12], %12 {strides = array<i32>} : memref<256x128xf32, #tpu.memory_space<vmem>>, vector<256x128xf32>,
    } else {
    }
    %c0 = arith.constant 0 : index
    %c0_1 = arith.constant 0 : index
    %3 = vector.load %arg6[%c0, %c0_1] : memref<256x128xf32, #tpu.memory_space<vmem>>, vector<256x128xf32>
    %c0_2 = arith.constant 0 : index
    %c0_3 = arith.constant 0 : index
    %4 = vector.load %arg3[%c0_2, %c0_3] : memref<256x147xbf16, #tpu.memory_space<vmem>>, vector<256x147xbf16>
    %c0_4 = arith.constant 0 : index
    %c0_5 = arith.constant 0 : index
    %5 = vector.load %arg4[%c0_4, %c0_5] : memref<147x128xbf16, #tpu.memory_space<vmem>>, vector<147x128xbf16>
    %cst = arith.constant dense<0.000000e+00> : vector<256x128xf32>
    %6 = tpu.matmul %4, %5, %cst {dimension_numbers = #tpu.dot_dimension_numbers<[1], [0], [0], [1], [0, 0, 1, 1], [], []>} : vector<256x147xbf16>, vector<147x128xbf16>, vector<256x128xf32> -> vector<256x128xf32>
    %7 = arith.addf %3, %6 : vector<256x128xf32>
    %c0_6 = arith.constant 0 : index
    %c0_7 = arith.constant 0 : index
    %8 = vector.load %arg6[%c0_6, %c0_7] : memref<256x128xf32, #tpu.memory_space<vmem>>, vector<256x128xf32>
    tpu.vector_store %arg6[%c0_6, %c0_7], %7 {strides = array<i32>} : memref<256x128xf32, #tpu.memory_space<vmem>>, vector<256x128xf32>,
    %c0_i32_8 = arith.constant 0 : i32
    %9 = arith.cmpi eq, %arg2, %c0_i32_8 : i32
    %10 = arith.extui %9 : i1 to i32
    %c0_i32_9 = arith.constant 0 : i32
    %11 = arith.cmpi ne, %10, %c0_i32_9 : i32
    scf.if %11 {
      %c0_10 = arith.constant 0 : index
      %c0_11 = arith.constant 0 : index
      %12 = vector.load %arg6[%c0_10, %c0_11] : memref<256x128xf32, #tpu.memory_space<vmem>>, vector<256x128xf32>
      %c0_12 = arith.constant 0 : index
      %c0_13 = arith.constant 0 : index
      %13 = vector.load %arg5[%c0_12, %c0_13] : memref<256x128xf32, #tpu.memory_space<vmem>>, vector<256x128xf32>
      tpu.vector_store %arg5[%c0_12, %c0_13], %12 {strides = array<i32>} : memref<256x128xf32, #tpu.memory_space<vmem>>, vector<256x128xf32>,
    } else {
    }
    return
  }
  func.func @transform_0(%arg0: i32, %arg1: i32, %arg2: i32) -> (i32, i32) {
    %c0_i32 = arith.constant 0 : i32
    return %arg0, %arg2 : i32, i32
  }
  func.func @transform_1(%arg0: i32, %arg1: i32, %arg2: i32) -> (i32, i32) {
    %c0_i32 = arith.constant 0 : i32
    return %arg2, %arg1 : i32, i32
  }
  func.func @transform_2(%arg0: i32, %arg1: i32, %arg2: i32) -> (i32, i32) {
    %c0_i32 = arith.constant 0 : i32
    return %arg0, %arg1 : i32, i32
  }
}

module attributes {stable_mosaic.version = 11 : i64} {
  func.func @_in_fused_kernel(%arg0: i32, %arg1: memref<1x1024x4xf32, #tpu.memory_space<vmem>>, %arg2: memref<1x1024x4xf32, #tpu.memory_space<vmem>>) attributes {dimension_semantics = [#tpu.dimension_semantics<parallel>], iteration_bounds = array<i64: 2>, scalar_prefetch = 0 : i64, scratch_operands = 0 : i64, tpu.core_type = #tpu.core_type<tc>, window_params = [{transform_indices = @transform_0, window_bounds = array<i64: 1, 1024, 4>}, {transform_indices = @transform_1, window_bounds = array<i64: 1, 1024, 4>}]} {
    %c0 = arith.constant 0 : index
    %c0_0 = arith.constant 0 : index
    %c0_1 = arith.constant 0 : index
    %0 = vector.load %arg1[%c0, %c0_0, %c0_1] : memref<1x1024x4xf32, #tpu.memory_space<vmem>>, vector<1x1024x4xf32>
    %cst = arith.constant dense<0.000000e+00> : vector<1x4xf32>
    %1 = vector.multi_reduction <add>, %0, %cst [1] : vector<1x1024x4xf32> to vector<1x4xf32>
    %2 = vector.shape_cast %1 : vector<1x4xf32> to vector<1x1x4xf32>
    %cst_2 = arith.constant 1.024000e+03 : f32
    %3 = vector.broadcast %cst_2 : f32 to vector<1x1x4xf32>
    %4 = arith.divf %2, %3 : vector<1x1x4xf32>
    %5 = vector.broadcast %4 : vector<1x1x4xf32> to vector<1x1024x4xf32>
    %6 = arith.subf %0, %5 : vector<1x1024x4xf32>
    %7 = arith.mulf %6, %6 : vector<1x1024x4xf32>
    %cst_3 = arith.constant dense<0.000000e+00> : vector<1x4xf32>
    %8 = vector.multi_reduction <add>, %7, %cst_3 [1] : vector<1x1024x4xf32> to vector<1x4xf32>
    %9 = vector.shape_cast %8 : vector<1x4xf32> to vector<1x1x4xf32>
    %cst_4 = arith.constant 1.024000e+03 : f32
    %10 = vector.broadcast %cst_4 : f32 to vector<1x1x4xf32>
    %11 = arith.divf %9, %10 : vector<1x1x4xf32>
    %cst_5 = arith.constant 9.99999974E-6 : f32
    %12 = vector.broadcast %cst_5 : f32 to vector<1x1x4xf32>
    %13 = arith.addf %11, %12 : vector<1x1x4xf32>
    %14 = math.rsqrt %13 : vector<1x1x4xf32>
    %15 = vector.broadcast %14 : vector<1x1x4xf32> to vector<1x1024x4xf32>
    %16 = arith.mulf %6, %15 : vector<1x1024x4xf32>
    %cst_6 = arith.constant 0.000000e+00 : f32
    %17 = vector.broadcast %cst_6 : f32 to vector<1x1024x4xf32>
    %18 = arith.maximumf %16, %17 : vector<1x1024x4xf32>
    %c0_7 = arith.constant 0 : index
    %c0_8 = arith.constant 0 : index
    %c0_9 = arith.constant 0 : index
    %19 = vector.load %arg2[%c0_7, %c0_8, %c0_9] : memref<1x1024x4xf32, #tpu.memory_space<vmem>>, vector<1x1024x4xf32>
    tpu.vector_store %arg2[%c0_7, %c0_8, %c0_9], %18 {strides = array<i32>} : memref<1x1024x4xf32, #tpu.memory_space<vmem>>, vector<1x1024x4xf32>,
    return
  }
  func.func @transform_0(%arg0: i32) -> (i32, i32, i32) {
    %c0_i32 = arith.constant 0 : i32
    %c0_i32_0 = arith.constant 0 : i32
    %c0_i32_1 = arith.constant 0 : i32
    return %arg0, %c0_i32, %c0_i32_0 : i32, i32, i32
  }
  func.func @transform_1(%arg0: i32) -> (i32, i32, i32) {
    %c0_i32 = arith.constant 0 : i32
    %c0_i32_0 = arith.constant 0 : i32
    %c0_i32_1 = arith.constant 0 : i32
    return %arg0, %c0_i32, %c0_i32_0 : i32, i32, i32
  }
}

module attributes {stable_mosaic.version = 11 : i64} {
  func.func @_mm_kernel(%arg0: i32, %arg1: i32, %arg2: i32, %arg3: memref<256x36xbf16, #tpu.memory_space<vmem>>, %arg4: memref<36x128xbf16, #tpu.memory_space<vmem>>, %arg5: memref<256x128xf32, #tpu.memory_space<vmem>>, %arg6: memref<256x128xf32, #tpu.memory_space<vmem>>) attributes {dimension_semantics = [#tpu.dimension_semantics<parallel>, #tpu.dimension_semantics<parallel>, #tpu.dimension_semantics<arbitrary>], iteration_bounds = array<i64: 2, 1, 1>, scalar_prefetch = 0 : i64, scratch_operands = 1 : i64, tpu.core_type = #tpu.core_type<tc>, window_params = [{transform_indices = @transform_0, window_bounds = array<i64: 256, 36>}, {transform_indices = @transform_1, window_bounds = array<i64: 36, 128>}, {transform_indices = @transform_2, window_bounds = array<i64: 256, 128>}]} {
    %c0_i32 = arith.constant 0 : i32
    %0 = arith.cmpi eq, %arg2, %c0_i32 : i32
    %1 = arith.extui %0 : i1 to i32
    %c0_i32_0 = arith.constant 0 : i32
    %2 = arith.cmpi ne, %1, %c0_i32_0 : i32
    scf.if %2 {
      %cst_10 = arith.constant 0.000000e+00 : f32
      %12 = vector.broadcast %cst_10 : f32 to vector<256x128xf32>
      %c0_11 = arith.constant 0 : index
      %c0_12 = arith.constant 0 : index
      %13 = vector.load %arg6[%c0_11, %c0_12] : memref<256x128xf32, #tpu.memory_space<vmem>>, vector<256x128xf32>
      tpu.vector_store %arg6[%c0_11, %c0_12], %12 {strides = array<i32>} : memref<256x128xf32, #tpu.memory_space<vmem>>, vector<256x128xf32>,
    } else {
    }
    %c0 = arith.constant 0 : index
    %c0_1 = arith.constant 0 : index
    %3 = vector.load %arg6[%c0, %c0_1] : memref<256x128xf32, #tpu.memory_space<vmem>>, vector<256x128xf32>
    %c0_2 = arith.constant 0 : index
    %c0_3 = arith.constant 0 : index
    %4 = vector.load %arg3[%c0_2, %c0_3] : memref<256x36xbf16, #tpu.memory_space<vmem>>, vector<256x36xbf16>
    %c0_4 = arith.constant 0 : index
    %c0_5 = arith.constant 0 : index
    %5 = vector.load %arg4[%c0_4, %c0_5] : memref<36x128xbf16, #tpu.memory_space<vmem>>, vector<36x128xbf16>
    %cst = arith.constant dense<0.000000e+00> : vector<256x128xf32>
    %6 = tpu.matmul %4, %5, %cst {dimension_numbers = #tpu.dot_dimension_numbers<[1], [0], [0], [1], [0, 0, 1, 1], [], []>} : vector<256x36xbf16>, vector<36x128xbf16>, vector<256x128xf32> -> vector<256x128xf32>
    %7 = arith.addf %3, %6 : vector<256x128xf32>
    %c0_6 = arith.constant 0 : index
    %c0_7 = arith.constant 0 : index
    %8 = vector.load %arg6[%c0_6, %c0_7] : memref<256x128xf32, #tpu.memory_space<vmem>>, vector<256x128xf32>
    tpu.vector_store %arg6[%c0_6, %c0_7], %7 {strides = array<i32>} : memref<256x128xf32, #tpu.memory_space<vmem>>, vector<256x128xf32>,
    %c0_i32_8 = arith.constant 0 : i32
    %9 = arith.cmpi eq, %arg2, %c0_i32_8 : i32
    %10 = arith.extui %9 : i1 to i32
    %c0_i32_9 = arith.constant 0 : i32
    %11 = arith.cmpi ne, %10, %c0_i32_9 : i32
    scf.if %11 {
      %c0_10 = arith.constant 0 : index
      %c0_11 = arith.constant 0 : index
      %12 = vector.load %arg6[%c0_10, %c0_11] : memref<256x128xf32, #tpu.memory_space<vmem>>, vector<256x128xf32>
      %c0_12 = arith.constant 0 : index
      %c0_13 = arith.constant 0 : index
      %13 = vector.load %arg5[%c0_12, %c0_13] : memref<256x128xf32, #tpu.memory_space<vmem>>, vector<256x128xf32>
      tpu.vector_store %arg5[%c0_12, %c0_13], %12 {strides = array<i32>} : memref<256x128xf32, #tpu.memory_space<vmem>>, vector<256x128xf32>,
    } else {
    }
    return
  }
  func.func @transform_0(%arg0: i32, %arg1: i32, %arg2: i32) -> (i32, i32) {
    %c0_i32 = arith.constant 0 : i32
    return %arg0, %arg2 : i32, i32
  }
  func.func @transform_1(%arg0: i32, %arg1: i32, %arg2: i32) -> (i32, i32) {
    %c0_i32 = arith.constant 0 : i32
    return %arg2, %arg1 : i32, i32
  }
  func.func @transform_2(%arg0: i32, %arg1: i32, %arg2: i32) -> (i32, i32) {
    %c0_i32 = arith.constant 0 : i32
    return %arg0, %arg1 : i32, i32
  }
}

module attributes {stable_mosaic.version = 11 : i64} {
  func.func @_in_fused_kernel(%arg0: i32, %arg1: memref<1x256x8xf32, #tpu.memory_space<vmem>>, %arg2: memref<1x256x8xf32, #tpu.memory_space<vmem>>, %arg3: memref<1x256x8xf32, #tpu.memory_space<vmem>>) attributes {dimension_semantics = [#tpu.dimension_semantics<parallel>], iteration_bounds = array<i64: 2>, scalar_prefetch = 0 : i64, scratch_operands = 0 : i64, tpu.core_type = #tpu.core_type<tc>, window_params = [{transform_indices = @transform_0, window_bounds = array<i64: 1, 256, 8>}, {transform_indices = @transform_1, window_bounds = array<i64: 1, 256, 8>}, {transform_indices = @transform_2, window_bounds = array<i64: 1, 256, 8>}]} {
    %c0 = arith.constant 0 : index
    %c0_0 = arith.constant 0 : index
    %c0_1 = arith.constant 0 : index
    %0 = vector.load %arg1[%c0, %c0_0, %c0_1] : memref<1x256x8xf32, #tpu.memory_space<vmem>>, vector<1x256x8xf32>
    %cst = arith.constant dense<0.000000e+00> : vector<1x8xf32>
    %1 = vector.multi_reduction <add>, %0, %cst [1] : vector<1x256x8xf32> to vector<1x8xf32>
    %2 = vector.shape_cast %1 : vector<1x8xf32> to vector<1x1x8xf32>
    %cst_2 = arith.constant 2.560000e+02 : f32
    %3 = vector.broadcast %cst_2 : f32 to vector<1x1x8xf32>
    %4 = arith.divf %2, %3 : vector<1x1x8xf32>
    %5 = vector.broadcast %4 : vector<1x1x8xf32> to vector<1x256x8xf32>
    %6 = arith.subf %0, %5 : vector<1x256x8xf32>
    %7 = arith.mulf %6, %6 : vector<1x256x8xf32>
    %cst_3 = arith.constant dense<0.000000e+00> : vector<1x8xf32>
    %8 = vector.multi_reduction <add>, %7, %cst_3 [1] : vector<1x256x8xf32> to vector<1x8xf32>
    %9 = vector.shape_cast %8 : vector<1x8xf32> to vector<1x1x8xf32>
    %cst_4 = arith.constant 2.560000e+02 : f32
    %10 = vector.broadcast %cst_4 : f32 to vector<1x1x8xf32>
    %11 = arith.divf %9, %10 : vector<1x1x8xf32>
    %cst_5 = arith.constant 9.99999974E-6 : f32
    %12 = vector.broadcast %cst_5 : f32 to vector<1x1x8xf32>
    %13 = arith.addf %11, %12 : vector<1x1x8xf32>
    %14 = math.rsqrt %13 : vector<1x1x8xf32>
    %15 = vector.broadcast %14 : vector<1x1x8xf32> to vector<1x256x8xf32>
    %16 = arith.mulf %6, %15 : vector<1x256x8xf32>
    %cst_6 = arith.constant 0.000000e+00 : f32
    %17 = vector.broadcast %cst_6 : f32 to vector<1x256x8xf32>
    %18 = arith.maximumf %16, %17 : vector<1x256x8xf32>
    %c0_7 = arith.constant 0 : index
    %c0_8 = arith.constant 0 : index
    %c0_9 = arith.constant 0 : index
    %19 = vector.load %arg2[%c0_7, %c0_8, %c0_9] : memref<1x256x8xf32, #tpu.memory_space<vmem>>, vector<1x256x8xf32>
    %20 = arith.addf %18, %19 : vector<1x256x8xf32>
    %c0_10 = arith.constant 0 : index
    %c0_11 = arith.constant 0 : index
    %c0_12 = arith.constant 0 : index
    %21 = vector.load %arg3[%c0_10, %c0_11, %c0_12] : memref<1x256x8xf32, #tpu.memory_space<vmem>>, vector<1x256x8xf32>
    tpu.vector_store %arg3[%c0_10, %c0_11, %c0_12], %20 {strides = array<i32>} : memref<1x256x8xf32, #tpu.memory_space<vmem>>, vector<1x256x8xf32>,
    return
  }
  func.func @transform_0(%arg0: i32) -> (i32, i32, i32) {
    %c0_i32 = arith.constant 0 : i32
    %c0_i32_0 = arith.constant 0 : i32
    %c0_i32_1 = arith.constant 0 : i32
    return %arg0, %c0_i32, %c0_i32_0 : i32, i32, i32
  }
  func.func @transform_1(%arg0: i32) -> (i32, i32, i32) {
    %c0_i32 = arith.constant 0 : i32
    %c0_i32_0 = arith.constant 0 : i32
    %c0_i32_1 = arith.constant 0 : i32
    return %arg0, %c0_i32, %c0_i32_0 : i32, i32, i32
  }
  func.func @transform_2(%arg0: i32) -> (i32, i32, i32) {
    %c0_i32 = arith.constant 0 : i32
    %c0_i32_0 = arith.constant 0 : i32
    %c0_i32_1 = arith.constant 0 : i32
    return %arg0, %c0_i32, %c0_i32_0 : i32, i32, i32
  }
}

module attributes {stable_mosaic.version = 11 : i64} {
  func.func @_mm_kernel(%arg0: i32, %arg1: i32, %arg2: i32, %arg3: memref<256x72xbf16, #tpu.memory_space<vmem>>, %arg4: memref<72x128xbf16, #tpu.memory_space<vmem>>, %arg5: memref<256x128xf32, #tpu.memory_space<vmem>>, %arg6: memref<256x128xf32, #tpu.memory_space<vmem>>) attributes {dimension_semantics = [#tpu.dimension_semantics<parallel>, #tpu.dimension_semantics<parallel>, #tpu.dimension_semantics<arbitrary>], iteration_bounds = array<i64: 2, 1, 1>, scalar_prefetch = 0 : i64, scratch_operands = 1 : i64, tpu.core_type = #tpu.core_type<tc>, window_params = [{transform_indices = @transform_0, window_bounds = array<i64: 256, 72>}, {transform_indices = @transform_1, window_bounds = array<i64: 72, 128>}, {transform_indices = @transform_2, window_bounds = array<i64: 256, 128>}]} {
    %c0_i32 = arith.constant 0 : i32
    %0 = arith.cmpi eq, %arg2, %c0_i32 : i32
    %1 = arith.extui %0 : i1 to i32
    %c0_i32_0 = arith.constant 0 : i32
    %2 = arith.cmpi ne, %1, %c0_i32_0 : i32
    scf.if %2 {
      %cst_10 = arith.constant 0.000000e+00 : f32
      %12 = vector.broadcast %cst_10 : f32 to vector<256x128xf32>
      %c0_11 = arith.constant 0 : index
      %c0_12 = arith.constant 0 : index
      %13 = vector.load %arg6[%c0_11, %c0_12] : memref<256x128xf32, #tpu.memory_space<vmem>>, vector<256x128xf32>
      tpu.vector_store %arg6[%c0_11, %c0_12], %12 {strides = array<i32>} : memref<256x128xf32, #tpu.memory_space<vmem>>, vector<256x128xf32>,
    } else {
    }
    %c0 = arith.constant 0 : index
    %c0_1 = arith.constant 0 : index
    %3 = vector.load %arg6[%c0, %c0_1] : memref<256x128xf32, #tpu.memory_space<vmem>>, vector<256x128xf32>
    %c0_2 = arith.constant 0 : index
    %c0_3 = arith.constant 0 : index
    %4 = vector.load %arg3[%c0_2, %c0_3] : memref<256x72xbf16, #tpu.memory_space<vmem>>, vector<256x72xbf16>
    %c0_4 = arith.constant 0 : index
    %c0_5 = arith.constant 0 : index
    %5 = vector.load %arg4[%c0_4, %c0_5] : memref<72x128xbf16, #tpu.memory_space<vmem>>, vector<72x128xbf16>
    %cst = arith.constant dense<0.000000e+00> : vector<256x128xf32>
    %6 = tpu.matmul %4, %5, %cst {dimension_numbers = #tpu.dot_dimension_numbers<[1], [0], [0], [1], [0, 0, 1, 1], [], []>} : vector<256x72xbf16>, vector<72x128xbf16>, vector<256x128xf32> -> vector<256x128xf32>
    %7 = arith.addf %3, %6 : vector<256x128xf32>
    %c0_6 = arith.constant 0 : index
    %c0_7 = arith.constant 0 : index
    %8 = vector.load %arg6[%c0_6, %c0_7] : memref<256x128xf32, #tpu.memory_space<vmem>>, vector<256x128xf32>
    tpu.vector_store %arg6[%c0_6, %c0_7], %7 {strides = array<i32>} : memref<256x128xf32, #tpu.memory_space<vmem>>, vector<256x128xf32>,
    %c0_i32_8 = arith.constant 0 : i32
    %9 = arith.cmpi eq, %arg2, %c0_i32_8 : i32
    %10 = arith.extui %9 : i1 to i32
    %c0_i32_9 = arith.constant 0 : i32
    %11 = arith.cmpi ne, %10, %c0_i32_9 : i32
    scf.if %11 {
      %c0_10 = arith.constant 0 : index
      %c0_11 = arith.constant 0 : index
      %12 = vector.load %arg6[%c0_10, %c0_11] : memref<256x128xf32, #tpu.memory_space<vmem>>, vector<256x128xf32>
      %c0_12 = arith.constant 0 : index
      %c0_13 = arith.constant 0 : index
      %13 = vector.load %arg5[%c0_12, %c0_13] : memref<256x128xf32, #tpu.memory_space<vmem>>, vector<256x128xf32>
      tpu.vector_store %arg5[%c0_12, %c0_13], %12 {strides = array<i32>} : memref<256x128xf32, #tpu.memory_space<vmem>>, vector<256x128xf32>,
    } else {
    }
    return
  }
  func.func @transform_0(%arg0: i32, %arg1: i32, %arg2: i32) -> (i32, i32) {
    %c0_i32 = arith.constant 0 : i32
    return %arg0, %arg2 : i32, i32
  }
  func.func @transform_1(%arg0: i32, %arg1: i32, %arg2: i32) -> (i32, i32) {
    %c0_i32 = arith.constant 0 : i32
    return %arg2, %arg1 : i32, i32
  }
  func.func @transform_2(%arg0: i32, %arg1: i32, %arg2: i32) -> (i32, i32) {
    %c0_i32 = arith.constant 0 : i32
    return %arg0, %arg1 : i32, i32
  }
}

module attributes {stable_mosaic.version = 11 : i64} {
  func.func @_in_fused_kernel(%arg0: i32, %arg1: memref<1x256x8xf32, #tpu.memory_space<vmem>>, %arg2: memref<1x256x8xf32, #tpu.memory_space<vmem>>, %arg3: memref<1x256x8xf32, #tpu.memory_space<vmem>>) attributes {dimension_semantics = [#tpu.dimension_semantics<parallel>], iteration_bounds = array<i64: 2>, scalar_prefetch = 0 : i64, scratch_operands = 0 : i64, tpu.core_type = #tpu.core_type<tc>, window_params = [{transform_indices = @transform_0, window_bounds = array<i64: 1, 256, 8>}, {transform_indices = @transform_1, window_bounds = array<i64: 1, 256, 8>}, {transform_indices = @transform_2, window_bounds = array<i64: 1, 256, 8>}]} {
    %c0 = arith.constant 0 : index
    %c0_0 = arith.constant 0 : index
    %c0_1 = arith.constant 0 : index
    %0 = vector.load %arg1[%c0, %c0_0, %c0_1] : memref<1x256x8xf32, #tpu.memory_space<vmem>>, vector<1x256x8xf32>
    %cst = arith.constant dense<0.000000e+00> : vector<1x8xf32>
    %1 = vector.multi_reduction <add>, %0, %cst [1] : vector<1x256x8xf32> to vector<1x8xf32>
    %2 = vector.shape_cast %1 : vector<1x8xf32> to vector<1x1x8xf32>
    %cst_2 = arith.constant 2.560000e+02 : f32
    %3 = vector.broadcast %cst_2 : f32 to vector<1x1x8xf32>
    %4 = arith.divf %2, %3 : vector<1x1x8xf32>
    %5 = vector.broadcast %4 : vector<1x1x8xf32> to vector<1x256x8xf32>
    %6 = arith.subf %0, %5 : vector<1x256x8xf32>
    %7 = arith.mulf %6, %6 : vector<1x256x8xf32>
    %cst_3 = arith.constant dense<0.000000e+00> : vector<1x8xf32>
    %8 = vector.multi_reduction <add>, %7, %cst_3 [1] : vector<1x256x8xf32> to vector<1x8xf32>
    %9 = vector.shape_cast %8 : vector<1x8xf32> to vector<1x1x8xf32>
    %cst_4 = arith.constant 2.560000e+02 : f32
    %10 = vector.broadcast %cst_4 : f32 to vector<1x1x8xf32>
    %11 = arith.divf %9, %10 : vector<1x1x8xf32>
    %cst_5 = arith.constant 9.99999974E-6 : f32
    %12 = vector.broadcast %cst_5 : f32 to vector<1x1x8xf32>
    %13 = arith.addf %11, %12 : vector<1x1x8xf32>
    %14 = math.rsqrt %13 : vector<1x1x8xf32>
    %15 = vector.broadcast %14 : vector<1x1x8xf32> to vector<1x256x8xf32>
    %16 = arith.mulf %6, %15 : vector<1x256x8xf32>
    %c0_6 = arith.constant 0 : index
    %c0_7 = arith.constant 0 : index
    %c0_8 = arith.constant 0 : index
    %17 = vector.load %arg2[%c0_6, %c0_7, %c0_8] : memref<1x256x8xf32, #tpu.memory_space<vmem>>, vector<1x256x8xf32>
    %18 = arith.addf %16, %17 : vector<1x256x8xf32>
    %c0_9 = arith.constant 0 : index
    %c0_10 = arith.constant 0 : index
    %c0_11 = arith.constant 0 : index
    %19 = vector.load %arg3[%c0_9, %c0_10, %c0_11] : memref<1x256x8xf32, #tpu.memory_space<vmem>>, vector<1x256x8xf32>
    tpu.vector_store %arg3[%c0_9, %c0_10, %c0_11], %18 {strides = array<i32>} : memref<1x256x8xf32, #tpu.memory_space<vmem>>, vector<1x256x8xf32>,
    return
  }
  func.func @transform_0(%arg0: i32) -> (i32, i32, i32) {
    %c0_i32 = arith.constant 0 : i32
    %c0_i32_0 = arith.constant 0 : i32
    %c0_i32_1 = arith.constant 0 : i32
    return %arg0, %c0_i32, %c0_i32_0 : i32, i32, i32
  }
  func.func @transform_1(%arg0: i32) -> (i32, i32, i32) {
    %c0_i32 = arith.constant 0 : i32
    %c0_i32_0 = arith.constant 0 : i32
    %c0_i32_1 = arith.constant 0 : i32
    return %arg0, %c0_i32, %c0_i32_0 : i32, i32, i32
  }
  func.func @transform_2(%arg0: i32) -> (i32, i32, i32) {
    %c0_i32 = arith.constant 0 : i32
    %c0_i32_0 = arith.constant 0 : i32
    %c0_i32_1 = arith.constant 0 : i32
    return %arg0, %c0_i32, %c0_i32_0 : i32, i32, i32
  }
}

module attributes {stable_mosaic.version = 11 : i64} {
  func.func @_mm_kernel(%arg0: i32, %arg1: i32, %arg2: i32, %arg3: memref<256x32xbf16, #tpu.memory_space<vmem>>, %arg4: memref<32x128xbf16, #tpu.memory_space<vmem>>, %arg5: memref<256x128xf32, #tpu.memory_space<vmem>>, %arg6: memref<256x128xf32, #tpu.memory_space<vmem>>) attributes {dimension_semantics = [#tpu.dimension_semantics<parallel>, #tpu.dimension_semantics<parallel>, #tpu.dimension_semantics<arbitrary>], iteration_bounds = array<i64: 2, 1, 1>, scalar_prefetch = 0 : i64, scratch_operands = 1 : i64, tpu.core_type = #tpu.core_type<tc>, window_params = [{transform_indices = @transform_0, window_bounds = array<i64: 256, 32>}, {transform_indices = @transform_1, window_bounds = array<i64: 32, 128>}, {transform_indices = @transform_2, window_bounds = array<i64: 256, 128>}]} {
    %c0_i32 = arith.constant 0 : i32
    %0 = arith.cmpi eq, %arg2, %c0_i32 : i32
    %1 = arith.extui %0 : i1 to i32
    %c0_i32_0 = arith.constant 0 : i32
    %2 = arith.cmpi ne, %1, %c0_i32_0 : i32
    scf.if %2 {
      %cst_10 = arith.constant 0.000000e+00 : f32
      %12 = vector.broadcast %cst_10 : f32 to vector<256x128xf32>
      %c0_11 = arith.constant 0 : index
      %c0_12 = arith.constant 0 : index
      %13 = vector.load %arg6[%c0_11, %c0_12] : memref<256x128xf32, #tpu.memory_space<vmem>>, vector<256x128xf32>
      tpu.vector_store %arg6[%c0_11, %c0_12], %12 {strides = array<i32>} : memref<256x128xf32, #tpu.memory_space<vmem>>, vector<256x128xf32>,
    } else {
    }
    %c0 = arith.constant 0 : index
    %c0_1 = arith.constant 0 : index
    %3 = vector.load %arg6[%c0, %c0_1] : memref<256x128xf32, #tpu.memory_space<vmem>>, vector<256x128xf32>
    %c0_2 = arith.constant 0 : index
    %c0_3 = arith.constant 0 : index
    %4 = vector.load %arg3[%c0_2, %c0_3] : memref<256x32xbf16, #tpu.memory_space<vmem>>, vector<256x32xbf16>
    %c0_4 = arith.constant 0 : index
    %c0_5 = arith.constant 0 : index
    %5 = vector.load %arg4[%c0_4, %c0_5] : memref<32x128xbf16, #tpu.memory_space<vmem>>, vector<32x128xbf16>
    %cst = arith.constant dense<0.000000e+00> : vector<256x128xf32>
    %6 = tpu.matmul %4, %5, %cst {dimension_numbers = #tpu.dot_dimension_numbers<[1], [0], [0], [1], [0, 0, 1, 1], [], []>} : vector<256x32xbf16>, vector<32x128xbf16>, vector<256x128xf32> -> vector<256x128xf32>
    %7 = arith.addf %3, %6 : vector<256x128xf32>
    %c0_6 = arith.constant 0 : index
    %c0_7 = arith.constant 0 : index
    %8 = vector.load %arg6[%c0_6, %c0_7] : memref<256x128xf32, #tpu.memory_space<vmem>>, vector<256x128xf32>
    tpu.vector_store %arg6[%c0_6, %c0_7], %7 {strides = array<i32>} : memref<256x128xf32, #tpu.memory_space<vmem>>, vector<256x128xf32>,
    %c0_i32_8 = arith.constant 0 : i32
    %9 = arith.cmpi eq, %arg2, %c0_i32_8 : i32
    %10 = arith.extui %9 : i1 to i32
    %c0_i32_9 = arith.constant 0 : i32
    %11 = arith.cmpi ne, %10, %c0_i32_9 : i32
    scf.if %11 {
      %c0_10 = arith.constant 0 : index
      %c0_11 = arith.constant 0 : index
      %12 = vector.load %arg6[%c0_10, %c0_11] : memref<256x128xf32, #tpu.memory_space<vmem>>, vector<256x128xf32>
      %c0_12 = arith.constant 0 : index
      %c0_13 = arith.constant 0 : index
      %13 = vector.load %arg5[%c0_12, %c0_13] : memref<256x128xf32, #tpu.memory_space<vmem>>, vector<256x128xf32>
      tpu.vector_store %arg5[%c0_12, %c0_13], %12 {strides = array<i32>} : memref<256x128xf32, #tpu.memory_space<vmem>>, vector<256x128xf32>,
    } else {
    }
    return
  }
  func.func @transform_0(%arg0: i32, %arg1: i32, %arg2: i32) -> (i32, i32) {
    %c0_i32 = arith.constant 0 : i32
    return %arg0, %arg2 : i32, i32
  }
  func.func @transform_1(%arg0: i32, %arg1: i32, %arg2: i32) -> (i32, i32) {
    %c0_i32 = arith.constant 0 : i32
    return %arg2, %arg1 : i32, i32
  }
  func.func @transform_2(%arg0: i32, %arg1: i32, %arg2: i32) -> (i32, i32) {
    %c0_i32 = arith.constant 0 : i32
    return %arg0, %arg1 : i32, i32
  }
}

module attributes {stable_mosaic.version = 11 : i64} {
  func.func @_mm_kernel(%arg0: i32, %arg1: i32, %arg2: i32, %arg3: memref<256x196xbf16, #tpu.memory_space<vmem>>, %arg4: memref<196x128xbf16, #tpu.memory_space<vmem>>, %arg5: memref<1x128xf32, #tpu.memory_space<vmem>>, %arg6: memref<256x128xf32, #tpu.memory_space<vmem>>, %arg7: memref<256x128xf32, #tpu.memory_space<vmem>>) attributes {dimension_semantics = [#tpu.dimension_semantics<parallel>, #tpu.dimension_semantics<parallel>, #tpu.dimension_semantics<arbitrary>], iteration_bounds = array<i64: 8, 1, 1>, scalar_prefetch = 0 : i64, scratch_operands = 1 : i64, tpu.core_type = #tpu.core_type<tc>, window_params = [{transform_indices = @transform_0, window_bounds = array<i64: 256, 196>}, {transform_indices = @transform_1, window_bounds = array<i64: 196, 128>}, {transform_indices = @transform_2, window_bounds = array<i64: 1, 128>}, {transform_indices = @transform_3, window_bounds = array<i64: 256, 128>}]} {
    %c0_i32 = arith.constant 0 : i32
    %0 = arith.cmpi eq, %arg2, %c0_i32 : i32
    %1 = arith.extui %0 : i1 to i32
    %c0_i32_0 = arith.constant 0 : i32
    %2 = arith.cmpi ne, %1, %c0_i32_0 : i32
    scf.if %2 {
      %cst_10 = arith.constant 0.000000e+00 : f32
      %12 = vector.broadcast %cst_10 : f32 to vector<256x128xf32>
      %c0_11 = arith.constant 0 : index
      %c0_12 = arith.constant 0 : index
      %13 = vector.load %arg7[%c0_11, %c0_12] : memref<256x128xf32, #tpu.memory_space<vmem>>, vector<256x128xf32>
      tpu.vector_store %arg7[%c0_11, %c0_12], %12 {strides = array<i32>} : memref<256x128xf32, #tpu.memory_space<vmem>>, vector<256x128xf32>,
    } else {
    }
    %c0 = arith.constant 0 : index
    %c0_1 = arith.constant 0 : index
    %3 = vector.load %arg7[%c0, %c0_1] : memref<256x128xf32, #tpu.memory_space<vmem>>, vector<256x128xf32>
    %c0_2 = arith.constant 0 : index
    %c0_3 = arith.constant 0 : index
    %4 = vector.load %arg3[%c0_2, %c0_3] : memref<256x196xbf16, #tpu.memory_space<vmem>>, vector<256x196xbf16>
    %c0_4 = arith.constant 0 : index
    %c0_5 = arith.constant 0 : index
    %5 = vector.load %arg4[%c0_4, %c0_5] : memref<196x128xbf16, #tpu.memory_space<vmem>>, vector<196x128xbf16>
    %cst = arith.constant dense<0.000000e+00> : vector<256x128xf32>
    %6 = tpu.matmul %4, %5, %cst {dimension_numbers = #tpu.dot_dimension_numbers<[1], [0], [0], [1], [0, 0, 1, 1], [], []>} : vector<256x196xbf16>, vector<196x128xbf16>, vector<256x128xf32> -> vector<256x128xf32>
    %7 = arith.addf %3, %6 : vector<256x128xf32>
    %c0_6 = arith.constant 0 : index
    %c0_7 = arith.constant 0 : index
    %8 = vector.load %arg7[%c0_6, %c0_7] : memref<256x128xf32, #tpu.memory_space<vmem>>, vector<256x128xf32>
    tpu.vector_store %arg7[%c0_6, %c0_7], %7 {strides = array<i32>} : memref<256x128xf32, #tpu.memory_space<vmem>>, vector<256x128xf32>,
    %c0_i32_8 = arith.constant 0 : i32
    %9 = arith.cmpi eq, %arg2, %c0_i32_8 : i32
    %10 = arith.extui %9 : i1 to i32
    %c0_i32_9 = arith.constant 0 : i32
    %11 = arith.cmpi ne, %10, %c0_i32_9 : i32
    scf.if %11 {
      %c0_10 = arith.constant 0 : index
      %c0_11 = arith.constant 0 : index
      %12 = vector.load %arg7[%c0_10, %c0_11] : memref<256x128xf32, #tpu.memory_space<vmem>>, vector<256x128xf32>
      %c0_12 = arith.constant 0 : index
      %c0_13 = arith.constant 0 : index
      %13 = vector.load %arg5[%c0_12, %c0_13] : memref<1x128xf32, #tpu.memory_space<vmem>>, vector<1x128xf32>
      %14 = vector.broadcast %13 : vector<1x128xf32> to vector<256x128xf32>
      %15 = arith.addf %12, %14 : vector<256x128xf32>
      %16 = math.tanh %15 : vector<256x128xf32>
      %c0_14 = arith.constant 0 : index
      %c0_15 = arith.constant 0 : index
      %17 = vector.load %arg6[%c0_14, %c0_15] : memref<256x128xf32, #tpu.memory_space<vmem>>, vector<256x128xf32>
      tpu.vector_store %arg6[%c0_14, %c0_15], %16 {strides = array<i32>} : memref<256x128xf32, #tpu.memory_space<vmem>>, vector<256x128xf32>,
    } else {
    }
    return
  }
  func.func @transform_0(%arg0: i32, %arg1: i32, %arg2: i32) -> (i32, i32) {
    %c0_i32 = arith.constant 0 : i32
    return %arg0, %arg2 : i32, i32
  }
  func.func @transform_1(%arg0: i32, %arg1: i32, %arg2: i32) -> (i32, i32) {
    %c0_i32 = arith.constant 0 : i32
    return %arg2, %arg1 : i32, i32
  }
  func.func @transform_2(%arg0: i32, %arg1: i32, %arg2: i32) -> (i32, i32) {
    %c0_i32 = arith.constant 0 : i32
    %c0_i32_0 = arith.constant 0 : i32
    return %c0_i32, %arg1 : i32, i32
  }
  func.func @transform_3(%arg0: i32, %arg1: i32, %arg2: i32) -> (i32, i32) {
    %c0_i32 = arith.constant 0 : i32
    return %arg0, %arg1 : i32, i32
  }
}

</mosaic_0001>

<bundles_post_ra>
// kernel: _lambda_.34
= control target key start
LH: loop header
LB: loop body
LE: loop exit
PB: predicated region body
PF: predicated region fallthrough
CT: control target
= control target key end

     0   :  { %s568_s6 = smov 0   ;;  %s1116_s0 = inlined_call_operand.vmem [shape: f32[2,256,8], index: 0, kind: input, shape index: {}]   ;;  %s1117_s1 = inlined_call_operand.vmem [shape: f32[2,256,8], index: 1, kind: output, shape index: {}]  }
   0x1 LB: > { %s523_s7 = sadd.s32 4294967295, %s555_s6   ;;  %p527_p0 = scmp.ge.s32.totalorder %s555_s6, 1  ;;  %s555_s6 = sphi %s568_s6, %s11_s6  }
   0x2   : > { %p87_p1 = scmp.lt.s32.totalorder %s555_s6, 3 }
   0x4   : > { %p88_p2 = pnand %p527_p0, %p87_p1 }
   0x5   : > { %p107_p3 = scmp.lt.s32.totalorder (!%p88_p2), %s523_s7, 1 }
   0x6   : > { %91 = sbr.rel (%p88_p2) target bundleno = 229 (0xe5), region = 24 }
   0xb   : > { %s1119_s7 = smov (!%p107_p3, %s523_s7), 1  ;;  %vm149_vm0 = vcmask 64512  }
   0xc   : > { %s534_s8 = sshll.u32 %s1119_s7, 8 }
   0xd   : > { %s584_s11 = scalar_lea.vmem %s1116_s0, %s534_s8  ;;  %s991_s14 = scalar_lea.vmem %s1117_s1, %s534_s8 }
   0xe   : > { %v587_v0 = vld [vmem:[%s584_s11] sm:$0xff]  ;;  %v590_v1 = vld [vmem:[%s584_s11 + $0x8] sm:$0xff]  ;;  %v593_v2 = vld [vmem:[%s584_s11 + $0x10] sm:$0xff] }
   0xf   : > { %v596_v3 = vld [vmem:[%s584_s11 + $0x18] sm:$0xff]  ;;  %v150_v4 = vsel %vm149_vm0, %v587_v0, 0.0  ;;  %v151_v5 = vsel %vm149_vm0, %v590_v1, 0.0  ;;  %v153_v6 = vsel %vm149_vm0, %v593_v2, 0.0  ;;  %v605_v7 = vld [vmem:[%s584_s11 + $0x20] sm:$0xff]  ;;  %v610_v10 = vld [vmem:[%s584_s11 + $0x28] sm:$0xff] }
  0x10   : > { %v152_v8 = vadd.f32 %v151_v5, %v150_v4  ;;  %v155_v9 = vsel %vm149_vm0, %v596_v3, 0.0  ;;  %v157_v12 = vsel %vm149_vm0, %v605_v7, 0.0  ;;  %v615_v13 = vld [vmem:[%s584_s11 + $0x30] sm:$0xff]  ;;  %v159_v15 = vsel %vm149_vm0, %v610_v10, 0.0  ;;  %v620_v16 = vld [vmem:[%s584_s11 + $0x38] sm:$0xff]  ;;  %v625_v19 = vld [vmem:[%s584_s11 + $0x40] sm:$0xff] }
  0x11   : > { %v161_v18 = vsel %vm149_vm0, %v615_v13, 0.0  ;;  %v163_v21 = vsel %vm149_vm0, %v620_v16, 0.0  ;;  %v630_v22 = vld [vmem:[%s584_s11 + $0x48] sm:$0xff]  ;;  %v165_v24 = vsel %vm149_vm0, %v625_v19, 0.0  ;;  %v635_v25 = vld [vmem:[%s584_s11 + $0x50] sm:$0xff]  ;;  %v640_v28 = vld [vmem:[%s584_s11 + $0x58] sm:$0xff] }
  0x12   : > { %v154_v11 = vadd.f32 %v153_v6, %v152_v8  ;;  %v167_v27 = vsel %vm149_vm0, %v630_v22, 0.0  ;;  %v169_v30 = vsel %vm149_vm0, %v635_v25, 0.0  ;;  %v645_v31 = vld [vmem:[%s584_s11 + $0x60] sm:$0xff]  ;;  %v171_v33 = vsel %vm149_vm0, %v640_v28, 0.0  ;;  %v650_v34 = vld [vmem:[%s584_s11 + $0x68] sm:$0xff]  ;;  %v655_v37 = vld [vmem:[%s584_s11 + $0x70] sm:$0xff] }
  0x13   : > { %v173_v36 = vsel %vm149_vm0, %v645_v31, 0.0  ;;  %v175_v39 = vsel %vm149_vm0, %v650_v34, 0.0  ;;  %v660_v40 = vld [vmem:[%s584_s11 + $0x78] sm:$0xff]  ;;  %v177_v42 = vsel %vm149_vm0, %v655_v37, 0.0  ;;  %v665_v43 = vld [vmem:[%s584_s11 + $0x80] sm:$0xff]  ;;  %v670_v46 = vld [vmem:[%s584_s11 + $0x88] sm:$0xff] }
  0x14   : > { %v156_v14 = vadd.f32 %v155_v9, %v154_v11  ;;  %v179_v45 = vsel %vm149_vm0, %v660_v40, 0.0  ;;  %v181_v48 = vsel %vm149_vm0, %v665_v43, 0.0  ;;  %v675_v49 = vld [vmem:[%s584_s11 + $0x90] sm:$0xff]  ;;  %v183_v51 = vsel %vm149_vm0, %v670_v46, 0.0  ;;  %v680_v52 = vld [vmem:[%s584_s11 + $0x98] sm:$0xff]  ;;  %v685_v55 = vld [vmem:[%s584_s11 + $0xa0] sm:$0xff] }
  0x15   : > { %v185_v54 = vsel %vm149_vm0, %v675_v49, 0.0  ;;  %v187_v57 = vsel %vm149_vm0, %v680_v52, 0.0  ;;  %v690_v58 = vld [vmem:[%s584_s11 + $0xa8] sm:$0xff]  ;;  %v189_v60 = vsel %vm149_vm0, %v685_v55, 0.0  ;;  %v695_v61 = vld [vmem:[%s584_s11 + $0xb0] sm:$0xff]  ;;  %v700_v4 = vld [vmem:[%s584_s11 + $0xb8] sm:$0xff] }
  0x16   : > { %v158_v17 = vadd.f32 %v157_v12, %v156_v14  ;;  %v191_v63 = vsel %vm149_vm0, %v690_v58, 0.0  ;;  %v193_v6 = vsel %vm149_vm0, %v695_v61, 0.0  ;;  %v705_v8 = vld [vmem:[%s584_s11 + $0xc0] sm:$0xff]  ;;  %v195_v11 = vsel %vm149_vm0, %v700_v4, 0.0  ;;  %v710_v12 = vld [vmem:[%s584_s11 + $0xc8] sm:$0xff] }
  0x18   : > { %v160_v20 = vadd.f32 %v159_v15, %v158_v17  ;;  %v197_v15 = vsel %vm149_vm0, %v705_v8, 0.0  ;;  %v715_v17 = vld [vmem:[%s584_s11 + $0xd0] sm:$0xff] }
  0x1a   : > { %v162_v23 = vadd.f32 %v161_v18, %v160_v20  ;;  %v199_v20 = vsel %vm149_vm0, %v710_v12, 0.0 }
  0x1c   : > { %v164_v26 = vadd.f32 %v163_v21, %v162_v23  ;;  %v720_v21 = vld [vmem:[%s584_s11 + $0xd8] sm:$0xff] }
  0x1e   : > { %v166_v29 = vadd.f32 %v165_v24, %v164_v26  ;;  %v201_v24 = vsel %vm149_vm0, %v715_v17, 0.0  ;;  %v725_v26 = vld [vmem:[%s584_s11 + $0xe0] sm:$0xff] }
  0x20   : > { %v168_v32 = vadd.f32 %v167_v27, %v166_v29  ;;  %v203_v29 = vsel %vm149_vm0, %v720_v21, 0.0 }
  0x22   : > { %v170_v35 = vadd.f32 %v169_v30, %v168_v32  ;;  %v730_v30 = vld [vmem:[%s584_s11 + $0xe8] sm:$0xff] }
  0x24   : > { %v172_v38 = vadd.f32 %v171_v33, %v170_v35  ;;  %v205_v33 = vsel %vm149_vm0, %v725_v26, 0.0  ;;  %v735_v35 = vld [vmem:[%s584_s11 + $0xf0] sm:$0xff] }
  0x26   : > { %v174_v41 = vadd.f32 %v173_v36, %v172_v38  ;;  %v557_v38 = vmov 256.0  }
  0x27   : > { %545 = vrcp.f32 %v557_v38 }
  0x28   : > { %v176_v44 = vadd.f32 %v175_v39, %v174_v41  ;;  %v207_v39 = vsel %vm149_vm0, %v730_v30, 0.0  ;;  %v740_v41 = vld [vmem:[%s584_s11 + $0xf8] sm:$0xff] }
  0x2a   : > { %v178_v47 = vadd.f32 %v177_v42, %v176_v44  ;;  %v209_v44 = vsel %vm149_vm0, %v735_v35, 0.0 }
  0x2c   : > { %v180_v50 = vadd.f32 %v179_v45, %v178_v47  ;;  %v211_v47 = vsel %vm149_vm0, %v740_v41, 0.0 }
  0x2e   : > { %v182_v53 = vadd.f32 %v181_v48, %v180_v50  ;;  %v546_v48 = vpop.eup %545 }
  0x2f   : > { %vm224_vm1 = vweird.f32 %v546_v48 }
  0x30   : > { %v184_v56 = vadd.f32 %v183_v51, %v182_v53  ;;  %v220_v53 = vmul.f32 256.0, %v546_v48 }
  0x32   : > { %v186_v59 = vadd.f32 %v185_v54, %v184_v56 }
  0x34   : > { %v188_v62 = vadd.f32 %v187_v57, %v186_v59  ;;  %v221_v57 = vsub.f32 1.0, %v220_v53 }
  0x36   : > { %v190_v5 = vadd.f32 %v189_v60, %v188_v62  ;;  %v222_v62 = vmul.f32 %v546_v48, %v221_v57 }
  0x38   : > { %v192_v9 = vadd.f32 %v191_v63, %v190_v5  ;;  %v223_v5 = vadd.f32 %v546_v48, %v222_v62 }
  0x3a   : > { %v194_v14 = vadd.f32 %v193_v6, %v192_v9  ;;  %v746_v9 = vsel %vm224_vm1, %v546_v48, %v223_v5 }
  0x3c   : > { %v196_v18 = vadd.f32 %v195_v11, %v194_v14 }
  0x3e   : > { %v198_v23 = vadd.f32 %v197_v15, %v196_v18 }
  0x40   : > { %v200_v27 = vadd.f32 %v199_v20, %v198_v23 }
  0x42   : > { %v202_v32 = vadd.f32 %v201_v24, %v200_v27 }
  0x44   : > { %v204_v36 = vadd.f32 %v203_v29, %v202_v32 }
  0x46   : > { %v206_v42 = vadd.f32 %v205_v33, %v204_v36 }
  0x48   : > { %v208_v45 = vadd.f32 %v207_v39, %v206_v42 }
  0x4a   : > { %v210_v50 = vadd.f32 %v209_v44, %v208_v45 }
  0x4c   : > { %v212_v51 = vadd.f32 %v211_v47, %v210_v50 }
  0x4e   : > { %v213_v54 = vrot.slane %v212_v51, 4 }
  0x50   : > { %v214_v56 = vadd.f32 %v213_v54, %v212_v51 }
  0x52   : > { %v215_v59 = vrot.slane %v214_v56, 2 }
  0x54   : > { %v216_v60 = vadd.f32 %v215_v59, %v214_v56 }
  0x56   : > { %v217_v63 = vrot.slane %v216_v60, 1 }
  0x58   : > { %v218_v6 = vadd.f32 %v217_v63, %v216_v60 }
  0x5a   : > { %v749_v11 = vmul.f32 %v746_v9, %v218_v6 }
  0x5c   : > { %v753_v14 = vsub.f32 %v587_v0, %v749_v11  ;;  %v757_v15 = vsub.f32 %v590_v1, %v749_v11  ;;  %v761_v18 = vsub.f32 %v593_v2, %v749_v11  ;;  %v765_v20 = vsub.f32 %v596_v3, %v749_v11 }
  0x5d   : > { %v769_v23 = vsub.f32 %v605_v7, %v749_v11  ;;  %v779_v2 = vsub.f32 %v610_v10, %v749_v11  ;;  %v785_v7 = vsub.f32 %v615_v13, %v749_v11  ;;  %v794_v10 = vsub.f32 %v620_v16, %v749_v11 }
  0x5e   : > { %v259_v0 = vmul.f32 %v753_v14, %v753_v14  ;;  %v260_v24 = vmul.f32 %v757_v15, %v757_v15  ;;  %v261_v1 = vmul.f32 %v761_v18, %v761_v18  ;;  %v262_v3 = vmul.f32 %v765_v20, %v765_v20 }
  0x5f   : > { %v263_v27 = vmul.f32 %v769_v23, %v769_v23  ;;  %v264_v38 = vmul.f32 %v779_v2, %v779_v2  ;;  %v801_v42 = vsub.f32 %v625_v19, %v749_v11  ;;  %v265_v44 = vmul.f32 %v785_v7, %v785_v7 }
  0x60   : > { %v291_v29 = vsel %vm149_vm0, %v259_v0, 0.0  ;;  %v292_v32 = vsel %vm149_vm0, %v260_v24, 0.0  ;;  %v294_v33 = vsel %vm149_vm0, %v261_v1, 0.0  ;;  %v296_v13 = vsel %vm149_vm0, %v262_v3, 0.0 }
  0x61   : > { %v293_v36 = vadd.f32 %v292_v32, %v291_v29  ;;  %v298_v45 = vsel %vm149_vm0, %v263_v27, 0.0  ;;  %v808_v16 = vsub.f32 %v630_v22, %v749_v11  ;;  %v266_v48 = vmul.f32 %v794_v10, %v794_v10 }
  0x62   : > { %v300_v50 = vsel %vm149_vm0, %v264_v38, 0.0  ;;  %v815_v19 = vsub.f32 %v635_v25, %v749_v11  ;;  %v267_v53 = vmul.f32 %v801_v42, %v801_v42  ;;  %v302_v54 = vsel %vm149_vm0, %v265_v44, 0.0 }
  0x63   : > { %v295_v39 = vadd.f32 %v294_v33, %v293_v36  ;;  %v822_v22 = vsub.f32 %v640_v28, %v749_v11  ;;  %v268_v57 = vmul.f32 %v808_v16, %v808_v16  ;;  %v304_v59 = vsel %vm149_vm0, %v266_v48, 0.0 }
  0x64   : > { %v829_v25 = vsub.f32 %v645_v31, %v749_v11  ;;  %v269_v62 = vmul.f32 %v815_v19, %v815_v19  ;;  %v306_v63 = vsel %vm149_vm0, %v267_v53, 0.0  ;;  %v836_v28 = vsub.f32 %v650_v34, %v749_v11 }
  0x65   : > { %v297_v47 = vadd.f32 %v296_v13, %v295_v39  ;;  %v270_v6 = vmul.f32 %v822_v22, %v822_v22  ;;  %v308_v0 = vsel %vm149_vm0, %v268_v57, 0.0  ;;  %v843_v31 = vsub.f32 %v655_v37, %v749_v11 }
  0x66   : > { %v271_v1 = vmul.f32 %v829_v25, %v829_v25  ;;  %v310_v3 = vsel %vm149_vm0, %v269_v62, 0.0  ;;  %v850_v34 = vsub.f32 %v660_v40, %v749_v11  ;;  %v272_v29 = vmul.f32 %v836_v28, %v836_v28 }
  0x67   : > { %v299_v51 = vadd.f32 %v298_v45, %v297_v47  ;;  %v312_v32 = vsel %vm149_vm0, %v270_v6, 0.0  ;;  %v857_v37 = vsub.f32 %v665_v43, %v749_v11  ;;  %v273_v36 = vmul.f32 %v843_v31, %v843_v31 }
  0x68   : > { %v314_v38 = vsel %vm149_vm0, %v271_v1, 0.0  ;;  %v864_v40 = vsub.f32 %v670_v46, %v749_v11  ;;  %v274_v39 = vmul.f32 %v850_v34, %v850_v34  ;;  %v316_v44 = vsel %vm149_vm0, %v272_v29, 0.0 }
  0x69   : > { %v301_v56 = vadd.f32 %v300_v50, %v299_v51  ;;  %v871_v43 = vsub.f32 %v675_v49, %v749_v11  ;;  %v275_v47 = vmul.f32 %v857_v37, %v857_v37  ;;  %v318_v48 = vsel %vm149_vm0, %v273_v36, 0.0 }
  0x6a   : > { %v878_v46 = vsub.f32 %v680_v52, %v749_v11  ;;  %v276_v51 = vmul.f32 %v864_v40, %v864_v40  ;;  %v320_v53 = vsel %vm149_vm0, %v274_v39, 0.0  ;;  %v885_v49 = vsub.f32 %v685_v55, %v749_v11 }
  0x6b   : > { %v303_v60 = vadd.f32 %v302_v54, %v301_v56  ;;  %v277_v56 = vmul.f32 %v871_v43, %v871_v43  ;;  %v322_v57 = vsel %vm149_vm0, %v275_v47, 0.0  ;;  %v892_v52 = vsub.f32 %v690_v58, %v749_v11 }
  0x6c   : > { %v324_v62 = vsel %vm149_vm0, %v276_v51, 0.0  ;;  %v899_v55 = vsub.f32 %v695_v61, %v749_v11  ;;  %v906_v58 = vsub.f32 %v700_v4, %v749_v11  ;;  %v913_v61 = vsub.f32 %v705_v8, %v749_v11 }
  0x6d   : > { %v305_v5 = vadd.f32 %v304_v59, %v303_v60  ;;  %v278_v60 = vmul.f32 %v878_v46, %v878_v46  ;;  %v326_v6 = vsel %vm149_vm0, %v277_v56, 0.0  ;;  %v920_v4 = vsub.f32 %v710_v12, %v749_v11 }
  0x6e   : > { %v927_v8 = vsub.f32 %v715_v17, %v749_v11  ;;  %v934_v12 = vsub.f32 %v720_v21, %v749_v11  ;;  %v941_v17 = vsub.f32 %v725_v26, %v749_v11  ;;  %v948_v21 = vsub.f32 %v730_v30, %v749_v11 }
  0x6f   : > { %v307_v24 = vadd.f32 %v306_v63, %v305_v5  ;;  %v279_v5 = vmul.f32 %v885_v49, %v885_v49  ;;  %v328_v1 = vsel %vm149_vm0, %v278_v60, 0.0  ;;  %v955_v26 = vsub.f32 %v735_v35, %v749_v11 }
  0x70   : > { %v962_v30 = vsub.f32 %v740_v41, %v749_v11 }
  0x71   : > { %v309_v27 = vadd.f32 %v308_v0, %v307_v24  ;;  %v280_v24 = vmul.f32 %v892_v52, %v892_v52  ;;  %v330_v29 = vsel %vm149_vm0, %v279_v5, 0.0  ;;  %v289_v35 = vmul.f32 %v955_v26, %v955_v26 }
  0x73   : > { %v311_v33 = vadd.f32 %v310_v3, %v309_v27  ;;  %v281_v27 = vmul.f32 %v899_v55, %v899_v55  ;;  %v332_v36 = vsel %vm149_vm0, %v280_v24, 0.0  ;;  %v350_v41 = vsel %vm149_vm0, %v289_v35, 0.0 }
  0x75   : > { %v313_v13 = vadd.f32 %v312_v32, %v311_v33  ;;  %v282_v33 = vmul.f32 %v906_v58, %v906_v58  ;;  %v334_v39 = vsel %vm149_vm0, %v281_v27, 0.0 }
  0x77   : > { %v315_v45 = vadd.f32 %v314_v38, %v313_v13  ;;  %v283_v13 = vmul.f32 %v913_v61, %v913_v61  ;;  %v336_v47 = vsel %vm149_vm0, %v282_v33, 0.0 }
  0x79   : > { %v317_v50 = vadd.f32 %v316_v44, %v315_v45  ;;  %v284_v45 = vmul.f32 %v920_v4, %v920_v4  ;;  %v338_v51 = vsel %vm149_vm0, %v283_v13, 0.0 }
  0x7b   : > { %v319_v54 = vadd.f32 %v318_v48, %v317_v50  ;;  %v285_v50 = vmul.f32 %v927_v8, %v927_v8  ;;  %v340_v56 = vsel %vm149_vm0, %v284_v45, 0.0 }
  0x7d   : > { %v321_v59 = vadd.f32 %v320_v53, %v319_v54  ;;  %v286_v54 = vmul.f32 %v934_v12, %v934_v12  ;;  %v342_v60 = vsel %vm149_vm0, %v285_v50, 0.0 }
  0x7f   : > { %v323_v63 = vadd.f32 %v322_v57, %v321_v59  ;;  %v287_v59 = vmul.f32 %v941_v17, %v941_v17  ;;  %v344_v5 = vsel %vm149_vm0, %v286_v54, 0.0 }
  0x81   : > { %v325_v0 = vadd.f32 %v324_v62, %v323_v63  ;;  %v288_v63 = vmul.f32 %v948_v21, %v948_v21 }
  0x83   : > { %v327_v3 = vadd.f32 %v326_v6, %v325_v0  ;;  %v346_v0 = vsel %vm149_vm0, %v287_v59, 0.0 }
  0x85   : > { %v329_v32 = vadd.f32 %v328_v1, %v327_v3  ;;  %v290_v1 = vmul.f32 %v962_v30, %v962_v30  ;;  %v348_v3 = vsel %vm149_vm0, %v288_v63, 0.0 }
  0x87   : > { %v331_v38 = vadd.f32 %v330_v29, %v329_v32  ;;  %v352_v29 = vsel %vm149_vm0, %v290_v1, 0.0 }
  0x89   : > { %v333_v44 = vadd.f32 %v332_v36, %v331_v38 }
  0x8b   : > { %v335_v48 = vadd.f32 %v334_v39, %v333_v44 }
  0x8d   : > { %v337_v53 = vadd.f32 %v336_v47, %v335_v48 }
  0x8f   : > { %v339_v57 = vadd.f32 %v338_v51, %v337_v53 }
  0x91   : > { %v341_v62 = vadd.f32 %v340_v56, %v339_v57 }
  0x93   : > { %v343_v6 = vadd.f32 %v342_v60, %v341_v62 }
  0x95   : > { %v345_v24 = vadd.f32 %v344_v5, %v343_v6 }
  0x97   : > { %v347_v27 = vadd.f32 %v346_v0, %v345_v24 }
  0x99   : > { %v349_v11 = vadd.f32 %v348_v3, %v347_v27 }
  0x9b   : > { %v351_v32 = vadd.f32 %v350_v41, %v349_v11 }
  0x9d   : > { %v353_v33 = vadd.f32 %v352_v29, %v351_v32 }
  0x9f   : > { %v354_v36 = vrot.slane %v353_v33, 4 }
  0xa1   : > { %v355_v38 = vadd.f32 %v354_v36, %v353_v33 }
  0xa3   : > { %v356_v13 = vrot.slane %v355_v38, 2 }
  0xa5   : > { %v357_v39 = vadd.f32 %v356_v13, %v355_v38 }
  0xa7   : > { %v358_v44 = vrot.slane %v357_v39, 1 }
  0xa9   : > { %v359_v45 = vadd.f32 %v358_v44, %v357_v39 }
  0xab   : > { %v360_v47 = vmul.f32 %v359_v45, %v746_v9 }
  0xad   : > { %v361_v48 = vadd.f32 1e-05, %v360_v47 }
  0xaf   : > { %547 = vrsqrt.f32 %v361_v48  ;;  %vm368_vm2 = vweird.f32 %v361_v48 }
  0xb5   : > { %v548_v50 = vpop.eup %547 }
  0xb6   : > { %v363_v51 = vmul.f32 %v548_v50, %v361_v48  ;;  %vm369_vm3 = vweird.f32 %v548_v50 }
  0xb7   : > { %vm370_vm4 = vmor %vm368_vm2, %vm369_vm3 }
  0xb8   : > { %v364_v53 = vmul.f32 %v548_v50, %v363_v51 }
  0xba   : > { %v365_v54 = vmul.f32 0.5, %v364_v53 }
  0xbc   : > { %v366_v56 = vsub.f32 1.5, %v365_v54 }
  0xbe   : > { %v367_v57 = vmul.f32 %v548_v50, %v366_v56 }
  0xc0   : > { %v976_v59 = vsel %vm370_vm4, %v548_v50, %v367_v57 }
  0xc1   : > { %v372_v60 = vmul.f32 %v976_v59, %v753_v14  ;;  %v373_v9 = vmul.f32 %v976_v59, %v757_v15  ;;  %v374_v62 = vmul.f32 %v976_v59, %v761_v18  ;;  %v375_v63 = vmul.f32 %v976_v59, %v765_v20 }
  0xc2   : > { %v376_v14 = vmul.f32 %v976_v59, %v769_v23  ;;  %v377_v15 = vmul.f32 %v976_v59, %v779_v2  ;;  %v378_v20 = vmul.f32 %v976_v59, %v785_v7  ;;  %v379_v0 = vmul.f32 %v976_v59, %v794_v10 }
  0xc3   : > { %v404_v18 = vmax.f32 %v372_v60, 0.0  ;;  %v405_v5 = vmax.f32 %v373_v9, 0.0  ;;  %v406_v6 = vmax.f32 %v374_v62, 0.0  ;;  %v407_v35 = vmax.f32 %v375_v63, 0.0 }
  0xc4   : > { %v408_v24 = vmax.f32 %v376_v14, 0.0  ;;  %v380_v23 = vmul.f32 %v976_v59, %v801_v42  ;;  %v409_v2 = vmax.f32 %v377_v15, 0.0  ;;  %v381_v1 = vmul.f32 %v976_v59, %v808_v16 }
  0xc5   : > { %436 = vst.msk [vmem:[%s991_s14] sm:$0xff] %vm149_vm0, %v404_v18  ;;  %v410_v7 = vmax.f32 %v378_v20, 0.0  ;;  %v382_v10 = vmul.f32 %v976_v59, %v815_v19  ;;  %v411_v3 = vmax.f32 %v379_v0, 0.0  ;;  %v383_v42 = vmul.f32 %v976_v59, %v822_v22 }
  0xc6   : > { %437 = vst.msk [vmem:[%s991_s14 + $0x8] sm:$0xff] %vm149_vm0, %v405_v5  ;;  %v412_v27 = vmax.f32 %v380_v23, 0.0  ;;  %v384_v16 = vmul.f32 %v976_v59, %v829_v25  ;;  %v413_v41 = vmax.f32 %v381_v1, 0.0  ;;  %v385_v19 = vmul.f32 %v976_v59, %v836_v28 }
  0xc7   : > { %438 = vst.msk [vmem:[%s991_s14 + $0x10] sm:$0xff] %vm149_vm0, %v406_v6  ;;  %v414_v11 = vmax.f32 %v382_v10, 0.0  ;;  %v386_v22 = vmul.f32 %v976_v59, %v843_v31  ;;  %v415_v29 = vmax.f32 %v383_v42, 0.0  ;;  %v387_v25 = vmul.f32 %v976_v59, %v850_v34 }
  0xc8   : > { %439 = vst.msk [vmem:[%s991_s14 + $0x18] sm:$0xff] %vm149_vm0, %v407_v35  ;;  %v416_v32 = vmax.f32 %v384_v16, 0.0  ;;  %v388_v28 = vmul.f32 %v976_v59, %v857_v37  ;;  %v417_v33 = vmax.f32 %v385_v19, 0.0  ;;  %v389_v31 = vmul.f32 %v976_v59, %v864_v40 }
  0xc9   : > { %440 = vst.msk [vmem:[%s991_s14 + $0x20] sm:$0xff] %vm149_vm0, %v408_v24  ;;  %v418_v36 = vmax.f32 %v386_v22, 0.0  ;;  %v390_v34 = vmul.f32 %v976_v59, %v871_v43  ;;  %v419_v38 = vmax.f32 %v387_v25, 0.0  ;;  %v391_v37 = vmul.f32 %v976_v59, %v878_v46 }
  0xca   : > { %441 = vst.msk [vmem:[%s991_s14 + $0x28] sm:$0xff] %vm149_vm0, %v409_v2  ;;  %v420_v13 = vmax.f32 %v388_v28, 0.0  ;;  %v392_v40 = vmul.f32 %v976_v59, %v885_v49  ;;  %v421_v39 = vmax.f32 %v389_v31, 0.0  ;;  %v393_v43 = vmul.f32 %v976_v59, %v892_v52 }
  0xcb   : > { %442 = vst.msk [vmem:[%s991_s14 + $0x30] sm:$0xff] %vm149_vm0, %v410_v7  ;;  %v422_v44 = vmax.f32 %v390_v34, 0.0  ;;  %v394_v46 = vmul.f32 %v976_v59, %v899_v55  ;;  %v423_v45 = vmax.f32 %v391_v37, 0.0  ;;  %v395_v49 = vmul.f32 %v976_v59, %v906_v58 }
  0xcc   : > { %443 = vst.msk [vmem:[%s991_s14 + $0x38] sm:$0xff] %vm149_vm0, %v411_v3  ;;  %v424_v47 = vmax.f32 %v392_v40, 0.0  ;;  %v396_v52 = vmul.f32 %v976_v59, %v913_v61  ;;  %v425_v48 = vmax.f32 %v393_v43, 0.0  ;;  %v397_v55 = vmul.f32 %v976_v59, %v920_v4 }
  0xcd   : > { %444 = vst.msk [vmem:[%s991_s14 + $0x40] sm:$0xff] %vm149_vm0, %v412_v27  ;;  %v426_v50 = vmax.f32 %v394_v46, 0.0  ;;  %v398_v58 = vmul.f32 %v976_v59, %v927_v8  ;;  %v427_v51 = vmax.f32 %v395_v49, 0.0  ;;  %v399_v61 = vmul.f32 %v976_v59, %v934_v12 }
  0xce   : > { %445 = vst.msk [vmem:[%s991_s14 + $0x48] sm:$0xff] %vm149_vm0, %v413_v41  ;;  %v428_v53 = vmax.f32 %v396_v52, 0.0  ;;  %v400_v4 = vmul.f32 %v976_v59, %v941_v17  ;;  %v429_v54 = vmax.f32 %v397_v55, 0.0  ;;  %v401_v8 = vmul.f32 %v976_v59, %v948_v21 }
  0xcf   : > { %446 = vst.msk [vmem:[%s991_s14 + $0x50] sm:$0xff] %vm149_vm0, %v414_v11  ;;  %v430_v12 = vmax.f32 %v398_v58, 0.0  ;;  %v402_v56 = vmul.f32 %v976_v59, %v955_v26  ;;  %v431_v17 = vmax.f32 %v399_v61, 0.0  ;;  %v403_v57 = vmul.f32 %v976_v59, %v962_v30 }
  0xd0   : > { %447 = vst.msk [vmem:[%s991_s14 + $0x58] sm:$0xff] %vm149_vm0, %v415_v29  ;;  %v432_v60 = vmax.f32 %v400_v4, 0.0  ;;  %v433_v21 = vmax.f32 %v401_v8, 0.0 }
  0xd1   : > { %448 = vst.msk [vmem:[%s991_s14 + $0x60] sm:$0xff] %vm149_vm0, %v416_v32  ;;  %v434_v9 = vmax.f32 %v402_v56, 0.0  ;;  %v435_v62 = vmax.f32 %v403_v57, 0.0 }
  0xd2   : > { %449 = vst.msk [vmem:[%s991_s14 + $0x68] sm:$0xff] %vm149_vm0, %v417_v33 }
  0xd3   : > { %450 = vst.msk [vmem:[%s991_s14 + $0x70] sm:$0xff] %vm149_vm0, %v418_v36 }
  0xd4   : > { %451 = vst.msk [vmem:[%s991_s14 + $0x78] sm:$0xff] %vm149_vm0, %v419_v38 }
  0xd5   : > { %452 = vst.msk [vmem:[%s991_s14 + $0x80] sm:$0xff] %vm149_vm0, %v420_v13 }
  0xd6   : > { %453 = vst.msk [vmem:[%s991_s14 + $0x88] sm:$0xff] %vm149_vm0, %v421_v39 }
  0xd7   : > { %454 = vst.msk [vmem:[%s991_s14 + $0x90] sm:$0xff] %vm149_vm0, %v422_v44 }
  0xd8   : > { %455 = vst.msk [vmem:[%s991_s14 + $0x98] sm:$0xff] %vm149_vm0, %v423_v45 }
  0xd9   : > { %456 = vst.msk [vmem:[%s991_s14 + $0xa0] sm:$0xff] %vm149_vm0, %v424_v47 }
  0xda   : > { %457 = vst.msk [vmem:[%s991_s14 + $0xa8] sm:$0xff] %vm149_vm0, %v425_v48 }
  0xdb   : > { %458 = vst.msk [vmem:[%s991_s14 + $0xb0] sm:$0xff] %vm149_vm0, %v426_v50 }
  0xdc   : > { %459 = vst.msk [vmem:[%s991_s14 + $0xb8] sm:$0xff] %vm149_vm0, %v427_v51 }
  0xdd   : > { %460 = vst.msk [vmem:[%s991_s14 + $0xc0] sm:$0xff] %vm149_vm0, %v428_v53 }
  0xde   : > { %461 = vst.msk [vmem:[%s991_s14 + $0xc8] sm:$0xff] %vm149_vm0, %v429_v54 }
  0xdf   : > { %462 = vst.msk [vmem:[%s991_s14 + $0xd0] sm:$0xff] %vm149_vm0, %v430_v12 }
  0xe0   : > { %463 = vst.msk [vmem:[%s991_s14 + $0xd8] sm:$0xff] %vm149_vm0, %v431_v17 }
  0xe1   : > { %464 = vst.msk [vmem:[%s991_s14 + $0xe0] sm:$0xff] %vm149_vm0, %v432_v60 }
  0xe2   : > { %465 = vst.msk [vmem:[%s991_s14 + $0xe8] sm:$0xff] %vm149_vm0, %v433_v21 }
  0xe3   : > { %466 = vst.msk [vmem:[%s991_s14 + $0xf0] sm:$0xff] %vm149_vm0, %v434_v9 }
  0xe4   : > { %467 = vst.msk [vmem:[%s991_s14 + $0xf8] sm:$0xff] %vm149_vm0, %v435_v62 }
  0xe5 PF: > { %s11_s6 = sadd.s32 1, %s555_s6  }
  0xe6   : > { %p8_p4 = scmp.ge.s32.totalorder %s11_s6, 4  }
  0xe8   :  { %10 = sbr.rel (!%p8_p4) target bundleno = 1 (0x1), region = 54 }

// kernel: _lambda_.33
= control target key start
LH: loop header
LB: loop body
LE: loop exit
PB: predicated region body
PF: predicated region fallthrough
CT: control target
= control target key end

     0   :  { %s1324_s9 = smov 0   ;;  %s1326_s10 = smov 0   ;;  %s1516_s0 = inlined_call_operand.vmem [shape: bf16[512,147], index: 0, kind: input, shape index: {}]   ;;  %s1517_s1 = inlined_call_operand.vmem [shape: bf16[147,128], index: 1, kind: input, shape index: {}]   ;;  %s1518_s2 = inlined_call_operand.vmem [shape: f32[512,128], index: 2, kind: output, shape index: {}]  }
   0x1   :  { %s1328_s11 = smov 0  }
   0x2 LB: > { %s31_s12 = sadd.s32 1, %s1302_s10  ;;  %p1019_p0 = scmp.ge.s32.totalorder %s1306_s11, 1  ;;  %s1306_s11 = sphi %s1328_s11, %s12_s11   ;;  %s1302_s10 = sphi %s1326_s10, %s1520_s10   ;;  %s1298_s9 = sphi %s1324_s9, %s1519_s9  }
   0x3   : > { %p33_p1 = scmp.ge.s32.totalorder %s31_s12, 2  ;;  %p158_p2 = scmp.lt.s32.totalorder %s1306_s11, 3 }
   0x5   : > { %s1522_s12 = smov (%p33_p1, %s31_s12), 0  ;;  %p159_p3 = pnand %p1019_p0, %p158_p2 }
   0x6   : > { %s1020_s17 = sshll.u32 (!%p159_p3), %s1298_s9, 5 }
   0x7   : > { %162 = sbr.rel (%p159_p3) target bundleno = 299 (0x12b), region = 28  ;;  %p198_p4 = scmp.lt.s32.totalorder (!%p159_p3), %s1020_s17, 63 }
   0xc   : > { %v1247_v0 = vld [vmem:[%s1517_s1 + $0x38] sm:$0xff]  ;;  %v345_v1 = vld [vmem:[%s1517_s1 + $0x48] sm:$0x3]  ;;  %vm596_vm0 = vcmask 1040384   ;;  %vm597_vm1 = vcmask 1041408   ;;  %v1246_v3 = vld [vmem:[%s1517_s1 + $0x30] sm:$0xff] }
   0xd   : > { %v527_v2 = vunpack.c.l.b16 %v345_v1  ;;  %603 = vmatpush.bf16.msra.mxu0 %v1247_v0  ;;  %1249 = vmatpush.bf16.msra.mxu2 %v1247_v0  ;;  %v1308_v4 = vmov 65535   ;;  %s1524_s17 = smov (!%p198_p4, %s1020_s17), 63  ;;  %v1245_v9 = vld [vmem:[%s1517_s1 + $0x28] sm:$0xff]  ;;  %v1248_v10 = vld [vmem:[%s1517_s1 + $0x40] sm:$0xff]  ;;  %vm547_vm2 = vcmask 154624   ;;  %v1243_v18 = vld [vmem:[%s1517_s1 + $0x18] sm:$0xff] }
   0xe   : > { %v598_v5 = vsel %vm596_vm0, 4294967295, %v1308_v4  ;;  %s1207_s22 = sshll.u32 %s1524_s17, 3  ;;  %v1244_v14 = vld [vmem:[%s1517_s1 + $0x20] sm:$0xff]  ;;  %v1242_v19 = vld [vmem:[%s1517_s1 + $0x10] sm:$0xff]  ;;  %v1241_v20 = vld [vmem:[%s1517_s1 + $0x8] sm:$0xff] }
   0xf   : > { %v537_v6 = vpack.c.b16 %v527_v2, %v527_v2  ;;  %v599_v7 = vsel %vm597_vm1, %v598_v5, 0  ;;  %s1365_s27 = scalar_lea.vmem %s1516_s0, %s1207_s22  ;;  %v1240_v26 = vld [vmem:[%s1517_s1] sm:$0xff]  ;;  %s1467_s15 = scalar_lea.vmem %s1518_s2, %s1207_s22 }
  0x10   : > { %v1208_v11 = vld [vmem:[%s1365_s27 + $0x4] sm:$0xf]  ;;  %v1029_v12 = vld [vmem:[%s1365_s27 + $0x8] sm:$0xf0]  ;;  %v1226_v15 = vld [vmem:[%s1365_s27 + $0x94] sm:$0xf] }
  0x11   : > { %v601_v8 = vand.u32 %v599_v7, %v537_v6  ;;  %604 = vmatpush.bf16.msra.mxu0 %v1246_v3  ;;  %1250 = vmatpush.bf16.msra.mxu2 %v1246_v3  ;;  %v1032_v13 = vor.u32 %v1208_v11, %v1029_v12  ;;  %v1101_v16 = vld [vmem:[%s1365_s27 + $0x98] sm:$0xf0]  ;;  %v1210_v21 = vld [vmem:[%s1365_s27 + $0x14] sm:$0xf]  ;;  %v1228_v23 = vld [vmem:[%s1365_s27 + $0xa4] sm:$0xf] }
  0x12   : > { %v1104_v17 = vor.u32 %v1226_v15, %v1101_v16  ;;  %v1037_v22 = vld [vmem:[%s1365_s27 + $0x18] sm:$0xf0]  ;;  %v1109_v24 = vld [vmem:[%s1365_s27 + $0xa8] sm:$0xf0]  ;;  %v1027_v27 = vld [vmem:[%s1365_s27] sm:$0xf] }
  0x13   : > { %698 = vmatpush.bf16.msra.mxu1 %v601_v8  ;;  %1257 = vmatpush.bf16.msra.mxu3 %v601_v8  ;;  %v1040_v25 = vor.u32 %v1210_v21, %v1037_v22  ;;  %v1209_v28 = vld [vmem:[%s1365_s27 + $0x4] sm:$0xf0]  ;;  %v1091_v29 = vld [vmem:[%s1365_s27 + $0x80] sm:$0xf]  ;;  %v1112_v31 = vor.u32 %v1228_v23, %v1109_v24  ;;  %v1212_v34 = vld [vmem:[%s1365_s27 + $0x24] sm:$0xf] }
  0x14   : > { %v1225_v30 = vld [vmem:[%s1365_s27 + $0x84] sm:$0xf0]  ;;  %v1028_v32 = vor.u32 %v1209_v28, %v1027_v27  ;;  %v1045_v35 = vld [vmem:[%s1365_s27 + $0x28] sm:$0xf0]  ;;  %v1230_v36 = vld [vmem:[%s1365_s27 + $0xb4] sm:$0xf] }
  0x15   : > { %605 = vmatpush.bf16.msra.mxu0 %v1245_v9  ;;  %1251 = vmatpush.bf16.msra.mxu2 %v1245_v9  ;;  %v1092_v33 = vor.u32 %v1225_v30, %v1091_v29  ;;  %v1117_v37 = vld [vmem:[%s1365_s27 + $0xb8] sm:$0xf0]  ;;  %v1048_v38 = vor.u32 %v1212_v34, %v1045_v35  ;;  %v1035_v39 = vld [vmem:[%s1365_s27 + $0x10] sm:$0xf]  ;;  %v1211_v40 = vld [vmem:[%s1365_s27 + $0x14] sm:$0xf0] }
  0x16   : > { %v1099_v41 = vld [vmem:[%s1365_s27 + $0x90] sm:$0xf]  ;;  %v1227_v42 = vld [vmem:[%s1365_s27 + $0x94] sm:$0xf0]  ;;  %v1120_v43 = vor.u32 %v1230_v36, %v1117_v37  ;;  %v1036_v44 = vor.u32 %v1211_v40, %v1035_v39  ;;  %v1214_v46 = vld [vmem:[%s1365_s27 + $0x34] sm:$0xf] }
  0x17   : > { %699 = vmatpush.bf16.msra.mxu1 %v1248_v10  ;;  %1258 = vmatpush.bf16.msra.mxu3 %v1248_v10  ;;  %v1100_v45 = vor.u32 %v1227_v42, %v1099_v41  ;;  %v1053_v47 = vld [vmem:[%s1365_s27 + $0x38] sm:$0xf0]  ;;  %v1232_v48 = vld [vmem:[%s1365_s27 + $0xc4] sm:$0xf]  ;;  %v1125_v49 = vld [vmem:[%s1365_s27 + $0xc8] sm:$0xf0] }
  0x18   : > { %v1056_v50 = vor.u32 %v1214_v46, %v1053_v47  ;;  %v1043_v51 = vld [vmem:[%s1365_s27 + $0x20] sm:$0xf]  ;;  %v1213_v52 = vld [vmem:[%s1365_s27 + $0x24] sm:$0xf0]  ;;  %v1128_v55 = vor.u32 %v1232_v48, %v1125_v49  ;;  %v1216_v58 = vld [vmem:[%s1365_s27 + $0x44] sm:$0xf] }
  0x19   : > { %606 = vmatpush.bf16.msra.mxu0 %v1244_v14  ;;  %1252 = vmatpush.bf16.msra.mxu2 %v1244_v14  ;;  %v1107_v53 = vld [vmem:[%s1365_s27 + $0xa0] sm:$0xf]  ;;  %v1229_v54 = vld [vmem:[%s1365_s27 + $0xa4] sm:$0xf0]  ;;  %v1044_v56 = vor.u32 %v1213_v52, %v1043_v51  ;;  %v1061_v59 = vld [vmem:[%s1365_s27 + $0x48] sm:$0xf0] }
  0x1a   : > { %1189 = vmatmul.msk.bf16.vlgmr.msra.gmra.mxu1 %vm547_vm2, %v1032_v13  ;;  %1198 = vmatmul.msk.bf16.vlgmr.msra.gmra.mxu3 %vm547_vm2, %v1104_v17  ;;  %v1108_v57 = vor.u32 %v1229_v54, %v1107_v53  ;;  %v1234_v60 = vld [vmem:[%s1365_s27 + $0xd4] sm:$0xf]  ;;  %v1133_v61 = vld [vmem:[%s1365_s27 + $0xd8] sm:$0xf0]  ;;  %v1064_v62 = vor.u32 %v1216_v58, %v1061_v59  ;;  %v1051_v63 = vld [vmem:[%s1365_s27 + $0x30] sm:$0xf] }
  0x1b   : > { %v1215_v0 = vld [vmem:[%s1365_s27 + $0x34] sm:$0xf0]  ;;  %v1115_v1 = vld [vmem:[%s1365_s27 + $0xb0] sm:$0xf]  ;;  %v1136_v3 = vor.u32 %v1234_v60, %v1133_v61  ;;  %v1218_v6 = vld [vmem:[%s1365_s27 + $0x54] sm:$0xf] }
  0x1c   : > { %v1231_v2 = vld [vmem:[%s1365_s27 + $0xb4] sm:$0xf0]  ;;  %v1052_v4 = vor.u32 %v1215_v0, %v1051_v63  ;;  %v1069_v7 = vld [vmem:[%s1365_s27 + $0x58] sm:$0xf0]  ;;  %v1236_v8 = vld [vmem:[%s1365_s27 + $0xe4] sm:$0xf] }
  0x1d   : > { %607 = vmatpush.bf16.msra.mxu0 %v1243_v18  ;;  %1253 = vmatpush.bf16.msra.mxu2 %v1243_v18  ;;  %v1116_v5 = vor.u32 %v1231_v2, %v1115_v1  ;;  %v1141_v9 = vld [vmem:[%s1365_s27 + $0xe8] sm:$0xf0]  ;;  %v1072_v10 = vor.u32 %v1218_v6, %v1069_v7  ;;  %v1059_v11 = vld [vmem:[%s1365_s27 + $0x40] sm:$0xf]  ;;  %v1217_v12 = vld [vmem:[%s1365_s27 + $0x44] sm:$0xf0] }
  0x1e   : > { %v1123_v13 = vld [vmem:[%s1365_s27 + $0xc0] sm:$0xf]  ;;  %v1233_v14 = vld [vmem:[%s1365_s27 + $0xc4] sm:$0xf0]  ;;  %v1144_v15 = vor.u32 %v1236_v8, %v1141_v9  ;;  %v1060_v16 = vor.u32 %v1217_v12, %v1059_v11  ;;  %v1220_v18 = vld [vmem:[%s1365_s27 + $0x64] sm:$0xf] }
  0x1f   : > { %v1124_v17 = vor.u32 %v1233_v14, %v1123_v13  ;;  %v1149_v21 = vld [vmem:[%s1365_s27 + $0xf8] sm:$0xf0]  ;;  %v1067_v23 = vld [vmem:[%s1365_s27 + $0x50] sm:$0xf]  ;;  %v1219_v24 = vld [vmem:[%s1365_s27 + $0x54] sm:$0xf0] }
  0x20   : > { %v1068_v28 = vor.u32 %v1219_v24, %v1067_v23  ;;  %v1222_v30 = vld [vmem:[%s1365_s27 + $0x74] sm:$0xf]  ;;  %v1221_v34 = vld [vmem:[%s1365_s27 + $0x64] sm:$0xf0]  ;;  %v1139_v35 = vld [vmem:[%s1365_s27 + $0xe0] sm:$0xf] }
  0x21   : > { %608 = vmatpush.bf16.msra.mxu0 %v1242_v19  ;;  %1254 = vmatpush.bf16.msra.mxu2 %v1242_v19  ;;  %v1077_v19 = vld [vmem:[%s1365_s27 + $0x68] sm:$0xf0]  ;;  %v1237_v36 = vld [vmem:[%s1365_s27 + $0xe4] sm:$0xf0]  ;;  %v1224_v39 = vld [vmem:[%s1365_s27 + $0x84] sm:$0xf] }
  0x22   : > { %v1080_v22 = vor.u32 %v1220_v18, %v1077_v19  ;;  %v1093_v40 = vld [vmem:[%s1365_s27 + $0x88] sm:$0xf0]  ;;  %v1083_v42 = vld [vmem:[%s1365_s27 + $0x70] sm:$0xf]  ;;  %v1239_v46 = vld [vmem:[%s1365_s27 + $0xf4] sm:$0xf0] }
  0x23   : > { %v1096_v41 = vor.u32 %v1224_v39, %v1093_v40 }
  0x25   : > { %609 = vmatpush.bf16.msra.mxu0 %v1241_v20  ;;  %1255 = vmatpush.bf16.msra.mxu2 %v1241_v20  ;;  %v1238_v20 = vld [vmem:[%s1365_s27 + $0xf4] sm:$0xf] }
  0x26   : > { %v1152_v27 = vor.u32 %v1238_v20, %v1149_v21 }
  0x29   : > { %610 = vmatpush.bf16.msra.mxu0 %v1240_v26  ;;  %1256 = vmatpush.bf16.msra.mxu2 %v1240_v26  ;;  %v1235_v26 = vld [vmem:[%s1365_s27 + $0xd4] sm:$0xf0] }
  0x2a   : > { %1190 = vmatmul.msk.bf16.gmra.mxu1 %vm547_vm2, %v1040_v25  ;;  %1199 = vmatmul.msk.bf16.gmra.mxu3 %vm547_vm2, %v1112_v31  ;;  %v1131_v25 = vld [vmem:[%s1365_s27 + $0xd0] sm:$0xf]  ;;  %v1085_v31 = vld [vmem:[%s1365_s27 + $0x78] sm:$0xf0] }
  0x2b   : > { %v1132_v29 = vor.u32 %v1235_v26, %v1131_v25 }
  0x2c   : > { %611 = vmatmul.bf16.vlgmr.msra.gmra.mxu0 %v1028_v32  ;;  %651 = vmatmul.bf16.vlgmr.msra.gmra.mxu2 %v1092_v33  ;;  %v1088_v32 = vor.u32 %v1222_v30, %v1085_v31  ;;  %v1075_v33 = vld [vmem:[%s1365_s27 + $0x60] sm:$0xf] }
  0x2d   : > { %v1076_v37 = vor.u32 %v1221_v34, %v1075_v33 }
  0x3a   : > { %1191 = vmatmul.msk.bf16.gmra.mxu1 %vm547_vm2, %v1048_v38  ;;  %1200 = vmatmul.msk.bf16.gmra.mxu3 %vm547_vm2, %v1120_v43  ;;  %v1140_v38 = vor.u32 %v1237_v36, %v1139_v35  ;;  %v1223_v43 = vld [vmem:[%s1365_s27 + $0x74] sm:$0xf0] }
  0x3b   : > { %v1084_v47 = vor.u32 %v1223_v43, %v1083_v42 }
  0x3c   : > { %616 = vmatmul.bf16.gmra.mxu0 %v1036_v44  ;;  %656 = vmatmul.bf16.gmra.mxu2 %v1100_v45  ;;  %v1147_v45 = vld [vmem:[%s1365_s27 + $0xf0] sm:$0xf] }
  0x3d   : > { %v1148_v48 = vor.u32 %v1239_v46, %v1147_v45 }
  0x4a   : > { %1192 = vmatmul.msk.bf16.gmra.mxu1 %vm547_vm2, %v1056_v50  ;;  %1201 = vmatmul.msk.bf16.gmra.mxu3 %vm547_vm2, %v1128_v55 }
  0x4c   : > { %621 = vmatmul.bf16.gmra.mxu0 %v1044_v56  ;;  %661 = vmatmul.bf16.gmra.mxu2 %v1108_v57 }
  0x5a   : > { %1193 = vmatmul.msk.bf16.gmra.mxu1 %vm547_vm2, %v1064_v62  ;;  %1202 = vmatmul.msk.bf16.gmra.mxu3 %vm547_vm2, %v1136_v3 }
  0x5c   : > { %626 = vmatmul.bf16.gmra.mxu0 %v1052_v4  ;;  %666 = vmatmul.bf16.gmra.mxu2 %v1116_v5 }
  0x6a   : > { %1194 = vmatmul.msk.bf16.gmra.mxu1 %vm547_vm2, %v1072_v10  ;;  %1203 = vmatmul.msk.bf16.gmra.mxu3 %vm547_vm2, %v1144_v15 }
  0x6c   : > { %631 = vmatmul.bf16.gmra.mxu0 %v1060_v16  ;;  %671 = vmatmul.bf16.gmra.mxu2 %v1124_v17 }
  0x7a   : > { %1195 = vmatmul.msk.bf16.gmra.mxu1 %vm547_vm2, %v1080_v22  ;;  %1204 = vmatmul.msk.bf16.gmra.mxu3 %vm547_vm2, %v1152_v27 }
  0x7c   : > { %636 = vmatmul.bf16.gmra.mxu0 %v1068_v28  ;;  %676 = vmatmul.bf16.gmra.mxu2 %v1132_v29 }
  0x8a   : > { %1196 = vmatmul.msk.bf16.gmra.mxu1 %vm547_vm2, %v1088_v32 }
  0x8c   : > { %641 = vmatmul.bf16.gmra.mxu0 %v1076_v37  ;;  %681 = vmatmul.bf16.gmra.mxu2 %v1140_v38 }
  0x97   : > { %v701_v44 = vpop.f32.mrf.mxu1 }
  0x9a   : > { %1197 = vmatmul.msk.bf16.gmra.mxu1 %vm547_vm2, %v1096_v41 }
  0x9c   : > { %646 = vmatmul.bf16.gmra.mxu0 %v1084_v47  ;;  %686 = vmatmul.bf16.gmra.mxu2 %v1148_v48 }
  0x9d   : > { %v746_v51 = vpop.f32.mrf.mxu3 }
  0x9f   : > { %v703_v49 = vpop.f32.mrf.mxu1 }
  0xa5   : > { %v748_v56 = vpop.f32.mrf.mxu3 }
  0xa7   : > { %v706_v50 = vpop.f32.mrf.mxu1 }
  0xa9   : > { %v612_v52 = vpop.f32.mrf.mxu0 }
  0xaa   : > { %v702_v53 = vadd.f32 %v701_v44, %v612_v52 }
  0xac   : > { %880 = vst [vmem:[%s1467_s15] sm:$0xff] %v702_v53 }
  0xad   : > { %v751_v63 = vpop.f32.mrf.mxu3 }
  0xaf   : > { %v708_v54 = vpop.f32.mrf.mxu1  ;;  %v1470_v55 = vpop.f32.mrf.mxu2 }
  0xb1   : > { %v614_v57 = vpop.f32.mrf.mxu0 }
  0xb2   : > { %v704_v58 = vadd.f32 %v703_v49, %v614_v57 }
  0xb4   : > { %881 = vst [vmem:[%s1467_s15 + $0x8] sm:$0xff] %v704_v58 }
  0xb5   : > { %v753_v5 = vpop.f32.mrf.mxu3 }
  0xb7   : > { %v711_v59 = vpop.f32.mrf.mxu1  ;;  %v1473_v60 = vpop.f32.mrf.mxu2 }
  0xb9   : > { %v617_v61 = vpop.f32.mrf.mxu0 }
  0xba   : > { %v707_v62 = vadd.f32 %v706_v50, %v617_v61 }
  0xbc   : > { %882 = vst [vmem:[%s1467_s15 + $0x10] sm:$0xff] %v707_v62 }
  0xbd   : > { %v756_v12 = vpop.f32.mrf.mxu3 }
  0xbf   : > { %v713_v0 = vpop.f32.mrf.mxu1  ;;  %v657_v1 = vpop.f32.mrf.mxu2 }
  0xc0   : > { %v747_v2 = vadd.f32 %v746_v51, %v657_v1 }
  0xc1   : > { %v619_v3 = vpop.f32.mrf.mxu0 }
  0xc2   : > { %v709_v4 = vadd.f32 %v708_v54, %v619_v3  ;;  %898 = vst [vmem:[%s1467_s15 + $0x90] sm:$0xff] %v747_v2 }
  0xc4   : > { %883 = vst [vmem:[%s1467_s15 + $0x18] sm:$0xff] %v709_v4 }
  0xc5   : > { %v758_v19 = vpop.f32.mrf.mxu3 }
  0xc7   : > { %v716_v6 = vpop.f32.mrf.mxu1  ;;  %v659_v7 = vpop.f32.mrf.mxu2 }
  0xc8   : > { %v749_v8 = vadd.f32 %v748_v56, %v659_v7 }
  0xc9   : > { %v622_v9 = vpop.f32.mrf.mxu0 }
  0xca   : > { %v712_v10 = vadd.f32 %v711_v59, %v622_v9  ;;  %899 = vst [vmem:[%s1467_s15 + $0x98] sm:$0xff] %v749_v8 }
  0xcc   : > { %884 = vst [vmem:[%s1467_s15 + $0x20] sm:$0xff] %v712_v10 }
  0xcd   : > { %v761_v28 = vpop.f32.mrf.mxu3 }
  0xcf   : > { %v718_v11 = vpop.f32.mrf.mxu1  ;;  %v662_v13 = vpop.f32.mrf.mxu2 }
  0xd0   : > { %v752_v14 = vadd.f32 %v751_v63, %v662_v13 }
  0xd1   : > { %v624_v15 = vpop.f32.mrf.mxu0 }
  0xd2   : > { %v714_v16 = vadd.f32 %v713_v0, %v624_v15  ;;  %900 = vst [vmem:[%s1467_s15 + $0xa0] sm:$0xff] %v752_v14 }
  0xd4   : > { %885 = vst [vmem:[%s1467_s15 + $0x28] sm:$0xff] %v714_v16 }
  0xd5   : > { %v763_v34 = vpop.f32.mrf.mxu3 }
  0xd7   : > { %v721_v17 = vpop.f32.mrf.mxu1  ;;  %v664_v18 = vpop.f32.mrf.mxu2 }
  0xd8   : > { %v754_v20 = vadd.f32 %v753_v5, %v664_v18 }
  0xd9   : > { %v627_v21 = vpop.f32.mrf.mxu0 }
  0xda   : > { %v717_v22 = vadd.f32 %v716_v6, %v627_v21  ;;  %901 = vst [vmem:[%s1467_s15 + $0xa8] sm:$0xff] %v754_v20 }
  0xdc   : > { %886 = vst [vmem:[%s1467_s15 + $0x30] sm:$0xff] %v717_v22 }
  0xdd   : > { %v766_v41 = vpop.f32.mrf.mxu3 }
  0xdf   : > { %v723_v23 = vpop.f32.mrf.mxu1  ;;  %v667_v24 = vpop.f32.mrf.mxu2 }
  0xe0   : > { %v757_v25 = vadd.f32 %v756_v12, %v667_v24 }
  0xe1   : > { %v629_v26 = vpop.f32.mrf.mxu0 }
  0xe2   : > { %v719_v27 = vadd.f32 %v718_v11, %v629_v26  ;;  %902 = vst [vmem:[%s1467_s15 + $0xb0] sm:$0xff] %v757_v25 }
  0xe4   : > { %887 = vst [vmem:[%s1467_s15 + $0x38] sm:$0xff] %v719_v27 }
  0xe5   : > { %v768_v48 = vpop.f32.mrf.mxu3 }
  0xe7   : > { %v726_v29 = vpop.f32.mrf.mxu1  ;;  %v669_v30 = vpop.f32.mrf.mxu2 }
  0xe8   : > { %v759_v31 = vadd.f32 %v758_v19, %v669_v30 }
  0xe9   : > { %v632_v32 = vpop.f32.mrf.mxu0 }
  0xea   : > { %v722_v33 = vadd.f32 %v721_v17, %v632_v32  ;;  %903 = vst [vmem:[%s1467_s15 + $0xb8] sm:$0xff] %v759_v31 }
  0xec   : > { %888 = vst [vmem:[%s1467_s15 + $0x40] sm:$0xff] %v722_v33 }
  0xed   : > { %v771_v57 = vpop.f32.mrf.mxu3 }
  0xef   : > { %v728_v35 = vpop.f32.mrf.mxu1  ;;  %v672_v36 = vpop.f32.mrf.mxu2 }
  0xf0   : > { %v762_v37 = vadd.f32 %v761_v28, %v672_v36 }
  0xf1   : > { %v634_v38 = vpop.f32.mrf.mxu0 }
  0xf2   : > { %v724_v39 = vadd.f32 %v723_v23, %v634_v38  ;;  %904 = vst [vmem:[%s1467_s15 + $0xc0] sm:$0xff] %v762_v37 }
  0xf4   : > { %889 = vst [vmem:[%s1467_s15 + $0x48] sm:$0xff] %v724_v39 }
  0xf5   : > { %v773_v1 = vpop.f32.mrf.mxu3 }
  0xf7   : > { %v731_v40 = vpop.f32.mrf.mxu1  ;;  %v674_v42 = vpop.f32.mrf.mxu2 }
  0xf8   : > { %v764_v43 = vadd.f32 %v763_v34, %v674_v42 }
  0xf9   : > { %v637_v44 = vpop.f32.mrf.mxu0 }
  0xfa   : > { %v727_v45 = vadd.f32 %v726_v29, %v637_v44  ;;  %905 = vst [vmem:[%s1467_s15 + $0xc8] sm:$0xff] %v764_v43 }
  0xfc   : > { %890 = vst [vmem:[%s1467_s15 + $0x50] sm:$0xff] %v727_v45 }
  0xfd   : > { %v776_v8 = vpop.f32.mrf.mxu3 }
  0xff   : > { %v733_v46 = vpop.f32.mrf.mxu1  ;;  %v677_v47 = vpop.f32.mrf.mxu2 }
 0x100   : > { %v767_v49 = vadd.f32 %v766_v41, %v677_v47 }
 0x101   : > { %v639_v50 = vpop.f32.mrf.mxu0 }
 0x102   : > { %v729_v51 = vadd.f32 %v728_v35, %v639_v50  ;;  %906 = vst [vmem:[%s1467_s15 + $0xd0] sm:$0xff] %v767_v49 }
 0x104   : > { %891 = vst [vmem:[%s1467_s15 + $0x58] sm:$0xff] %v729_v51 }
 0x107   : > { %v736_v52 = vpop.f32.mrf.mxu1  ;;  %v679_v53 = vpop.f32.mrf.mxu2 }
 0x108   : > { %v769_v54 = vadd.f32 %v768_v48, %v679_v53 }
 0x109   : > { %v642_v56 = vpop.f32.mrf.mxu0 }
 0x10a   : > { %v732_v58 = vadd.f32 %v731_v40, %v642_v56  ;;  %907 = vst [vmem:[%s1467_s15 + $0xd8] sm:$0xff] %v769_v54 }
 0x10c   : > { %892 = vst [vmem:[%s1467_s15 + $0x60] sm:$0xff] %v732_v58 }
 0x10f   : > { %v738_v59 = vpop.f32.mrf.mxu1  ;;  %v682_v61 = vpop.f32.mrf.mxu2 }
 0x110   : > { %v772_v62 = vadd.f32 %v771_v57, %v682_v61 }
 0x111   : > { %v644_v63 = vpop.f32.mrf.mxu0 }
 0x112   : > { %v734_v0 = vadd.f32 %v733_v46, %v644_v63  ;;  %908 = vst [vmem:[%s1467_s15 + $0xe0] sm:$0xff] %v772_v62 }
 0x114   : > { %893 = vst [vmem:[%s1467_s15 + $0x68] sm:$0xff] %v734_v0 }
 0x117   : > { %v741_v2 = vpop.f32.mrf.mxu1  ;;  %v684_v4 = vpop.f32.mrf.mxu2 }
 0x118   : > { %v742_v3 = vadd.f32 %v741_v2, %v1470_v55  ;;  %v774_v5 = vadd.f32 %v773_v1, %v684_v4  ;;  %v778_v55 = vpop.f32.mrf.mxu3 }
 0x119   : > { %v647_v6 = vpop.f32.mrf.mxu0 }
 0x11a   : > { %896 = vst [vmem:[%s1467_s15 + $0x80] sm:$0xff] %v742_v3  ;;  %v737_v7 = vadd.f32 %v736_v52, %v647_v6 }
 0x11b   : > { %909 = vst [vmem:[%s1467_s15 + $0xe8] sm:$0xff] %v774_v5 }
 0x11c   : > { %894 = vst [vmem:[%s1467_s15 + $0x70] sm:$0xff] %v737_v7 }
 0x11f   : > { %v743_v9 = vpop.f32.mrf.mxu1  ;;  %v687_v11 = vpop.f32.mrf.mxu2 }
 0x120   : > { %v744_v10 = vadd.f32 %v743_v9, %v1473_v60  ;;  %v777_v12 = vadd.f32 %v776_v8, %v687_v11 }
 0x121   : > { %v649_v13 = vpop.f32.mrf.mxu0 }
 0x122   : > { %897 = vst [vmem:[%s1467_s15 + $0x88] sm:$0xff] %v744_v10  ;;  %v739_v14 = vadd.f32 %v738_v59, %v649_v13 }
 0x123   : > { %910 = vst [vmem:[%s1467_s15 + $0xf0] sm:$0xff] %v777_v12 }
 0x124   : > { %895 = vst [vmem:[%s1467_s15 + $0x78] sm:$0xff] %v739_v14 }
 0x127   : > { %v689_v15 = vpop.f32.mrf.mxu2 }
 0x128   : > { %v779_v16 = vadd.f32 %v778_v55, %v689_v15 }
 0x12a   : > { %911 = vst [vmem:[%s1467_s15 + $0xf8] sm:$0xff] %v779_v16 }
 0x12b PF: > { %s12_s11 = sadd.s32 1, %s1306_s11   ;;  %s1519_s9 = smov %s1302_s10 }
 0x12c   : > { %p9_p5 = scmp.ge.s32.totalorder %s12_s11, 4   ;;  %s1520_s10 = smov %s1522_s12 }
 0x12e   :  { %11 = sbr.rel (!%p9_p5) target bundleno = 2 (0x2), region = 69 }

// kernel: _lambda_.35
= control target key start
LH: loop header
LB: loop body
LE: loop exit
PB: predicated region body
PF: predicated region fallthrough
CT: control target
= control target key end

     0   :  { %vm165_vm0 = vcmask 1043456   ;;  %vm140_vm1 = vcmask 588800   ;;  %s482_s1 = inlined_call_operand.vmem [shape: bf16[72,128], index: 1, kind: input, shape index: {}]   ;;  %s483_s0 = inlined_call_operand.vmem [shape: bf16[128,72], index: 0, kind: input, shape index: {}]   ;;  %s484_s2 = inlined_call_operand.vmem [shape: f32[128,128], index: 2, kind: output, shape index: {}]  }
   0x1   :  { %v72_v0 = vld [vmem:[%s482_s1 + $0x20] sm:$0xf]  ;;  %v356_v4 = vld [vmem:[%s482_s1 + $0x18] sm:$0xff]  ;;  %v355_v5 = vld [vmem:[%s482_s1 + $0x10] sm:$0xff] }
   0x2   :  { %v130_v1 = vunpack.c.l.b16 %v72_v0  ;;  %v354_v6 = vld [vmem:[%s482_s1 + $0x8] sm:$0xff]  ;;  %v353_v7 = vld [vmem:[%s482_s1] sm:$0xff]  ;;  %v347_v9 = vld [vmem:[%s483_s0 + $0x10] sm:$0xff] }
   0x3   :  { %v345_v8 = vld [vmem:[%s483_s0] sm:$0xff]  ;;  %v351_v11 = vld [vmem:[%s483_s0 + $0x30] sm:$0xff]  ;;  %v346_v12 = vld [vmem:[%s483_s0 + $0x8] sm:$0xff] }
   0x4   :  { %v135_v2 = vpack.c.b16 %v130_v1, %v130_v1  ;;  %v349_v10 = vld [vmem:[%s483_s0 + $0x20] sm:$0xff]  ;;  %v348_v13 = vld [vmem:[%s483_s0 + $0x18] sm:$0xff]  ;;  %v350_v14 = vld [vmem:[%s483_s0 + $0x28] sm:$0xff] }
   0x5   :  { %v352_v15 = vld [vmem:[%s483_s0 + $0x38] sm:$0xff] }
   0x6   :  { %v167_v3 = vsel %vm165_vm0, %v135_v2, 0 }
   0x7   :  { %172 = vmatpush.bf16.msra.mxu0 %v167_v3  ;;  %357 = vmatpush.bf16.msra.mxu1 %v167_v3 }
   0x8   :  { %358 = vmatpush.bf16.msra.mxu2 %v167_v3  ;;  %359 = vmatpush.bf16.msra.mxu3 %v167_v3 }
   0xb   :  { %173 = vmatpush.bf16.msra.mxu0 %v356_v4  ;;  %360 = vmatpush.bf16.msra.mxu1 %v356_v4 }
   0xc   :  { %361 = vmatpush.bf16.msra.mxu2 %v356_v4  ;;  %362 = vmatpush.bf16.msra.mxu3 %v356_v4 }
   0xf   :  { %174 = vmatpush.bf16.msra.mxu0 %v355_v5  ;;  %363 = vmatpush.bf16.msra.mxu1 %v355_v5 }
  0x10   :  { %364 = vmatpush.bf16.msra.mxu2 %v355_v5  ;;  %365 = vmatpush.bf16.msra.mxu3 %v355_v5 }
  0x13   :  { %175 = vmatpush.bf16.msra.mxu0 %v354_v6  ;;  %366 = vmatpush.bf16.msra.mxu1 %v354_v6 }
  0x14   :  { %367 = vmatpush.bf16.msra.mxu2 %v354_v6  ;;  %368 = vmatpush.bf16.msra.mxu3 %v354_v6 }
  0x17   :  { %176 = vmatpush.bf16.msra.mxu0 %v353_v7  ;;  %369 = vmatpush.bf16.msra.mxu1 %v353_v7 }
  0x18   :  { %370 = vmatpush.bf16.msra.mxu2 %v353_v7  ;;  %371 = vmatpush.bf16.msra.mxu3 %v353_v7 }
  0x1a   :  { %337 = vmatmul.msk.bf16.vlgmr.msra.gmra.mxu0 %vm140_vm1, %v345_v8  ;;  %339 = vmatmul.msk.bf16.vlgmr.msra.gmra.mxu1 %vm140_vm1, %v347_v9 }
  0x1b   :  { %341 = vmatmul.msk.bf16.vlgmr.msra.gmra.mxu2 %vm140_vm1, %v349_v10  ;;  %343 = vmatmul.msk.bf16.vlgmr.msra.gmra.mxu3 %vm140_vm1, %v351_v11 }
  0x2a   :  { %338 = vmatmul.msk.bf16.gmra.mxu0 %vm140_vm1, %v346_v12  ;;  %340 = vmatmul.msk.bf16.gmra.mxu1 %vm140_vm1, %v348_v13 }
  0x2b   :  { %342 = vmatmul.msk.bf16.gmra.mxu2 %vm140_vm1, %v350_v14  ;;  %344 = vmatmul.msk.bf16.gmra.mxu3 %vm140_vm1, %v352_v15 }
  0x97   :  { %v178_v16 = vpop.f32.mrf.mxu0  ;;  %v188_v17 = vpop.f32.mrf.mxu1 }
  0x98   :  { %269 = vst [vmem:[%s484_s2] sm:$0xff] %v178_v16 }
  0x99   :  { %273 = vst [vmem:[%s484_s2 + $0x20] sm:$0xff] %v188_v17 }
  0x9e   :  { %v198_v18 = vpop.f32.mrf.mxu2  ;;  %v208_v19 = vpop.f32.mrf.mxu3 }
  0x9f   :  { %277 = vst [vmem:[%s484_s2 + $0x40] sm:$0xff] %v198_v18  ;;  %v180_v20 = vpop.f32.mrf.mxu0  ;;  %v190_v21 = vpop.f32.mrf.mxu1 }
  0xa0   :  { %281 = vst [vmem:[%s484_s2 + $0x60] sm:$0xff] %v208_v19 }
  0xa1   :  { %270 = vst [vmem:[%s484_s2 + $0x8] sm:$0xff] %v180_v20 }
  0xa2   :  { %274 = vst [vmem:[%s484_s2 + $0x28] sm:$0xff] %v190_v21 }
  0xa6   :  { %v200_v22 = vpop.f32.mrf.mxu2  ;;  %v210_v23 = vpop.f32.mrf.mxu3 }
  0xa7   :  { %278 = vst [vmem:[%s484_s2 + $0x48] sm:$0xff] %v200_v22  ;;  %v183_v24 = vpop.f32.mrf.mxu0  ;;  %v193_v25 = vpop.f32.mrf.mxu1 }
  0xa8   :  { %282 = vst [vmem:[%s484_s2 + $0x68] sm:$0xff] %v210_v23 }
  0xa9   :  { %271 = vst [vmem:[%s484_s2 + $0x10] sm:$0xff] %v183_v24 }
  0xaa   :  { %275 = vst [vmem:[%s484_s2 + $0x30] sm:$0xff] %v193_v25 }
  0xae   :  { %v203_v26 = vpop.f32.mrf.mxu2  ;;  %v213_v27 = vpop.f32.mrf.mxu3 }
  0xaf   :  { %279 = vst [vmem:[%s484_s2 + $0x50] sm:$0xff] %v203_v26  ;;  %v185_v28 = vpop.f32.mrf.mxu0  ;;  %v195_v29 = vpop.f32.mrf.mxu1 }
  0xb0   :  { %283 = vst [vmem:[%s484_s2 + $0x70] sm:$0xff] %v213_v27 }
  0xb1   :  { %272 = vst [vmem:[%s484_s2 + $0x18] sm:$0xff] %v185_v28 }
  0xb2   :  { %276 = vst [vmem:[%s484_s2 + $0x38] sm:$0xff] %v195_v29 }
  0xb6   :  { %v205_v30 = vpop.f32.mrf.mxu2  ;;  %v215_v31 = vpop.f32.mrf.mxu3 }
  0xb7   :  { %280 = vst [vmem:[%s484_s2 + $0x58] sm:$0xff] %v205_v30 }
  0xb8   :  { %284 = vst [vmem:[%s484_s2 + $0x78] sm:$0xff] %v215_v31 }

// kernel: _lambda_.36
= control target key start
LH: loop header
LB: loop body
LE: loop exit
PB: predicated region body
PF: predicated region fallthrough
CT: control target
= control target key end

     0   :  { %s328_s6 = smov 0   ;;  %s376_s0 = inlined_call_operand.vmem [shape: f32[2,64,16], index: 0, kind: input, shape index: {}]   ;;  %s377_s1 = inlined_call_operand.vmem [shape: f32[2,64,16], index: 1, kind: output, shape index: {}]  }
   0x1 LB: > { %s283_s7 = sadd.s32 4294967295, %s315_s6   ;;  %p287_p0 = scmp.ge.s32.totalorder %s315_s6, 1  ;;  %s315_s6 = sphi %s328_s6, %s11_s6  }
   0x2   : > { %p87_p1 = scmp.lt.s32.totalorder %s315_s6, 3 }
   0x4   : > { %p88_p2 = pnand %p287_p0, %p87_p1 }
   0x5   : > { %p107_p3 = scmp.lt.s32.totalorder (!%p88_p2), %s283_s7, 1 }
   0x6   : > { %91 = sbr.rel (%p88_p2) target bundleno = 109 (0x6d), region = 24 }
   0xb   : > { %s379_s7 = smov (!%p107_p3, %s283_s7), 1  ;;  %vm125_vm0 = vcmask 130048   ;;  %v317_v3 = vmov 64.0  }
   0xc   : > { %s294_s8 = sshll.u32 %s379_s7, 6  ;;  %305 = vrcp.f32 %v317_v3 }
   0xd   : > { %s111_s11 = scalar_lea.vmem %s376_s0, %s294_s8  ;;  %s116_s14 = scalar_lea.vmem %s377_s1, %s294_s8 }
   0xe   : > { %v117_v0 = vld [vmem:[%s111_s11] sm:$0xff]  ;;  %v118_v1 = vld [vmem:[%s111_s11 + $0x8] sm:$0xff]  ;;  %v119_v2 = vld [vmem:[%s111_s11 + $0x10] sm:$0xff] }
   0xf   : > { %v120_v4 = vld [vmem:[%s111_s11 + $0x18] sm:$0xff]  ;;  %v126_v5 = vsel %vm125_vm0, %v117_v0, 0.0  ;;  %v127_v6 = vsel %vm125_vm0, %v118_v1, 0.0  ;;  %v129_v7 = vsel %vm125_vm0, %v119_v2, 0.0  ;;  %v121_v8 = vld [vmem:[%s111_s11 + $0x20] sm:$0xff]  ;;  %v122_v11 = vld [vmem:[%s111_s11 + $0x28] sm:$0xff] }
  0x10   : > { %v128_v9 = vadd.f32 %v127_v6, %v126_v5  ;;  %v131_v10 = vsel %vm125_vm0, %v120_v4, 0.0  ;;  %v133_v13 = vsel %vm125_vm0, %v121_v8, 0.0  ;;  %v123_v15 = vld [vmem:[%s111_s11 + $0x30] sm:$0xff]  ;;  %v135_v17 = vsel %vm125_vm0, %v122_v11, 0.0  ;;  %v124_v18 = vld [vmem:[%s111_s11 + $0x38] sm:$0xff] }
  0x11   : > { %v137_v20 = vsel %vm125_vm0, %v123_v15, 0.0  ;;  %v139_v23 = vsel %vm125_vm0, %v124_v18, 0.0 }
  0x12   : > { %v130_v12 = vadd.f32 %v129_v7, %v128_v9  ;;  %v306_v14 = vpop.eup %305 }
  0x13   : > { %v148_v21 = vmul.f32 64.0, %v306_v14  ;;  %vm152_vm1 = vweird.f32 %v306_v14 }
  0x14   : > { %v132_v16 = vadd.f32 %v131_v10, %v130_v12 }
  0x15   : > { %v149_v25 = vsub.f32 1.0, %v148_v21 }
  0x16   : > { %v134_v19 = vadd.f32 %v133_v13, %v132_v16 }
  0x17   : > { %v150_v28 = vmul.f32 %v306_v14, %v149_v25 }
  0x18   : > { %v136_v22 = vadd.f32 %v135_v17, %v134_v19 }
  0x19   : > { %v151_v31 = vadd.f32 %v306_v14, %v150_v28 }
  0x1a   : > { %v138_v24 = vadd.f32 %v137_v20, %v136_v22 }
  0x1b   : > { %v153_v34 = vsel %vm152_vm1, %v306_v14, %v151_v31 }
  0x1c   : > { %v140_v26 = vadd.f32 %v139_v23, %v138_v24 }
  0x1e   : > { %v141_v27 = vrot.slane %v140_v26, 4 }
  0x20   : > { %v142_v29 = vadd.f32 %v141_v27, %v140_v26 }
  0x22   : > { %v143_v30 = vrot.slane %v142_v29, 2 }
  0x24   : > { %v144_v32 = vadd.f32 %v143_v30, %v142_v29 }
  0x26   : > { %v145_v33 = vrot.slane %v144_v32, 1 }
  0x28   : > { %v146_v35 = vadd.f32 %v145_v33, %v144_v32 }
  0x2a   : > { %v154_v36 = vmul.f32 %v153_v34, %v146_v35 }
  0x2c   : > { %v155_v37 = vsub.f32 %v117_v0, %v154_v36  ;;  %v156_v38 = vsub.f32 %v118_v1, %v154_v36  ;;  %v157_v39 = vsub.f32 %v119_v2, %v154_v36  ;;  %v158_v40 = vsub.f32 %v120_v4, %v154_v36 }
  0x2d   : > { %v159_v41 = vsub.f32 %v121_v8, %v154_v36  ;;  %v160_v42 = vsub.f32 %v122_v11, %v154_v36  ;;  %v161_v47 = vsub.f32 %v123_v15, %v154_v36  ;;  %v162_v53 = vsub.f32 %v124_v18, %v154_v36 }
  0x2e   : > { %v163_v43 = vmul.f32 %v155_v37, %v155_v37  ;;  %v164_v44 = vmul.f32 %v156_v38, %v156_v38  ;;  %v165_v45 = vmul.f32 %v157_v39, %v157_v39  ;;  %v166_v46 = vmul.f32 %v158_v40, %v158_v40 }
  0x2f   : > { %v167_v48 = vmul.f32 %v159_v41, %v159_v41  ;;  %v168_v54 = vmul.f32 %v160_v42, %v160_v42  ;;  %v169_v57 = vmul.f32 %v161_v47, %v161_v47  ;;  %v170_v60 = vmul.f32 %v162_v53, %v162_v53 }
  0x30   : > { %v171_v49 = vsel %vm125_vm0, %v163_v43, 0.0  ;;  %v172_v50 = vsel %vm125_vm0, %v164_v44, 0.0  ;;  %v174_v51 = vsel %vm125_vm0, %v165_v45, 0.0  ;;  %v176_v55 = vsel %vm125_vm0, %v166_v46, 0.0 }
  0x31   : > { %v173_v52 = vadd.f32 %v172_v50, %v171_v49  ;;  %v178_v58 = vsel %vm125_vm0, %v167_v48, 0.0  ;;  %v180_v61 = vsel %vm125_vm0, %v168_v54, 0.0  ;;  %v182_v63 = vsel %vm125_vm0, %v169_v57, 0.0 }
  0x32   : > { %v184_v1 = vsel %vm125_vm0, %v170_v60, 0.0 }
  0x33   : > { %v175_v56 = vadd.f32 %v174_v51, %v173_v52 }
  0x35   : > { %v177_v59 = vadd.f32 %v176_v55, %v175_v56 }
  0x37   : > { %v179_v62 = vadd.f32 %v178_v58, %v177_v59 }
  0x39   : > { %v181_v0 = vadd.f32 %v180_v61, %v179_v62 }
  0x3b   : > { %v183_v2 = vadd.f32 %v182_v63, %v181_v0 }
  0x3d   : > { %v185_v3 = vadd.f32 %v184_v1, %v183_v2 }
  0x3f   : > { %v186_v4 = vrot.slane %v185_v3, 4 }
  0x41   : > { %v187_v5 = vadd.f32 %v186_v4, %v185_v3 }
  0x43   : > { %v188_v6 = vrot.slane %v187_v5, 2 }
  0x45   : > { %v189_v7 = vadd.f32 %v188_v6, %v187_v5 }
  0x47   : > { %v190_v8 = vrot.slane %v189_v7, 1 }
  0x49   : > { %v191_v9 = vadd.f32 %v190_v8, %v189_v7 }
  0x4b   : > { %v192_v10 = vmul.f32 %v191_v9, %v153_v34 }
  0x4d   : > { %v193_v11 = vadd.f32 1e-05, %v192_v10 }
  0x4f   : > { %307 = vrsqrt.f32 %v193_v11  ;;  %vm200_vm2 = vweird.f32 %v193_v11 }
  0x55   : > { %v308_v12 = vpop.eup %307 }
  0x56   : > { %v195_v13 = vmul.f32 %v308_v12, %v193_v11  ;;  %vm201_vm3 = vweird.f32 %v308_v12 }
  0x57   : > { %vm202_vm4 = vmor %vm200_vm2, %vm201_vm3 }
  0x58   : > { %v196_v14 = vmul.f32 %v308_v12, %v195_v13 }
  0x5a   : > { %v197_v15 = vmul.f32 0.5, %v196_v14 }
  0x5c   : > { %v198_v16 = vsub.f32 1.5, %v197_v15 }
  0x5e   : > { %v199_v17 = vmul.f32 %v308_v12, %v198_v16 }
  0x60   : > { %v203_v18 = vsel %vm202_vm4, %v308_v12, %v199_v17 }
  0x61   : > { %v204_v19 = vmul.f32 %v203_v18, %v155_v37  ;;  %v205_v20 = vmul.f32 %v203_v18, %v156_v38  ;;  %v206_v21 = vmul.f32 %v203_v18, %v157_v39  ;;  %v207_v22 = vmul.f32 %v203_v18, %v158_v40 }
  0x62   : > { %v208_v23 = vmul.f32 %v203_v18, %v159_v41  ;;  %v209_v24 = vmul.f32 %v203_v18, %v160_v42  ;;  %v210_v28 = vmul.f32 %v203_v18, %v161_v47  ;;  %v211_v30 = vmul.f32 %v203_v18, %v162_v53 }
  0x63   : > { %v212_v25 = vmax.f32 %v204_v19, 0.0  ;;  %v213_v26 = vmax.f32 %v205_v20, 0.0  ;;  %v214_v27 = vmax.f32 %v206_v21, 0.0  ;;  %v215_v29 = vmax.f32 %v207_v22, 0.0 }
  0x64   : > { %v216_v31 = vmax.f32 %v208_v23, 0.0  ;;  %v217_v32 = vmax.f32 %v209_v24, 0.0  ;;  %v218_v33 = vmax.f32 %v210_v28, 0.0  ;;  %v219_v34 = vmax.f32 %v211_v30, 0.0 }
  0x65   : > { %220 = vst.msk [vmem:[%s116_s14] sm:$0xff] %vm125_vm0, %v212_v25 }
  0x66   : > { %221 = vst.msk [vmem:[%s116_s14 + $0x8] sm:$0xff] %vm125_vm0, %v213_v26 }
  0x67   : > { %222 = vst.msk [vmem:[%s116_s14 + $0x10] sm:$0xff] %vm125_vm0, %v214_v27 }
  0x68   : > { %223 = vst.msk [vmem:[%s116_s14 + $0x18] sm:$0xff] %vm125_vm0, %v215_v29 }
  0x69   : > { %224 = vst.msk [vmem:[%s116_s14 + $0x20] sm:$0xff] %vm125_vm0, %v216_v31 }
  0x6a   : > { %225 = vst.msk [vmem:[%s116_s14 + $0x28] sm:$0xff] %vm125_vm0, %v217_v32 }
  0x6b   : > { %226 = vst.msk [vmem:[%s116_s14 + $0x30] sm:$0xff] %vm125_vm0, %v218_v33 }
  0x6c   : > { %227 = vst.msk [vmem:[%s116_s14 + $0x38] sm:$0xff] %vm125_vm0, %v219_v34 }
  0x6d PF: > { %s11_s6 = sadd.s32 1, %s315_s6  }
  0x6e   : > { %p8_p4 = scmp.ge.s32.totalorder %s11_s6, 4  }
  0x70   :  { %10 = sbr.rel (!%p8_p4) target bundleno = 1 (0x1), region = 54 }

// kernel: _lambda_.37
= control target key start
LH: loop header
LB: loop body
LE: loop exit
PB: predicated region body
PF: predicated region fallthrough
CT: control target
= control target key end

     0   :  { %vm118_vm0 = vcmask 130048   ;;  %s341_s1 = inlined_call_operand.vmem [shape: bf16[144,128], index: 1, kind: input, shape index: {}]   ;;  %s342_s0 = inlined_call_operand.vmem [shape: bf16[32,144], index: 0, kind: input, shape index: {}]   ;;  %s343_s2 = inlined_call_operand.vmem [shape: f32[32,128], index: 2, kind: output, shape index: {}]  }
   0x1   :  { %v251_v0 = vld [vmem:[%s341_s1 + $0x38] sm:$0xff]  ;;  %v252_v1 = vld [vmem:[%s341_s1 + $0x40] sm:$0xff]  ;;  %v250_v3 = vld [vmem:[%s341_s1 + $0x30] sm:$0xff] }
   0x2   :  { %v240_v2 = vld [vmem:[%s342_s0 + $0x4] sm:$0xf]  ;;  %125 = vmatpush.bf16.msra.mxu0 %v251_v0  ;;  %253 = vmatpush.bf16.msra.mxu2 %v251_v0  ;;  %v190_v4 = vld [vmem:[%s342_s0 + $0x8] sm:$0xf0]  ;;  %v247_v8 = vld [vmem:[%s341_s1 + $0x18] sm:$0xff] }
   0x3   :  { %151 = vmatpush.bf16.msra.mxu1 %v252_v1  ;;  %v193_v5 = vor.u32 %v240_v2, %v190_v4  ;;  %v249_v6 = vld [vmem:[%s341_s1 + $0x28] sm:$0xff]  ;;  %v248_v7 = vld [vmem:[%s341_s1 + $0x20] sm:$0xff]  ;;  %v242_v9 = vld [vmem:[%s342_s0 + $0x14] sm:$0xf] }
   0x4   :  { %v198_v10 = vld [vmem:[%s342_s0 + $0x18] sm:$0xf0]  ;;  %v246_v11 = vld [vmem:[%s341_s1 + $0x10] sm:$0xff]  ;;  %v245_v13 = vld [vmem:[%s341_s1 + $0x8] sm:$0xff] }
   0x5   :  { %v201_v12 = vor.u32 %v242_v9, %v198_v10  ;;  %v244_v14 = vld [vmem:[%s341_s1] sm:$0xff]  ;;  %v241_v16 = vld [vmem:[%s342_s0 + $0x4] sm:$0xf0]  ;;  %v196_v17 = vld [vmem:[%s342_s0 + $0x10] sm:$0xf] }
   0x6   :  { %126 = vmatpush.bf16.msra.mxu0 %v250_v3  ;;  %254 = vmatpush.bf16.msra.mxu2 %v250_v3  ;;  %v188_v15 = vld [vmem:[%s342_s0] sm:$0xf]  ;;  %v243_v18 = vld [vmem:[%s342_s0 + $0x14] sm:$0xf0] }
   0x7   :  { %238 = vmatmul.msk.bf16.vlgmr.msra.gmra.mxu1 %vm118_vm0, %v193_v5  ;;  %v189_v19 = vor.u32 %v241_v16, %v188_v15  ;;  %v197_v20 = vor.u32 %v243_v18, %v196_v17 }
   0xa   :  { %127 = vmatpush.bf16.msra.mxu0 %v249_v6  ;;  %255 = vmatpush.bf16.msra.mxu2 %v249_v6 }
   0xe   :  { %128 = vmatpush.bf16.msra.mxu0 %v248_v7  ;;  %256 = vmatpush.bf16.msra.mxu2 %v248_v7 }
  0x12   :  { %129 = vmatpush.bf16.msra.mxu0 %v247_v8  ;;  %257 = vmatpush.bf16.msra.mxu2 %v247_v8 }
  0x16   :  { %130 = vmatpush.bf16.msra.mxu0 %v246_v11  ;;  %258 = vmatpush.bf16.msra.mxu2 %v246_v11 }
  0x17   :  { %239 = vmatmul.msk.bf16.gmra.mxu1 %vm118_vm0, %v201_v12 }
  0x1a   :  { %131 = vmatpush.bf16.msra.mxu0 %v245_v13  ;;  %259 = vmatpush.bf16.msra.mxu2 %v245_v13 }
  0x1e   :  { %132 = vmatpush.bf16.msra.mxu0 %v244_v14  ;;  %260 = vmatpush.bf16.msra.mxu2 %v244_v14 }
  0x21   :  { %133 = vmatmul.bf16.vlgmr.msra.gmra.mxu0 %v189_v19  ;;  %138 = vmatmul.bf16.vlgmr.msra.gmra.mxu2 %v197_v20 }
  0x84   :  { %v153_v21 = vpop.f32.mrf.mxu1 }
  0x8c   :  { %v155_v22 = vpop.f32.mrf.mxu1 }
  0x94   :  { %v158_v25 = vpop.f32.mrf.mxu1 }
  0x9c   :  { %v160_v30 = vpop.f32.mrf.mxu1 }
  0x9e   :  { %v134_v23 = vpop.f32.mrf.mxu0 }
  0x9f   :  { %v154_v24 = vadd.f32 %v153_v21, %v134_v23 }
  0xa1   :  { %178 = vst [vmem:[%s343_s2] sm:$0xff] %v154_v24 }
  0xa4   :  { %v139_v26 = vpop.f32.mrf.mxu2 }
  0xa5   :  { %v159_v27 = vadd.f32 %v158_v25, %v139_v26 }
  0xa6   :  { %v136_v28 = vpop.f32.mrf.mxu0 }
  0xa7   :  { %180 = vst [vmem:[%s343_s2 + $0x10] sm:$0xff] %v159_v27  ;;  %v156_v29 = vadd.f32 %v155_v22, %v136_v28 }
  0xa9   :  { %179 = vst [vmem:[%s343_s2 + $0x8] sm:$0xff] %v156_v29 }
  0xac   :  { %v141_v31 = vpop.f32.mrf.mxu2 }
  0xad   :  { %v161_v32 = vadd.f32 %v160_v30, %v141_v31 }
  0xaf   :  { %181 = vst [vmem:[%s343_s2 + $0x18] sm:$0xff] %v161_v32 }

// kernel: _lambda_.38
= control target key start
LH: loop header
LB: loop body
LE: loop exit
PB: predicated region body
PF: predicated region fallthrough
CT: control target
= control target key end

     0   :  { %s268_s6 = smov 0   ;;  %s298_s0 = inlined_call_operand.vmem [shape: f32[2,16,32], index: 0, kind: input, shape index: {}]   ;;  %s299_s1 = inlined_call_operand.vmem [shape: f32[2,16,32], index: 1, kind: output, shape index: {}]  }
   0x1 LB: > { %s223_s7 = sadd.s32 4294967295, %s255_s6   ;;  %p227_p0 = scmp.ge.s32.totalorder %s255_s6, 1  ;;  %s255_s6 = sphi %s268_s6, %s11_s6  }
   0x2   : > { %p87_p1 = scmp.lt.s32.totalorder %s255_s6, 3 }
   0x4   : > { %p88_p2 = pnand %p227_p0, %p87_p1 }
   0x5   : > { %p107_p3 = scmp.lt.s32.totalorder (!%p88_p2), %s223_s7, 1 }
   0x6   : > { %91 = sbr.rel (%p88_p2) target bundleno = 79 (0x4f), region = 24 }
   0xb   : > { %v257_v0 = vmov 16.0   ;;  %s301_s7 = smov (!%p107_p3, %s223_s7), 1  ;;  %vm119_vm0 = vcmask 261120  }
   0xc   : > { %245 = vrcp.f32 %v257_v0  ;;  %s234_s8 = sshll.u32 %s301_s7, 4 }
   0xd   : > { %s111_s11 = scalar_lea.vmem %s298_s0, %s234_s8  ;;  %s116_s14 = scalar_lea.vmem %s299_s1, %s234_s8 }
   0xe   : > { %v117_v1 = vld [vmem:[%s111_s11] sm:$0xff]  ;;  %v118_v2 = vld [vmem:[%s111_s11 + $0x8] sm:$0xff] }
   0xf   : > { %v120_v4 = vsel %vm119_vm0, %v117_v1, 0.0  ;;  %v121_v5 = vsel %vm119_vm0, %v118_v2, 0.0 }
  0x10   : > { %v122_v6 = vadd.f32 %v121_v5, %v120_v4 }
  0x12   : > { %v246_v3 = vpop.eup %245  ;;  %v123_v8 = vrot.slane %v122_v6, 4 }
  0x13   : > { %v130_v7 = vmul.f32 16.0, %v246_v3  ;;  %vm134_vm1 = vweird.f32 %v246_v3 }
  0x14   : > { %v124_v10 = vadd.f32 %v123_v8, %v122_v6 }
  0x15   : > { %v131_v9 = vsub.f32 1.0, %v130_v7 }
  0x16   : > { %v125_v12 = vrot.slane %v124_v10, 2 }
  0x17   : > { %v132_v11 = vmul.f32 %v246_v3, %v131_v9 }
  0x18   : > { %v126_v14 = vadd.f32 %v125_v12, %v124_v10 }
  0x19   : > { %v133_v13 = vadd.f32 %v246_v3, %v132_v11 }
  0x1a   : > { %v127_v15 = vrot.slane %v126_v14, 1 }
  0x1b   : > { %v135_v16 = vsel %vm134_vm1, %v246_v3, %v133_v13 }
  0x1c   : > { %v128_v17 = vadd.f32 %v127_v15, %v126_v14 }
  0x1e   : > { %v136_v18 = vmul.f32 %v135_v16, %v128_v17 }
  0x20   : > { %v137_v19 = vsub.f32 %v117_v1, %v136_v18  ;;  %v138_v20 = vsub.f32 %v118_v2, %v136_v18 }
  0x22   : > { %v139_v21 = vmul.f32 %v137_v19, %v137_v19  ;;  %v140_v22 = vmul.f32 %v138_v20, %v138_v20 }
  0x24   : > { %v141_v23 = vsel %vm119_vm0, %v139_v21, 0.0  ;;  %v142_v24 = vsel %vm119_vm0, %v140_v22, 0.0 }
  0x25   : > { %v143_v25 = vadd.f32 %v142_v24, %v141_v23 }
  0x27   : > { %v144_v26 = vrot.slane %v143_v25, 4 }
  0x29   : > { %v145_v27 = vadd.f32 %v144_v26, %v143_v25 }
  0x2b   : > { %v146_v28 = vrot.slane %v145_v27, 2 }
  0x2d   : > { %v147_v29 = vadd.f32 %v146_v28, %v145_v27 }
  0x2f   : > { %v148_v30 = vrot.slane %v147_v29, 1 }
  0x31   : > { %v149_v31 = vadd.f32 %v148_v30, %v147_v29 }
  0x33   : > { %v150_v32 = vmul.f32 %v149_v31, %v135_v16 }
  0x35   : > { %v151_v33 = vadd.f32 1e-05, %v150_v32 }
  0x37   : > { %247 = vrsqrt.f32 %v151_v33  ;;  %vm158_vm2 = vweird.f32 %v151_v33 }
  0x3d   : > { %v248_v34 = vpop.eup %247 }
  0x3e   : > { %v153_v35 = vmul.f32 %v248_v34, %v151_v33  ;;  %vm159_vm3 = vweird.f32 %v248_v34 }
  0x3f   : > { %vm160_vm4 = vmor %vm158_vm2, %vm159_vm3 }
  0x40   : > { %v154_v36 = vmul.f32 %v248_v34, %v153_v35 }
  0x42   : > { %v155_v37 = vmul.f32 0.5, %v154_v36 }
  0x44   : > { %v156_v38 = vsub.f32 1.5, %v155_v37 }
  0x46   : > { %v157_v39 = vmul.f32 %v248_v34, %v156_v38 }
  0x48   : > { %v161_v40 = vsel %vm160_vm4, %v248_v34, %v157_v39 }
  0x49   : > { %v162_v41 = vmul.f32 %v161_v40, %v137_v19  ;;  %v163_v42 = vmul.f32 %v161_v40, %v138_v20 }
  0x4b   : > { %v164_v43 = vmax.f32 %v162_v41, 0.0  ;;  %v165_v44 = vmax.f32 %v163_v42, 0.0 }
  0x4d   : > { %166 = vst.msk [vmem:[%s116_s14] sm:$0xff] %vm119_vm0, %v164_v43 }
  0x4e   : > { %167 = vst.msk [vmem:[%s116_s14 + $0x8] sm:$0xff] %vm119_vm0, %v165_v44 }
  0x4f PF: > { %s11_s6 = sadd.s32 1, %s255_s6  }
  0x50   : > { %p8_p4 = scmp.ge.s32.totalorder %s11_s6, 4  }
  0x52   :  { %10 = sbr.rel (!%p8_p4) target bundleno = 1 (0x1), region = 54 }

// kernel: _lambda_.42
= control target key start
LH: loop header
LB: loop body
LE: loop exit
PB: predicated region body
PF: predicated region fallthrough
CT: control target
= control target key end

     0   :  { %s337_s9 = smov 0   ;;  %s368_s0 = inlined_call_operand.vmem [shape: f32[2,16,32], index: 0, kind: input, shape index: {}]   ;;  %s369_s1 = inlined_call_operand.vmem [shape: f32[2,16,32], index: 1, kind: input, shape index: {}]   ;;  %s370_s2 = inlined_call_operand.vmem [shape: f32[2,16,32], index: 2, kind: output, shape index: {}]  }
   0x1 LB: > { %s284_s10 = sadd.s32 4294967295, %s319_s9   ;;  %p288_p0 = scmp.ge.s32.totalorder %s319_s9, 1  ;;  %s319_s9 = sphi %s337_s9, %s12_s9  }
   0x2   : > { %p122_p1 = scmp.lt.s32.totalorder %s319_s9, 3 }
   0x4   : > { %p123_p2 = pnand %p288_p0, %p122_p1 }
   0x5   : > { %p149_p3 = scmp.lt.s32.totalorder (!%p123_p2), %s284_s10, 1 }
   0x6   : > { %126 = sbr.rel (%p123_p2) target bundleno = 79 (0x4f), region = 28 }
   0xb   : > { %v321_v0 = vmov 16.0   ;;  %s372_s10 = smov (!%p149_p3, %s284_s10), 1  ;;  %vm166_vm0 = vcmask 261120  }
   0xc   : > { %309 = vrcp.f32 %v321_v0  ;;  %s345_s11 = sshll.u32 %s372_s10, 4 }
   0xd   : > { %s153_s14 = scalar_lea.vmem %s368_s0, %s345_s11  ;;  %s158_s17 = scalar_lea.vmem %s369_s1, %s345_s11 }
   0xe   : > { %v164_v1 = vld [vmem:[%s153_s14] sm:$0xff]  ;;  %v165_v2 = vld [vmem:[%s153_s14 + $0x8] sm:$0xff]  ;;  %s163_s20 = scalar_lea.vmem %s370_s2, %s345_s11 }
   0xf   : > { %v167_v4 = vsel %vm166_vm0, %v164_v1, 0.0  ;;  %v168_v5 = vsel %vm166_vm0, %v165_v2, 0.0  ;;  %v211_v41 = vld [vmem:[%s158_s17] sm:$0xff]  ;;  %v212_v42 = vld [vmem:[%s158_s17 + $0x8] sm:$0xff] }
  0x10   : > { %v169_v6 = vadd.f32 %v168_v5, %v167_v4 }
  0x12   : > { %v310_v3 = vpop.eup %309  ;;  %v170_v8 = vrot.slane %v169_v6, 4 }
  0x13   : > { %v177_v7 = vmul.f32 16.0, %v310_v3  ;;  %vm181_vm1 = vweird.f32 %v310_v3 }
  0x14   : > { %v171_v10 = vadd.f32 %v170_v8, %v169_v6 }
  0x15   : > { %v178_v9 = vsub.f32 1.0, %v177_v7 }
  0x16   : > { %v172_v12 = vrot.slane %v171_v10, 2 }
  0x17   : > { %v179_v11 = vmul.f32 %v310_v3, %v178_v9 }
  0x18   : > { %v173_v14 = vadd.f32 %v172_v12, %v171_v10 }
  0x19   : > { %v180_v13 = vadd.f32 %v310_v3, %v179_v11 }
  0x1a   : > { %v174_v15 = vrot.slane %v173_v14, 1 }
  0x1b   : > { %v182_v16 = vsel %vm181_vm1, %v310_v3, %v180_v13 }
  0x1c   : > { %v175_v17 = vadd.f32 %v174_v15, %v173_v14 }
  0x1e   : > { %v183_v18 = vmul.f32 %v182_v16, %v175_v17 }
  0x20   : > { %v184_v19 = vsub.f32 %v164_v1, %v183_v18  ;;  %v185_v20 = vsub.f32 %v165_v2, %v183_v18 }
  0x22   : > { %v186_v21 = vmul.f32 %v184_v19, %v184_v19  ;;  %v187_v22 = vmul.f32 %v185_v20, %v185_v20 }
  0x24   : > { %v188_v23 = vsel %vm166_vm0, %v186_v21, 0.0  ;;  %v189_v24 = vsel %vm166_vm0, %v187_v22, 0.0 }
  0x25   : > { %v190_v25 = vadd.f32 %v189_v24, %v188_v23 }
  0x27   : > { %v191_v26 = vrot.slane %v190_v25, 4 }
  0x29   : > { %v192_v27 = vadd.f32 %v191_v26, %v190_v25 }
  0x2b   : > { %v193_v28 = vrot.slane %v192_v27, 2 }
  0x2d   : > { %v194_v29 = vadd.f32 %v193_v28, %v192_v27 }
  0x2f   : > { %v195_v30 = vrot.slane %v194_v29, 1 }
  0x31   : > { %v196_v31 = vadd.f32 %v195_v30, %v194_v29 }
  0x33   : > { %v197_v32 = vmul.f32 %v196_v31, %v182_v16 }
  0x35   : > { %v198_v33 = vadd.f32 1e-05, %v197_v32 }
  0x37   : > { %311 = vrsqrt.f32 %v198_v33  ;;  %vm205_vm2 = vweird.f32 %v198_v33 }
  0x3d   : > { %v312_v34 = vpop.eup %311 }
  0x3e   : > { %v200_v35 = vmul.f32 %v312_v34, %v198_v33  ;;  %vm206_vm3 = vweird.f32 %v312_v34 }
  0x3f   : > { %vm207_vm4 = vmor %vm205_vm2, %vm206_vm3 }
  0x40   : > { %v201_v36 = vmul.f32 %v312_v34, %v200_v35 }
  0x42   : > { %v202_v37 = vmul.f32 0.5, %v201_v36 }
  0x44   : > { %v203_v38 = vsub.f32 1.5, %v202_v37 }
  0x46   : > { %v204_v39 = vmul.f32 %v312_v34, %v203_v38 }
  0x48   : > { %v208_v40 = vsel %vm207_vm4, %v312_v34, %v204_v39 }
  0x49   : > { %v209_v43 = vmul.f32 %v208_v40, %v184_v19  ;;  %v210_v44 = vmul.f32 %v208_v40, %v185_v20 }
  0x4b   : > { %v213_v45 = vadd.f32 %v211_v41, %v209_v43  ;;  %v214_v46 = vadd.f32 %v212_v42, %v210_v44 }
  0x4d   : > { %215 = vst.msk [vmem:[%s163_s20] sm:$0xff] %vm166_vm0, %v213_v45 }
  0x4e   : > { %216 = vst.msk [vmem:[%s163_s20 + $0x8] sm:$0xff] %vm166_vm0, %v214_v46 }
  0x4f PF: > { %s12_s9 = sadd.s32 1, %s319_s9  }
  0x50   : > { %p9_p4 = scmp.ge.s32.totalorder %s12_s9, 4  }
  0x52   :  { %11 = sbr.rel (!%p9_p4) target bundleno = 1 (0x1), region = 61 }

// kernel: _lambda_.39
= control target key start
LH: loop header
LB: loop body
LE: loop exit
PB: predicated region body
PF: predicated region fallthrough
CT: control target
= control target key end

     0   :  { %vm206_vm0 = vcmask 261120   ;;  %s542_s1 = inlined_call_operand.vmem [shape: bf16[288,128], index: 1, kind: input, shape index: {}]   ;;  %s543_s0 = inlined_call_operand.vmem [shape: bf16[32,288], index: 0, kind: input, shape index: {}]   ;;  %s544_s2 = inlined_call_operand.vmem [shape: f32[32,128], index: 2, kind: output, shape index: {}]  }
   0x1   :  { %v404_v0 = vld [vmem:[%s542_s1 + $0x38] sm:$0xff]  ;;  %v403_v2 = vld [vmem:[%s542_s1 + $0x30] sm:$0xff]  ;;  %v414_v4 = vld [vmem:[%s542_s1 + $0x88] sm:$0xff] }
   0x2   :  { %v412_v1 = vld [vmem:[%s542_s1 + $0x78] sm:$0xff]  ;;  %213 = vmatpush.bf16.msra.mxu0 %v404_v0  ;;  %v411_v3 = vld [vmem:[%s542_s1 + $0x70] sm:$0xff]  ;;  %415 = vmatpush.bf16.msra.mxu3 %v404_v0  ;;  %v413_v5 = vld [vmem:[%s542_s1 + $0x80] sm:$0xff] }
   0x3   :  { %232 = vmatpush.bf16.msra.mxu1 %v412_v1  ;;  %257 = vmatpush.bf16.msra.mxu2 %v414_v4  ;;  %v303_v6 = vld [vmem:[%s543_s0 + $0x8] sm:$0xf]  ;;  %v393_v7 = vld [vmem:[%s543_s0 + $0x10] sm:$0xf0]  ;;  %v401_v11 = vld [vmem:[%s542_s1 + $0x20] sm:$0xff] }
   0x4   :  { %v402_v8 = vld [vmem:[%s542_s1 + $0x28] sm:$0xff]  ;;  %v304_v10 = vor.u32 %v393_v7, %v303_v6  ;;  %v409_v12 = vld [vmem:[%s542_s1 + $0x60] sm:$0xff]  ;;  %v400_v13 = vld [vmem:[%s542_s1 + $0x18] sm:$0xff] }
   0x5   :  { %v410_v9 = vld [vmem:[%s542_s1 + $0x68] sm:$0xff]  ;;  %v408_v14 = vld [vmem:[%s542_s1 + $0x58] sm:$0xff]  ;;  %v399_v15 = vld [vmem:[%s542_s1 + $0x10] sm:$0xff] }
   0x6   :  { %214 = vmatpush.bf16.msra.mxu0 %v403_v2  ;;  %416 = vmatpush.bf16.msra.mxu3 %v403_v2  ;;  %v407_v16 = vld [vmem:[%s542_s1 + $0x50] sm:$0xff]  ;;  %v315_v17 = vld [vmem:[%s543_s0 + $0x20] sm:$0xf]  ;;  %v396_v18 = vld [vmem:[%s543_s0 + $0x28] sm:$0xf0] }
   0x7   :  { %233 = vmatpush.bf16.msra.mxu1 %v411_v3  ;;  %258 = vmatpush.bf16.msra.mxu2 %v413_v5  ;;  %v398_v19 = vld [vmem:[%s542_s1 + $0x8] sm:$0xff]  ;;  %v316_v21 = vor.u32 %v396_v18, %v315_v17  ;;  %v397_v22 = vld [vmem:[%s542_s1] sm:$0xff]  ;;  %v297_v27 = vld [vmem:[%s543_s0 + $0xc] sm:$0xf0] }
   0x8   :  { %v406_v20 = vld [vmem:[%s542_s1 + $0x48] sm:$0xff]  ;;  %v405_v23 = vld [vmem:[%s542_s1 + $0x40] sm:$0xff]  ;;  %v307_v28 = vld [vmem:[%s543_s0 + $0x18] sm:$0xf] }
   0x9   :  { %v295_v24 = vld [vmem:[%s543_s0] sm:$0xf]  ;;  %v392_v25 = vld [vmem:[%s543_s0 + $0x8] sm:$0xf0]  ;;  %v391_v26 = vld [vmem:[%s543_s0 + $0x4] sm:$0xf] }
   0xa   :  { %215 = vmatpush.bf16.msra.mxu0 %v402_v8  ;;  %417 = vmatpush.bf16.msra.mxu3 %v402_v8  ;;  %v395_v29 = vld [vmem:[%s543_s0 + $0x20] sm:$0xf0]  ;;  %v296_v30 = vor.u32 %v392_v25, %v295_v24  ;;  %v300_v31 = vor.u32 %v391_v26, %v297_v27  ;;  %v394_v33 = vld [vmem:[%s543_s0 + $0x1c] sm:$0xf]  ;;  %v309_v34 = vld [vmem:[%s543_s0 + $0x24] sm:$0xf0] }
   0xb   :  { %234 = vmatpush.bf16.msra.mxu1 %v410_v9  ;;  %389 = vmatmul.msk.bf16.vlgmr.msra.gmra.mxu2 %vm206_vm0, %v304_v10  ;;  %v308_v32 = vor.u32 %v395_v29, %v307_v28  ;;  %v312_v35 = vor.u32 %v394_v33, %v309_v34 }
   0xe   :  { %216 = vmatpush.bf16.msra.mxu0 %v401_v11  ;;  %418 = vmatpush.bf16.msra.mxu3 %v401_v11 }
   0xf   :  { %235 = vmatpush.bf16.msra.mxu1 %v409_v12 }
  0x12   :  { %217 = vmatpush.bf16.msra.mxu0 %v400_v13  ;;  %419 = vmatpush.bf16.msra.mxu3 %v400_v13 }
  0x13   :  { %236 = vmatpush.bf16.msra.mxu1 %v408_v14 }
  0x16   :  { %218 = vmatpush.bf16.msra.mxu0 %v399_v15  ;;  %420 = vmatpush.bf16.msra.mxu3 %v399_v15 }
  0x17   :  { %237 = vmatpush.bf16.msra.mxu1 %v407_v16 }
  0x1a   :  { %219 = vmatpush.bf16.msra.mxu0 %v398_v19  ;;  %421 = vmatpush.bf16.msra.mxu3 %v398_v19 }
  0x1b   :  { %238 = vmatpush.bf16.msra.mxu1 %v406_v20  ;;  %390 = vmatmul.msk.bf16.gmra.mxu2 %vm206_vm0, %v316_v21 }
  0x1e   :  { %220 = vmatpush.bf16.msra.mxu0 %v397_v22  ;;  %422 = vmatpush.bf16.msra.mxu3 %v397_v22 }
  0x1f   :  { %239 = vmatpush.bf16.msra.mxu1 %v405_v23 }
  0x21   :  { %221 = vmatmul.bf16.vlgmr.msra.gmra.mxu0 %v296_v30  ;;  %226 = vmatmul.bf16.vlgmr.msra.gmra.mxu3 %v308_v32 }
  0x22   :  { %240 = vmatmul.bf16.vlgmr.msra.gmra.mxu1 %v300_v31 }
  0x32   :  { %245 = vmatmul.bf16.gmra.mxu1 %v312_v35 }
  0x8e   :  { %v260_v36 = vpop.f32.mrf.mxu2 }
  0x96   :  { %v262_v41 = vpop.f32.mrf.mxu2 }
  0x9e   :  { %v222_v37 = vpop.f32.mrf.mxu0  ;;  %v265_v47 = vpop.f32.mrf.mxu2 }
  0x9f   :  { %v241_v38 = vpop.f32.mrf.mxu1 }
  0xa0   :  { %v242_v39 = vadd.f32 %v241_v38, %v222_v37 }
  0xa2   :  { %v261_v40 = vadd.f32 %v260_v36, %v242_v39 }
  0xa4   :  { %285 = vst [vmem:[%s544_s2] sm:$0xff] %v261_v40  ;;  %v227_v46 = vpop.f32.mrf.mxu3 }
  0xa6   :  { %v224_v42 = vpop.f32.mrf.mxu0  ;;  %v267_v54 = vpop.f32.mrf.mxu2 }
  0xa7   :  { %v243_v43 = vpop.f32.mrf.mxu1 }
  0xa8   :  { %v244_v44 = vadd.f32 %v243_v43, %v224_v42 }
  0xaa   :  { %v263_v45 = vadd.f32 %v262_v41, %v244_v44 }
  0xac   :  { %286 = vst [vmem:[%s544_s2 + $0x8] sm:$0xff] %v263_v45  ;;  %v229_v51 = vpop.f32.mrf.mxu3 }
  0xaf   :  { %v246_v48 = vpop.f32.mrf.mxu1 }
  0xb0   :  { %v247_v49 = vadd.f32 %v246_v48, %v227_v46 }
  0xb2   :  { %v266_v50 = vadd.f32 %v265_v47, %v247_v49 }
  0xb4   :  { %287 = vst [vmem:[%s544_s2 + $0x10] sm:$0xff] %v266_v50 }
  0xb7   :  { %v248_v52 = vpop.f32.mrf.mxu1 }
  0xb8   :  { %v249_v53 = vadd.f32 %v248_v52, %v229_v51 }
  0xba   :  { %v268_v55 = vadd.f32 %v267_v54, %v249_v53 }
  0xbc   :  { %288 = vst [vmem:[%s544_s2 + $0x18] sm:$0xff] %v268_v55 }

// kernel: _lambda_.47
= control target key start
LH: loop header
LB: loop body
LE: loop exit
PB: predicated region body
PF: predicated region fallthrough
CT: control target
= control target key end

     0   :  { %s260_s1 = inlined_call_operand.vmem [shape: bf16[128,128], index: 1, kind: input, shape index: {}]   ;;  %s261_s0 = inlined_call_operand.vmem [shape: bf16[32,128], index: 0, kind: input, shape index: {}]   ;;  %s262_s2 = inlined_call_operand.vmem [shape: f32[32,128], index: 2, kind: output, shape index: {}]  }
   0x1   :  { %v194_v0 = vld [vmem:[%s260_s1 + $0x38] sm:$0xff]  ;;  %v193_v1 = vld [vmem:[%s260_s1 + $0x30] sm:$0xff]  ;;  %v192_v2 = vld [vmem:[%s260_s1 + $0x28] sm:$0xff] }
   0x2   :  { %103 = vmatpush.bf16.msra.mxu0 %v194_v0  ;;  %195 = vmatpush.bf16.msra.mxu1 %v194_v0  ;;  %v191_v3 = vld [vmem:[%s260_s1 + $0x20] sm:$0xff]  ;;  %v190_v4 = vld [vmem:[%s260_s1 + $0x18] sm:$0xff]  ;;  %v189_v5 = vld [vmem:[%s260_s1 + $0x10] sm:$0xff] }
   0x3   :  { %v188_v6 = vld [vmem:[%s260_s1 + $0x8] sm:$0xff]  ;;  %v187_v7 = vld [vmem:[%s260_s1] sm:$0xff] }
   0x4   :  { %v185_v8 = vld [vmem:[%s261_s0] sm:$0xff]  ;;  %v186_v9 = vld [vmem:[%s261_s0 + $0x8] sm:$0xff] }
   0x6   :  { %104 = vmatpush.bf16.msra.mxu0 %v193_v1  ;;  %196 = vmatpush.bf16.msra.mxu1 %v193_v1 }
   0xa   :  { %105 = vmatpush.bf16.msra.mxu0 %v192_v2  ;;  %197 = vmatpush.bf16.msra.mxu1 %v192_v2 }
   0xe   :  { %106 = vmatpush.bf16.msra.mxu0 %v191_v3  ;;  %198 = vmatpush.bf16.msra.mxu1 %v191_v3 }
  0x12   :  { %107 = vmatpush.bf16.msra.mxu0 %v190_v4  ;;  %199 = vmatpush.bf16.msra.mxu1 %v190_v4 }
  0x16   :  { %108 = vmatpush.bf16.msra.mxu0 %v189_v5  ;;  %200 = vmatpush.bf16.msra.mxu1 %v189_v5 }
  0x1a   :  { %109 = vmatpush.bf16.msra.mxu0 %v188_v6  ;;  %201 = vmatpush.bf16.msra.mxu1 %v188_v6 }
  0x1e   :  { %110 = vmatpush.bf16.msra.mxu0 %v187_v7  ;;  %202 = vmatpush.bf16.msra.mxu1 %v187_v7 }
  0x21   :  { %111 = vmatmul.bf16.vlgmr.msra.gmra.mxu0 %v185_v8  ;;  %116 = vmatmul.bf16.vlgmr.msra.gmra.mxu1 %v186_v9 }
  0x9e   :  { %v112_v10 = vpop.f32.mrf.mxu0  ;;  %v117_v11 = vpop.f32.mrf.mxu1 }
  0x9f   :  { %137 = vst [vmem:[%s262_s2] sm:$0xff] %v112_v10 }
  0xa0   :  { %139 = vst [vmem:[%s262_s2 + $0x10] sm:$0xff] %v117_v11 }
  0xa6   :  { %v114_v12 = vpop.f32.mrf.mxu0  ;;  %v119_v13 = vpop.f32.mrf.mxu1 }
  0xa7   :  { %138 = vst [vmem:[%s262_s2 + $0x8] sm:$0xff] %v114_v12 }
  0xa8   :  { %140 = vst [vmem:[%s262_s2 + $0x18] sm:$0xff] %v119_v13 }

// kernel: _lambda_.49
= control target key start
LH: loop header
LB: loop body
LE: loop exit
PB: predicated region body
PF: predicated region fallthrough
CT: control target
= control target key end

     0   :  { %vm136_vm0 = vcmask 523264   ;;  %s468_s1 = inlined_call_operand.vmem [shape: bf16[64,128], index: 1, kind: input, shape index: {}]   ;;  %s469_s0 = inlined_call_operand.vmem [shape: bf16[128,64], index: 0, kind: input, shape index: {}]   ;;  %s470_s2 = inlined_call_operand.vmem [shape: f32[128,128], index: 2, kind: output, shape index: {}]  }
   0x1   :  { %v348_v0 = vld [vmem:[%s468_s1 + $0x18] sm:$0xff]  ;;  %v347_v1 = vld [vmem:[%s468_s1 + $0x10] sm:$0xff]  ;;  %v346_v2 = vld [vmem:[%s468_s1 + $0x8] sm:$0xff] }
   0x2   :  { %165 = vmatpush.bf16.msra.mxu0 %v348_v0  ;;  %349 = vmatpush.bf16.msra.mxu1 %v348_v0  ;;  %v345_v3 = vld [vmem:[%s468_s1] sm:$0xff]  ;;  %v339_v5 = vld [vmem:[%s469_s0 + $0x10] sm:$0xff]  ;;  %v338_v8 = vld [vmem:[%s469_s0 + $0x8] sm:$0xff] }
   0x3   :  { %350 = vmatpush.bf16.msra.mxu2 %v348_v0  ;;  %351 = vmatpush.bf16.msra.mxu3 %v348_v0  ;;  %v337_v4 = vld [vmem:[%s469_s0] sm:$0xff]  ;;  %v343_v7 = vld [vmem:[%s469_s0 + $0x30] sm:$0xff]  ;;  %v340_v9 = vld [vmem:[%s469_s0 + $0x18] sm:$0xff] }
   0x4   :  { %v341_v6 = vld [vmem:[%s469_s0 + $0x20] sm:$0xff]  ;;  %v342_v10 = vld [vmem:[%s469_s0 + $0x28] sm:$0xff]  ;;  %v344_v11 = vld [vmem:[%s469_s0 + $0x38] sm:$0xff] }
   0x6   :  { %166 = vmatpush.bf16.msra.mxu0 %v347_v1  ;;  %352 = vmatpush.bf16.msra.mxu1 %v347_v1 }
   0x7   :  { %353 = vmatpush.bf16.msra.mxu2 %v347_v1  ;;  %354 = vmatpush.bf16.msra.mxu3 %v347_v1 }
   0xa   :  { %167 = vmatpush.bf16.msra.mxu0 %v346_v2  ;;  %355 = vmatpush.bf16.msra.mxu1 %v346_v2 }
   0xb   :  { %356 = vmatpush.bf16.msra.mxu2 %v346_v2  ;;  %357 = vmatpush.bf16.msra.mxu3 %v346_v2 }
   0xe   :  { %168 = vmatpush.bf16.msra.mxu0 %v345_v3  ;;  %358 = vmatpush.bf16.msra.mxu1 %v345_v3 }
   0xf   :  { %359 = vmatpush.bf16.msra.mxu2 %v345_v3  ;;  %360 = vmatpush.bf16.msra.mxu3 %v345_v3 }
  0x11   :  { %329 = vmatmul.msk.bf16.vlgmr.msra.gmra.mxu0 %vm136_vm0, %v337_v4  ;;  %331 = vmatmul.msk.bf16.vlgmr.msra.gmra.mxu1 %vm136_vm0, %v339_v5 }
  0x12   :  { %333 = vmatmul.msk.bf16.vlgmr.msra.gmra.mxu2 %vm136_vm0, %v341_v6  ;;  %335 = vmatmul.msk.bf16.vlgmr.msra.gmra.mxu3 %vm136_vm0, %v343_v7 }
  0x21   :  { %330 = vmatmul.msk.bf16.gmra.mxu0 %vm136_vm0, %v338_v8  ;;  %332 = vmatmul.msk.bf16.gmra.mxu1 %vm136_vm0, %v340_v9 }
  0x22   :  { %334 = vmatmul.msk.bf16.gmra.mxu2 %vm136_vm0, %v342_v10  ;;  %336 = vmatmul.msk.bf16.gmra.mxu3 %vm136_vm0, %v344_v11 }
  0x8e   :  { %v170_v12 = vpop.f32.mrf.mxu0  ;;  %v180_v13 = vpop.f32.mrf.mxu1 }
  0x8f   :  { %261 = vst [vmem:[%s470_s2] sm:$0xff] %v170_v12 }
  0x90   :  { %265 = vst [vmem:[%s470_s2 + $0x20] sm:$0xff] %v180_v13 }
  0x95   :  { %v190_v14 = vpop.f32.mrf.mxu2  ;;  %v200_v15 = vpop.f32.mrf.mxu3 }
  0x96   :  { %269 = vst [vmem:[%s470_s2 + $0x40] sm:$0xff] %v190_v14  ;;  %v172_v16 = vpop.f32.mrf.mxu0  ;;  %v182_v17 = vpop.f32.mrf.mxu1 }
  0x97   :  { %273 = vst [vmem:[%s470_s2 + $0x60] sm:$0xff] %v200_v15 }
  0x98   :  { %262 = vst [vmem:[%s470_s2 + $0x8] sm:$0xff] %v172_v16 }
  0x99   :  { %266 = vst [vmem:[%s470_s2 + $0x28] sm:$0xff] %v182_v17 }
  0x9d   :  { %v192_v18 = vpop.f32.mrf.mxu2  ;;  %v202_v19 = vpop.f32.mrf.mxu3 }
  0x9e   :  { %270 = vst [vmem:[%s470_s2 + $0x48] sm:$0xff] %v192_v18  ;;  %v175_v20 = vpop.f32.mrf.mxu0  ;;  %v185_v21 = vpop.f32.mrf.mxu1 }
  0x9f   :  { %274 = vst [vmem:[%s470_s2 + $0x68] sm:$0xff] %v202_v19 }
  0xa0   :  { %263 = vst [vmem:[%s470_s2 + $0x10] sm:$0xff] %v175_v20 }
  0xa1   :  { %267 = vst [vmem:[%s470_s2 + $0x30] sm:$0xff] %v185_v21 }
  0xa5   :  { %v195_v22 = vpop.f32.mrf.mxu2  ;;  %v205_v23 = vpop.f32.mrf.mxu3 }
  0xa6   :  { %271 = vst [vmem:[%s470_s2 + $0x50] sm:$0xff] %v195_v22  ;;  %v177_v24 = vpop.f32.mrf.mxu0  ;;  %v187_v25 = vpop.f32.mrf.mxu1 }
  0xa7   :  { %275 = vst [vmem:[%s470_s2 + $0x70] sm:$0xff] %v205_v23 }
  0xa8   :  { %264 = vst [vmem:[%s470_s2 + $0x18] sm:$0xff] %v177_v24 }
  0xa9   :  { %268 = vst [vmem:[%s470_s2 + $0x38] sm:$0xff] %v187_v25 }
  0xad   :  { %v197_v26 = vpop.f32.mrf.mxu2  ;;  %v207_v27 = vpop.f32.mrf.mxu3 }
  0xae   :  { %272 = vst [vmem:[%s470_s2 + $0x58] sm:$0xff] %v197_v26 }
  0xaf   :  { %276 = vst [vmem:[%s470_s2 + $0x78] sm:$0xff] %v207_v27 }

// kernel: _lambda_.51
= control target key start
LH: loop header
LB: loop body
LE: loop exit
PB: predicated region body
PF: predicated region fallthrough
CT: control target
= control target key end

     0   :  { %s1324_s9 = smov 0   ;;  %s1326_s10 = smov 0   ;;  %s1516_s0 = inlined_call_operand.vmem [shape: bf16[2048,147], index: 0, kind: input, shape index: {}]   ;;  %s1517_s1 = inlined_call_operand.vmem [shape: bf16[147,128], index: 1, kind: input, shape index: {}]   ;;  %s1518_s2 = inlined_call_operand.vmem [shape: f32[2048,128], index: 2, kind: output, shape index: {}]  }
   0x1   :  { %s1328_s11 = smov 0  }
   0x2 LB: > { %s31_s12 = sadd.s32 1, %s1302_s10  ;;  %p1019_p0 = scmp.ge.s32.totalorder %s1306_s11, 1  ;;  %s1306_s11 = sphi %s1328_s11, %s12_s11   ;;  %s1302_s10 = sphi %s1326_s10, %s1520_s10   ;;  %s1298_s9 = sphi %s1324_s9, %s1519_s9  }
   0x3   : > { %p33_p1 = scmp.ge.s32.totalorder %s31_s12, 8  ;;  %p158_p2 = scmp.lt.s32.totalorder %s1306_s11, 9 }
   0x5   : > { %s1522_s12 = smov (%p33_p1, %s31_s12), 0  ;;  %p159_p3 = pnand %p1019_p0, %p158_p2 }
   0x6   : > { %s1020_s17 = sshll.u32 (!%p159_p3), %s1298_s9, 5 }
   0x7   : > { %162 = sbr.rel (%p159_p3) target bundleno = 299 (0x12b), region = 28  ;;  %p198_p4 = scmp.lt.s32.totalorder (!%p159_p3), %s1020_s17, 255 }
   0xc   : > { %v1247_v0 = vld [vmem:[%s1517_s1 + $0x38] sm:$0xff]  ;;  %v345_v1 = vld [vmem:[%s1517_s1 + $0x48] sm:$0x3]  ;;  %vm596_vm0 = vcmask 1040384   ;;  %vm597_vm1 = vcmask 1041408   ;;  %v1246_v3 = vld [vmem:[%s1517_s1 + $0x30] sm:$0xff] }
   0xd   : > { %v527_v2 = vunpack.c.l.b16 %v345_v1  ;;  %603 = vmatpush.bf16.msra.mxu0 %v1247_v0  ;;  %1249 = vmatpush.bf16.msra.mxu2 %v1247_v0  ;;  %v1308_v4 = vmov 65535   ;;  %s1524_s17 = smov (!%p198_p4, %s1020_s17), 255  ;;  %v1245_v9 = vld [vmem:[%s1517_s1 + $0x28] sm:$0xff]  ;;  %v1248_v10 = vld [vmem:[%s1517_s1 + $0x40] sm:$0xff]  ;;  %vm547_vm2 = vcmask 154624   ;;  %v1243_v18 = vld [vmem:[%s1517_s1 + $0x18] sm:$0xff] }
   0xe   : > { %v598_v5 = vsel %vm596_vm0, 4294967295, %v1308_v4  ;;  %s1207_s22 = sshll.u32 %s1524_s17, 3  ;;  %v1244_v14 = vld [vmem:[%s1517_s1 + $0x20] sm:$0xff]  ;;  %v1242_v19 = vld [vmem:[%s1517_s1 + $0x10] sm:$0xff]  ;;  %v1241_v20 = vld [vmem:[%s1517_s1 + $0x8] sm:$0xff] }
   0xf   : > { %v537_v6 = vpack.c.b16 %v527_v2, %v527_v2  ;;  %v599_v7 = vsel %vm597_vm1, %v598_v5, 0  ;;  %s1365_s27 = scalar_lea.vmem %s1516_s0, %s1207_s22  ;;  %v1240_v26 = vld [vmem:[%s1517_s1] sm:$0xff]  ;;  %s1467_s15 = scalar_lea.vmem %s1518_s2, %s1207_s22 }
  0x10   : > { %v1208_v11 = vld [vmem:[%s1365_s27 + $0x4] sm:$0xf]  ;;  %v1029_v12 = vld [vmem:[%s1365_s27 + $0x8] sm:$0xf0]  ;;  %v1226_v15 = vld [vmem:[%s1365_s27 + $0x94] sm:$0xf] }
  0x11   : > { %v601_v8 = vand.u32 %v599_v7, %v537_v6  ;;  %604 = vmatpush.bf16.msra.mxu0 %v1246_v3  ;;  %1250 = vmatpush.bf16.msra.mxu2 %v1246_v3  ;;  %v1032_v13 = vor.u32 %v1208_v11, %v1029_v12  ;;  %v1101_v16 = vld [vmem:[%s1365_s27 + $0x98] sm:$0xf0]  ;;  %v1210_v21 = vld [vmem:[%s1365_s27 + $0x14] sm:$0xf]  ;;  %v1228_v23 = vld [vmem:[%s1365_s27 + $0xa4] sm:$0xf] }
  0x12   : > { %v1104_v17 = vor.u32 %v1226_v15, %v1101_v16  ;;  %v1037_v22 = vld [vmem:[%s1365_s27 + $0x18] sm:$0xf0]  ;;  %v1109_v24 = vld [vmem:[%s1365_s27 + $0xa8] sm:$0xf0]  ;;  %v1027_v27 = vld [vmem:[%s1365_s27] sm:$0xf] }
  0x13   : > { %698 = vmatpush.bf16.msra.mxu1 %v601_v8  ;;  %1257 = vmatpush.bf16.msra.mxu3 %v601_v8  ;;  %v1040_v25 = vor.u32 %v1210_v21, %v1037_v22  ;;  %v1209_v28 = vld [vmem:[%s1365_s27 + $0x4] sm:$0xf0]  ;;  %v1091_v29 = vld [vmem:[%s1365_s27 + $0x80] sm:$0xf]  ;;  %v1112_v31 = vor.u32 %v1228_v23, %v1109_v24  ;;  %v1212_v34 = vld [vmem:[%s1365_s27 + $0x24] sm:$0xf] }
  0x14   : > { %v1225_v30 = vld [vmem:[%s1365_s27 + $0x84] sm:$0xf0]  ;;  %v1028_v32 = vor.u32 %v1209_v28, %v1027_v27  ;;  %v1045_v35 = vld [vmem:[%s1365_s27 + $0x28] sm:$0xf0]  ;;  %v1230_v36 = vld [vmem:[%s1365_s27 + $0xb4] sm:$0xf] }
  0x15   : > { %605 = vmatpush.bf16.msra.mxu0 %v1245_v9  ;;  %1251 = vmatpush.bf16.msra.mxu2 %v1245_v9  ;;  %v1092_v33 = vor.u32 %v1225_v30, %v1091_v29  ;;  %v1117_v37 = vld [vmem:[%s1365_s27 + $0xb8] sm:$0xf0]  ;;  %v1048_v38 = vor.u32 %v1212_v34, %v1045_v35  ;;  %v1035_v39 = vld [vmem:[%s1365_s27 + $0x10] sm:$0xf]  ;;  %v1211_v40 = vld [vmem:[%s1365_s27 + $0x14] sm:$0xf0] }
  0x16   : > { %v1099_v41 = vld [vmem:[%s1365_s27 + $0x90] sm:$0xf]  ;;  %v1227_v42 = vld [vmem:[%s1365_s27 + $0x94] sm:$0xf0]  ;;  %v1120_v43 = vor.u32 %v1230_v36, %v1117_v37  ;;  %v1036_v44 = vor.u32 %v1211_v40, %v1035_v39  ;;  %v1214_v46 = vld [vmem:[%s1365_s27 + $0x34] sm:$0xf] }
  0x17   : > { %699 = vmatpush.bf16.msra.mxu1 %v1248_v10  ;;  %1258 = vmatpush.bf16.msra.mxu3 %v1248_v10  ;;  %v1100_v45 = vor.u32 %v1227_v42, %v1099_v41  ;;  %v1053_v47 = vld [vmem:[%s1365_s27 + $0x38] sm:$0xf0]  ;;  %v1232_v48 = vld [vmem:[%s1365_s27 + $0xc4] sm:$0xf]  ;;  %v1125_v49 = vld [vmem:[%s1365_s27 + $0xc8] sm:$0xf0] }
  0x18   : > { %v1056_v50 = vor.u32 %v1214_v46, %v1053_v47  ;;  %v1043_v51 = vld [vmem:[%s1365_s27 + $0x20] sm:$0xf]  ;;  %v1213_v52 = vld [vmem:[%s1365_s27 + $0x24] sm:$0xf0]  ;;  %v1128_v55 = vor.u32 %v1232_v48, %v1125_v49  ;;  %v1216_v58 = vld [vmem:[%s1365_s27 + $0x44] sm:$0xf] }
  0x19   : > { %606 = vmatpush.bf16.msra.mxu0 %v1244_v14  ;;  %1252 = vmatpush.bf16.msra.mxu2 %v1244_v14  ;;  %v1107_v53 = vld [vmem:[%s1365_s27 + $0xa0] sm:$0xf]  ;;  %v1229_v54 = vld [vmem:[%s1365_s27 + $0xa4] sm:$0xf0]  ;;  %v1044_v56 = vor.u32 %v1213_v52, %v1043_v51  ;;  %v1061_v59 = vld [vmem:[%s1365_s27 + $0x48] sm:$0xf0] }
  0x1a   : > { %1189 = vmatmul.msk.bf16.vlgmr.msra.gmra.mxu1 %vm547_vm2, %v1032_v13  ;;  %1198 = vmatmul.msk.bf16.vlgmr.msra.gmra.mxu3 %vm547_vm2, %v1104_v17  ;;  %v1108_v57 = vor.u32 %v1229_v54, %v1107_v53  ;;  %v1234_v60 = vld [vmem:[%s1365_s27 + $0xd4] sm:$0xf]  ;;  %v1133_v61 = vld [vmem:[%s1365_s27 + $0xd8] sm:$0xf0]  ;;  %v1064_v62 = vor.u32 %v1216_v58, %v1061_v59  ;;  %v1051_v63 = vld [vmem:[%s1365_s27 + $0x30] sm:$0xf] }
  0x1b   : > { %v1215_v0 = vld [vmem:[%s1365_s27 + $0x34] sm:$0xf0]  ;;  %v1115_v1 = vld [vmem:[%s1365_s27 + $0xb0] sm:$0xf]  ;;  %v1136_v3 = vor.u32 %v1234_v60, %v1133_v61  ;;  %v1218_v6 = vld [vmem:[%s1365_s27 + $0x54] sm:$0xf] }
  0x1c   : > { %v1231_v2 = vld [vmem:[%s1365_s27 + $0xb4] sm:$0xf0]  ;;  %v1052_v4 = vor.u32 %v1215_v0, %v1051_v63  ;;  %v1069_v7 = vld [vmem:[%s1365_s27 + $0x58] sm:$0xf0]  ;;  %v1236_v8 = vld [vmem:[%s1365_s27 + $0xe4] sm:$0xf] }
  0x1d   : > { %607 = vmatpush.bf16.msra.mxu0 %v1243_v18  ;;  %1253 = vmatpush.bf16.msra.mxu2 %v1243_v18  ;;  %v1116_v5 = vor.u32 %v1231_v2, %v1115_v1  ;;  %v1141_v9 = vld [vmem:[%s1365_s27 + $0xe8] sm:$0xf0]  ;;  %v1072_v10 = vor.u32 %v1218_v6, %v1069_v7  ;;  %v1059_v11 = vld [vmem:[%s1365_s27 + $0x40] sm:$0xf]  ;;  %v1217_v12 = vld [vmem:[%s1365_s27 + $0x44] sm:$0xf0] }
  0x1e   : > { %v1123_v13 = vld [vmem:[%s1365_s27 + $0xc0] sm:$0xf]  ;;  %v1233_v14 = vld [vmem:[%s1365_s27 + $0xc4] sm:$0xf0]  ;;  %v1144_v15 = vor.u32 %v1236_v8, %v1141_v9  ;;  %v1060_v16 = vor.u32 %v1217_v12, %v1059_v11  ;;  %v1220_v18 = vld [vmem:[%s1365_s27 + $0x64] sm:$0xf] }
  0x1f   : > { %v1124_v17 = vor.u32 %v1233_v14, %v1123_v13  ;;  %v1149_v21 = vld [vmem:[%s1365_s27 + $0xf8] sm:$0xf0]  ;;  %v1067_v23 = vld [vmem:[%s1365_s27 + $0x50] sm:$0xf]  ;;  %v1219_v24 = vld [vmem:[%s1365_s27 + $0x54] sm:$0xf0] }
  0x20   : > { %v1068_v28 = vor.u32 %v1219_v24, %v1067_v23  ;;  %v1222_v30 = vld [vmem:[%s1365_s27 + $0x74] sm:$0xf]  ;;  %v1221_v34 = vld [vmem:[%s1365_s27 + $0x64] sm:$0xf0]  ;;  %v1139_v35 = vld [vmem:[%s1365_s27 + $0xe0] sm:$0xf] }
  0x21   : > { %608 = vmatpush.bf16.msra.mxu0 %v1242_v19  ;;  %1254 = vmatpush.bf16.msra.mxu2 %v1242_v19  ;;  %v1077_v19 = vld [vmem:[%s1365_s27 + $0x68] sm:$0xf0]  ;;  %v1237_v36 = vld [vmem:[%s1365_s27 + $0xe4] sm:$0xf0]  ;;  %v1224_v39 = vld [vmem:[%s1365_s27 + $0x84] sm:$0xf] }
  0x22   : > { %v1080_v22 = vor.u32 %v1220_v18, %v1077_v19  ;;  %v1093_v40 = vld [vmem:[%s1365_s27 + $0x88] sm:$0xf0]  ;;  %v1083_v42 = vld [vmem:[%s1365_s27 + $0x70] sm:$0xf]  ;;  %v1239_v46 = vld [vmem:[%s1365_s27 + $0xf4] sm:$0xf0] }
  0x23   : > { %v1096_v41 = vor.u32 %v1224_v39, %v1093_v40 }
  0x25   : > { %609 = vmatpush.bf16.msra.mxu0 %v1241_v20  ;;  %1255 = vmatpush.bf16.msra.mxu2 %v1241_v20  ;;  %v1238_v20 = vld [vmem:[%s1365_s27 + $0xf4] sm:$0xf] }
  0x26   : > { %v1152_v27 = vor.u32 %v1238_v20, %v1149_v21 }
  0x29   : > { %610 = vmatpush.bf16.msra.mxu0 %v1240_v26  ;;  %1256 = vmatpush.bf16.msra.mxu2 %v1240_v26  ;;  %v1235_v26 = vld [vmem:[%s1365_s27 + $0xd4] sm:$0xf0] }
  0x2a   : > { %1190 = vmatmul.msk.bf16.gmra.mxu1 %vm547_vm2, %v1040_v25  ;;  %1199 = vmatmul.msk.bf16.gmra.mxu3 %vm547_vm2, %v1112_v31  ;;  %v1131_v25 = vld [vmem:[%s1365_s27 + $0xd0] sm:$0xf]  ;;  %v1085_v31 = vld [vmem:[%s1365_s27 + $0x78] sm:$0xf0] }
  0x2b   : > { %v1132_v29 = vor.u32 %v1235_v26, %v1131_v25 }
  0x2c   : > { %611 = vmatmul.bf16.vlgmr.msra.gmra.mxu0 %v1028_v32  ;;  %651 = vmatmul.bf16.vlgmr.msra.gmra.mxu2 %v1092_v33  ;;  %v1088_v32 = vor.u32 %v1222_v30, %v1085_v31  ;;  %v1075_v33 = vld [vmem:[%s1365_s27 + $0x60] sm:$0xf] }
  0x2d   : > { %v1076_v37 = vor.u32 %v1221_v34, %v1075_v33 }
  0x3a   : > { %1191 = vmatmul.msk.bf16.gmra.mxu1 %vm547_vm2, %v1048_v38  ;;  %1200 = vmatmul.msk.bf16.gmra.mxu3 %vm547_vm2, %v1120_v43  ;;  %v1140_v38 = vor.u32 %v1237_v36, %v1139_v35  ;;  %v1223_v43 = vld [vmem:[%s1365_s27 + $0x74] sm:$0xf0] }
  0x3b   : > { %v1084_v47 = vor.u32 %v1223_v43, %v1083_v42 }
  0x3c   : > { %616 = vmatmul.bf16.gmra.mxu0 %v1036_v44  ;;  %656 = vmatmul.bf16.gmra.mxu2 %v1100_v45  ;;  %v1147_v45 = vld [vmem:[%s1365_s27 + $0xf0] sm:$0xf] }
  0x3d   : > { %v1148_v48 = vor.u32 %v1239_v46, %v1147_v45 }
  0x4a   : > { %1192 = vmatmul.msk.bf16.gmra.mxu1 %vm547_vm2, %v1056_v50  ;;  %1201 = vmatmul.msk.bf16.gmra.mxu3 %vm547_vm2, %v1128_v55 }
  0x4c   : > { %621 = vmatmul.bf16.gmra.mxu0 %v1044_v56  ;;  %661 = vmatmul.bf16.gmra.mxu2 %v1108_v57 }
  0x5a   : > { %1193 = vmatmul.msk.bf16.gmra.mxu1 %vm547_vm2, %v1064_v62  ;;  %1202 = vmatmul.msk.bf16.gmra.mxu3 %vm547_vm2, %v1136_v3 }
  0x5c   : > { %626 = vmatmul.bf16.gmra.mxu0 %v1052_v4  ;;  %666 = vmatmul.bf16.gmra.mxu2 %v1116_v5 }
  0x6a   : > { %1194 = vmatmul.msk.bf16.gmra.mxu1 %vm547_vm2, %v1072_v10  ;;  %1203 = vmatmul.msk.bf16.gmra.mxu3 %vm547_vm2, %v1144_v15 }
  0x6c   : > { %631 = vmatmul.bf16.gmra.mxu0 %v1060_v16  ;;  %671 = vmatmul.bf16.gmra.mxu2 %v1124_v17 }
  0x7a   : > { %1195 = vmatmul.msk.bf16.gmra.mxu1 %vm547_vm2, %v1080_v22  ;;  %1204 = vmatmul.msk.bf16.gmra.mxu3 %vm547_vm2, %v1152_v27 }
  0x7c   : > { %636 = vmatmul.bf16.gmra.mxu0 %v1068_v28  ;;  %676 = vmatmul.bf16.gmra.mxu2 %v1132_v29 }
  0x8a   : > { %1196 = vmatmul.msk.bf16.gmra.mxu1 %vm547_vm2, %v1088_v32 }
  0x8c   : > { %641 = vmatmul.bf16.gmra.mxu0 %v1076_v37  ;;  %681 = vmatmul.bf16.gmra.mxu2 %v1140_v38 }
  0x97   : > { %v701_v44 = vpop.f32.mrf.mxu1 }
  0x9a   : > { %1197 = vmatmul.msk.bf16.gmra.mxu1 %vm547_vm2, %v1096_v41 }
  0x9c   : > { %646 = vmatmul.bf16.gmra.mxu0 %v1084_v47  ;;  %686 = vmatmul.bf16.gmra.mxu2 %v1148_v48 }
  0x9d   : > { %v746_v51 = vpop.f32.mrf.mxu3 }
  0x9f   : > { %v703_v49 = vpop.f32.mrf.mxu1 }
  0xa5   : > { %v748_v56 = vpop.f32.mrf.mxu3 }
  0xa7   : > { %v706_v50 = vpop.f32.mrf.mxu1 }
  0xa9   : > { %v612_v52 = vpop.f32.mrf.mxu0 }
  0xaa   : > { %v702_v53 = vadd.f32 %v701_v44, %v612_v52 }
  0xac   : > { %880 = vst [vmem:[%s1467_s15] sm:$0xff] %v702_v53 }
  0xad   : > { %v751_v63 = vpop.f32.mrf.mxu3 }
  0xaf   : > { %v708_v54 = vpop.f32.mrf.mxu1  ;;  %v1470_v55 = vpop.f32.mrf.mxu2 }
  0xb1   : > { %v614_v57 = vpop.f32.mrf.mxu0 }
  0xb2   : > { %v704_v58 = vadd.f32 %v703_v49, %v614_v57 }
  0xb4   : > { %881 = vst [vmem:[%s1467_s15 + $0x8] sm:$0xff] %v704_v58 }
  0xb5   : > { %v753_v5 = vpop.f32.mrf.mxu3 }
  0xb7   : > { %v711_v59 = vpop.f32.mrf.mxu1  ;;  %v1473_v60 = vpop.f32.mrf.mxu2 }
  0xb9   : > { %v617_v61 = vpop.f32.mrf.mxu0 }
  0xba   : > { %v707_v62 = vadd.f32 %v706_v50, %v617_v61 }
  0xbc   : > { %882 = vst [vmem:[%s1467_s15 + $0x10] sm:$0xff] %v707_v62 }
  0xbd   : > { %v756_v12 = vpop.f32.mrf.mxu3 }
  0xbf   : > { %v713_v0 = vpop.f32.mrf.mxu1  ;;  %v657_v1 = vpop.f32.mrf.mxu2 }
  0xc0   : > { %v747_v2 = vadd.f32 %v746_v51, %v657_v1 }
  0xc1   : > { %v619_v3 = vpop.f32.mrf.mxu0 }
  0xc2   : > { %v709_v4 = vadd.f32 %v708_v54, %v619_v3  ;;  %898 = vst [vmem:[%s1467_s15 + $0x90] sm:$0xff] %v747_v2 }
  0xc4   : > { %883 = vst [vmem:[%s1467_s15 + $0x18] sm:$0xff] %v709_v4 }
  0xc5   : > { %v758_v19 = vpop.f32.mrf.mxu3 }
  0xc7   : > { %v716_v6 = vpop.f32.mrf.mxu1  ;;  %v659_v7 = vpop.f32.mrf.mxu2 }
  0xc8   : > { %v749_v8 = vadd.f32 %v748_v56, %v659_v7 }
  0xc9   : > { %v622_v9 = vpop.f32.mrf.mxu0 }
  0xca   : > { %v712_v10 = vadd.f32 %v711_v59, %v622_v9  ;;  %899 = vst [vmem:[%s1467_s15 + $0x98] sm:$0xff] %v749_v8 }
  0xcc   : > { %884 = vst [vmem:[%s1467_s15 + $0x20] sm:$0xff] %v712_v10 }
  0xcd   : > { %v761_v28 = vpop.f32.mrf.mxu3 }
  0xcf   : > { %v718_v11 = vpop.f32.mrf.mxu1  ;;  %v662_v13 = vpop.f32.mrf.mxu2 }
  0xd0   : > { %v752_v14 = vadd.f32 %v751_v63, %v662_v13 }
  0xd1   : > { %v624_v15 = vpop.f32.mrf.mxu0 }
  0xd2   : > { %v714_v16 = vadd.f32 %v713_v0, %v624_v15  ;;  %900 = vst [vmem:[%s1467_s15 + $0xa0] sm:$0xff] %v752_v14 }
  0xd4   : > { %885 = vst [vmem:[%s1467_s15 + $0x28] sm:$0xff] %v714_v16 }
  0xd5   : > { %v763_v34 = vpop.f32.mrf.mxu3 }
  0xd7   : > { %v721_v17 = vpop.f32.mrf.mxu1  ;;  %v664_v18 = vpop.f32.mrf.mxu2 }
  0xd8   : > { %v754_v20 = vadd.f32 %v753_v5, %v664_v18 }
  0xd9   : > { %v627_v21 = vpop.f32.mrf.mxu0 }
  0xda   : > { %v717_v22 = vadd.f32 %v716_v6, %v627_v21  ;;  %901 = vst [vmem:[%s1467_s15 + $0xa8] sm:$0xff] %v754_v20 }
  0xdc   : > { %886 = vst [vmem:[%s1467_s15 + $0x30] sm:$0xff] %v717_v22 }
  0xdd   : > { %v766_v41 = vpop.f32.mrf.mxu3 }
  0xdf   : > { %v723_v23 = vpop.f32.mrf.mxu1  ;;  %v667_v24 = vpop.f32.mrf.mxu2 }
  0xe0   : > { %v757_v25 = vadd.f32 %v756_v12, %v667_v24 }
  0xe1   : > { %v629_v26 = vpop.f32.mrf.mxu0 }
  0xe2   : > { %v719_v27 = vadd.f32 %v718_v11, %v629_v26  ;;  %902 = vst [vmem:[%s1467_s15 + $0xb0] sm:$0xff] %v757_v25 }
  0xe4   : > { %887 = vst [vmem:[%s1467_s15 + $0x38] sm:$0xff] %v719_v27 }
  0xe5   : > { %v768_v48 = vpop.f32.mrf.mxu3 }
  0xe7   : > { %v726_v29 = vpop.f32.mrf.mxu1  ;;  %v669_v30 = vpop.f32.mrf.mxu2 }
  0xe8   : > { %v759_v31 = vadd.f32 %v758_v19, %v669_v30 }
  0xe9   : > { %v632_v32 = vpop.f32.mrf.mxu0 }
  0xea   : > { %v722_v33 = vadd.f32 %v721_v17, %v632_v32  ;;  %903 = vst [vmem:[%s1467_s15 + $0xb8] sm:$0xff] %v759_v31 }
  0xec   : > { %888 = vst [vmem:[%s1467_s15 + $0x40] sm:$0xff] %v722_v33 }
  0xed   : > { %v771_v57 = vpop.f32.mrf.mxu3 }
  0xef   : > { %v728_v35 = vpop.f32.mrf.mxu1  ;;  %v672_v36 = vpop.f32.mrf.mxu2 }
  0xf0   : > { %v762_v37 = vadd.f32 %v761_v28, %v672_v36 }
  0xf1   : > { %v634_v38 = vpop.f32.mrf.mxu0 }
  0xf2   : > { %v724_v39 = vadd.f32 %v723_v23, %v634_v38  ;;  %904 = vst [vmem:[%s1467_s15 + $0xc0] sm:$0xff] %v762_v37 }
  0xf4   : > { %889 = vst [vmem:[%s1467_s15 + $0x48] sm:$0xff] %v724_v39 }
  0xf5   : > { %v773_v1 = vpop.f32.mrf.mxu3 }
  0xf7   : > { %v731_v40 = vpop.f32.mrf.mxu1  ;;  %v674_v42 = vpop.f32.mrf.mxu2 }
  0xf8   : > { %v764_v43 = vadd.f32 %v763_v34, %v674_v42 }
  0xf9   : > { %v637_v44 = vpop.f32.mrf.mxu0 }
  0xfa   : > { %v727_v45 = vadd.f32 %v726_v29, %v637_v44  ;;  %905 = vst [vmem:[%s1467_s15 + $0xc8] sm:$0xff] %v764_v43 }
  0xfc   : > { %890 = vst [vmem:[%s1467_s15 + $0x50] sm:$0xff] %v727_v45 }
  0xfd   : > { %v776_v8 = vpop.f32.mrf.mxu3 }
  0xff   : > { %v733_v46 = vpop.f32.mrf.mxu1  ;;  %v677_v47 = vpop.f32.mrf.mxu2 }
 0x100   : > { %v767_v49 = vadd.f32 %v766_v41, %v677_v47 }
 0x101   : > { %v639_v50 = vpop.f32.mrf.mxu0 }
 0x102   : > { %v729_v51 = vadd.f32 %v728_v35, %v639_v50  ;;  %906 = vst [vmem:[%s1467_s15 + $0xd0] sm:$0xff] %v767_v49 }
 0x104   : > { %891 = vst [vmem:[%s1467_s15 + $0x58] sm:$0xff] %v729_v51 }
 0x107   : > { %v736_v52 = vpop.f32.mrf.mxu1  ;;  %v679_v53 = vpop.f32.mrf.mxu2 }
 0x108   : > { %v769_v54 = vadd.f32 %v768_v48, %v679_v53 }
 0x109   : > { %v642_v56 = vpop.f32.mrf.mxu0 }
 0x10a   : > { %v732_v58 = vadd.f32 %v731_v40, %v642_v56  ;;  %907 = vst [vmem:[%s1467_s15 + $0xd8] sm:$0xff] %v769_v54 }
 0x10c   : > { %892 = vst [vmem:[%s1467_s15 + $0x60] sm:$0xff] %v732_v58 }
 0x10f   : > { %v738_v59 = vpop.f32.mrf.mxu1  ;;  %v682_v61 = vpop.f32.mrf.mxu2 }
 0x110   : > { %v772_v62 = vadd.f32 %v771_v57, %v682_v61 }
 0x111   : > { %v644_v63 = vpop.f32.mrf.mxu0 }
 0x112   : > { %v734_v0 = vadd.f32 %v733_v46, %v644_v63  ;;  %908 = vst [vmem:[%s1467_s15 + $0xe0] sm:$0xff] %v772_v62 }
 0x114   : > { %893 = vst [vmem:[%s1467_s15 + $0x68] sm:$0xff] %v734_v0 }
 0x117   : > { %v741_v2 = vpop.f32.mrf.mxu1  ;;  %v684_v4 = vpop.f32.mrf.mxu2 }
 0x118   : > { %v742_v3 = vadd.f32 %v741_v2, %v1470_v55  ;;  %v774_v5 = vadd.f32 %v773_v1, %v684_v4  ;;  %v778_v55 = vpop.f32.mrf.mxu3 }
 0x119   : > { %v647_v6 = vpop.f32.mrf.mxu0 }
 0x11a   : > { %896 = vst [vmem:[%s1467_s15 + $0x80] sm:$0xff] %v742_v3  ;;  %v737_v7 = vadd.f32 %v736_v52, %v647_v6 }
 0x11b   : > { %909 = vst [vmem:[%s1467_s15 + $0xe8] sm:$0xff] %v774_v5 }
 0x11c   : > { %894 = vst [vmem:[%s1467_s15 + $0x70] sm:$0xff] %v737_v7 }
 0x11f   : > { %v743_v9 = vpop.f32.mrf.mxu1  ;;  %v687_v11 = vpop.f32.mrf.mxu2 }
 0x120   : > { %v744_v10 = vadd.f32 %v743_v9, %v1473_v60  ;;  %v777_v12 = vadd.f32 %v776_v8, %v687_v11 }
 0x121   : > { %v649_v13 = vpop.f32.mrf.mxu0 }
 0x122   : > { %897 = vst [vmem:[%s1467_s15 + $0x88] sm:$0xff] %v744_v10  ;;  %v739_v14 = vadd.f32 %v738_v59, %v649_v13 }
 0x123   : > { %910 = vst [vmem:[%s1467_s15 + $0xf0] sm:$0xff] %v777_v12 }
 0x124   : > { %895 = vst [vmem:[%s1467_s15 + $0x78] sm:$0xff] %v739_v14 }
 0x127   : > { %v689_v15 = vpop.f32.mrf.mxu2 }
 0x128   : > { %v779_v16 = vadd.f32 %v778_v55, %v689_v15 }
 0x12a   : > { %911 = vst [vmem:[%s1467_s15 + $0xf8] sm:$0xff] %v779_v16 }
 0x12b PF: > { %s12_s11 = sadd.s32 1, %s1306_s11   ;;  %s1519_s9 = smov %s1302_s10 }
 0x12c   : > { %p9_p5 = scmp.ge.s32.totalorder %s12_s11, 10   ;;  %s1520_s10 = smov %s1522_s12 }
 0x12e   :  { %11 = sbr.rel (!%p9_p5) target bundleno = 2 (0x2), region = 69 }

// kernel: _lambda_.52
= control target key start
LH: loop header
LB: loop body
LE: loop exit
PB: predicated region body
PF: predicated region fallthrough
CT: control target
= control target key end

     0   :  { %s1533_s6 = smov 0   ;;  %s3602_s0 = inlined_call_operand.vmem [shape: f32[2,1024,4], index: 0, kind: input, shape index: {}]   ;;  %s3603_s1 = inlined_call_operand.vmem [shape: f32[2,1024,4], index: 1, kind: output, shape index: {}]  }
   0x1 LB: > { %s1483_s7 = sadd.s32 4294967295, %s1520_s6   ;;  %p1487_p0 = scmp.ge.s32.totalorder %s1520_s6, 1  ;;  %s1520_s6 = sphi %s1533_s6, %s11_s6  }
   0x2   : > { %p87_p1 = scmp.lt.s32.totalorder %s1520_s6, 3 }
   0x4   : > { %p88_p2 = pnand %p1487_p0, %p87_p1 }
   0x6   : > { %91 = sbr.rel (%p88_p2) target bundleno = 711 (0x2c7), region = 24 }
   0xb   : > { %p107_p3 = scmp.lt.s32.totalorder %s1483_s7, 1  ;;  %vm245_vm0 = vcmask 31744  }
   0xd   : > { %s4097_s7 = smov (!%p107_p3, %s1483_s7), 1 }
   0xe   : > { %s1494_s8 = sshll.u32 %s4097_s7, 10 }
   0xf   : > { %s1549_s11 = scalar_lea.vmem %s3602_s0, %s1494_s8  ;;  %s3093_s14 = scalar_lea.vmem %s3603_s1, %s1494_s8 }
  0x10   : > { %v1552_v0 = vld [vmem:[%s1549_s11] sm:$0xff]  ;;  %v1555_v1 = vld [vmem:[%s1549_s11 + $0x8] sm:$0xff]  ;;  %v1558_v2 = vld [vmem:[%s1549_s11 + $0x10] sm:$0xff] }
  0x11   : > { %v1561_v3 = vld [vmem:[%s1549_s11 + $0x18] sm:$0xff]  ;;  %v246_v4 = vsel %vm245_vm0, %v1552_v0, 0.0  ;;  %v247_v5 = vsel %vm245_vm0, %v1555_v1, 0.0  ;;  %v249_v6 = vsel %vm245_vm0, %v1558_v2, 0.0  ;;  %v1570_v7 = vld [vmem:[%s1549_s11 + $0x20] sm:$0xff]  ;;  %v1575_v10 = vld [vmem:[%s1549_s11 + $0x28] sm:$0xff] }
  0x12   : > { %v248_v8 = vadd.f32 %v247_v5, %v246_v4  ;;  %v251_v9 = vsel %vm245_vm0, %v1561_v3, 0.0  ;;  %v253_v12 = vsel %vm245_vm0, %v1570_v7, 0.0  ;;  %v1580_v13 = vld [vmem:[%s1549_s11 + $0x30] sm:$0xff]  ;;  %v255_v15 = vsel %vm245_vm0, %v1575_v10, 0.0  ;;  %v1585_v16 = vld [vmem:[%s1549_s11 + $0x38] sm:$0xff]  ;;  %v1590_v19 = vld [vmem:[%s1549_s11 + $0x40] sm:$0xff] }
  0x13   : > { %v257_v18 = vsel %vm245_vm0, %v1580_v13, 0.0  ;;  %v259_v21 = vsel %vm245_vm0, %v1585_v16, 0.0  ;;  %v1595_v22 = vld [vmem:[%s1549_s11 + $0x48] sm:$0xff]  ;;  %v261_v24 = vsel %vm245_vm0, %v1590_v19, 0.0  ;;  %v1600_v25 = vld [vmem:[%s1549_s11 + $0x50] sm:$0xff]  ;;  %v1605_v28 = vld [vmem:[%s1549_s11 + $0x58] sm:$0xff] }
  0x14   : > { %v250_v11 = vadd.f32 %v249_v6, %v248_v8  ;;  %v263_v27 = vsel %vm245_vm0, %v1595_v22, 0.0  ;;  %v265_v30 = vsel %vm245_vm0, %v1600_v25, 0.0  ;;  %v1610_v31 = vld [vmem:[%s1549_s11 + $0x60] sm:$0xff]  ;;  %v267_v33 = vsel %vm245_vm0, %v1605_v28, 0.0  ;;  %v1615_v34 = vld [vmem:[%s1549_s11 + $0x68] sm:$0xff]  ;;  %v1620_v37 = vld [vmem:[%s1549_s11 + $0x70] sm:$0xff] }
  0x15   : > { %v269_v36 = vsel %vm245_vm0, %v1610_v31, 0.0  ;;  %v271_v39 = vsel %vm245_vm0, %v1615_v34, 0.0  ;;  %v1625_v40 = vld [vmem:[%s1549_s11 + $0x78] sm:$0xff]  ;;  %v273_v42 = vsel %vm245_vm0, %v1620_v37, 0.0  ;;  %v1630_v43 = vld [vmem:[%s1549_s11 + $0x80] sm:$0xff]  ;;  %v1635_v46 = vld [vmem:[%s1549_s11 + $0x88] sm:$0xff] }
  0x16   : > { %v252_v14 = vadd.f32 %v251_v9, %v250_v11  ;;  %v275_v45 = vsel %vm245_vm0, %v1625_v40, 0.0  ;;  %v277_v48 = vsel %vm245_vm0, %v1630_v43, 0.0  ;;  %v1640_v49 = vld [vmem:[%s1549_s11 + $0x90] sm:$0xff]  ;;  %v279_v51 = vsel %vm245_vm0, %v1635_v46, 0.0  ;;  %v1645_v52 = vld [vmem:[%s1549_s11 + $0x98] sm:$0xff]  ;;  %v1650_v55 = vld [vmem:[%s1549_s11 + $0xa0] sm:$0xff] }
  0x17   : > { %v281_v54 = vsel %vm245_vm0, %v1640_v49, 0.0  ;;  %v283_v57 = vsel %vm245_vm0, %v1645_v52, 0.0  ;;  %v1655_v58 = vld [vmem:[%s1549_s11 + $0xa8] sm:$0xff]  ;;  %v285_v60 = vsel %vm245_vm0, %v1650_v55, 0.0  ;;  %v1660_v61 = vld [vmem:[%s1549_s11 + $0xb0] sm:$0xff]  ;;  %v1665_v4 = vld [vmem:[%s1549_s11 + $0xb8] sm:$0xff] }
  0x18   : > { %v254_v17 = vadd.f32 %v253_v12, %v252_v14  ;;  %v287_v63 = vsel %vm245_vm0, %v1655_v58, 0.0  ;;  %v289_v6 = vsel %vm245_vm0, %v1660_v61, 0.0  ;;  %v1670_v8 = vld [vmem:[%s1549_s11 + $0xc0] sm:$0xff]  ;;  %v291_v11 = vsel %vm245_vm0, %v1665_v4, 0.0  ;;  %v1675_v12 = vld [vmem:[%s1549_s11 + $0xc8] sm:$0xff] }
  0x1a   : > { %v256_v20 = vadd.f32 %v255_v15, %v254_v17  ;;  %v293_v15 = vsel %vm245_vm0, %v1670_v8, 0.0  ;;  %v1680_v17 = vld [vmem:[%s1549_s11 + $0xd0] sm:$0xff] }
  0x1c   : > { %v258_v23 = vadd.f32 %v257_v18, %v256_v20  ;;  %v295_v20 = vsel %vm245_vm0, %v1675_v12, 0.0 }
  0x1e   : > { %v260_v26 = vadd.f32 %v259_v21, %v258_v23  ;;  %v1685_v21 = vld [vmem:[%s1549_s11 + $0xd8] sm:$0xff] }
  0x20   : > { %v262_v29 = vadd.f32 %v261_v24, %v260_v26  ;;  %v297_v24 = vsel %vm245_vm0, %v1680_v17, 0.0  ;;  %v1690_v26 = vld [vmem:[%s1549_s11 + $0xe0] sm:$0xff] }
  0x22   : > { %v264_v32 = vadd.f32 %v263_v27, %v262_v29  ;;  %v299_v29 = vsel %vm245_vm0, %v1685_v21, 0.0 }
  0x24   : > { %v266_v35 = vadd.f32 %v265_v30, %v264_v32  ;;  %v1695_v30 = vld [vmem:[%s1549_s11 + $0xe8] sm:$0xff] }
  0x26   : > { %v268_v38 = vadd.f32 %v267_v33, %v266_v35  ;;  %v301_v33 = vsel %vm245_vm0, %v1690_v26, 0.0  ;;  %v1700_v35 = vld [vmem:[%s1549_s11 + $0xf0] sm:$0xff] }
  0x28   : > { %v270_v41 = vadd.f32 %v269_v36, %v268_v38  ;;  %v303_v38 = vsel %vm245_vm0, %v1695_v30, 0.0 }
  0x2a   : > { %v272_v44 = vadd.f32 %v271_v39, %v270_v41  ;;  %v1705_v39 = vld [vmem:[%s1549_s11 + $0xf8] sm:$0xff] }
  0x2c   : > { %v274_v47 = vadd.f32 %v273_v42, %v272_v44  ;;  %v305_v42 = vsel %vm245_vm0, %v1700_v35, 0.0  ;;  %v1710_v44 = vld [vmem:[%s1549_s11 + $0x100] sm:$0xff] }
  0x2e   : > { %v276_v50 = vadd.f32 %v275_v45, %v274_v47  ;;  %v307_v47 = vsel %vm245_vm0, %v1705_v39, 0.0 }
  0x30   : > { %v278_v53 = vadd.f32 %v277_v48, %v276_v50  ;;  %v1715_v48 = vld [vmem:[%s1549_s11 + $0x108] sm:$0xff] }
  0x32   : > { %v280_v56 = vadd.f32 %v279_v51, %v278_v53  ;;  %v309_v51 = vsel %vm245_vm0, %v1710_v44, 0.0  ;;  %v1720_v53 = vld [vmem:[%s1549_s11 + $0x110] sm:$0xff] }
  0x34   : > { %v282_v59 = vadd.f32 %v281_v54, %v280_v56  ;;  %v311_v56 = vsel %vm245_vm0, %v1715_v48, 0.0 }
  0x36   : > { %v284_v62 = vadd.f32 %v283_v57, %v282_v59  ;;  %v1725_v57 = vld [vmem:[%s1549_s11 + $0x118] sm:$0xff] }
  0x38   : > { %v286_v5 = vadd.f32 %v285_v60, %v284_v62  ;;  %v313_v60 = vsel %vm245_vm0, %v1720_v53, 0.0  ;;  %v1730_v62 = vld [vmem:[%s1549_s11 + $0x120] sm:$0xff] }
  0x3a   : > { %v288_v9 = vadd.f32 %v287_v63, %v286_v5  ;;  %v315_v5 = vsel %vm245_vm0, %v1725_v57, 0.0 }
  0x3c   : > { %v290_v14 = vadd.f32 %v289_v6, %v288_v9  ;;  %v1735_v6 = vld [vmem:[%s1549_s11 + $0x128] sm:$0xff] }
  0x3e   : > { %v292_v18 = vadd.f32 %v291_v11, %v290_v14  ;;  %v317_v11 = vsel %vm245_vm0, %v1730_v62, 0.0  ;;  %v1740_v14 = vld [vmem:[%s1549_s11 + $0x130] sm:$0xff] }
  0x40   : > { %v294_v23 = vadd.f32 %v293_v15, %v292_v18  ;;  %v319_v18 = vsel %vm245_vm0, %v1735_v6, 0.0 }
  0x42   : > { %v296_v27 = vadd.f32 %v295_v20, %v294_v23  ;;  %v1745_v20 = vld [vmem:[%s1549_s11 + $0x138] sm:$0xff] }
  0x44   : > { %v298_v32 = vadd.f32 %v297_v24, %v296_v27  ;;  %v321_v24 = vsel %vm245_vm0, %v1740_v14, 0.0  ;;  %v1750_v27 = vld [vmem:[%s1549_s11 + $0x140] sm:$0xff] }
  0x46   : > { %v300_v36 = vadd.f32 %v299_v29, %v298_v32  ;;  %v323_v32 = vsel %vm245_vm0, %v1745_v20, 0.0 }
  0x48   : > { %v302_v41 = vadd.f32 %v301_v33, %v300_v36  ;;  %v1755_v33 = vld [vmem:[%s1549_s11 + $0x148] sm:$0xff] }
  0x4a   : > { %v304_v45 = vadd.f32 %v303_v38, %v302_v41  ;;  %v325_v38 = vsel %vm245_vm0, %v1750_v27, 0.0  ;;  %v1760_v41 = vld [vmem:[%s1549_s11 + $0x150] sm:$0xff] }
  0x4c   : > { %v306_v50 = vadd.f32 %v305_v42, %v304_v45  ;;  %v327_v45 = vsel %vm245_vm0, %v1755_v33, 0.0 }
  0x4e   : > { %v308_v54 = vadd.f32 %v307_v47, %v306_v50  ;;  %v1765_v47 = vld [vmem:[%s1549_s11 + $0x158] sm:$0xff] }
  0x50   : > { %v310_v59 = vadd.f32 %v309_v51, %v308_v54  ;;  %v329_v51 = vsel %vm245_vm0, %v1760_v41, 0.0  ;;  %v1770_v54 = vld [vmem:[%s1549_s11 + $0x160] sm:$0xff] }
  0x51   : > { %3768 = vst [vmem:[#allocation2_spill] sm:$0xff] %v1770_v54 }
  0x52   : > { %v312_v63 = vadd.f32 %v311_v56, %v310_v59  ;;  %v331_v59 = vsel %vm245_vm0, %v1765_v47, 0.0 }
  0x54   : > { %v314_v9 = vadd.f32 %v313_v60, %v312_v63  ;;  %v1775_v60 = vld [vmem:[%s1549_s11 + $0x168] sm:$0xff] }
  0x55   : > { %3769 = vst [vmem:[#allocation3_spill] sm:$0xff] %v1775_v60 }
  0x56   : > { %v316_v15 = vadd.f32 %v315_v5, %v314_v9  ;;  %v333_v5 = vsel %vm245_vm0, %v1770_v54, 0.0  ;;  %v1780_v9 = vld [vmem:[%s1549_s11 + $0x170] sm:$0xff] }
  0x57   : > { %3770 = vst [vmem:[#allocation4_spill] sm:$0xff] %v1780_v9 }
  0x58   : > { %v318_v23 = vadd.f32 %v317_v11, %v316_v15  ;;  %v335_v15 = vsel %vm245_vm0, %v1775_v60, 0.0 }
  0x5a   : > { %v320_v29 = vadd.f32 %v319_v18, %v318_v23  ;;  %v1785_v18 = vld [vmem:[%s1549_s11 + $0x178] sm:$0xff] }
  0x5b   : > { %3771 = vst [vmem:[#allocation5_spill] sm:$0xff] %v1785_v18 }
  0x5c   : > { %v322_v36 = vadd.f32 %v321_v24, %v320_v29  ;;  %v337_v24 = vsel %vm245_vm0, %v1780_v9, 0.0  ;;  %v1790_v29 = vld [vmem:[%s1549_s11 + $0x180] sm:$0xff] }
  0x5d   : > { %3772 = vst [vmem:[#allocation6_spill] sm:$0xff] %v1790_v29 }
  0x5e   : > { %v324_v42 = vadd.f32 %v323_v32, %v322_v36  ;;  %v339_v36 = vsel %vm245_vm0, %v1785_v18, 0.0 }
  0x60   : > { %v326_v50 = vadd.f32 %v325_v38, %v324_v42  ;;  %v1795_v38 = vld [vmem:[%s1549_s11 + $0x188] sm:$0xff] }
  0x61   : > { %3773 = vst [vmem:[#allocation7_spill] sm:$0xff] %v1795_v38 }
  0x62   : > { %v328_v56 = vadd.f32 %v327_v45, %v326_v50  ;;  %v341_v45 = vsel %vm245_vm0, %v1790_v29, 0.0  ;;  %v1800_v50 = vld [vmem:[%s1549_s11 + $0x190] sm:$0xff] }
  0x63   : > { %3774 = vst [vmem:[#allocation8_spill] sm:$0xff] %v1800_v50 }
  0x64   : > { %v330_v63 = vadd.f32 %v329_v51, %v328_v56  ;;  %v343_v56 = vsel %vm245_vm0, %v1795_v38, 0.0  ;;  %v242_v38 = vld [vmem:[%s1549_s11 + $0x3e8] sm:$0xff] }
  0x66   : > { %v332_v11 = vadd.f32 %v331_v59, %v330_v63  ;;  %v1805_v59 = vld [vmem:[%s1549_s11 + $0x198] sm:$0xff] }
  0x67   : > { %3775 = vst [vmem:[#allocation9_spill] sm:$0xff] %v1805_v59 }
  0x68   : > { %v334_v23 = vadd.f32 %v333_v5, %v332_v11  ;;  %v345_v5 = vsel %vm245_vm0, %v1800_v50, 0.0  ;;  %v1810_v11 = vld [vmem:[%s1549_s11 + $0x1a0] sm:$0xff]  ;;  %v1825_v50 = vld [vmem:[%s1549_s11 + $0x1b8] sm:$0xff] }
  0x69   : > { %3776 = vst [vmem:[#allocation10_spill] sm:$0xff] %v1810_v11 }
  0x6a   : > { %v336_v32 = vadd.f32 %v335_v15, %v334_v23  ;;  %v347_v23 = vsel %vm245_vm0, %v1805_v59, 0.0  ;;  %3779 = vst [vmem:[#allocation13_spill] sm:$0xff] %v1825_v50  ;;  %v1830_v59 = vld [vmem:[%s1549_s11 + $0x1c0] sm:$0xff] }
  0x6b   : > { %3780 = vst [vmem:[#allocation14_spill] sm:$0xff] %v1830_v59 }
  0x6c   : > { %v338_v42 = vadd.f32 %v337_v24, %v336_v32  ;;  %v1815_v24 = vld [vmem:[%s1549_s11 + $0x1a8] sm:$0xff] }
  0x6d   : > { %3777 = vst [vmem:[#allocation11_spill] sm:$0xff] %v1815_v24 }
  0x6e   : > { %v340_v51 = vadd.f32 %v339_v36, %v338_v42  ;;  %v349_v36 = vsel %vm245_vm0, %v1810_v11, 0.0  ;;  %v1820_v42 = vld [vmem:[%s1549_s11 + $0x1b0] sm:$0xff]  ;;  %v1835_v11 = vld [vmem:[%s1549_s11 + $0x1c8] sm:$0xff] }
  0x6f   : > { %3778 = vst [vmem:[#allocation12_spill] sm:$0xff] %v1820_v42 }
  0x70   : > { %v342_v63 = vadd.f32 %v341_v45, %v340_v51  ;;  %v351_v51 = vsel %vm245_vm0, %v1815_v24, 0.0  ;;  %3781 = vst [vmem:[#allocation15_spill] sm:$0xff] %v1835_v11  ;;  %v1840_v24 = vld [vmem:[%s1549_s11 + $0x1d0] sm:$0xff] }
  0x71   : > { %3782 = vst [vmem:[#allocation16_spill] sm:$0xff] %v1840_v24 }
  0x72   : > { %v344_v15 = vadd.f32 %v343_v56, %v342_v63  ;;  %v353_v63 = vsel %vm245_vm0, %v1820_v42, 0.0  ;;  %v1845_v42 = vld [vmem:[%s1549_s11 + $0x1d8] sm:$0xff] }
  0x73   : > { %3783 = vst [vmem:[#allocation17_spill] sm:$0xff] %v1845_v42 }
  0x74   : > { %v346_v32 = vadd.f32 %v345_v5, %v344_v15  ;;  %v355_v15 = vsel %vm245_vm0, %v1825_v50, 0.0  ;;  %v1850_v50 = vld [vmem:[%s1549_s11 + $0x1e0] sm:$0xff] }
  0x75   : > { %3784 = vst [vmem:[#allocation18_spill] sm:$0xff] %v1850_v50 }
  0x76   : > { %v348_v45 = vadd.f32 %v347_v23, %v346_v32  ;;  %v357_v32 = vsel %vm245_vm0, %v1830_v59, 0.0  ;;  %v1855_v59 = vld [vmem:[%s1549_s11 + $0x1e8] sm:$0xff] }
  0x77   : > { %3785 = vst [vmem:[#allocation19_spill] sm:$0xff] %v1855_v59 }
  0x78   : > { %v350_v56 = vadd.f32 %v349_v36, %v348_v45  ;;  %v359_v45 = vsel %vm245_vm0, %v1835_v11, 0.0  ;;  %v1860_v11 = vld [vmem:[%s1549_s11 + $0x1f0] sm:$0xff] }
  0x79   : > { %3786 = vst [vmem:[#allocation20_spill] sm:$0xff] %v1860_v11 }
  0x7a   : > { %v352_v5 = vadd.f32 %v351_v51, %v350_v56  ;;  %v361_v56 = vsel %vm245_vm0, %v1840_v24, 0.0  ;;  %v1865_v24 = vld [vmem:[%s1549_s11 + $0x1f8] sm:$0xff] }
  0x7b   : > { %3787 = vst [vmem:[#allocation21_spill] sm:$0xff] %v1865_v24 }
  0x7c   : > { %v354_v23 = vadd.f32 %v353_v63, %v352_v5  ;;  %v363_v5 = vsel %vm245_vm0, %v1845_v42, 0.0  ;;  %v1870_v42 = vld [vmem:[%s1549_s11 + $0x200] sm:$0xff] }
  0x7d   : > { %3788 = vst [vmem:[#allocation22_spill] sm:$0xff] %v1870_v42 }
  0x7e   : > { %v356_v36 = vadd.f32 %v355_v15, %v354_v23  ;;  %v365_v23 = vsel %vm245_vm0, %v1850_v50, 0.0  ;;  %v1875_v50 = vld [vmem:[%s1549_s11 + $0x208] sm:$0xff] }
  0x7f   : > { %3789 = vst [vmem:[#allocation23_spill] sm:$0xff] %v1875_v50 }
  0x80   : > { %v358_v51 = vadd.f32 %v357_v32, %v356_v36  ;;  %v367_v36 = vsel %vm245_vm0, %v1855_v59, 0.0  ;;  %v1880_v59 = vld [vmem:[%s1549_s11 + $0x210] sm:$0xff] }
  0x81   : > { %3790 = vst [vmem:[#allocation24_spill] sm:$0xff] %v1880_v59 }
  0x82   : > { %v360_v63 = vadd.f32 %v359_v45, %v358_v51  ;;  %v369_v51 = vsel %vm245_vm0, %v1860_v11, 0.0  ;;  %v1885_v11 = vld [vmem:[%s1549_s11 + $0x218] sm:$0xff] }
  0x83   : > { %3791 = vst [vmem:[#allocation25_spill] sm:$0xff] %v1885_v11 }
  0x84   : > { %v362_v15 = vadd.f32 %v361_v56, %v360_v63  ;;  %v371_v63 = vsel %vm245_vm0, %v1865_v24, 0.0  ;;  %v1890_v24 = vld [vmem:[%s1549_s11 + $0x220] sm:$0xff] }
  0x85   : > { %3792 = vst [vmem:[#allocation26_spill] sm:$0xff] %v1890_v24 }
  0x86   : > { %v364_v32 = vadd.f32 %v363_v5, %v362_v15  ;;  %v373_v15 = vsel %vm245_vm0, %v1870_v42, 0.0  ;;  %v1895_v42 = vld [vmem:[%s1549_s11 + $0x228] sm:$0xff] }
  0x87   : > { %3793 = vst [vmem:[#allocation27_spill] sm:$0xff] %v1895_v42 }
  0x88   : > { %v366_v45 = vadd.f32 %v365_v23, %v364_v32  ;;  %v375_v32 = vsel %vm245_vm0, %v1875_v50, 0.0  ;;  %v1900_v50 = vld [vmem:[%s1549_s11 + $0x230] sm:$0xff] }
  0x89   : > { %3794 = vst [vmem:[#allocation28_spill] sm:$0xff] %v1900_v50 }
  0x8a   : > { %v368_v56 = vadd.f32 %v367_v36, %v366_v45  ;;  %v377_v45 = vsel %vm245_vm0, %v1880_v59, 0.0  ;;  %v1905_v59 = vld [vmem:[%s1549_s11 + $0x238] sm:$0xff] }
  0x8b   : > { %3795 = vst [vmem:[#allocation29_spill] sm:$0xff] %v1905_v59 }
  0x8c   : > { %v370_v5 = vadd.f32 %v369_v51, %v368_v56  ;;  %v379_v56 = vsel %vm245_vm0, %v1885_v11, 0.0  ;;  %v1910_v11 = vld [vmem:[%s1549_s11 + $0x240] sm:$0xff] }
  0x8d   : > { %3796 = vst [vmem:[#allocation30_spill] sm:$0xff] %v1910_v11 }
  0x8e   : > { %v372_v23 = vadd.f32 %v371_v63, %v370_v5  ;;  %v381_v5 = vsel %vm245_vm0, %v1890_v24, 0.0  ;;  %v1915_v24 = vld [vmem:[%s1549_s11 + $0x248] sm:$0xff] }
  0x8f   : > { %3797 = vst [vmem:[#allocation31_spill] sm:$0xff] %v1915_v24 }
  0x90   : > { %v374_v36 = vadd.f32 %v373_v15, %v372_v23  ;;  %v383_v23 = vsel %vm245_vm0, %v1895_v42, 0.0  ;;  %v1920_v42 = vld [vmem:[%s1549_s11 + $0x250] sm:$0xff] }
  0x91   : > { %3798 = vst [vmem:[#allocation32_spill] sm:$0xff] %v1920_v42 }
  0x92   : > { %v376_v51 = vadd.f32 %v375_v32, %v374_v36  ;;  %v385_v36 = vsel %vm245_vm0, %v1900_v50, 0.0  ;;  %v1925_v50 = vld [vmem:[%s1549_s11 + $0x258] sm:$0xff] }
  0x93   : > { %3799 = vst [vmem:[#allocation33_spill] sm:$0xff] %v1925_v50 }
  0x94   : > { %v378_v63 = vadd.f32 %v377_v45, %v376_v51  ;;  %v387_v51 = vsel %vm245_vm0, %v1905_v59, 0.0  ;;  %v1930_v59 = vld [vmem:[%s1549_s11 + $0x260] sm:$0xff] }
  0x95   : > { %3800 = vst [vmem:[#allocation34_spill] sm:$0xff] %v1930_v59 }
  0x96   : > { %v380_v15 = vadd.f32 %v379_v56, %v378_v63  ;;  %v389_v63 = vsel %vm245_vm0, %v1910_v11, 0.0  ;;  %v1935_v11 = vld [vmem:[%s1549_s11 + $0x268] sm:$0xff] }
  0x97   : > { %3801 = vst [vmem:[#allocation35_spill] sm:$0xff] %v1935_v11 }
  0x98   : > { %v382_v32 = vadd.f32 %v381_v5, %v380_v15  ;;  %v391_v15 = vsel %vm245_vm0, %v1915_v24, 0.0  ;;  %v1940_v24 = vld [vmem:[%s1549_s11 + $0x270] sm:$0xff] }
  0x99   : > { %3802 = vst [vmem:[#allocation36_spill] sm:$0xff] %v1940_v24 }
  0x9a   : > { %v384_v45 = vadd.f32 %v383_v23, %v382_v32  ;;  %v393_v32 = vsel %vm245_vm0, %v1920_v42, 0.0  ;;  %v1945_v42 = vld [vmem:[%s1549_s11 + $0x278] sm:$0xff] }
  0x9b   : > { %3803 = vst [vmem:[#allocation37_spill] sm:$0xff] %v1945_v42 }
  0x9c   : > { %v386_v56 = vadd.f32 %v385_v36, %v384_v45  ;;  %v395_v45 = vsel %vm245_vm0, %v1925_v50, 0.0  ;;  %v1950_v50 = vld [vmem:[%s1549_s11 + $0x280] sm:$0xff] }
  0x9d   : > { %3804 = vst [vmem:[#allocation38_spill] sm:$0xff] %v1950_v50 }
  0x9e   : > { %v388_v5 = vadd.f32 %v387_v51, %v386_v56  ;;  %v397_v56 = vsel %vm245_vm0, %v1930_v59, 0.0  ;;  %v1955_v59 = vld [vmem:[%s1549_s11 + $0x288] sm:$0xff] }
  0x9f   : > { %3805 = vst [vmem:[#allocation39_spill] sm:$0xff] %v1955_v59 }
  0xa0   : > { %v390_v23 = vadd.f32 %v389_v63, %v388_v5  ;;  %v399_v5 = vsel %vm245_vm0, %v1935_v11, 0.0  ;;  %v1960_v11 = vld [vmem:[%s1549_s11 + $0x290] sm:$0xff] }
  0xa1   : > { %3806 = vst [vmem:[#allocation40_spill] sm:$0xff] %v1960_v11 }
  0xa2   : > { %v392_v36 = vadd.f32 %v391_v15, %v390_v23  ;;  %v401_v23 = vsel %vm245_vm0, %v1940_v24, 0.0  ;;  %v1965_v24 = vld [vmem:[%s1549_s11 + $0x298] sm:$0xff] }
  0xa3   : > { %3807 = vst [vmem:[#allocation41_spill] sm:$0xff] %v1965_v24 }
  0xa4   : > { %v394_v51 = vadd.f32 %v393_v32, %v392_v36  ;;  %v403_v36 = vsel %vm245_vm0, %v1945_v42, 0.0  ;;  %v1970_v42 = vld [vmem:[%s1549_s11 + $0x2a0] sm:$0xff] }
  0xa5   : > { %3808 = vst [vmem:[#allocation42_spill] sm:$0xff] %v1970_v42 }
  0xa6   : > { %v396_v63 = vadd.f32 %v395_v45, %v394_v51  ;;  %v405_v51 = vsel %vm245_vm0, %v1950_v50, 0.0  ;;  %v1975_v50 = vld [vmem:[%s1549_s11 + $0x2a8] sm:$0xff] }
  0xa7   : > { %3809 = vst [vmem:[#allocation43_spill] sm:$0xff] %v1975_v50 }
  0xa8   : > { %v398_v15 = vadd.f32 %v397_v56, %v396_v63  ;;  %v407_v63 = vsel %vm245_vm0, %v1955_v59, 0.0  ;;  %v1980_v59 = vld [vmem:[%s1549_s11 + $0x2b0] sm:$0xff] }
  0xa9   : > { %3810 = vst [vmem:[#allocation44_spill] sm:$0xff] %v1980_v59 }
  0xaa   : > { %v400_v32 = vadd.f32 %v399_v5, %v398_v15  ;;  %v409_v15 = vsel %vm245_vm0, %v1960_v11, 0.0  ;;  %v1985_v11 = vld [vmem:[%s1549_s11 + $0x2b8] sm:$0xff] }
  0xab   : > { %3811 = vst [vmem:[#allocation45_spill] sm:$0xff] %v1985_v11 }
  0xac   : > { %v402_v45 = vadd.f32 %v401_v23, %v400_v32  ;;  %v411_v32 = vsel %vm245_vm0, %v1965_v24, 0.0  ;;  %v1990_v24 = vld [vmem:[%s1549_s11 + $0x2c0] sm:$0xff] }
  0xad   : > { %3812 = vst [vmem:[#allocation46_spill] sm:$0xff] %v1990_v24 }
  0xae   : > { %v404_v56 = vadd.f32 %v403_v36, %v402_v45  ;;  %v413_v45 = vsel %vm245_vm0, %v1970_v42, 0.0  ;;  %v1995_v42 = vld [vmem:[%s1549_s11 + $0x2c8] sm:$0xff] }
  0xaf   : > { %3813 = vst [vmem:[#allocation47_spill] sm:$0xff] %v1995_v42 }
  0xb0   : > { %v406_v5 = vadd.f32 %v405_v51, %v404_v56  ;;  %v415_v56 = vsel %vm245_vm0, %v1975_v50, 0.0  ;;  %v2000_v50 = vld [vmem:[%s1549_s11 + $0x2d0] sm:$0xff] }
  0xb1   : > { %3814 = vst [vmem:[#allocation48_spill] sm:$0xff] %v2000_v50 }
  0xb2   : > { %v408_v23 = vadd.f32 %v407_v63, %v406_v5  ;;  %v417_v5 = vsel %vm245_vm0, %v1980_v59, 0.0  ;;  %v2005_v59 = vld [vmem:[%s1549_s11 + $0x2d8] sm:$0xff] }
  0xb3   : > { %3815 = vst [vmem:[#allocation49_spill] sm:$0xff] %v2005_v59 }
  0xb4   : > { %v410_v36 = vadd.f32 %v409_v15, %v408_v23  ;;  %v419_v23 = vsel %vm245_vm0, %v1985_v11, 0.0  ;;  %v2010_v11 = vld [vmem:[%s1549_s11 + $0x2e0] sm:$0xff] }
  0xb5   : > { %3816 = vst [vmem:[#allocation50_spill] sm:$0xff] %v2010_v11 }
  0xb6   : > { %v412_v51 = vadd.f32 %v411_v32, %v410_v36  ;;  %v421_v36 = vsel %vm245_vm0, %v1990_v24, 0.0  ;;  %v2015_v24 = vld [vmem:[%s1549_s11 + $0x2e8] sm:$0xff] }
  0xb7   : > { %3817 = vst [vmem:[#allocation51_spill] sm:$0xff] %v2015_v24 }
  0xb8   : > { %v414_v63 = vadd.f32 %v413_v45, %v412_v51  ;;  %v423_v51 = vsel %vm245_vm0, %v1995_v42, 0.0  ;;  %v2020_v42 = vld [vmem:[%s1549_s11 + $0x2f0] sm:$0xff] }
  0xb9   : > { %3818 = vst [vmem:[#allocation52_spill] sm:$0xff] %v2020_v42 }
  0xba   : > { %v416_v15 = vadd.f32 %v415_v56, %v414_v63  ;;  %v425_v63 = vsel %vm245_vm0, %v2000_v50, 0.0  ;;  %v2025_v50 = vld [vmem:[%s1549_s11 + $0x2f8] sm:$0xff] }
  0xbb   : > { %3819 = vst [vmem:[#allocation53_spill] sm:$0xff] %v2025_v50 }
  0xbc   : > { %v418_v32 = vadd.f32 %v417_v5, %v416_v15  ;;  %v427_v15 = vsel %vm245_vm0, %v2005_v59, 0.0  ;;  %v2030_v59 = vld [vmem:[%s1549_s11 + $0x300] sm:$0xff] }
  0xbd   : > { %3820 = vst [vmem:[#allocation54_spill] sm:$0xff] %v2030_v59 }
  0xbe   : > { %v420_v45 = vadd.f32 %v419_v23, %v418_v32  ;;  %v429_v32 = vsel %vm245_vm0, %v2010_v11, 0.0  ;;  %v2035_v11 = vld [vmem:[%s1549_s11 + $0x308] sm:$0xff] }
  0xbf   : > { %3821 = vst [vmem:[#allocation55_spill] sm:$0xff] %v2035_v11 }
  0xc0   : > { %v422_v56 = vadd.f32 %v421_v36, %v420_v45  ;;  %v431_v45 = vsel %vm245_vm0, %v2015_v24, 0.0  ;;  %v2040_v24 = vld [vmem:[%s1549_s11 + $0x310] sm:$0xff] }
  0xc1   : > { %3822 = vst [vmem:[#allocation56_spill] sm:$0xff] %v2040_v24 }
  0xc2   : > { %v424_v5 = vadd.f32 %v423_v51, %v422_v56  ;;  %v433_v56 = vsel %vm245_vm0, %v2020_v42, 0.0  ;;  %v2045_v42 = vld [vmem:[%s1549_s11 + $0x318] sm:$0xff] }
  0xc3   : > { %3823 = vst [vmem:[#allocation57_spill] sm:$0xff] %v2045_v42 }
  0xc4   : > { %v426_v23 = vadd.f32 %v425_v63, %v424_v5  ;;  %v435_v5 = vsel %vm245_vm0, %v2025_v50, 0.0  ;;  %v2050_v50 = vld [vmem:[%s1549_s11 + $0x320] sm:$0xff] }
  0xc5   : > { %3824 = vst [vmem:[#allocation58_spill] sm:$0xff] %v2050_v50 }
  0xc6   : > { %v428_v36 = vadd.f32 %v427_v15, %v426_v23  ;;  %v437_v23 = vsel %vm245_vm0, %v2030_v59, 0.0  ;;  %v2055_v59 = vld [vmem:[%s1549_s11 + $0x328] sm:$0xff] }
  0xc7   : > { %3825 = vst [vmem:[#allocation59_spill] sm:$0xff] %v2055_v59 }
  0xc8   : > { %v430_v51 = vadd.f32 %v429_v32, %v428_v36  ;;  %v439_v36 = vsel %vm245_vm0, %v2035_v11, 0.0  ;;  %v2060_v11 = vld [vmem:[%s1549_s11 + $0x330] sm:$0xff] }
  0xc9   : > { %3826 = vst [vmem:[#allocation60_spill] sm:$0xff] %v2060_v11 }
  0xca   : > { %v432_v63 = vadd.f32 %v431_v45, %v430_v51  ;;  %v441_v51 = vsel %vm245_vm0, %v2040_v24, 0.0  ;;  %v2065_v24 = vld [vmem:[%s1549_s11 + $0x338] sm:$0xff] }
  0xcb   : > { %3827 = vst [vmem:[#allocation61_spill] sm:$0xff] %v2065_v24 }
  0xcc   : > { %v434_v15 = vadd.f32 %v433_v56, %v432_v63  ;;  %v443_v63 = vsel %vm245_vm0, %v2045_v42, 0.0  ;;  %v2070_v42 = vld [vmem:[%s1549_s11 + $0x340] sm:$0xff] }
  0xcd   : > { %3828 = vst [vmem:[#allocation62_spill] sm:$0xff] %v2070_v42 }
  0xce   : > { %v436_v32 = vadd.f32 %v435_v5, %v434_v15  ;;  %v445_v15 = vsel %vm245_vm0, %v2050_v50, 0.0  ;;  %v2075_v50 = vld [vmem:[%s1549_s11 + $0x348] sm:$0xff] }
  0xcf   : > { %3829 = vst [vmem:[#allocation63_spill] sm:$0xff] %v2075_v50 }
  0xd0   : > { %v438_v45 = vadd.f32 %v437_v23, %v436_v32  ;;  %v447_v32 = vsel %vm245_vm0, %v2055_v59, 0.0  ;;  %v2080_v59 = vld [vmem:[%s1549_s11 + $0x350] sm:$0xff] }
  0xd1   : > { %3830 = vst [vmem:[#allocation64_spill] sm:$0xff] %v2080_v59 }
  0xd2   : > { %v440_v56 = vadd.f32 %v439_v36, %v438_v45  ;;  %v449_v45 = vsel %vm245_vm0, %v2060_v11, 0.0  ;;  %v2085_v11 = vld [vmem:[%s1549_s11 + $0x358] sm:$0xff] }
  0xd3   : > { %3831 = vst [vmem:[#allocation65_spill] sm:$0xff] %v2085_v11 }
  0xd4   : > { %v442_v5 = vadd.f32 %v441_v51, %v440_v56  ;;  %v451_v56 = vsel %vm245_vm0, %v2065_v24, 0.0 }
  0xd6   : > { %v444_v23 = vadd.f32 %v443_v63, %v442_v5  ;;  %v453_v5 = vsel %vm245_vm0, %v2070_v42, 0.0 }
  0xd8   : > { %v446_v36 = vadd.f32 %v445_v15, %v444_v23  ;;  %v455_v23 = vsel %vm245_vm0, %v2075_v50, 0.0  ;;  %v2097_v50 = vld [vmem:[%s1549_s11 + $0x368] sm:$0xff] }
  0xd9   : > { %3833 = vst [vmem:[#allocation67_spill] sm:$0xff] %v2097_v50 }
  0xda   : > { %v448_v51 = vadd.f32 %v447_v32, %v446_v36  ;;  %v457_v36 = vsel %vm245_vm0, %v2080_v59, 0.0 }
  0xdc   : > { %v450_v63 = vadd.f32 %v449_v45, %v448_v51  ;;  %v459_v45 = vsel %vm245_vm0, %v2085_v11, 0.0  ;;  %v2092_v51 = vld [vmem:[%s1549_s11 + $0x360] sm:$0xff] }
  0xdd   : > { %3832 = vst [vmem:[#allocation66_spill] sm:$0xff] %v2092_v51 }
  0xde   : > { %v452_v15 = vadd.f32 %v451_v56, %v450_v63  ;;  %v461_v63 = vsel %vm245_vm0, %v2092_v51, 0.0 }
  0xe0   : > { %v454_v32 = vadd.f32 %v453_v5, %v452_v15  ;;  %v463_v15 = vsel %vm245_vm0, %v2097_v50, 0.0  ;;  %v2117_v50 = vld [vmem:[%s1549_s11 + $0x388] sm:$0xff] }
  0xe1   : > { %3837 = vst [vmem:[#allocation71_spill] sm:$0xff] %v2117_v50 }
  0xe2   : > { %v456_v24 = vadd.f32 %v455_v23, %v454_v32  ;;  %v2102_v23 = vld [vmem:[%s1549_s11 + $0x370] sm:$0xff] }
  0xe3   : > { %3834 = vst [vmem:[#allocation68_spill] sm:$0xff] %v2102_v23  ;;  %v465_v11 = vsel %vm245_vm0, %v2102_v23, 0.0  ;;  %v2122_v23 = vld [vmem:[%s1549_s11 + $0x390] sm:$0xff] }
  0xe4   : > { %v458_v42 = vadd.f32 %v457_v36, %v456_v24  ;;  %v2107_v24 = vld [vmem:[%s1549_s11 + $0x378] sm:$0xff]  ;;  %3838 = vst [vmem:[#allocation72_spill] sm:$0xff] %v2122_v23 }
  0xe5   : > { %3835 = vst [vmem:[#allocation69_spill] sm:$0xff] %v2107_v24  ;;  %v467_v36 = vsel %vm245_vm0, %v2107_v24, 0.0  ;;  %v2127_v24 = vld [vmem:[%s1549_s11 + $0x398] sm:$0xff] }
  0xe6   : > { %v460_v56 = vadd.f32 %v459_v45, %v458_v42  ;;  %v2112_v45 = vld [vmem:[%s1549_s11 + $0x380] sm:$0xff]  ;;  %3839 = vst [vmem:[#allocation73_spill] sm:$0xff] %v2127_v24 }
  0xe7   : > { %3836 = vst [vmem:[#allocation70_spill] sm:$0xff] %v2112_v45 }
  0xe8   : > { %v462_v5 = vadd.f32 %v461_v63, %v460_v56  ;;  %v469_v63 = vsel %vm245_vm0, %v2112_v45, 0.0  ;;  %v2132_v45 = vld [vmem:[%s1549_s11 + $0x3a0] sm:$0xff] }
  0xe9   : > { %3840 = vst [vmem:[#allocation74_spill] sm:$0xff] %v2132_v45 }
  0xea   : > { %v464_v32 = vadd.f32 %v463_v15, %v462_v5  ;;  %v471_v15 = vsel %vm245_vm0, %v2117_v50, 0.0  ;;  %v2137_v50 = vld [vmem:[%s1549_s11 + $0x3a8] sm:$0xff] }
  0xeb   : > { %3841 = vst [vmem:[#allocation75_spill] sm:$0xff] %v2137_v50 }
  0xec   : > { %v466_v42 = vadd.f32 %v465_v11, %v464_v32  ;;  %v473_v32 = vsel %vm245_vm0, %v2122_v23, 0.0  ;;  %v2142_v23 = vld [vmem:[%s1549_s11 + $0x3b0] sm:$0xff] }
  0xed   : > { %3842 = vst [vmem:[#allocation76_spill] sm:$0xff] %v2142_v23 }
  0xee   : > { %v468_v56 = vadd.f32 %v467_v36, %v466_v42  ;;  %v475_v36 = vsel %vm245_vm0, %v2127_v24, 0.0  ;;  %v2147_v24 = vld [vmem:[%s1549_s11 + $0x3b8] sm:$0xff] }
  0xef   : > { %3843 = vst [vmem:[#allocation77_spill] sm:$0xff] %v2147_v24 }
  0xf0   : > { %v470_v5 = vadd.f32 %v469_v63, %v468_v56  ;;  %v477_v63 = vsel %vm245_vm0, %v2132_v45, 0.0  ;;  %v2152_v45 = vld [vmem:[%s1549_s11 + $0x3c0] sm:$0xff] }
  0xf1   : > { %3844 = vst [vmem:[#allocation78_spill] sm:$0xff] %v2152_v45 }
  0xf2   : > { %v472_v11 = vadd.f32 %v471_v15, %v470_v5  ;;  %v479_v15 = vsel %vm245_vm0, %v2137_v50, 0.0  ;;  %v2157_v50 = vld [vmem:[%s1549_s11 + $0x3c8] sm:$0xff] }
  0xf3   : > { %3845 = vst [vmem:[#allocation79_spill] sm:$0xff] %v2157_v50 }
  0xf4   : > { %v474_v42 = vadd.f32 %v473_v32, %v472_v11  ;;  %v481_v32 = vsel %vm245_vm0, %v2142_v23, 0.0  ;;  %v2162_v23 = vld [vmem:[%s1549_s11 + $0x3d0] sm:$0xff] }
  0xf5   : > { %3846 = vst [vmem:[#allocation80_spill] sm:$0xff] %v2162_v23 }
  0xf6   : > { %v476_v56 = vadd.f32 %v475_v36, %v474_v42  ;;  %v483_v36 = vsel %vm245_vm0, %v2147_v24, 0.0  ;;  %v240_v24 = vld [vmem:[%s1549_s11 + $0x3d8] sm:$0xff] }
  0xf8   : > { %v478_v5 = vadd.f32 %v477_v63, %v476_v56  ;;  %v485_v63 = vsel %vm245_vm0, %v2152_v45, 0.0 }
  0xfa   : > { %v480_v11 = vadd.f32 %v479_v15, %v478_v5  ;;  %v487_v15 = vsel %vm245_vm0, %v2157_v50, 0.0  ;;  %v243_v50 = vld [vmem:[%s1549_s11 + $0x3f0] sm:$0xff] }
  0xfb   : > { %v497_v18 = vsel %vm245_vm0, %v243_v50, 0.0 }
  0xfc   : > { %v482_v42 = vadd.f32 %v481_v32, %v480_v11  ;;  %v489_v32 = vsel %vm245_vm0, %v2162_v23, 0.0 }
  0xfe   : > { %v484_v56 = vadd.f32 %v483_v36, %v482_v42  ;;  %v491_v42 = vsel %vm245_vm0, %v240_v24, 0.0  ;;  %v241_v36 = vld [vmem:[%s1549_s11 + $0x3e0] sm:$0xff] }
  0xff   : > { %v493_v59 = vsel %vm245_vm0, %v241_v36, 0.0 }
 0x100   : > { %v486_v5 = vadd.f32 %v485_v63, %v484_v56  ;;  %v495_v63 = vsel %vm245_vm0, %v242_v38, 0.0 }
 0x102   : > { %v488_v11 = vadd.f32 %v487_v15, %v486_v5  ;;  %v244_v5 = vld [vmem:[%s1549_s11 + $0x3f8] sm:$0xff] }
 0x103   : > { %v499_v23 = vsel %vm245_vm0, %v244_v5, 0.0 }
 0x104   : > { %v490_v51 = vadd.f32 %v489_v32, %v488_v11  ;;  %v1522_v11 = vmov 1024.0  }
 0x105   : > { %1505 = vrcp.f32 %v1522_v11 }
 0x106   : > { %v492_v45 = vadd.f32 %v491_v42, %v490_v51 }
 0x108   : > { %v494_v56 = vadd.f32 %v493_v59, %v492_v45 }
 0x10a   : > { %v496_v29 = vadd.f32 %v495_v63, %v494_v56 }
 0x10b   : > { %v1506_v32 = vpop.eup %1505 }
 0x10c   : > { %v498_v15 = vadd.f32 %v497_v18, %v496_v29  ;;  %v508_v42 = vmul.f32 1024.0, %v1506_v32  ;;  %vm512_vm1 = vweird.f32 %v1506_v32 }
 0x10e   : > { %v500_v9 = vadd.f32 %v499_v23, %v498_v15  ;;  %v509_v60 = vsub.f32 1.0, %v508_v42 }
 0x110   : > { %v501_v24 = vrot.slane %v500_v9, 4  ;;  %v510_v45 = vmul.f32 %v1506_v32, %v509_v60 }
 0x112   : > { %v502_v51 = vadd.f32 %v501_v24, %v500_v9  ;;  %v511_v54 = vadd.f32 %v1506_v32, %v510_v45 }
 0x114   : > { %v503_v36 = vrot.slane %v502_v51, 2  ;;  %v2176_v50 = vsel %vm512_vm1, %v1506_v32, %v511_v54 }
 0x116   : > { %v504_v59 = vadd.f32 %v503_v36, %v502_v51 }
 0x118   : > { %v505_v38 = vrot.slane %v504_v59, 1 }
 0x11a   : > { %v506_v56 = vadd.f32 %v505_v38, %v504_v59 }
 0x11c   : > { %v2179_v18 = vmul.f32 %v2176_v50, %v506_v56 }
 0x11e   : > { %v2183_v29 = vsub.f32 %v1552_v0, %v2179_v18  ;;  %v2187_v9 = vsub.f32 %v1555_v1, %v2179_v18  ;;  %v2191_v60 = vsub.f32 %v1558_v2, %v2179_v18  ;;  %v2195_v23 = vsub.f32 %v1561_v3, %v2179_v18 }
 0x11f   : > { %v2199_v54 = vsub.f32 %v1570_v7, %v2179_v18  ;;  %v2209_v2 = vsub.f32 %v1575_v10, %v2179_v18  ;;  %v2215_v7 = vsub.f32 %v1580_v13, %v2179_v18  ;;  %v2224_v10 = vsub.f32 %v1585_v16, %v2179_v18 }
 0x120   : > { %v643_v0 = vmul.f32 %v2183_v29, %v2183_v29  ;;  %v644_v63 = vmul.f32 %v2187_v9, %v2187_v9  ;;  %v645_v1 = vmul.f32 %v2191_v60, %v2191_v60  ;;  %v646_v3 = vmul.f32 %v2195_v23, %v2195_v23 }
 0x121   : > { %v647_v5 = vmul.f32 %v2199_v54, %v2199_v54  ;;  %v648_v51 = vmul.f32 %v2209_v2, %v2209_v2  ;;  %v2231_v36 = vsub.f32 %v1590_v19, %v2179_v18  ;;  %v649_v59 = vmul.f32 %v2215_v7, %v2215_v7 }
 0x122   : > { %v771_v15 = vsel %vm245_vm0, %v643_v0, 0.0  ;;  %v772_v11 = vsel %vm245_vm0, %v644_v63, 0.0  ;;  %v774_v24 = vsel %vm245_vm0, %v645_v1, 0.0  ;;  %v776_v13 = vsel %vm245_vm0, %v646_v3, 0.0 }
 0x123   : > { %v773_v32 = vadd.f32 %v772_v11, %v771_v15  ;;  %v778_v45 = vsel %vm245_vm0, %v647_v5, 0.0  ;;  %v2238_v16 = vsub.f32 %v1595_v22, %v2179_v18  ;;  %v650_v56 = vmul.f32 %v2224_v10, %v2224_v10 }
 0x124   : > { %v780_v0 = vsel %vm245_vm0, %v648_v51, 0.0  ;;  %v2245_v19 = vsub.f32 %v1600_v25, %v2179_v18  ;;  %v651_v1 = vmul.f32 %v2231_v36, %v2231_v36  ;;  %v782_v3 = vsel %vm245_vm0, %v649_v59, 0.0 }
 0x125   : > { %v775_v42 = vadd.f32 %v774_v24, %v773_v32  ;;  %v2252_v22 = vsub.f32 %v1605_v28, %v2179_v18  ;;  %v652_v15 = vmul.f32 %v2238_v16, %v2238_v16  ;;  %v784_v11 = vsel %vm245_vm0, %v650_v56, 0.0 }
 0x126   : > { %v2259_v25 = vsub.f32 %v1610_v31, %v2179_v18  ;;  %v653_v32 = vmul.f32 %v2245_v19, %v2245_v19  ;;  %v786_v51 = vsel %vm245_vm0, %v651_v1, 0.0  ;;  %v2266_v28 = vsub.f32 %v1615_v34, %v2179_v18 }
 0x127   : > { %v777_v38 = vadd.f32 %v776_v13, %v775_v42  ;;  %v654_v42 = vmul.f32 %v2252_v22, %v2252_v22  ;;  %v788_v59 = vsel %vm245_vm0, %v652_v15, 0.0  ;;  %v2273_v31 = vsub.f32 %v1620_v37, %v2179_v18 }
 0x128   : > { %v790_v56 = vsel %vm245_vm0, %v653_v32, 0.0  ;;  %v2280_v34 = vsub.f32 %v1625_v40, %v2179_v18  ;;  %v2287_v37 = vsub.f32 %v1630_v43, %v2179_v18  ;;  %v2294_v40 = vsub.f32 %v1635_v46, %v2179_v18 }
 0x129   : > { %v779_v63 = vadd.f32 %v778_v45, %v777_v38  ;;  %v655_v38 = vmul.f32 %v2259_v25, %v2259_v25  ;;  %v792_v1 = vsel %vm245_vm0, %v654_v42, 0.0  ;;  %v2301_v43 = vsub.f32 %v1640_v49, %v2179_v18 }
 0x12a   : > { %v2308_v46 = vsub.f32 %v1645_v52, %v2179_v18  ;;  %v2315_v49 = vsub.f32 %v1650_v55, %v2179_v18  ;;  %v2322_v52 = vsub.f32 %v1655_v58, %v2179_v18  ;;  %v2329_v55 = vsub.f32 %v1660_v61, %v2179_v18 }
 0x12b   : > { %v781_v5 = vadd.f32 %v780_v0, %v779_v63  ;;  %v656_v63 = vmul.f32 %v2266_v28, %v2266_v28  ;;  %v794_v15 = vsel %vm245_vm0, %v655_v38, 0.0  ;;  %v2336_v58 = vsub.f32 %v1665_v4, %v2179_v18 }
 0x12c   : > { %v2343_v61 = vsub.f32 %v1670_v8, %v2179_v18  ;;  %v2350_v4 = vsub.f32 %v1675_v12, %v2179_v18  ;;  %v2357_v8 = vsub.f32 %v1680_v17, %v2179_v18  ;;  %v2364_v12 = vsub.f32 %v1685_v21, %v2179_v18 }
 0x12d   : > { %v783_v24 = vadd.f32 %v782_v3, %v781_v5  ;;  %v657_v5 = vmul.f32 %v2273_v31, %v2273_v31  ;;  %v796_v32 = vsel %vm245_vm0, %v656_v63, 0.0  ;;  %v2371_v17 = vsub.f32 %v1690_v26, %v2179_v18 }
 0x12e   : > { %v2378_v21 = vsub.f32 %v1695_v30, %v2179_v18  ;;  %v2385_v26 = vsub.f32 %v1700_v35, %v2179_v18  ;;  %v2392_v30 = vsub.f32 %v1705_v39, %v2179_v18  ;;  %v2399_v35 = vsub.f32 %v1710_v44, %v2179_v18 }
 0x12f   : > { %v785_v13 = vadd.f32 %v784_v11, %v783_v24  ;;  %v658_v24 = vmul.f32 %v2280_v34, %v2280_v34  ;;  %v798_v42 = vsel %vm245_vm0, %v657_v5, 0.0  ;;  %v2406_v39 = vsub.f32 %v1715_v48, %v2179_v18 }
 0x130   : > { %v2413_v44 = vsub.f32 %v1720_v53, %v2179_v18  ;;  %v2420_v48 = vsub.f32 %v1725_v57, %v2179_v18  ;;  %v2427_v53 = vsub.f32 %v1730_v62, %v2179_v18  ;;  %v2434_v57 = vsub.f32 %v1735_v6, %v2179_v18 }
 0x131   : > { %v787_v45 = vadd.f32 %v786_v51, %v785_v13  ;;  %v659_v13 = vmul.f32 %v2287_v37, %v2287_v37  ;;  %v800_v38 = vsel %vm245_vm0, %v658_v24, 0.0  ;;  %v2441_v62 = vsub.f32 %v1740_v14, %v2179_v18 }
 0x132   : > { %v2448_v6 = vsub.f32 %v1745_v20, %v2179_v18  ;;  %v2455_v14 = vsub.f32 %v1750_v27, %v2179_v18  ;;  %v2462_v20 = vsub.f32 %v1755_v33, %v2179_v18  ;;  %v2469_v27 = vsub.f32 %v1760_v41, %v2179_v18 }
 0x133   : > { %v789_v0 = vadd.f32 %v788_v59, %v787_v45  ;;  %v660_v45 = vmul.f32 %v2294_v40, %v2294_v40  ;;  %v802_v63 = vsel %vm245_vm0, %v659_v13, 0.0  ;;  %v2476_v33 = vsub.f32 %v1765_v47, %v2179_v18 }
 0x134   : > { %3847 = vst [vmem:[#allocation81_spill] sm:$0xff] %v2469_v27 }
 0x135   : > { %v791_v3 = vadd.f32 %v790_v56, %v789_v0  ;;  %v661_v0 = vmul.f32 %v2301_v43, %v2301_v43  ;;  %v804_v5 = vsel %vm245_vm0, %v660_v45, 0.0  ;;  %3848 = vst [vmem:[#allocation82_spill] sm:$0xff] %v2476_v33 }
 0x137   : > { %v793_v11 = vadd.f32 %v792_v1, %v791_v3  ;;  %v662_v3 = vmul.f32 %v2308_v46, %v2308_v46  ;;  %v806_v24 = vsel %vm245_vm0, %v661_v0, 0.0 }
 0x139   : > { %v795_v51 = vadd.f32 %v794_v15, %v793_v11  ;;  %v663_v11 = vmul.f32 %v2315_v49, %v2315_v49  ;;  %v808_v13 = vsel %vm245_vm0, %v662_v3, 0.0 }
 0x13b   : > { %v797_v59 = vadd.f32 %v796_v32, %v795_v51  ;;  %v664_v51 = vmul.f32 %v2322_v52, %v2322_v52  ;;  %v810_v45 = vsel %vm245_vm0, %v663_v11, 0.0 }
 0x13d   : > { %v799_v56 = vadd.f32 %v798_v42, %v797_v59  ;;  %v665_v59 = vmul.f32 %v2329_v55, %v2329_v55  ;;  %v812_v0 = vsel %vm245_vm0, %v664_v51, 0.0 }
 0x13f   : > { %v801_v1 = vadd.f32 %v800_v38, %v799_v56  ;;  %v666_v56 = vmul.f32 %v2336_v58, %v2336_v58  ;;  %v814_v3 = vsel %vm245_vm0, %v665_v59, 0.0 }
 0x141   : > { %v803_v15 = vadd.f32 %v802_v63, %v801_v1  ;;  %v667_v1 = vmul.f32 %v2343_v61, %v2343_v61  ;;  %v816_v11 = vsel %vm245_vm0, %v666_v56, 0.0 }
 0x143   : > { %v805_v32 = vadd.f32 %v804_v5, %v803_v15  ;;  %v668_v15 = vmul.f32 %v2350_v4, %v2350_v4  ;;  %v818_v51 = vsel %vm245_vm0, %v667_v1, 0.0 }
 0x145   : > { %v807_v42 = vadd.f32 %v806_v24, %v805_v32  ;;  %v669_v32 = vmul.f32 %v2357_v8, %v2357_v8  ;;  %v820_v59 = vsel %vm245_vm0, %v668_v15, 0.0 }
 0x147   : > { %v809_v38 = vadd.f32 %v808_v13, %v807_v42  ;;  %v670_v42 = vmul.f32 %v2364_v12, %v2364_v12  ;;  %v822_v56 = vsel %vm245_vm0, %v669_v32, 0.0 }
 0x149   : > { %v811_v63 = vadd.f32 %v810_v45, %v809_v38  ;;  %v671_v38 = vmul.f32 %v2371_v17, %v2371_v17  ;;  %v824_v1 = vsel %vm245_vm0, %v670_v42, 0.0 }
 0x14b   : > { %v813_v5 = vadd.f32 %v812_v0, %v811_v63  ;;  %v672_v63 = vmul.f32 %v2378_v21, %v2378_v21  ;;  %v826_v15 = vsel %vm245_vm0, %v671_v38, 0.0 }
 0x14d   : > { %v815_v24 = vadd.f32 %v814_v3, %v813_v5  ;;  %v673_v5 = vmul.f32 %v2385_v26, %v2385_v26  ;;  %v828_v32 = vsel %vm245_vm0, %v672_v63, 0.0 }
 0x14f   : > { %v817_v13 = vadd.f32 %v816_v11, %v815_v24  ;;  %v674_v24 = vmul.f32 %v2392_v30, %v2392_v30  ;;  %v830_v42 = vsel %vm245_vm0, %v673_v5, 0.0 }
 0x151   : > { %v819_v45 = vadd.f32 %v818_v51, %v817_v13  ;;  %v675_v13 = vmul.f32 %v2399_v35, %v2399_v35  ;;  %v832_v38 = vsel %vm245_vm0, %v674_v24, 0.0 }
 0x153   : > { %v821_v0 = vadd.f32 %v820_v59, %v819_v45  ;;  %v676_v45 = vmul.f32 %v2406_v39, %v2406_v39  ;;  %v834_v63 = vsel %vm245_vm0, %v675_v13, 0.0 }
 0x155   : > { %v823_v3 = vadd.f32 %v822_v56, %v821_v0  ;;  %v677_v0 = vmul.f32 %v2413_v44, %v2413_v44  ;;  %v836_v5 = vsel %vm245_vm0, %v676_v45, 0.0 }
 0x157   : > { %v825_v11 = vadd.f32 %v824_v1, %v823_v3  ;;  %v678_v3 = vmul.f32 %v2420_v48, %v2420_v48  ;;  %v838_v24 = vsel %vm245_vm0, %v677_v0, 0.0 }
 0x159   : > { %v827_v51 = vadd.f32 %v826_v15, %v825_v11  ;;  %v679_v11 = vmul.f32 %v2427_v53, %v2427_v53  ;;  %v840_v13 = vsel %vm245_vm0, %v678_v3, 0.0 }
 0x15b   : > { %v829_v59 = vadd.f32 %v828_v32, %v827_v51  ;;  %v680_v51 = vmul.f32 %v2434_v57, %v2434_v57  ;;  %v842_v45 = vsel %vm245_vm0, %v679_v11, 0.0 }
 0x15d   : > { %v831_v56 = vadd.f32 %v830_v42, %v829_v59  ;;  %v681_v59 = vmul.f32 %v2441_v62, %v2441_v62  ;;  %v844_v0 = vsel %vm245_vm0, %v680_v51, 0.0  ;;  %v685_v51 = vmul.f32 %v2469_v27, %v2469_v27 }
 0x15f   : > { %v833_v1 = vadd.f32 %v832_v38, %v831_v56  ;;  %v682_v56 = vmul.f32 %v2448_v6, %v2448_v6  ;;  %v846_v3 = vsel %vm245_vm0, %v681_v59, 0.0  ;;  %v3851_v59 = vld [vmem:[#allocation3_spill] sm:$0xff] }
 0x160   : > { %v2490_v47 = vsub.f32 %v3851_v59, %v2179_v18 }
 0x161   : > { %v835_v15 = vadd.f32 %v834_v63, %v833_v1  ;;  %v683_v1 = vmul.f32 %v2455_v14, %v2455_v14  ;;  %v848_v11 = vsel %vm245_vm0, %v682_v56, 0.0 }
 0x162   : > { %3852 = vst [vmem:[#allocation3_spill] sm:$0xff] %v2490_v47 }
 0x163   : > { %v837_v32 = vadd.f32 %v836_v5, %v835_v15  ;;  %v684_v15 = vmul.f32 %v2462_v20, %v2462_v20 }
 0x165   : > { %v839_v42 = vadd.f32 %v838_v24, %v837_v32  ;;  %v3849_v32 = vld [vmem:[#allocation2_spill] sm:$0xff] }
 0x166   : > { %v2483_v41 = vsub.f32 %v3849_v32, %v2179_v18  ;;  %v688_v32 = vmul.f32 %v2490_v47, %v2490_v47 }
 0x167   : > { %v841_v38 = vadd.f32 %v840_v13, %v839_v42  ;;  %v850_v13 = vsel %vm245_vm0, %v683_v1, 0.0  ;;  %v854_v1 = vsel %vm245_vm0, %v685_v51, 0.0 }
 0x168   : > { %3850 = vst [vmem:[#allocation2_spill] sm:$0xff] %v2483_v41 }
 0x169   : > { %v843_v63 = vadd.f32 %v842_v45, %v841_v38  ;;  %v686_v45 = vmul.f32 %v2476_v33, %v2476_v33  ;;  %v852_v38 = vsel %vm245_vm0, %v684_v15, 0.0 }
 0x16b   : > { %v845_v5 = vadd.f32 %v844_v0, %v843_v63  ;;  %v3853_v0 = vld [vmem:[#allocation4_spill] sm:$0xff]  ;;  %v856_v15 = vsel %vm245_vm0, %v686_v45, 0.0  ;;  %v860_v45 = vsel %vm245_vm0, %v688_v32, 0.0 }
 0x16c   : > { %v2497_v63 = vsub.f32 %v3853_v0, %v2179_v18 }
 0x16d   : > { %v847_v24 = vadd.f32 %v846_v3, %v845_v5  ;;  %v687_v3 = vmul.f32 %v2483_v41, %v2483_v41 }
 0x16e   : > { %3854 = vst [vmem:[#allocation4_spill] sm:$0xff] %v2497_v63  ;;  %v689_v0 = vmul.f32 %v2497_v63, %v2497_v63 }
 0x16f   : > { %v849_v42 = vadd.f32 %v848_v11, %v847_v24  ;;  %v3855_v11 = vld [vmem:[#allocation5_spill] sm:$0xff]  ;;  %v858_v51 = vsel %vm245_vm0, %v687_v3, 0.0 }
 0x170   : > { %v2504_v24 = vsub.f32 %v3855_v11, %v2179_v18  ;;  %v862_v3 = vsel %vm245_vm0, %v689_v0, 0.0 }
 0x171   : > { %v851_v56 = vadd.f32 %v850_v13, %v849_v42  ;;  %v3857_v42 = vld [vmem:[#allocation6_spill] sm:$0xff] }
 0x172   : > { %3856 = vst [vmem:[#allocation5_spill] sm:$0xff] %v2504_v24  ;;  %v2511_v59 = vsub.f32 %v3857_v42, %v2179_v18  ;;  %v690_v47 = vmul.f32 %v2504_v24, %v2504_v24 }
 0x173   : > { %v853_v5 = vadd.f32 %v852_v38, %v851_v56  ;;  %v3859_v56 = vld [vmem:[#allocation7_spill] sm:$0xff] }
 0x174   : > { %3858 = vst [vmem:[#allocation6_spill] sm:$0xff] %v2511_v59  ;;  %v2518_v11 = vsub.f32 %v3859_v56, %v2179_v18  ;;  %v691_v63 = vmul.f32 %v2511_v59, %v2511_v59  ;;  %v864_v32 = vsel %vm245_vm0, %v690_v47, 0.0 }
 0x175   : > { %v855_v13 = vadd.f32 %v854_v1, %v853_v5  ;;  %v3861_v5 = vld [vmem:[#allocation8_spill] sm:$0xff] }
 0x176   : > { %3860 = vst [vmem:[#allocation7_spill] sm:$0xff] %v2518_v11  ;;  %v2525_v42 = vsub.f32 %v3861_v5, %v2179_v18  ;;  %v692_v24 = vmul.f32 %v2518_v11, %v2518_v11  ;;  %v866_v0 = vsel %vm245_vm0, %v691_v63, 0.0 }
 0x177   : > { %v857_v38 = vadd.f32 %v856_v15, %v855_v13  ;;  %v3863_v13 = vld [vmem:[#allocation9_spill] sm:$0xff] }
 0x178   : > { %3862 = vst [vmem:[#allocation8_spill] sm:$0xff] %v2525_v42  ;;  %v2532_v56 = vsub.f32 %v3863_v13, %v2179_v18  ;;  %v693_v59 = vmul.f32 %v2525_v42, %v2525_v42  ;;  %v868_v47 = vsel %vm245_vm0, %v692_v24, 0.0 }
 0x179   : > { %v859_v1 = vadd.f32 %v858_v51, %v857_v38  ;;  %v3865_v38 = vld [vmem:[#allocation10_spill] sm:$0xff] }
 0x17a   : > { %3864 = vst [vmem:[#allocation9_spill] sm:$0xff] %v2532_v56  ;;  %v2539_v5 = vsub.f32 %v3865_v38, %v2179_v18  ;;  %v694_v11 = vmul.f32 %v2532_v56, %v2532_v56  ;;  %v870_v63 = vsel %vm245_vm0, %v693_v59, 0.0 }
 0x17b   : > { %v861_v15 = vadd.f32 %v860_v45, %v859_v1  ;;  %v3867_v1 = vld [vmem:[#allocation11_spill] sm:$0xff] }
 0x17c   : > { %3866 = vst [vmem:[#allocation10_spill] sm:$0xff] %v2539_v5  ;;  %v2546_v13 = vsub.f32 %v3867_v1, %v2179_v18  ;;  %v695_v42 = vmul.f32 %v2539_v5, %v2539_v5  ;;  %v872_v24 = vsel %vm245_vm0, %v694_v11, 0.0 }
 0x17d   : > { %v863_v51 = vadd.f32 %v862_v3, %v861_v15  ;;  %v3869_v15 = vld [vmem:[#allocation12_spill] sm:$0xff] }
 0x17e   : > { %3868 = vst [vmem:[#allocation11_spill] sm:$0xff] %v2546_v13  ;;  %v2553_v38 = vsub.f32 %v3869_v15, %v2179_v18  ;;  %v696_v56 = vmul.f32 %v2546_v13, %v2546_v13  ;;  %v874_v59 = vsel %vm245_vm0, %v695_v42, 0.0 }
 0x17f   : > { %v865_v45 = vadd.f32 %v864_v32, %v863_v51  ;;  %v3871_v51 = vld [vmem:[#allocation13_spill] sm:$0xff] }
 0x180   : > { %3870 = vst [vmem:[#allocation12_spill] sm:$0xff] %v2553_v38  ;;  %v2560_v1 = vsub.f32 %v3871_v51, %v2179_v18  ;;  %v697_v5 = vmul.f32 %v2553_v38, %v2553_v38  ;;  %v876_v11 = vsel %vm245_vm0, %v696_v56, 0.0 }
 0x181   : > { %v867_v3 = vadd.f32 %v866_v0, %v865_v45  ;;  %v3873_v45 = vld [vmem:[#allocation14_spill] sm:$0xff] }
 0x182   : > { %3872 = vst [vmem:[#allocation13_spill] sm:$0xff] %v2560_v1  ;;  %v2567_v15 = vsub.f32 %v3873_v45, %v2179_v18  ;;  %v698_v13 = vmul.f32 %v2560_v1, %v2560_v1  ;;  %v878_v42 = vsel %vm245_vm0, %v697_v5, 0.0 }
 0x183   : > { %v869_v32 = vadd.f32 %v868_v47, %v867_v3  ;;  %v3875_v3 = vld [vmem:[#allocation15_spill] sm:$0xff] }
 0x184   : > { %3874 = vst [vmem:[#allocation14_spill] sm:$0xff] %v2567_v15  ;;  %v2574_v51 = vsub.f32 %v3875_v3, %v2179_v18  ;;  %v699_v38 = vmul.f32 %v2567_v15, %v2567_v15  ;;  %v880_v56 = vsel %vm245_vm0, %v698_v13, 0.0 }
 0x185   : > { %v871_v0 = vadd.f32 %v870_v63, %v869_v32  ;;  %v3877_v32 = vld [vmem:[#allocation16_spill] sm:$0xff] }
 0x186   : > { %3876 = vst [vmem:[#allocation15_spill] sm:$0xff] %v2574_v51  ;;  %v2581_v45 = vsub.f32 %v3877_v32, %v2179_v18  ;;  %v700_v1 = vmul.f32 %v2574_v51, %v2574_v51  ;;  %v882_v5 = vsel %vm245_vm0, %v699_v38, 0.0 }
 0x187   : > { %v873_v47 = vadd.f32 %v872_v24, %v871_v0  ;;  %v3879_v0 = vld [vmem:[#allocation17_spill] sm:$0xff] }
 0x188   : > { %3878 = vst [vmem:[#allocation16_spill] sm:$0xff] %v2581_v45  ;;  %v2588_v3 = vsub.f32 %v3879_v0, %v2179_v18  ;;  %v701_v15 = vmul.f32 %v2581_v45, %v2581_v45  ;;  %v884_v13 = vsel %vm245_vm0, %v700_v1, 0.0 }
 0x189   : > { %v875_v63 = vadd.f32 %v874_v59, %v873_v47  ;;  %v3881_v47 = vld [vmem:[#allocation18_spill] sm:$0xff] }
 0x18a   : > { %3880 = vst [vmem:[#allocation17_spill] sm:$0xff] %v2588_v3  ;;  %v2595_v32 = vsub.f32 %v3881_v47, %v2179_v18  ;;  %v702_v51 = vmul.f32 %v2588_v3, %v2588_v3  ;;  %v886_v38 = vsel %vm245_vm0, %v701_v15, 0.0 }
 0x18b   : > { %v877_v24 = vadd.f32 %v876_v11, %v875_v63  ;;  %v3883_v63 = vld [vmem:[#allocation19_spill] sm:$0xff] }
 0x18c   : > { %3882 = vst [vmem:[#allocation18_spill] sm:$0xff] %v2595_v32  ;;  %v2602_v0 = vsub.f32 %v3883_v63, %v2179_v18  ;;  %v703_v45 = vmul.f32 %v2595_v32, %v2595_v32  ;;  %v888_v1 = vsel %vm245_vm0, %v702_v51, 0.0 }
 0x18d   : > { %v879_v59 = vadd.f32 %v878_v42, %v877_v24  ;;  %v3885_v24 = vld [vmem:[#allocation20_spill] sm:$0xff] }
 0x18e   : > { %3884 = vst [vmem:[#allocation19_spill] sm:$0xff] %v2602_v0  ;;  %v2609_v47 = vsub.f32 %v3885_v24, %v2179_v18  ;;  %v704_v3 = vmul.f32 %v2602_v0, %v2602_v0  ;;  %v890_v15 = vsel %vm245_vm0, %v703_v45, 0.0 }
 0x18f   : > { %v881_v11 = vadd.f32 %v880_v56, %v879_v59  ;;  %v3887_v59 = vld [vmem:[#allocation21_spill] sm:$0xff] }
 0x190   : > { %3886 = vst [vmem:[#allocation20_spill] sm:$0xff] %v2609_v47  ;;  %v2616_v63 = vsub.f32 %v3887_v59, %v2179_v18  ;;  %v705_v32 = vmul.f32 %v2609_v47, %v2609_v47  ;;  %v892_v51 = vsel %vm245_vm0, %v704_v3, 0.0 }
 0x191   : > { %v883_v42 = vadd.f32 %v882_v5, %v881_v11  ;;  %v3889_v11 = vld [vmem:[#allocation22_spill] sm:$0xff] }
 0x192   : > { %3888 = vst [vmem:[#allocation21_spill] sm:$0xff] %v2616_v63  ;;  %v2623_v24 = vsub.f32 %v3889_v11, %v2179_v18  ;;  %v706_v0 = vmul.f32 %v2616_v63, %v2616_v63  ;;  %v894_v45 = vsel %vm245_vm0, %v705_v32, 0.0 }
 0x193   : > { %v885_v56 = vadd.f32 %v884_v13, %v883_v42  ;;  %v3891_v42 = vld [vmem:[#allocation23_spill] sm:$0xff] }
 0x194   : > { %3890 = vst [vmem:[#allocation22_spill] sm:$0xff] %v2623_v24  ;;  %v2630_v59 = vsub.f32 %v3891_v42, %v2179_v18  ;;  %v707_v47 = vmul.f32 %v2623_v24, %v2623_v24  ;;  %v896_v3 = vsel %vm245_vm0, %v706_v0, 0.0 }
 0x195   : > { %v887_v5 = vadd.f32 %v886_v38, %v885_v56  ;;  %v3893_v56 = vld [vmem:[#allocation24_spill] sm:$0xff] }
 0x196   : > { %3892 = vst [vmem:[#allocation23_spill] sm:$0xff] %v2630_v59  ;;  %v2637_v11 = vsub.f32 %v3893_v56, %v2179_v18  ;;  %v708_v63 = vmul.f32 %v2630_v59, %v2630_v59  ;;  %v898_v32 = vsel %vm245_vm0, %v707_v47, 0.0 }
 0x197   : > { %v889_v13 = vadd.f32 %v888_v1, %v887_v5  ;;  %v3895_v5 = vld [vmem:[#allocation25_spill] sm:$0xff] }
 0x198   : > { %3894 = vst [vmem:[#allocation24_spill] sm:$0xff] %v2637_v11  ;;  %v2644_v42 = vsub.f32 %v3895_v5, %v2179_v18  ;;  %v709_v24 = vmul.f32 %v2637_v11, %v2637_v11  ;;  %v900_v0 = vsel %vm245_vm0, %v708_v63, 0.0 }
 0x199   : > { %v891_v38 = vadd.f32 %v890_v15, %v889_v13  ;;  %v3897_v13 = vld [vmem:[#allocation26_spill] sm:$0xff] }
 0x19a   : > { %3896 = vst [vmem:[#allocation25_spill] sm:$0xff] %v2644_v42  ;;  %v2651_v56 = vsub.f32 %v3897_v13, %v2179_v18  ;;  %v710_v59 = vmul.f32 %v2644_v42, %v2644_v42  ;;  %v902_v47 = vsel %vm245_vm0, %v709_v24, 0.0 }
 0x19b   : > { %v893_v1 = vadd.f32 %v892_v51, %v891_v38  ;;  %v3899_v38 = vld [vmem:[#allocation27_spill] sm:$0xff] }
 0x19c   : > { %3898 = vst [vmem:[#allocation26_spill] sm:$0xff] %v2651_v56  ;;  %v2658_v5 = vsub.f32 %v3899_v38, %v2179_v18  ;;  %v711_v11 = vmul.f32 %v2651_v56, %v2651_v56  ;;  %v904_v63 = vsel %vm245_vm0, %v710_v59, 0.0 }
 0x19d   : > { %v895_v15 = vadd.f32 %v894_v45, %v893_v1  ;;  %v3901_v1 = vld [vmem:[#allocation28_spill] sm:$0xff] }
 0x19e   : > { %3900 = vst [vmem:[#allocation27_spill] sm:$0xff] %v2658_v5  ;;  %v2665_v13 = vsub.f32 %v3901_v1, %v2179_v18  ;;  %v712_v42 = vmul.f32 %v2658_v5, %v2658_v5  ;;  %v906_v24 = vsel %vm245_vm0, %v711_v11, 0.0 }
 0x19f   : > { %v897_v51 = vadd.f32 %v896_v3, %v895_v15  ;;  %v3903_v15 = vld [vmem:[#allocation29_spill] sm:$0xff] }
 0x1a0   : > { %3902 = vst [vmem:[#allocation28_spill] sm:$0xff] %v2665_v13  ;;  %v2672_v38 = vsub.f32 %v3903_v15, %v2179_v18  ;;  %v713_v56 = vmul.f32 %v2665_v13, %v2665_v13  ;;  %v908_v59 = vsel %vm245_vm0, %v712_v42, 0.0 }
 0x1a1   : > { %v899_v45 = vadd.f32 %v898_v32, %v897_v51  ;;  %v3905_v51 = vld [vmem:[#allocation30_spill] sm:$0xff] }
 0x1a2   : > { %3904 = vst [vmem:[#allocation29_spill] sm:$0xff] %v2672_v38  ;;  %v2679_v1 = vsub.f32 %v3905_v51, %v2179_v18  ;;  %v714_v5 = vmul.f32 %v2672_v38, %v2672_v38  ;;  %v910_v11 = vsel %vm245_vm0, %v713_v56, 0.0 }
 0x1a3   : > { %v901_v3 = vadd.f32 %v900_v0, %v899_v45  ;;  %v3907_v45 = vld [vmem:[#allocation31_spill] sm:$0xff] }
 0x1a4   : > { %3906 = vst [vmem:[#allocation30_spill] sm:$0xff] %v2679_v1  ;;  %v2686_v15 = vsub.f32 %v3907_v45, %v2179_v18  ;;  %v715_v13 = vmul.f32 %v2679_v1, %v2679_v1  ;;  %v912_v42 = vsel %vm245_vm0, %v714_v5, 0.0 }
 0x1a5   : > { %v903_v32 = vadd.f32 %v902_v47, %v901_v3  ;;  %v3909_v3 = vld [vmem:[#allocation32_spill] sm:$0xff] }
 0x1a6   : > { %3908 = vst [vmem:[#allocation31_spill] sm:$0xff] %v2686_v15  ;;  %v2693_v51 = vsub.f32 %v3909_v3, %v2179_v18  ;;  %v716_v38 = vmul.f32 %v2686_v15, %v2686_v15  ;;  %v914_v56 = vsel %vm245_vm0, %v715_v13, 0.0 }
 0x1a7   : > { %v905_v0 = vadd.f32 %v904_v63, %v903_v32  ;;  %v3911_v32 = vld [vmem:[#allocation33_spill] sm:$0xff] }
 0x1a8   : > { %3910 = vst [vmem:[#allocation32_spill] sm:$0xff] %v2693_v51  ;;  %v2700_v45 = vsub.f32 %v3911_v32, %v2179_v18  ;;  %v717_v1 = vmul.f32 %v2693_v51, %v2693_v51  ;;  %v916_v5 = vsel %vm245_vm0, %v716_v38, 0.0 }
 0x1a9   : > { %v907_v47 = vadd.f32 %v906_v24, %v905_v0  ;;  %v3913_v0 = vld [vmem:[#allocation34_spill] sm:$0xff] }
 0x1aa   : > { %3912 = vst [vmem:[#allocation33_spill] sm:$0xff] %v2700_v45  ;;  %v2707_v3 = vsub.f32 %v3913_v0, %v2179_v18  ;;  %v718_v15 = vmul.f32 %v2700_v45, %v2700_v45  ;;  %v918_v13 = vsel %vm245_vm0, %v717_v1, 0.0 }
 0x1ab   : > { %v909_v63 = vadd.f32 %v908_v59, %v907_v47  ;;  %v3915_v47 = vld [vmem:[#allocation35_spill] sm:$0xff] }
 0x1ac   : > { %3914 = vst [vmem:[#allocation34_spill] sm:$0xff] %v2707_v3  ;;  %v2714_v32 = vsub.f32 %v3915_v47, %v2179_v18  ;;  %v719_v51 = vmul.f32 %v2707_v3, %v2707_v3  ;;  %v920_v38 = vsel %vm245_vm0, %v718_v15, 0.0 }
 0x1ad   : > { %v911_v24 = vadd.f32 %v910_v11, %v909_v63  ;;  %v3917_v63 = vld [vmem:[#allocation36_spill] sm:$0xff] }
 0x1ae   : > { %3916 = vst [vmem:[#allocation35_spill] sm:$0xff] %v2714_v32  ;;  %v2721_v0 = vsub.f32 %v3917_v63, %v2179_v18  ;;  %v720_v45 = vmul.f32 %v2714_v32, %v2714_v32  ;;  %v922_v1 = vsel %vm245_vm0, %v719_v51, 0.0 }
 0x1af   : > { %v913_v59 = vadd.f32 %v912_v42, %v911_v24  ;;  %v3919_v24 = vld [vmem:[#allocation37_spill] sm:$0xff] }
 0x1b0   : > { %3918 = vst [vmem:[#allocation36_spill] sm:$0xff] %v2721_v0  ;;  %v2728_v47 = vsub.f32 %v3919_v24, %v2179_v18  ;;  %v721_v3 = vmul.f32 %v2721_v0, %v2721_v0  ;;  %v924_v15 = vsel %vm245_vm0, %v720_v45, 0.0 }
 0x1b1   : > { %v915_v11 = vadd.f32 %v914_v56, %v913_v59  ;;  %v3921_v59 = vld [vmem:[#allocation38_spill] sm:$0xff] }
 0x1b2   : > { %3920 = vst [vmem:[#allocation37_spill] sm:$0xff] %v2728_v47  ;;  %v2735_v63 = vsub.f32 %v3921_v59, %v2179_v18  ;;  %v722_v32 = vmul.f32 %v2728_v47, %v2728_v47  ;;  %v926_v51 = vsel %vm245_vm0, %v721_v3, 0.0 }
 0x1b3   : > { %v917_v42 = vadd.f32 %v916_v5, %v915_v11  ;;  %v3923_v11 = vld [vmem:[#allocation39_spill] sm:$0xff] }
 0x1b4   : > { %3922 = vst [vmem:[#allocation38_spill] sm:$0xff] %v2735_v63  ;;  %v2742_v24 = vsub.f32 %v3923_v11, %v2179_v18  ;;  %v723_v0 = vmul.f32 %v2735_v63, %v2735_v63  ;;  %v928_v45 = vsel %vm245_vm0, %v722_v32, 0.0 }
 0x1b5   : > { %v919_v56 = vadd.f32 %v918_v13, %v917_v42  ;;  %v3925_v42 = vld [vmem:[#allocation40_spill] sm:$0xff] }
 0x1b6   : > { %3924 = vst [vmem:[#allocation39_spill] sm:$0xff] %v2742_v24  ;;  %v2749_v59 = vsub.f32 %v3925_v42, %v2179_v18  ;;  %v724_v47 = vmul.f32 %v2742_v24, %v2742_v24  ;;  %v930_v3 = vsel %vm245_vm0, %v723_v0, 0.0 }
 0x1b7   : > { %v921_v5 = vadd.f32 %v920_v38, %v919_v56  ;;  %v3927_v56 = vld [vmem:[#allocation41_spill] sm:$0xff] }
 0x1b8   : > { %3926 = vst [vmem:[#allocation40_spill] sm:$0xff] %v2749_v59  ;;  %v2756_v11 = vsub.f32 %v3927_v56, %v2179_v18  ;;  %v725_v63 = vmul.f32 %v2749_v59, %v2749_v59  ;;  %v932_v32 = vsel %vm245_vm0, %v724_v47, 0.0 }
 0x1b9   : > { %v923_v13 = vadd.f32 %v922_v1, %v921_v5  ;;  %v3929_v5 = vld [vmem:[#allocation42_spill] sm:$0xff] }
 0x1ba   : > { %3928 = vst [vmem:[#allocation41_spill] sm:$0xff] %v2756_v11  ;;  %v2763_v42 = vsub.f32 %v3929_v5, %v2179_v18  ;;  %v726_v24 = vmul.f32 %v2756_v11, %v2756_v11  ;;  %v934_v0 = vsel %vm245_vm0, %v725_v63, 0.0 }
 0x1bb   : > { %v925_v38 = vadd.f32 %v924_v15, %v923_v13  ;;  %v3931_v13 = vld [vmem:[#allocation43_spill] sm:$0xff] }
 0x1bc   : > { %3930 = vst [vmem:[#allocation42_spill] sm:$0xff] %v2763_v42  ;;  %v2770_v56 = vsub.f32 %v3931_v13, %v2179_v18  ;;  %v727_v59 = vmul.f32 %v2763_v42, %v2763_v42  ;;  %v936_v47 = vsel %vm245_vm0, %v726_v24, 0.0 }
 0x1bd   : > { %v927_v1 = vadd.f32 %v926_v51, %v925_v38  ;;  %v3933_v38 = vld [vmem:[#allocation44_spill] sm:$0xff] }
 0x1be   : > { %3932 = vst [vmem:[#allocation43_spill] sm:$0xff] %v2770_v56  ;;  %v2777_v5 = vsub.f32 %v3933_v38, %v2179_v18  ;;  %v728_v11 = vmul.f32 %v2770_v56, %v2770_v56  ;;  %v938_v63 = vsel %vm245_vm0, %v727_v59, 0.0 }
 0x1bf   : > { %v929_v15 = vadd.f32 %v928_v45, %v927_v1  ;;  %v3935_v1 = vld [vmem:[#allocation45_spill] sm:$0xff] }
 0x1c0   : > { %3934 = vst [vmem:[#allocation44_spill] sm:$0xff] %v2777_v5  ;;  %v2784_v13 = vsub.f32 %v3935_v1, %v2179_v18  ;;  %v729_v42 = vmul.f32 %v2777_v5, %v2777_v5  ;;  %v940_v24 = vsel %vm245_vm0, %v728_v11, 0.0 }
 0x1c1   : > { %v931_v51 = vadd.f32 %v930_v3, %v929_v15  ;;  %v3937_v15 = vld [vmem:[#allocation46_spill] sm:$0xff] }
 0x1c2   : > { %3936 = vst [vmem:[#allocation45_spill] sm:$0xff] %v2784_v13  ;;  %v2791_v38 = vsub.f32 %v3937_v15, %v2179_v18  ;;  %v730_v56 = vmul.f32 %v2784_v13, %v2784_v13  ;;  %v942_v59 = vsel %vm245_vm0, %v729_v42, 0.0 }
 0x1c3   : > { %v933_v45 = vadd.f32 %v932_v32, %v931_v51  ;;  %v3939_v51 = vld [vmem:[#allocation47_spill] sm:$0xff] }
 0x1c4   : > { %3938 = vst [vmem:[#allocation46_spill] sm:$0xff] %v2791_v38  ;;  %v2798_v1 = vsub.f32 %v3939_v51, %v2179_v18  ;;  %v731_v5 = vmul.f32 %v2791_v38, %v2791_v38  ;;  %v944_v11 = vsel %vm245_vm0, %v730_v56, 0.0 }
 0x1c5   : > { %v935_v3 = vadd.f32 %v934_v0, %v933_v45  ;;  %v3941_v45 = vld [vmem:[#allocation48_spill] sm:$0xff] }
 0x1c6   : > { %3940 = vst [vmem:[#allocation47_spill] sm:$0xff] %v2798_v1  ;;  %v2805_v15 = vsub.f32 %v3941_v45, %v2179_v18  ;;  %v732_v13 = vmul.f32 %v2798_v1, %v2798_v1  ;;  %v946_v42 = vsel %vm245_vm0, %v731_v5, 0.0 }
 0x1c7   : > { %v937_v32 = vadd.f32 %v936_v47, %v935_v3  ;;  %v3943_v3 = vld [vmem:[#allocation49_spill] sm:$0xff] }
 0x1c8   : > { %3942 = vst [vmem:[#allocation48_spill] sm:$0xff] %v2805_v15  ;;  %v2812_v51 = vsub.f32 %v3943_v3, %v2179_v18  ;;  %v733_v38 = vmul.f32 %v2805_v15, %v2805_v15  ;;  %v948_v56 = vsel %vm245_vm0, %v732_v13, 0.0 }
 0x1c9   : > { %v939_v0 = vadd.f32 %v938_v63, %v937_v32  ;;  %v3945_v32 = vld [vmem:[#allocation50_spill] sm:$0xff] }
 0x1ca   : > { %3944 = vst [vmem:[#allocation49_spill] sm:$0xff] %v2812_v51  ;;  %v2819_v45 = vsub.f32 %v3945_v32, %v2179_v18  ;;  %v734_v1 = vmul.f32 %v2812_v51, %v2812_v51  ;;  %v950_v5 = vsel %vm245_vm0, %v733_v38, 0.0 }
 0x1cb   : > { %v941_v47 = vadd.f32 %v940_v24, %v939_v0  ;;  %v3947_v0 = vld [vmem:[#allocation51_spill] sm:$0xff] }
 0x1cc   : > { %3946 = vst [vmem:[#allocation50_spill] sm:$0xff] %v2819_v45  ;;  %v2826_v3 = vsub.f32 %v3947_v0, %v2179_v18  ;;  %v735_v15 = vmul.f32 %v2819_v45, %v2819_v45  ;;  %v952_v13 = vsel %vm245_vm0, %v734_v1, 0.0 }
 0x1cd   : > { %v943_v63 = vadd.f32 %v942_v59, %v941_v47  ;;  %v3949_v47 = vld [vmem:[#allocation52_spill] sm:$0xff] }
 0x1ce   : > { %3948 = vst [vmem:[#allocation51_spill] sm:$0xff] %v2826_v3  ;;  %v2833_v32 = vsub.f32 %v3949_v47, %v2179_v18  ;;  %v736_v51 = vmul.f32 %v2826_v3, %v2826_v3  ;;  %v954_v38 = vsel %vm245_vm0, %v735_v15, 0.0 }
 0x1cf   : > { %v945_v24 = vadd.f32 %v944_v11, %v943_v63  ;;  %v3951_v63 = vld [vmem:[#allocation53_spill] sm:$0xff] }
 0x1d0   : > { %3950 = vst [vmem:[#allocation52_spill] sm:$0xff] %v2833_v32  ;;  %v2840_v0 = vsub.f32 %v3951_v63, %v2179_v18  ;;  %v737_v45 = vmul.f32 %v2833_v32, %v2833_v32  ;;  %v956_v1 = vsel %vm245_vm0, %v736_v51, 0.0 }
 0x1d1   : > { %v947_v59 = vadd.f32 %v946_v42, %v945_v24  ;;  %v3953_v24 = vld [vmem:[#allocation54_spill] sm:$0xff] }
 0x1d2   : > { %3952 = vst [vmem:[#allocation53_spill] sm:$0xff] %v2840_v0  ;;  %v2847_v47 = vsub.f32 %v3953_v24, %v2179_v18  ;;  %v738_v3 = vmul.f32 %v2840_v0, %v2840_v0  ;;  %v958_v15 = vsel %vm245_vm0, %v737_v45, 0.0 }
 0x1d3   : > { %v949_v11 = vadd.f32 %v948_v56, %v947_v59  ;;  %v3955_v59 = vld [vmem:[#allocation55_spill] sm:$0xff] }
 0x1d4   : > { %3954 = vst [vmem:[#allocation54_spill] sm:$0xff] %v2847_v47  ;;  %v2854_v63 = vsub.f32 %v3955_v59, %v2179_v18  ;;  %v739_v32 = vmul.f32 %v2847_v47, %v2847_v47  ;;  %v960_v51 = vsel %vm245_vm0, %v738_v3, 0.0 }
 0x1d5   : > { %v951_v42 = vadd.f32 %v950_v5, %v949_v11  ;;  %v3957_v11 = vld [vmem:[#allocation56_spill] sm:$0xff] }
 0x1d6   : > { %3956 = vst [vmem:[#allocation55_spill] sm:$0xff] %v2854_v63  ;;  %v2861_v24 = vsub.f32 %v3957_v11, %v2179_v18  ;;  %v740_v0 = vmul.f32 %v2854_v63, %v2854_v63  ;;  %v962_v45 = vsel %vm245_vm0, %v739_v32, 0.0 }
 0x1d7   : > { %v953_v56 = vadd.f32 %v952_v13, %v951_v42  ;;  %v3959_v42 = vld [vmem:[#allocation57_spill] sm:$0xff] }
 0x1d8   : > { %3958 = vst [vmem:[#allocation56_spill] sm:$0xff] %v2861_v24  ;;  %v2868_v59 = vsub.f32 %v3959_v42, %v2179_v18  ;;  %v741_v47 = vmul.f32 %v2861_v24, %v2861_v24  ;;  %v964_v3 = vsel %vm245_vm0, %v740_v0, 0.0 }
 0x1d9   : > { %v955_v5 = vadd.f32 %v954_v38, %v953_v56  ;;  %v3961_v56 = vld [vmem:[#allocation58_spill] sm:$0xff] }
 0x1da   : > { %3960 = vst [vmem:[#allocation57_spill] sm:$0xff] %v2868_v59  ;;  %v2875_v11 = vsub.f32 %v3961_v56, %v2179_v18  ;;  %v742_v63 = vmul.f32 %v2868_v59, %v2868_v59  ;;  %v966_v32 = vsel %vm245_vm0, %v741_v47, 0.0 }
 0x1db   : > { %v957_v13 = vadd.f32 %v956_v1, %v955_v5  ;;  %v3963_v5 = vld [vmem:[#allocation59_spill] sm:$0xff] }
 0x1dc   : > { %3962 = vst [vmem:[#allocation58_spill] sm:$0xff] %v2875_v11  ;;  %v2882_v42 = vsub.f32 %v3963_v5, %v2179_v18  ;;  %v743_v24 = vmul.f32 %v2875_v11, %v2875_v11  ;;  %v968_v0 = vsel %vm245_vm0, %v742_v63, 0.0 }
 0x1dd   : > { %v959_v38 = vadd.f32 %v958_v15, %v957_v13  ;;  %v3965_v13 = vld [vmem:[#allocation60_spill] sm:$0xff] }
 0x1de   : > { %3964 = vst [vmem:[#allocation59_spill] sm:$0xff] %v2882_v42  ;;  %v2889_v56 = vsub.f32 %v3965_v13, %v2179_v18  ;;  %v744_v59 = vmul.f32 %v2882_v42, %v2882_v42  ;;  %v970_v47 = vsel %vm245_vm0, %v743_v24, 0.0 }
 0x1df   : > { %v961_v1 = vadd.f32 %v960_v51, %v959_v38  ;;  %v3967_v38 = vld [vmem:[#allocation61_spill] sm:$0xff] }
 0x1e0   : > { %3966 = vst [vmem:[#allocation60_spill] sm:$0xff] %v2889_v56  ;;  %v2896_v5 = vsub.f32 %v3967_v38, %v2179_v18  ;;  %v745_v11 = vmul.f32 %v2889_v56, %v2889_v56  ;;  %v972_v63 = vsel %vm245_vm0, %v744_v59, 0.0 }
 0x1e1   : > { %v963_v15 = vadd.f32 %v962_v45, %v961_v1  ;;  %v3969_v1 = vld [vmem:[#allocation62_spill] sm:$0xff] }
 0x1e2   : > { %3968 = vst [vmem:[#allocation61_spill] sm:$0xff] %v2896_v5  ;;  %v2903_v13 = vsub.f32 %v3969_v1, %v2179_v18  ;;  %v746_v42 = vmul.f32 %v2896_v5, %v2896_v5  ;;  %v974_v24 = vsel %vm245_vm0, %v745_v11, 0.0 }
 0x1e3   : > { %v965_v51 = vadd.f32 %v964_v3, %v963_v15  ;;  %v3971_v15 = vld [vmem:[#allocation63_spill] sm:$0xff] }
 0x1e4   : > { %3970 = vst [vmem:[#allocation62_spill] sm:$0xff] %v2903_v13  ;;  %v2910_v38 = vsub.f32 %v3971_v15, %v2179_v18  ;;  %v747_v56 = vmul.f32 %v2903_v13, %v2903_v13  ;;  %v976_v59 = vsel %vm245_vm0, %v746_v42, 0.0 }
 0x1e5   : > { %v967_v45 = vadd.f32 %v966_v32, %v965_v51  ;;  %v3973_v51 = vld [vmem:[#allocation64_spill] sm:$0xff] }
 0x1e6   : > { %3972 = vst [vmem:[#allocation63_spill] sm:$0xff] %v2910_v38  ;;  %v2917_v1 = vsub.f32 %v3973_v51, %v2179_v18  ;;  %v748_v5 = vmul.f32 %v2910_v38, %v2910_v38  ;;  %v978_v11 = vsel %vm245_vm0, %v747_v56, 0.0 }
 0x1e7   : > { %v969_v3 = vadd.f32 %v968_v0, %v967_v45  ;;  %v3975_v45 = vld [vmem:[#allocation65_spill] sm:$0xff] }
 0x1e8   : > { %3974 = vst [vmem:[#allocation64_spill] sm:$0xff] %v2917_v1  ;;  %v2924_v15 = vsub.f32 %v3975_v45, %v2179_v18  ;;  %v749_v13 = vmul.f32 %v2917_v1, %v2917_v1  ;;  %v980_v42 = vsel %vm245_vm0, %v748_v5, 0.0 }
 0x1e9   : > { %v971_v32 = vadd.f32 %v970_v47, %v969_v3  ;;  %v3977_v3 = vld [vmem:[#allocation66_spill] sm:$0xff] }
 0x1ea   : > { %3976 = vst [vmem:[#allocation65_spill] sm:$0xff] %v2924_v15  ;;  %v2931_v51 = vsub.f32 %v3977_v3, %v2179_v18  ;;  %v750_v38 = vmul.f32 %v2924_v15, %v2924_v15  ;;  %v982_v56 = vsel %vm245_vm0, %v749_v13, 0.0 }
 0x1eb   : > { %v973_v0 = vadd.f32 %v972_v63, %v971_v32  ;;  %v3979_v32 = vld [vmem:[#allocation67_spill] sm:$0xff] }
 0x1ec   : > { %3978 = vst [vmem:[#allocation66_spill] sm:$0xff] %v2931_v51  ;;  %v2938_v45 = vsub.f32 %v3979_v32, %v2179_v18  ;;  %v751_v1 = vmul.f32 %v2931_v51, %v2931_v51  ;;  %v984_v5 = vsel %vm245_vm0, %v750_v38, 0.0 }
 0x1ed   : > { %v975_v47 = vadd.f32 %v974_v24, %v973_v0  ;;  %v3981_v0 = vld [vmem:[#allocation68_spill] sm:$0xff] }
 0x1ee   : > { %3980 = vst [vmem:[#allocation67_spill] sm:$0xff] %v2938_v45  ;;  %v2945_v3 = vsub.f32 %v3981_v0, %v2179_v18  ;;  %v752_v15 = vmul.f32 %v2938_v45, %v2938_v45  ;;  %v986_v13 = vsel %vm245_vm0, %v751_v1, 0.0 }
 0x1ef   : > { %v977_v63 = vadd.f32 %v976_v59, %v975_v47  ;;  %v3983_v47 = vld [vmem:[#allocation69_spill] sm:$0xff] }
 0x1f0   : > { %3982 = vst [vmem:[#allocation68_spill] sm:$0xff] %v2945_v3  ;;  %v2952_v32 = vsub.f32 %v3983_v47, %v2179_v18  ;;  %v753_v51 = vmul.f32 %v2945_v3, %v2945_v3  ;;  %v988_v38 = vsel %vm245_vm0, %v752_v15, 0.0 }
 0x1f1   : > { %v979_v24 = vadd.f32 %v978_v11, %v977_v63  ;;  %v3985_v63 = vld [vmem:[#allocation70_spill] sm:$0xff] }
 0x1f2   : > { %3984 = vst [vmem:[#allocation69_spill] sm:$0xff] %v2952_v32  ;;  %v2959_v0 = vsub.f32 %v3985_v63, %v2179_v18  ;;  %v754_v45 = vmul.f32 %v2952_v32, %v2952_v32  ;;  %v990_v1 = vsel %vm245_vm0, %v753_v51, 0.0 }
 0x1f3   : > { %v981_v59 = vadd.f32 %v980_v42, %v979_v24  ;;  %v3987_v24 = vld [vmem:[#allocation71_spill] sm:$0xff] }
 0x1f4   : > { %3986 = vst [vmem:[#allocation70_spill] sm:$0xff] %v2959_v0  ;;  %v2966_v47 = vsub.f32 %v3987_v24, %v2179_v18  ;;  %v755_v3 = vmul.f32 %v2959_v0, %v2959_v0  ;;  %v992_v15 = vsel %vm245_vm0, %v754_v45, 0.0 }
 0x1f5   : > { %v983_v11 = vadd.f32 %v982_v56, %v981_v59  ;;  %v3989_v59 = vld [vmem:[#allocation72_spill] sm:$0xff] }
 0x1f6   : > { %3988 = vst [vmem:[#allocation71_spill] sm:$0xff] %v2966_v47  ;;  %v2973_v63 = vsub.f32 %v3989_v59, %v2179_v18  ;;  %v756_v32 = vmul.f32 %v2966_v47, %v2966_v47  ;;  %v994_v51 = vsel %vm245_vm0, %v755_v3, 0.0 }
 0x1f7   : > { %v985_v42 = vadd.f32 %v984_v5, %v983_v11  ;;  %v3991_v11 = vld [vmem:[#allocation73_spill] sm:$0xff] }
 0x1f8   : > { %3990 = vst [vmem:[#allocation72_spill] sm:$0xff] %v2973_v63  ;;  %v2980_v24 = vsub.f32 %v3991_v11, %v2179_v18  ;;  %v757_v0 = vmul.f32 %v2973_v63, %v2973_v63  ;;  %v996_v45 = vsel %vm245_vm0, %v756_v32, 0.0 }
 0x1f9   : > { %v987_v56 = vadd.f32 %v986_v13, %v985_v42  ;;  %v3993_v42 = vld [vmem:[#allocation74_spill] sm:$0xff] }
 0x1fa   : > { %3992 = vst [vmem:[#allocation73_spill] sm:$0xff] %v2980_v24  ;;  %v2987_v59 = vsub.f32 %v3993_v42, %v2179_v18  ;;  %v758_v47 = vmul.f32 %v2980_v24, %v2980_v24  ;;  %v998_v3 = vsel %vm245_vm0, %v757_v0, 0.0 }
 0x1fb   : > { %v989_v5 = vadd.f32 %v988_v38, %v987_v56  ;;  %v3995_v56 = vld [vmem:[#allocation75_spill] sm:$0xff] }
 0x1fc   : > { %3994 = vst [vmem:[#allocation74_spill] sm:$0xff] %v2987_v59  ;;  %v2994_v11 = vsub.f32 %v3995_v56, %v2179_v18  ;;  %v759_v63 = vmul.f32 %v2987_v59, %v2987_v59  ;;  %v1000_v32 = vsel %vm245_vm0, %v758_v47, 0.0 }
 0x1fd   : > { %v991_v13 = vadd.f32 %v990_v1, %v989_v5  ;;  %v3997_v5 = vld [vmem:[#allocation76_spill] sm:$0xff] }
 0x1fe   : > { %3996 = vst [vmem:[#allocation75_spill] sm:$0xff] %v2994_v11  ;;  %v3001_v42 = vsub.f32 %v3997_v5, %v2179_v18  ;;  %v760_v24 = vmul.f32 %v2994_v11, %v2994_v11  ;;  %v1002_v0 = vsel %vm245_vm0, %v759_v63, 0.0 }
 0x1ff   : > { %v993_v38 = vadd.f32 %v992_v15, %v991_v13  ;;  %v3999_v13 = vld [vmem:[#allocation77_spill] sm:$0xff] }
 0x200   : > { %3998 = vst [vmem:[#allocation76_spill] sm:$0xff] %v3001_v42  ;;  %v3008_v56 = vsub.f32 %v3999_v13, %v2179_v18  ;;  %v761_v59 = vmul.f32 %v3001_v42, %v3001_v42  ;;  %v1004_v47 = vsel %vm245_vm0, %v760_v24, 0.0 }
 0x201   : > { %v995_v1 = vadd.f32 %v994_v51, %v993_v38  ;;  %v4001_v38 = vld [vmem:[#allocation78_spill] sm:$0xff] }
 0x202   : > { %4000 = vst [vmem:[#allocation77_spill] sm:$0xff] %v3008_v56  ;;  %v3015_v5 = vsub.f32 %v4001_v38, %v2179_v18  ;;  %v762_v11 = vmul.f32 %v3008_v56, %v3008_v56  ;;  %v1006_v63 = vsel %vm245_vm0, %v761_v59, 0.0 }
 0x203   : > { %v997_v15 = vadd.f32 %v996_v45, %v995_v1  ;;  %v4003_v1 = vld [vmem:[#allocation79_spill] sm:$0xff] }
 0x204   : > { %4002 = vst [vmem:[#allocation78_spill] sm:$0xff] %v3015_v5  ;;  %v3022_v13 = vsub.f32 %v4003_v1, %v2179_v18  ;;  %v763_v42 = vmul.f32 %v3015_v5, %v3015_v5  ;;  %v1511_v5 = vld [vmem:[%s1549_s11 + $0x3e8] sm:$0xff] }
 0x205   : > { %v999_v51 = vadd.f32 %v998_v3, %v997_v15  ;;  %v4005_v15 = vld [vmem:[#allocation80_spill] sm:$0xff] }
 0x206   : > { %4004 = vst [vmem:[#allocation79_spill] sm:$0xff] %v3022_v13  ;;  %v3029_v38 = vsub.f32 %v4005_v15, %v2179_v18  ;;  %v764_v24 = vmul.f32 %v3022_v13, %v3022_v13  ;;  %v1510_v15 = vld [vmem:[%s1549_s11 + $0x3e0] sm:$0xff] }
 0x207   : > { %v1001_v45 = vadd.f32 %v1000_v32, %v999_v51  ;;  %v1509_v51 = vld [vmem:[%s1549_s11 + $0x3d8] sm:$0xff]  ;;  %v3043_v56 = vsub.f32 %v1510_v15, %v2179_v18 }
 0x208   : > { %4006 = vst [vmem:[#allocation80_spill] sm:$0xff] %v3029_v38  ;;  %v3036_v1 = vsub.f32 %v1509_v51, %v2179_v18  ;;  %v765_v59 = vmul.f32 %v3029_v38, %v3029_v38  ;;  %v3050_v51 = vsub.f32 %v1511_v5, %v2179_v18 }
 0x209   : > { %v1003_v3 = vadd.f32 %v1002_v0, %v1001_v45  ;;  %v1008_v0 = vsel %vm245_vm0, %v762_v11, 0.0  ;;  %4008 = vst [vmem:[#allocation84_spill] sm:$0xff] %v3043_v56  ;;  %v1012_v11 = vsel %vm245_vm0, %v764_v24, 0.0  ;;  %v767_v38 = vmul.f32 %v3043_v56, %v3043_v56 }
 0x20a   : > { %4007 = vst [vmem:[#allocation83_spill] sm:$0xff] %v3036_v1  ;;  %v766_v13 = vmul.f32 %v3036_v1, %v3036_v1  ;;  %v768_v1 = vmul.f32 %v3050_v51, %v3050_v51 }
 0x20b   : > { %v1005_v32 = vadd.f32 %v1004_v47, %v1003_v3  ;;  %v1010_v47 = vsel %vm245_vm0, %v763_v42, 0.0  ;;  %4009 = vst [vmem:[#allocation85_spill] sm:$0xff] %v3050_v51  ;;  %v1014_v42 = vsel %vm245_vm0, %v765_v59, 0.0 }
 0x20c   : > { %v1016_v24 = vsel %vm245_vm0, %v766_v13, 0.0 }
 0x20d   : > { %v1007_v45 = vadd.f32 %v1006_v63, %v1005_v32  ;;  %v1512_v32 = vld [vmem:[%s1549_s11 + $0x3f0] sm:$0xff] }
 0x20e   : > { %v3057_v15 = vsub.f32 %v1512_v32, %v2179_v18  ;;  %v1018_v32 = vsel %vm245_vm0, %v767_v38, 0.0 }
 0x20f   : > { %v1009_v3 = vadd.f32 %v1008_v0, %v1007_v45  ;;  %v1513_v45 = vld [vmem:[%s1549_s11 + $0x3f8] sm:$0xff] }
 0x210   : > { %4010 = vst [vmem:[#allocation86_spill] sm:$0xff] %v3057_v15  ;;  %v3064_v5 = vsub.f32 %v1513_v45, %v2179_v18 }
 0x211   : > { %v1011_v63 = vadd.f32 %v1010_v47, %v1009_v3  ;;  %v769_v3 = vmul.f32 %v3057_v15, %v3057_v15 }
 0x212   : > { %v770_v59 = vmul.f32 %v3064_v5, %v3064_v5 }
 0x213   : > { %v1013_v0 = vadd.f32 %v1012_v11, %v1011_v63  ;;  %v1020_v11 = vsel %vm245_vm0, %v768_v1, 0.0  ;;  %v1022_v18 = vsel %vm245_vm0, %v769_v3, 0.0 }
 0x214   : > { %v1024_v51 = vsel %vm245_vm0, %v770_v59, 0.0 }
 0x215   : > { %v1015_v47 = vadd.f32 %v1014_v42, %v1013_v0 }
 0x217   : > { %v1017_v41 = vadd.f32 %v1016_v24, %v1015_v47 }
 0x219   : > { %v1019_v63 = vadd.f32 %v1018_v32, %v1017_v41 }
 0x21b   : > { %v1021_v45 = vadd.f32 %v1020_v11, %v1019_v63 }
 0x21d   : > { %v1023_v56 = vadd.f32 %v1022_v18, %v1021_v45 }
 0x21f   : > { %v1025_v13 = vadd.f32 %v1024_v51, %v1023_v56 }
 0x221   : > { %v1026_v42 = vrot.slane %v1025_v13, 4 }
 0x223   : > { %v1027_v0 = vadd.f32 %v1026_v42, %v1025_v13 }
 0x225   : > { %v1028_v33 = vrot.slane %v1027_v0, 2 }
 0x227   : > { %v1029_v15 = vadd.f32 %v1028_v33, %v1027_v0 }
 0x229   : > { %v1030_v27 = vrot.slane %v1029_v15, 1 }
 0x22b   : > { %v1031_v38 = vadd.f32 %v1030_v27, %v1029_v15 }
 0x22d   : > { %v1032_v24 = vmul.f32 %v1031_v38, %v2176_v50 }
 0x22f   : > { %v1033_v47 = vadd.f32 1e-05, %v1032_v24 }
 0x231   : > { %1507 = vrsqrt.f32 %v1033_v47  ;;  %vm1040_vm2 = vweird.f32 %v1033_v47 }
 0x237   : > { %v1508_v1 = vpop.eup %1507 }
 0x238   : > { %v1035_v41 = vmul.f32 %v1508_v1, %v1033_v47  ;;  %vm1041_vm3 = vweird.f32 %v1508_v1 }
 0x239   : > { %vm1042_vm4 = vmor %vm1040_vm2, %vm1041_vm3 }
 0x23a   : > { %v1036_v32 = vmul.f32 %v1508_v1, %v1035_v41 }
 0x23c   : > { %v1037_v3 = vmul.f32 0.5, %v1036_v32 }
 0x23e   : > { %v1038_v59 = vsub.f32 1.5, %v1037_v3 }
 0x240   : > { %v1039_v56 = vmul.f32 %v1508_v1, %v1038_v59 }
 0x242   : > { %v3078_v51 = vsel %vm1042_vm4, %v1508_v1, %v1039_v56 }
 0x243   : > { %v1044_v33 = vmul.f32 %v3078_v51, %v2183_v29  ;;  %v1045_v50 = vmul.f32 %v3078_v51, %v2187_v9  ;;  %v1046_v27 = vmul.f32 %v3078_v51, %v2191_v60  ;;  %v1047_v15 = vmul.f32 %v3078_v51, %v2195_v23 }
 0x244   : > { %v1048_v29 = vmul.f32 %v3078_v51, %v2199_v54  ;;  %v1049_v9 = vmul.f32 %v3078_v51, %v2209_v2  ;;  %v1050_v23 = vmul.f32 %v3078_v51, %v2215_v7  ;;  %v1051_v45 = vmul.f32 %v3078_v51, %v2224_v10 }
 0x245   : > { %v1172_v60 = vmax.f32 %v1044_v33, 0.0  ;;  %v1173_v11 = vmax.f32 %v1045_v50, 0.0  ;;  %v1174_v63 = vmax.f32 %v1046_v27, 0.0  ;;  %v1175_v18 = vmax.f32 %v1047_v15, 0.0 }
 0x246   : > { %v1176_v13 = vmax.f32 %v1048_v29, 0.0  ;;  %v1052_v54 = vmul.f32 %v3078_v51, %v2231_v36  ;;  %v1177_v2 = vmax.f32 %v1049_v9, 0.0  ;;  %v1053_v42 = vmul.f32 %v3078_v51, %v2238_v16 }
 0x247   : > { %1300 = vst.msk [vmem:[%s3093_s14] sm:$0xff] %vm245_vm0, %v1172_v60  ;;  %v1178_v7 = vmax.f32 %v1050_v23, 0.0  ;;  %v1054_v10 = vmul.f32 %v3078_v51, %v2245_v19  ;;  %v1179_v0 = vmax.f32 %v1051_v45, 0.0  ;;  %v1055_v36 = vmul.f32 %v3078_v51, %v2252_v22 }
 0x248   : > { %1301 = vst.msk [vmem:[%s3093_s14 + $0x8] sm:$0xff] %vm245_vm0, %v1173_v11  ;;  %v1180_v38 = vmax.f32 %v1052_v54, 0.0  ;;  %v1056_v16 = vmul.f32 %v3078_v51, %v2259_v25  ;;  %v1181_v24 = vmax.f32 %v1053_v42, 0.0  ;;  %v1057_v19 = vmul.f32 %v3078_v51, %v2266_v28 }
 0x249   : > { %1302 = vst.msk [vmem:[%s3093_s14 + $0x10] sm:$0xff] %vm245_vm0, %v1174_v63  ;;  %v1182_v47 = vmax.f32 %v1054_v10, 0.0  ;;  %v1058_v22 = vmul.f32 %v3078_v51, %v2273_v31  ;;  %v1183_v1 = vmax.f32 %v1055_v36, 0.0  ;;  %v1059_v25 = vmul.f32 %v3078_v51, %v2280_v34 }
 0x24a   : > { %1303 = vst.msk [vmem:[%s3093_s14 + $0x18] sm:$0xff] %vm245_vm0, %v1175_v18  ;;  %v1184_v41 = vmax.f32 %v1056_v16, 0.0  ;;  %v1060_v28 = vmul.f32 %v3078_v51, %v2287_v37  ;;  %v1185_v32 = vmax.f32 %v1057_v19, 0.0  ;;  %v1061_v31 = vmul.f32 %v3078_v51, %v2294_v40 }
 0x24b   : > { %1304 = vst.msk [vmem:[%s3093_s14 + $0x20] sm:$0xff] %vm245_vm0, %v1176_v13  ;;  %v1186_v3 = vmax.f32 %v1058_v22, 0.0  ;;  %v1062_v34 = vmul.f32 %v3078_v51, %v2301_v43  ;;  %v1187_v59 = vmax.f32 %v1059_v25, 0.0  ;;  %v1063_v37 = vmul.f32 %v3078_v51, %v2308_v46 }
 0x24c   : > { %1305 = vst.msk [vmem:[%s3093_s14 + $0x28] sm:$0xff] %vm245_vm0, %v1177_v2  ;;  %v1188_v56 = vmax.f32 %v1060_v28, 0.0  ;;  %v1064_v40 = vmul.f32 %v3078_v51, %v2315_v49  ;;  %v1189_v33 = vmax.f32 %v1061_v31, 0.0  ;;  %v1065_v43 = vmul.f32 %v3078_v51, %v2322_v52  ;;  %v4015_v31 = vld [vmem:[#allocation4_spill] sm:$0xff] }
 0x24d   : > { %1306 = vst.msk [vmem:[%s3093_s14 + $0x30] sm:$0xff] %vm245_vm0, %v1178_v7  ;;  %v1190_v50 = vmax.f32 %v1062_v34, 0.0  ;;  %v1066_v46 = vmul.f32 %v3078_v51, %v2329_v55  ;;  %v1191_v27 = vmax.f32 %v1063_v37, 0.0  ;;  %v1067_v49 = vmul.f32 %v3078_v51, %v2336_v58 }
 0x24e   : > { %1307 = vst.msk [vmem:[%s3093_s14 + $0x38] sm:$0xff] %vm245_vm0, %v1179_v0  ;;  %v1192_v15 = vmax.f32 %v1064_v40, 0.0  ;;  %v1068_v52 = vmul.f32 %v3078_v51, %v2343_v61  ;;  %v1193_v29 = vmax.f32 %v1065_v43, 0.0  ;;  %v1069_v55 = vmul.f32 %v3078_v51, %v2350_v4  ;;  %v4017_v40 = vld [vmem:[#allocation6_spill] sm:$0xff] }
 0x24f   : > { %1308 = vst.msk [vmem:[%s3093_s14 + $0x40] sm:$0xff] %vm245_vm0, %v1180_v38  ;;  %v1194_v9 = vmax.f32 %v1066_v46, 0.0  ;;  %v1070_v58 = vmul.f32 %v3078_v51, %v2357_v8  ;;  %v1195_v60 = vmax.f32 %v1067_v49, 0.0  ;;  %v1071_v61 = vmul.f32 %v3078_v51, %v2364_v12  ;;  %v4019_v49 = vld [vmem:[#allocation8_spill] sm:$0xff] }
 0x250   : > { %1309 = vst.msk [vmem:[%s3093_s14 + $0x48] sm:$0xff] %vm245_vm0, %v1181_v24  ;;  %v1196_v11 = vmax.f32 %v1068_v52, 0.0  ;;  %v1072_v4 = vmul.f32 %v3078_v51, %v2371_v17  ;;  %v1197_v63 = vmax.f32 %v1069_v55, 0.0  ;;  %v1073_v8 = vmul.f32 %v3078_v51, %v2378_v21  ;;  %v4011_v24 = vld [vmem:[#allocation81_spill] sm:$0xff] }
 0x251   : > { %1310 = vst.msk [vmem:[%s3093_s14 + $0x50] sm:$0xff] %vm245_vm0, %v1182_v47  ;;  %v1198_v23 = vmax.f32 %v1070_v58, 0.0  ;;  %v1074_v12 = vmul.f32 %v3078_v51, %v2385_v26  ;;  %v1199_v18 = vmax.f32 %v1071_v61, 0.0  ;;  %v1075_v17 = vmul.f32 %v3078_v51, %v2392_v30  ;;  %v4012_v47 = vld [vmem:[#allocation82_spill] sm:$0xff] }
 0x252   : > { %1311 = vst.msk [vmem:[%s3093_s14 + $0x58] sm:$0xff] %vm245_vm0, %v1183_v1  ;;  %v1200_v45 = vmax.f32 %v1072_v4, 0.0  ;;  %v1076_v21 = vmul.f32 %v3078_v51, %v2399_v35  ;;  %v1201_v13 = vmax.f32 %v1073_v8, 0.0  ;;  %v1077_v26 = vmul.f32 %v3078_v51, %v2406_v39  ;;  %v4013_v1 = vld [vmem:[#allocation2_spill] sm:$0xff]  ;;  %v4023_v8 = vld [vmem:[#allocation12_spill] sm:$0xff] }
 0x253   : > { %1312 = vst.msk [vmem:[%s3093_s14 + $0x60] sm:$0xff] %vm245_vm0, %v1184_v41  ;;  %v1202_v54 = vmax.f32 %v1074_v12, 0.0  ;;  %v1078_v30 = vmul.f32 %v3078_v51, %v2413_v44  ;;  %v1203_v2 = vmax.f32 %v1075_v17, 0.0  ;;  %v1079_v35 = vmul.f32 %v3078_v51, %v2420_v48  ;;  %v4014_v41 = vld [vmem:[#allocation3_spill] sm:$0xff]  ;;  %v4021_v58 = vld [vmem:[#allocation10_spill] sm:$0xff] }
 0x254   : > { %1313 = vst.msk [vmem:[%s3093_s14 + $0x68] sm:$0xff] %vm245_vm0, %v1185_v32  ;;  %v1204_v42 = vmax.f32 %v1076_v21, 0.0  ;;  %v1080_v39 = vmul.f32 %v3078_v51, %v2427_v53  ;;  %v1205_v7 = vmax.f32 %v1077_v26, 0.0  ;;  %v1081_v44 = vmul.f32 %v3078_v51, %v2434_v57  ;;  %v4025_v21 = vld [vmem:[#allocation14_spill] sm:$0xff] }
 0x255   : > { %1314 = vst.msk [vmem:[%s3093_s14 + $0x70] sm:$0xff] %vm245_vm0, %v1186_v3  ;;  %v1206_v10 = vmax.f32 %v1078_v30, 0.0  ;;  %v1082_v48 = vmul.f32 %v3078_v51, %v2441_v62  ;;  %v1207_v0 = vmax.f32 %v1079_v35, 0.0  ;;  %v1083_v53 = vmul.f32 %v3078_v51, %v2448_v6  ;;  %v4027_v35 = vld [vmem:[#allocation16_spill] sm:$0xff] }
 0x256   : > { %1315 = vst.msk [vmem:[%s3093_s14 + $0x78] sm:$0xff] %vm245_vm0, %v1187_v59  ;;  %v1208_v36 = vmax.f32 %v1080_v39, 0.0  ;;  %v1084_v57 = vmul.f32 %v3078_v51, %v2455_v14  ;;  %v1209_v38 = vmax.f32 %v1081_v44, 0.0  ;;  %v1085_v62 = vmul.f32 %v3078_v51, %v2462_v20  ;;  %v4016_v59 = vld [vmem:[#allocation5_spill] sm:$0xff] }
 0x257   : > { %1316 = vst.msk [vmem:[%s3093_s14 + $0x80] sm:$0xff] %vm245_vm0, %v1188_v56  ;;  %v1210_v16 = vmax.f32 %v1082_v48, 0.0  ;;  %v1086_v6 = vmul.f32 %v3078_v51, %v4011_v24  ;;  %v1211_v19 = vmax.f32 %v1083_v53, 0.0  ;;  %v1087_v14 = vmul.f32 %v3078_v51, %v4012_v47  ;;  %v4029_v48 = vld [vmem:[#allocation18_spill] sm:$0xff] }
 0x258   : > { %1317 = vst.msk [vmem:[%s3093_s14 + $0x88] sm:$0xff] %vm245_vm0, %v1189_v33  ;;  %v1212_v22 = vmax.f32 %v1084_v57, 0.0  ;;  %v1088_v20 = vmul.f32 %v3078_v51, %v4013_v1  ;;  %v1213_v25 = vmax.f32 %v1085_v62, 0.0  ;;  %v1089_v28 = vmul.f32 %v3078_v51, %v4014_v41  ;;  %v4031_v62 = vld [vmem:[#allocation20_spill] sm:$0xff] }
 0x259   : > { %1318 = vst.msk [vmem:[%s3093_s14 + $0x90] sm:$0xff] %vm245_vm0, %v1190_v50  ;;  %v1214_v32 = vmax.f32 %v1086_v6, 0.0  ;;  %v1090_v3 = vmul.f32 %v3078_v51, %v4015_v31  ;;  %v1215_v34 = vmax.f32 %v1087_v14, 0.0  ;;  %v1091_v37 = vmul.f32 %v3078_v51, %v4016_v59  ;;  %v4018_v50 = vld [vmem:[#allocation7_spill] sm:$0xff]  ;;  %v4032_v6 = vld [vmem:[#allocation21_spill] sm:$0xff]  ;;  %v4033_v14 = vld [vmem:[#allocation22_spill] sm:$0xff] }
 0x25a   : > { %1319 = vst.msk [vmem:[%s3093_s14 + $0x98] sm:$0xff] %vm245_vm0, %v1191_v27  ;;  %v1216_v56 = vmax.f32 %v1088_v20, 0.0  ;;  %v1092_v33 = vmul.f32 %v3078_v51, %v4017_v40  ;;  %v1217_v43 = vmax.f32 %v1089_v28, 0.0  ;;  %v1093_v46 = vmul.f32 %v3078_v51, %v4018_v50  ;;  %v4034_v20 = vld [vmem:[#allocation23_spill] sm:$0xff]  ;;  %v4035_v28 = vld [vmem:[#allocation24_spill] sm:$0xff] }
 0x25b   : > { %1320 = vst.msk [vmem:[%s3093_s14 + $0xa0] sm:$0xff] %vm245_vm0, %v1192_v15  ;;  %v1218_v27 = vmax.f32 %v1090_v3, 0.0  ;;  %v1094_v15 = vmul.f32 %v3078_v51, %v4019_v49  ;;  %v1219_v52 = vmax.f32 %v1091_v37, 0.0  ;;  %v4036_v3 = vld [vmem:[#allocation25_spill] sm:$0xff]  ;;  %v4037_v37 = vld [vmem:[#allocation26_spill] sm:$0xff] }
 0x25c   : > { %1321 = vst.msk [vmem:[%s3093_s14 + $0xa8] sm:$0xff] %vm245_vm0, %v1193_v29  ;;  %v4020_v29 = vld [vmem:[#allocation9_spill] sm:$0xff]  ;;  %v1221_v61 = vmax.f32 %v1093_v46, 0.0  ;;  %v4039_v46 = vld [vmem:[#allocation28_spill] sm:$0xff] }
 0x25d   : > { %1322 = vst.msk [vmem:[%s3093_s14 + $0xb0] sm:$0xff] %vm245_vm0, %v1194_v9  ;;  %v1095_v55 = vmul.f32 %v3078_v51, %v4020_v29  ;;  %v1220_v9 = vmax.f32 %v1092_v33, 0.0  ;;  %v4038_v33 = vld [vmem:[#allocation27_spill] sm:$0xff] }
 0x25e   : > { %1323 = vst.msk [vmem:[%s3093_s14 + $0xb8] sm:$0xff] %vm245_vm0, %v1195_v60  ;;  %v1096_v60 = vmul.f32 %v3078_v51, %v4021_v58 }
 0x25f   : > { %1324 = vst.msk [vmem:[%s3093_s14 + $0xc0] sm:$0xff] %vm245_vm0, %v1196_v11  ;;  %v4022_v11 = vld [vmem:[#allocation11_spill] sm:$0xff]  ;;  %v1223_v12 = vmax.f32 %v1095_v55, 0.0  ;;  %v4041_v55 = vld [vmem:[#allocation30_spill] sm:$0xff] }
 0x260   : > { %1325 = vst.msk [vmem:[%s3093_s14 + $0xc8] sm:$0xff] %vm245_vm0, %v1197_v63  ;;  %v1097_v4 = vmul.f32 %v3078_v51, %v4022_v11  ;;  %v1222_v63 = vmax.f32 %v1094_v15, 0.0  ;;  %v4040_v15 = vld [vmem:[#allocation29_spill] sm:$0xff] }
 0x261   : > { %1326 = vst.msk [vmem:[%s3093_s14 + $0xd0] sm:$0xff] %vm245_vm0, %v1198_v23  ;;  %v1098_v23 = vmul.f32 %v3078_v51, %v4023_v8 }
 0x262   : > { %1327 = vst.msk [vmem:[%s3093_s14 + $0xd8] sm:$0xff] %vm245_vm0, %v1199_v18  ;;  %v4024_v18 = vld [vmem:[#allocation13_spill] sm:$0xff]  ;;  %v1225_v26 = vmax.f32 %v1097_v4, 0.0  ;;  %v4043_v4 = vld [vmem:[#allocation32_spill] sm:$0xff] }
 0x263   : > { %1328 = vst.msk [vmem:[%s3093_s14 + $0xe0] sm:$0xff] %vm245_vm0, %v1200_v45  ;;  %v1099_v17 = vmul.f32 %v3078_v51, %v4024_v18  ;;  %v1224_v45 = vmax.f32 %v1096_v60, 0.0  ;;  %v4042_v60 = vld [vmem:[#allocation31_spill] sm:$0xff] }
 0x264   : > { %1329 = vst.msk [vmem:[%s3093_s14 + $0xe8] sm:$0xff] %vm245_vm0, %v1201_v13  ;;  %v1100_v13 = vmul.f32 %v3078_v51, %v4025_v21 }
 0x265   : > { %1330 = vst.msk [vmem:[%s3093_s14 + $0xf0] sm:$0xff] %vm245_vm0, %v1202_v54  ;;  %v4026_v54 = vld [vmem:[#allocation15_spill] sm:$0xff]  ;;  %v1227_v39 = vmax.f32 %v1099_v17, 0.0  ;;  %v4045_v17 = vld [vmem:[#allocation34_spill] sm:$0xff] }
 0x266   : > { %1331 = vst.msk [vmem:[%s3093_s14 + $0xf8] sm:$0xff] %vm245_vm0, %v1203_v2  ;;  %v1101_v30 = vmul.f32 %v3078_v51, %v4026_v54  ;;  %v1226_v2 = vmax.f32 %v1098_v23, 0.0  ;;  %v4044_v23 = vld [vmem:[#allocation33_spill] sm:$0xff] }
 0x267   : > { %1332 = vst.msk [vmem:[%s3093_s14 + $0x100] sm:$0xff] %vm245_vm0, %v1204_v42  ;;  %v1102_v42 = vmul.f32 %v3078_v51, %v4027_v35 }
 0x268   : > { %1333 = vst.msk [vmem:[%s3093_s14 + $0x108] sm:$0xff] %vm245_vm0, %v1205_v7  ;;  %v4028_v7 = vld [vmem:[#allocation17_spill] sm:$0xff]  ;;  %v1229_v53 = vmax.f32 %v1101_v30, 0.0  ;;  %v4047_v30 = vld [vmem:[#allocation36_spill] sm:$0xff] }
 0x269   : > { %1334 = vst.msk [vmem:[%s3093_s14 + $0x110] sm:$0xff] %vm245_vm0, %v1206_v10  ;;  %v1103_v44 = vmul.f32 %v3078_v51, %v4028_v7  ;;  %v1228_v10 = vmax.f32 %v1100_v13, 0.0  ;;  %v4046_v13 = vld [vmem:[#allocation35_spill] sm:$0xff] }
 0x26a   : > { %1335 = vst.msk [vmem:[%s3093_s14 + $0x118] sm:$0xff] %vm245_vm0, %v1207_v0  ;;  %v1104_v0 = vmul.f32 %v3078_v51, %v4029_v48 }
 0x26b   : > { %1336 = vst.msk [vmem:[%s3093_s14 + $0x120] sm:$0xff] %vm245_vm0, %v1208_v36  ;;  %v4030_v36 = vld [vmem:[#allocation19_spill] sm:$0xff]  ;;  %v1231_v24 = vmax.f32 %v1103_v44, 0.0  ;;  %v4049_v44 = vld [vmem:[#allocation38_spill] sm:$0xff] }
 0x26c   : > { %1337 = vst.msk [vmem:[%s3093_s14 + $0x128] sm:$0xff] %vm245_vm0, %v1209_v38  ;;  %v1105_v57 = vmul.f32 %v3078_v51, %v4030_v36  ;;  %v1230_v38 = vmax.f32 %v1102_v42, 0.0  ;;  %v1232_v47 = vmax.f32 %v1104_v0, 0.0  ;;  %v4048_v42 = vld [vmem:[#allocation37_spill] sm:$0xff]  ;;  %v4050_v0 = vld [vmem:[#allocation39_spill] sm:$0xff] }
 0x26d   : > { %1338 = vst.msk [vmem:[%s3093_s14 + $0x130] sm:$0xff] %vm245_vm0, %v1210_v16  ;;  %v1106_v16 = vmul.f32 %v3078_v51, %v4031_v62 }
 0x26e   : > { %1339 = vst.msk [vmem:[%s3093_s14 + $0x138] sm:$0xff] %vm245_vm0, %v1211_v19  ;;  %v1107_v19 = vmul.f32 %v3078_v51, %v4032_v6  ;;  %v1233_v1 = vmax.f32 %v1105_v57, 0.0  ;;  %v4051_v57 = vld [vmem:[#allocation40_spill] sm:$0xff] }
 0x26f   : > { %1340 = vst.msk [vmem:[%s3093_s14 + $0x140] sm:$0xff] %vm245_vm0, %v1212_v22  ;;  %v1108_v22 = vmul.f32 %v3078_v51, %v4033_v14  ;;  %v1234_v41 = vmax.f32 %v1106_v16, 0.0  ;;  %v4052_v16 = vld [vmem:[#allocation41_spill] sm:$0xff] }
 0x270   : > { %1341 = vst.msk [vmem:[%s3093_s14 + $0x148] sm:$0xff] %vm245_vm0, %v1213_v25  ;;  %v1109_v25 = vmul.f32 %v3078_v51, %v4034_v20  ;;  %v1235_v31 = vmax.f32 %v1107_v19, 0.0  ;;  %v4053_v19 = vld [vmem:[#allocation42_spill] sm:$0xff] }
 0x271   : > { %1342 = vst.msk [vmem:[%s3093_s14 + $0x150] sm:$0xff] %vm245_vm0, %v1214_v32  ;;  %v1110_v32 = vmul.f32 %v3078_v51, %v4035_v28  ;;  %v1236_v59 = vmax.f32 %v1108_v22, 0.0  ;;  %v4054_v22 = vld [vmem:[#allocation43_spill] sm:$0xff] }
 0x272   : > { %1343 = vst.msk [vmem:[%s3093_s14 + $0x158] sm:$0xff] %vm245_vm0, %v1215_v34  ;;  %v1111_v34 = vmul.f32 %v3078_v51, %v4036_v3  ;;  %v1237_v40 = vmax.f32 %v1109_v25, 0.0  ;;  %v4055_v25 = vld [vmem:[#allocation44_spill] sm:$0xff] }
 0x273   : > { %1344 = vst.msk [vmem:[%s3093_s14 + $0x160] sm:$0xff] %vm245_vm0, %v1216_v56  ;;  %v1112_v56 = vmul.f32 %v3078_v51, %v4037_v37  ;;  %v1238_v50 = vmax.f32 %v1110_v32, 0.0  ;;  %v4056_v32 = vld [vmem:[#allocation45_spill] sm:$0xff] }
 0x274   : > { %1345 = vst.msk [vmem:[%s3093_s14 + $0x168] sm:$0xff] %vm245_vm0, %v1217_v43  ;;  %v1113_v43 = vmul.f32 %v3078_v51, %v4038_v33  ;;  %v1239_v49 = vmax.f32 %v1111_v34, 0.0  ;;  %v4057_v34 = vld [vmem:[#allocation46_spill] sm:$0xff] }
 0x275   : > { %1346 = vst.msk [vmem:[%s3093_s14 + $0x170] sm:$0xff] %vm245_vm0, %v1218_v27  ;;  %v1114_v27 = vmul.f32 %v3078_v51, %v4039_v46  ;;  %v1240_v29 = vmax.f32 %v1112_v56, 0.0  ;;  %v4058_v56 = vld [vmem:[#allocation47_spill] sm:$0xff] }
 0x276   : > { %1347 = vst.msk [vmem:[%s3093_s14 + $0x178] sm:$0xff] %vm245_vm0, %v1219_v52  ;;  %v1115_v52 = vmul.f32 %v3078_v51, %v4040_v15  ;;  %v1241_v58 = vmax.f32 %v1113_v43, 0.0  ;;  %v4059_v43 = vld [vmem:[#allocation48_spill] sm:$0xff] }
 0x277   : > { %1348 = vst.msk [vmem:[%s3093_s14 + $0x180] sm:$0xff] %vm245_vm0, %v1220_v9  ;;  %v1116_v9 = vmul.f32 %v3078_v51, %v4041_v55  ;;  %v1242_v11 = vmax.f32 %v1114_v27, 0.0  ;;  %v4060_v27 = vld [vmem:[#allocation49_spill] sm:$0xff] }
 0x278   : > { %1349 = vst.msk [vmem:[%s3093_s14 + $0x188] sm:$0xff] %vm245_vm0, %v1221_v61  ;;  %v1117_v61 = vmul.f32 %v3078_v51, %v4042_v60  ;;  %v1243_v8 = vmax.f32 %v1115_v52, 0.0  ;;  %v4061_v52 = vld [vmem:[#allocation50_spill] sm:$0xff] }
 0x279   : > { %1350 = vst.msk [vmem:[%s3093_s14 + $0x190] sm:$0xff] %vm245_vm0, %v1222_v63  ;;  %v1118_v63 = vmul.f32 %v3078_v51, %v4043_v4  ;;  %v1244_v18 = vmax.f32 %v1116_v9, 0.0  ;;  %v4062_v9 = vld [vmem:[#allocation51_spill] sm:$0xff] }
 0x27a   : > { %1351 = vst.msk [vmem:[%s3093_s14 + $0x198] sm:$0xff] %vm245_vm0, %v1223_v12  ;;  %v1119_v12 = vmul.f32 %v3078_v51, %v4044_v23  ;;  %v1245_v21 = vmax.f32 %v1117_v61, 0.0  ;;  %v4063_v61 = vld [vmem:[#allocation52_spill] sm:$0xff] }
 0x27b   : > { %1352 = vst.msk [vmem:[%s3093_s14 + $0x1a0] sm:$0xff] %vm245_vm0, %v1224_v45  ;;  %v1120_v45 = vmul.f32 %v3078_v51, %v4045_v17  ;;  %v1246_v54 = vmax.f32 %v1118_v63, 0.0  ;;  %v4064_v63 = vld [vmem:[#allocation53_spill] sm:$0xff] }
 0x27c   : > { %1353 = vst.msk [vmem:[%s3093_s14 + $0x1a8] sm:$0xff] %vm245_vm0, %v1225_v26  ;;  %v1121_v26 = vmul.f32 %v3078_v51, %v4046_v13  ;;  %v1247_v35 = vmax.f32 %v1119_v12, 0.0  ;;  %v4065_v12 = vld [vmem:[#allocation54_spill] sm:$0xff] }
 0x27d   : > { %1354 = vst.msk [vmem:[%s3093_s14 + $0x1b0] sm:$0xff] %vm245_vm0, %v1226_v2  ;;  %v1122_v2 = vmul.f32 %v3078_v51, %v4047_v30  ;;  %v1248_v7 = vmax.f32 %v1120_v45, 0.0  ;;  %v4066_v45 = vld [vmem:[#allocation55_spill] sm:$0xff] }
 0x27e   : > { %1355 = vst.msk [vmem:[%s3093_s14 + $0x1b8] sm:$0xff] %vm245_vm0, %v1227_v39  ;;  %v1123_v39 = vmul.f32 %v3078_v51, %v4048_v42  ;;  %v1249_v48 = vmax.f32 %v1121_v26, 0.0  ;;  %v4067_v26 = vld [vmem:[#allocation56_spill] sm:$0xff] }
 0x27f   : > { %1356 = vst.msk [vmem:[%s3093_s14 + $0x1c0] sm:$0xff] %vm245_vm0, %v1228_v10  ;;  %v1124_v10 = vmul.f32 %v3078_v51, %v4049_v44  ;;  %v1250_v36 = vmax.f32 %v1122_v2, 0.0  ;;  %v4068_v2 = vld [vmem:[#allocation57_spill] sm:$0xff] }
 0x280   : > { %1357 = vst.msk [vmem:[%s3093_s14 + $0x1c8] sm:$0xff] %vm245_vm0, %v1229_v53  ;;  %v1125_v53 = vmul.f32 %v3078_v51, %v4050_v0  ;;  %v1251_v62 = vmax.f32 %v1123_v39, 0.0  ;;  %v4069_v39 = vld [vmem:[#allocation58_spill] sm:$0xff] }
 0x281   : > { %1358 = vst.msk [vmem:[%s3093_s14 + $0x1d0] sm:$0xff] %vm245_vm0, %v1230_v38  ;;  %v1126_v38 = vmul.f32 %v3078_v51, %v4051_v57  ;;  %v1252_v6 = vmax.f32 %v1124_v10, 0.0  ;;  %v4070_v10 = vld [vmem:[#allocation59_spill] sm:$0xff] }
 0x282   : > { %1359 = vst.msk [vmem:[%s3093_s14 + $0x1d8] sm:$0xff] %vm245_vm0, %v1231_v24  ;;  %v1127_v24 = vmul.f32 %v3078_v51, %v4052_v16  ;;  %v1253_v14 = vmax.f32 %v1125_v53, 0.0  ;;  %v4071_v53 = vld [vmem:[#allocation60_spill] sm:$0xff] }
 0x283   : > { %1360 = vst.msk [vmem:[%s3093_s14 + $0x1e0] sm:$0xff] %vm245_vm0, %v1232_v47  ;;  %v1128_v47 = vmul.f32 %v3078_v51, %v4053_v19  ;;  %v1254_v20 = vmax.f32 %v1126_v38, 0.0  ;;  %v4072_v38 = vld [vmem:[#allocation61_spill] sm:$0xff] }
 0x284   : > { %1361 = vst.msk [vmem:[%s3093_s14 + $0x1e8] sm:$0xff] %vm245_vm0, %v1233_v1  ;;  %v1129_v1 = vmul.f32 %v3078_v51, %v4054_v22  ;;  %v1255_v28 = vmax.f32 %v1127_v24, 0.0  ;;  %v4073_v24 = vld [vmem:[#allocation62_spill] sm:$0xff] }
 0x285   : > { %1362 = vst.msk [vmem:[%s3093_s14 + $0x1f0] sm:$0xff] %vm245_vm0, %v1234_v41  ;;  %v1130_v41 = vmul.f32 %v3078_v51, %v4055_v25  ;;  %v1256_v3 = vmax.f32 %v1128_v47, 0.0  ;;  %v4074_v47 = vld [vmem:[#allocation63_spill] sm:$0xff] }
 0x286   : > { %1363 = vst.msk [vmem:[%s3093_s14 + $0x1f8] sm:$0xff] %vm245_vm0, %v1235_v31  ;;  %v1131_v31 = vmul.f32 %v3078_v51, %v4056_v32  ;;  %v1257_v37 = vmax.f32 %v1129_v1, 0.0  ;;  %v4075_v1 = vld [vmem:[#allocation64_spill] sm:$0xff] }
 0x287   : > { %1364 = vst.msk [vmem:[%s3093_s14 + $0x200] sm:$0xff] %vm245_vm0, %v1236_v59  ;;  %v1132_v59 = vmul.f32 %v3078_v51, %v4057_v34  ;;  %v1258_v33 = vmax.f32 %v1130_v41, 0.0  ;;  %v4076_v41 = vld [vmem:[#allocation65_spill] sm:$0xff] }
 0x288   : > { %1365 = vst.msk [vmem:[%s3093_s14 + $0x208] sm:$0xff] %vm245_vm0, %v1237_v40  ;;  %v1133_v40 = vmul.f32 %v3078_v51, %v4058_v56  ;;  %v1259_v46 = vmax.f32 %v1131_v31, 0.0  ;;  %v4077_v31 = vld [vmem:[#allocation66_spill] sm:$0xff] }
 0x289   : > { %1366 = vst.msk [vmem:[%s3093_s14 + $0x210] sm:$0xff] %vm245_vm0, %v1238_v50  ;;  %v1134_v50 = vmul.f32 %v3078_v51, %v4059_v43  ;;  %v1260_v15 = vmax.f32 %v1132_v59, 0.0  ;;  %v4078_v59 = vld [vmem:[#allocation67_spill] sm:$0xff] }
 0x28a   : > { %1367 = vst.msk [vmem:[%s3093_s14 + $0x218] sm:$0xff] %vm245_vm0, %v1239_v49  ;;  %v1135_v49 = vmul.f32 %v3078_v51, %v4060_v27  ;;  %v1261_v55 = vmax.f32 %v1133_v40, 0.0  ;;  %v4079_v40 = vld [vmem:[#allocation68_spill] sm:$0xff] }
 0x28b   : > { %1368 = vst.msk [vmem:[%s3093_s14 + $0x220] sm:$0xff] %vm245_vm0, %v1240_v29  ;;  %v1136_v29 = vmul.f32 %v3078_v51, %v4061_v52  ;;  %v1262_v60 = vmax.f32 %v1134_v50, 0.0  ;;  %v4080_v50 = vld [vmem:[#allocation69_spill] sm:$0xff] }
 0x28c   : > { %1369 = vst.msk [vmem:[%s3093_s14 + $0x228] sm:$0xff] %vm245_vm0, %v1241_v58  ;;  %v1137_v58 = vmul.f32 %v3078_v51, %v4062_v9  ;;  %v1263_v4 = vmax.f32 %v1135_v49, 0.0  ;;  %v4081_v49 = vld [vmem:[#allocation70_spill] sm:$0xff] }
 0x28d   : > { %1370 = vst.msk [vmem:[%s3093_s14 + $0x230] sm:$0xff] %vm245_vm0, %v1242_v11  ;;  %v1138_v11 = vmul.f32 %v3078_v51, %v4063_v61  ;;  %v1264_v23 = vmax.f32 %v1136_v29, 0.0  ;;  %v4082_v29 = vld [vmem:[#allocation71_spill] sm:$0xff] }
 0x28e   : > { %1371 = vst.msk [vmem:[%s3093_s14 + $0x238] sm:$0xff] %vm245_vm0, %v1243_v8  ;;  %v1139_v8 = vmul.f32 %v3078_v51, %v4064_v63  ;;  %v1265_v17 = vmax.f32 %v1137_v58, 0.0  ;;  %v4083_v58 = vld [vmem:[#allocation72_spill] sm:$0xff] }
 0x28f   : > { %1372 = vst.msk [vmem:[%s3093_s14 + $0x240] sm:$0xff] %vm245_vm0, %v1244_v18  ;;  %v1140_v18 = vmul.f32 %v3078_v51, %v4065_v12  ;;  %v1266_v13 = vmax.f32 %v1138_v11, 0.0  ;;  %v4084_v11 = vld [vmem:[#allocation73_spill] sm:$0xff] }
 0x290   : > { %1373 = vst.msk [vmem:[%s3093_s14 + $0x248] sm:$0xff] %vm245_vm0, %v1245_v21  ;;  %v1141_v21 = vmul.f32 %v3078_v51, %v4066_v45  ;;  %v1267_v30 = vmax.f32 %v1139_v8, 0.0  ;;  %v4085_v8 = vld [vmem:[#allocation74_spill] sm:$0xff] }
 0x291   : > { %1374 = vst.msk [vmem:[%s3093_s14 + $0x250] sm:$0xff] %vm245_vm0, %v1246_v54  ;;  %v1142_v54 = vmul.f32 %v3078_v51, %v4067_v26  ;;  %v1268_v42 = vmax.f32 %v1140_v18, 0.0  ;;  %v4086_v18 = vld [vmem:[#allocation75_spill] sm:$0xff] }
 0x292   : > { %1375 = vst.msk [vmem:[%s3093_s14 + $0x258] sm:$0xff] %vm245_vm0, %v1247_v35  ;;  %v1143_v35 = vmul.f32 %v3078_v51, %v4068_v2  ;;  %v1269_v44 = vmax.f32 %v1141_v21, 0.0  ;;  %v4087_v21 = vld [vmem:[#allocation76_spill] sm:$0xff] }
 0x293   : > { %1376 = vst.msk [vmem:[%s3093_s14 + $0x260] sm:$0xff] %vm245_vm0, %v1248_v7  ;;  %v1144_v7 = vmul.f32 %v3078_v51, %v4069_v39  ;;  %v1270_v0 = vmax.f32 %v1142_v54, 0.0  ;;  %v4088_v54 = vld [vmem:[#allocation77_spill] sm:$0xff] }
 0x294   : > { %1377 = vst.msk [vmem:[%s3093_s14 + $0x268] sm:$0xff] %vm245_vm0, %v1249_v48  ;;  %v1145_v48 = vmul.f32 %v3078_v51, %v4070_v10  ;;  %v1271_v57 = vmax.f32 %v1143_v35, 0.0  ;;  %v4089_v35 = vld [vmem:[#allocation78_spill] sm:$0xff] }
 0x295   : > { %1378 = vst.msk [vmem:[%s3093_s14 + $0x270] sm:$0xff] %vm245_vm0, %v1250_v36  ;;  %v1146_v36 = vmul.f32 %v3078_v51, %v4071_v53  ;;  %v1272_v16 = vmax.f32 %v1144_v7, 0.0  ;;  %v4090_v7 = vld [vmem:[#allocation79_spill] sm:$0xff] }
 0x296   : > { %1379 = vst.msk [vmem:[%s3093_s14 + $0x278] sm:$0xff] %vm245_vm0, %v1251_v62  ;;  %v1147_v62 = vmul.f32 %v3078_v51, %v4072_v38  ;;  %v1273_v19 = vmax.f32 %v1145_v48, 0.0  ;;  %v4091_v48 = vld [vmem:[#allocation80_spill] sm:$0xff] }
 0x297   : > { %1380 = vst.msk [vmem:[%s3093_s14 + $0x280] sm:$0xff] %vm245_vm0, %v1252_v6  ;;  %v1148_v6 = vmul.f32 %v3078_v51, %v4073_v24  ;;  %v1274_v22 = vmax.f32 %v1146_v36, 0.0  ;;  %v4092_v36 = vld [vmem:[#allocation83_spill] sm:$0xff] }
 0x298   : > { %1381 = vst.msk [vmem:[%s3093_s14 + $0x288] sm:$0xff] %vm245_vm0, %v1253_v14  ;;  %v1149_v14 = vmul.f32 %v3078_v51, %v4074_v47  ;;  %v1275_v25 = vmax.f32 %v1147_v62, 0.0  ;;  %v4093_v62 = vld [vmem:[#allocation84_spill] sm:$0xff] }
 0x299   : > { %1382 = vst.msk [vmem:[%s3093_s14 + $0x290] sm:$0xff] %vm245_vm0, %v1254_v20  ;;  %v1150_v20 = vmul.f32 %v3078_v51, %v4075_v1  ;;  %v1276_v32 = vmax.f32 %v1148_v6, 0.0  ;;  %v4094_v6 = vld [vmem:[#allocation85_spill] sm:$0xff] }
 0x29a   : > { %1383 = vst.msk [vmem:[%s3093_s14 + $0x298] sm:$0xff] %vm245_vm0, %v1255_v28  ;;  %v1151_v28 = vmul.f32 %v3078_v51, %v4076_v41  ;;  %v1277_v34 = vmax.f32 %v1149_v14, 0.0  ;;  %v4095_v14 = vld [vmem:[#allocation86_spill] sm:$0xff] }
 0x29b   : > { %1384 = vst.msk [vmem:[%s3093_s14 + $0x2a0] sm:$0xff] %vm245_vm0, %v1256_v3  ;;  %v1152_v3 = vmul.f32 %v3078_v51, %v4077_v31  ;;  %v1278_v56 = vmax.f32 %v1150_v20, 0.0  ;;  %v1171_v20 = vmul.f32 %v3078_v51, %v3064_v5 }
 0x29c   : > { %1385 = vst.msk [vmem:[%s3093_s14 + $0x2a8] sm:$0xff] %vm245_vm0, %v1257_v37  ;;  %v1153_v37 = vmul.f32 %v3078_v51, %v4078_v59  ;;  %v1279_v43 = vmax.f32 %v1151_v28, 0.0 }
 0x29d   : > { %1386 = vst.msk [vmem:[%s3093_s14 + $0x2b0] sm:$0xff] %vm245_vm0, %v1258_v33  ;;  %v1154_v33 = vmul.f32 %v3078_v51, %v4079_v40  ;;  %v1280_v27 = vmax.f32 %v1152_v3, 0.0 }
 0x29e   : > { %1387 = vst.msk [vmem:[%s3093_s14 + $0x2b8] sm:$0xff] %vm245_vm0, %v1259_v46  ;;  %v1155_v46 = vmul.f32 %v3078_v51, %v4080_v50  ;;  %v1281_v52 = vmax.f32 %v1153_v37, 0.0 }
 0x29f   : > { %1388 = vst.msk [vmem:[%s3093_s14 + $0x2c0] sm:$0xff] %vm245_vm0, %v1260_v15  ;;  %v1156_v15 = vmul.f32 %v3078_v51, %v4081_v49  ;;  %v1282_v9 = vmax.f32 %v1154_v33, 0.0 }
 0x2a0   : > { %1389 = vst.msk [vmem:[%s3093_s14 + $0x2c8] sm:$0xff] %vm245_vm0, %v1261_v55  ;;  %v1157_v55 = vmul.f32 %v3078_v51, %v4082_v29  ;;  %v1283_v61 = vmax.f32 %v1155_v46, 0.0 }
 0x2a1   : > { %1390 = vst.msk [vmem:[%s3093_s14 + $0x2d0] sm:$0xff] %vm245_vm0, %v1262_v60  ;;  %v1158_v60 = vmul.f32 %v3078_v51, %v4083_v58  ;;  %v1284_v63 = vmax.f32 %v1156_v15, 0.0 }
 0x2a2   : > { %1391 = vst.msk [vmem:[%s3093_s14 + $0x2d8] sm:$0xff] %vm245_vm0, %v1263_v4  ;;  %v1159_v4 = vmul.f32 %v3078_v51, %v4084_v11  ;;  %v1285_v12 = vmax.f32 %v1157_v55, 0.0 }
 0x2a3   : > { %1392 = vst.msk [vmem:[%s3093_s14 + $0x2e0] sm:$0xff] %vm245_vm0, %v1264_v23  ;;  %v1160_v23 = vmul.f32 %v3078_v51, %v4085_v8  ;;  %v1286_v45 = vmax.f32 %v1158_v60, 0.0 }
 0x2a4   : > { %1393 = vst.msk [vmem:[%s3093_s14 + $0x2e8] sm:$0xff] %vm245_vm0, %v1265_v17  ;;  %v1161_v17 = vmul.f32 %v3078_v51, %v4086_v18  ;;  %v1287_v26 = vmax.f32 %v1159_v4, 0.0 }
 0x2a5   : > { %1394 = vst.msk [vmem:[%s3093_s14 + $0x2f0] sm:$0xff] %vm245_vm0, %v1266_v13  ;;  %v1162_v13 = vmul.f32 %v3078_v51, %v4087_v21  ;;  %v1288_v2 = vmax.f32 %v1160_v23, 0.0 }
 0x2a6   : > { %1395 = vst.msk [vmem:[%s3093_s14 + $0x2f8] sm:$0xff] %vm245_vm0, %v1267_v30  ;;  %v1163_v30 = vmul.f32 %v3078_v51, %v4088_v54  ;;  %v1289_v39 = vmax.f32 %v1161_v17, 0.0 }
 0x2a7   : > { %1396 = vst.msk [vmem:[%s3093_s14 + $0x300] sm:$0xff] %vm245_vm0, %v1268_v42  ;;  %v1164_v42 = vmul.f32 %v3078_v51, %v4089_v35  ;;  %v1290_v10 = vmax.f32 %v1162_v13, 0.0 }
 0x2a8   : > { %1397 = vst.msk [vmem:[%s3093_s14 + $0x308] sm:$0xff] %vm245_vm0, %v1269_v44  ;;  %v1165_v44 = vmul.f32 %v3078_v51, %v4090_v7  ;;  %v1291_v53 = vmax.f32 %v1163_v30, 0.0 }
 0x2a9   : > { %1398 = vst.msk [vmem:[%s3093_s14 + $0x310] sm:$0xff] %vm245_vm0, %v1270_v0  ;;  %v1166_v0 = vmul.f32 %v3078_v51, %v4091_v48  ;;  %v1292_v38 = vmax.f32 %v1164_v42, 0.0 }
 0x2aa   : > { %1399 = vst.msk [vmem:[%s3093_s14 + $0x318] sm:$0xff] %vm245_vm0, %v1271_v57  ;;  %v1167_v57 = vmul.f32 %v3078_v51, %v4092_v36  ;;  %v1293_v24 = vmax.f32 %v1165_v44, 0.0 }
 0x2ab   : > { %1400 = vst.msk [vmem:[%s3093_s14 + $0x320] sm:$0xff] %vm245_vm0, %v1272_v16  ;;  %v1168_v16 = vmul.f32 %v3078_v51, %v4093_v62  ;;  %v1294_v47 = vmax.f32 %v1166_v0, 0.0 }
 0x2ac   : > { %1401 = vst.msk [vmem:[%s3093_s14 + $0x328] sm:$0xff] %vm245_vm0, %v1273_v19  ;;  %v1169_v19 = vmul.f32 %v3078_v51, %v4094_v6  ;;  %v1295_v1 = vmax.f32 %v1167_v57, 0.0 }
 0x2ad   : > { %1402 = vst.msk [vmem:[%s3093_s14 + $0x330] sm:$0xff] %vm245_vm0, %v1274_v22  ;;  %v1170_v22 = vmul.f32 %v3078_v51, %v4095_v14 }
 0x2ae   : > { %1403 = vst.msk [vmem:[%s3093_s14 + $0x338] sm:$0xff] %vm245_vm0, %v1275_v25  ;;  %v1296_v25 = vmax.f32 %v1168_v16, 0.0  ;;  %v1297_v41 = vmax.f32 %v1169_v19, 0.0 }
 0x2af   : > { %1404 = vst.msk [vmem:[%s3093_s14 + $0x340] sm:$0xff] %vm245_vm0, %v1276_v32  ;;  %v1298_v28 = vmax.f32 %v1170_v22, 0.0  ;;  %v1299_v32 = vmax.f32 %v1171_v20, 0.0 }
 0x2b0   : > { %1405 = vst.msk [vmem:[%s3093_s14 + $0x348] sm:$0xff] %vm245_vm0, %v1277_v34 }
 0x2b1   : > { %1406 = vst.msk [vmem:[%s3093_s14 + $0x350] sm:$0xff] %vm245_vm0, %v1278_v56 }
 0x2b2   : > { %1407 = vst.msk [vmem:[%s3093_s14 + $0x358] sm:$0xff] %vm245_vm0, %v1279_v43 }
 0x2b3   : > { %1408 = vst.msk [vmem:[%s3093_s14 + $0x360] sm:$0xff] %vm245_vm0, %v1280_v27 }
 0x2b4   : > { %1409 = vst.msk [vmem:[%s3093_s14 + $0x368] sm:$0xff] %vm245_vm0, %v1281_v52 }
 0x2b5   : > { %1410 = vst.msk [vmem:[%s3093_s14 + $0x370] sm:$0xff] %vm245_vm0, %v1282_v9 }
 0x2b6   : > { %1411 = vst.msk [vmem:[%s3093_s14 + $0x378] sm:$0xff] %vm245_vm0, %v1283_v61 }
 0x2b7   : > { %1412 = vst.msk [vmem:[%s3093_s14 + $0x380] sm:$0xff] %vm245_vm0, %v1284_v63 }
 0x2b8   : > { %1413 = vst.msk [vmem:[%s3093_s14 + $0x388] sm:$0xff] %vm245_vm0, %v1285_v12 }
 0x2b9   : > { %1414 = vst.msk [vmem:[%s3093_s14 + $0x390] sm:$0xff] %vm245_vm0, %v1286_v45 }
 0x2ba   : > { %1415 = vst.msk [vmem:[%s3093_s14 + $0x398] sm:$0xff] %vm245_vm0, %v1287_v26 }
 0x2bb   : > { %1416 = vst.msk [vmem:[%s3093_s14 + $0x3a0] sm:$0xff] %vm245_vm0, %v1288_v2 }
 0x2bc   : > { %1417 = vst.msk [vmem:[%s3093_s14 + $0x3a8] sm:$0xff] %vm245_vm0, %v1289_v39 }
 0x2bd   : > { %1418 = vst.msk [vmem:[%s3093_s14 + $0x3b0] sm:$0xff] %vm245_vm0, %v1290_v10 }
 0x2be   : > { %1419 = vst.msk [vmem:[%s3093_s14 + $0x3b8] sm:$0xff] %vm245_vm0, %v1291_v53 }
 0x2bf   : > { %1420 = vst.msk [vmem:[%s3093_s14 + $0x3c0] sm:$0xff] %vm245_vm0, %v1292_v38 }
 0x2c0   : > { %1421 = vst.msk [vmem:[%s3093_s14 + $0x3c8] sm:$0xff] %vm245_vm0, %v1293_v24 }
 0x2c1   : > { %1422 = vst.msk [vmem:[%s3093_s14 + $0x3d0] sm:$0xff] %vm245_vm0, %v1294_v47 }
 0x2c2   : > { %1423 = vst.msk [vmem:[%s3093_s14 + $0x3d8] sm:$0xff] %vm245_vm0, %v1295_v1 }
 0x2c3   : > { %1424 = vst.msk [vmem:[%s3093_s14 + $0x3e0] sm:$0xff] %vm245_vm0, %v1296_v25 }
 0x2c4   : > { %1425 = vst.msk [vmem:[%s3093_s14 + $0x3e8] sm:$0xff] %vm245_vm0, %v1297_v41 }
 0x2c5   : > { %1426 = vst.msk [vmem:[%s3093_s14 + $0x3f0] sm:$0xff] %vm245_vm0, %v1298_v28 }
 0x2c6   : > { %1427 = vst.msk [vmem:[%s3093_s14 + $0x3f8] sm:$0xff] %vm245_vm0, %v1299_v32 }
 0x2c7 PF: > { %s11_s6 = sadd.s32 1, %s1520_s6  }
 0x2c8   : > { %p8_p4 = scmp.ge.s32.totalorder %s11_s6, 4  }
 0x2ca   :  { %10 = sbr.rel (!%p8_p4) target bundleno = 1 (0x1), region = 54 }

// kernel: _lambda_.53
= control target key start
LH: loop header
LB: loop body
LE: loop exit
PB: predicated region body
PF: predicated region fallthrough
CT: control target
= control target key end

     0   :  { %s981_s9 = smov 0   ;;  %s983_s10 = smov 0   ;;  %s1095_s0 = inlined_call_operand.vmem [shape: bf16[512,36], index: 0, kind: input, shape index: {}]   ;;  %s1096_s1 = inlined_call_operand.vmem [shape: bf16[36,128], index: 1, kind: input, shape index: {}]   ;;  %s1097_s2 = inlined_call_operand.vmem [shape: f32[512,128], index: 2, kind: output, shape index: {}]  }
   0x1   :  { %s985_s11 = smov 0  }
   0x2 LB: > { %s31_s12 = sadd.s32 1, %s960_s10  ;;  %p796_p0 = scmp.ge.s32.totalorder %s964_s11, 1  ;;  %s964_s11 = sphi %s985_s11, %s12_s11   ;;  %s960_s10 = sphi %s983_s10, %s1099_s10   ;;  %s956_s9 = sphi %s981_s9, %s1098_s9  }
   0x3   : > { %p33_p1 = scmp.ge.s32.totalorder %s31_s12, 2  ;;  %p155_p2 = scmp.lt.s32.totalorder %s964_s11, 3 }
   0x5   : > { %s1101_s12 = smov (%p33_p1, %s31_s12), 0  ;;  %p156_p3 = pnand %p796_p0, %p155_p2 }
   0x6   : > { %s797_s15 = sshll.u32 (!%p156_p3), %s956_s9, 5 }
   0x7   : > { %159 = sbr.rel (%p156_p3) target bundleno = 220 (0xdc), region = 28  ;;  %p192_p4 = scmp.lt.s32.totalorder (!%p156_p3), %s797_s15, 63 }
   0xc   : > { %v323_v0 = vld [vmem:[%s1096_s1 + $0x10] sm:$0x3]  ;;  %vm468_vm0 = vcmask 1041408   ;;  %s1103_s15 = smov (!%p192_p4, %s797_s15), 63  ;;  %v908_v4 = vld [vmem:[%s1096_s1 + $0x8] sm:$0xff]  ;;  %v907_v5 = vld [vmem:[%s1096_s1] sm:$0xff] }
   0xd   : > { %v413_v1 = vunpack.c.l.b16 %v323_v0  ;;  %s798_s18 = sshll.u32 %s1103_s15, 2  ;;  %vm419_vm1 = vcmask 293888   ;;  %s800_s24 = sshll.u32 %s1103_s15, 3 }
   0xe   : > { %s1014_s23 = scalar_lea.vmem %s1095_s0, %s798_s18  ;;  %s1052_s27 = scalar_lea.vmem %s1097_s2, %s800_s24 }
   0xf   : > { %v416_v2 = vpack.c.b16 %v413_v1, %v413_v1  ;;  %v891_v6 = vld [vmem:[%s1014_s23] sm:$0xff]  ;;  %v892_v10 = vld [vmem:[%s1014_s23 + $0x8] sm:$0xff]  ;;  %v893_v14 = vld [vmem:[%s1014_s23 + $0x10] sm:$0xff] }
  0x10   : > { %v895_v7 = vld [vmem:[%s1014_s23 + $0x20] sm:$0xff]  ;;  %v896_v11 = vld [vmem:[%s1014_s23 + $0x28] sm:$0xff]  ;;  %v897_v15 = vld [vmem:[%s1014_s23 + $0x30] sm:$0xff] }
  0x11   : > { %v470_v3 = vsel %vm468_vm0, %v416_v2, 0  ;;  %v899_v8 = vld [vmem:[%s1014_s23 + $0x40] sm:$0xff]  ;;  %v900_v12 = vld [vmem:[%s1014_s23 + $0x48] sm:$0xff]  ;;  %v901_v16 = vld [vmem:[%s1014_s23 + $0x50] sm:$0xff] }
  0x12   : > { %477 = vmatpush.bf16.msra.mxu0 %v470_v3  ;;  %909 = vmatpush.bf16.msra.mxu1 %v470_v3  ;;  %v903_v9 = vld [vmem:[%s1014_s23 + $0x60] sm:$0xff]  ;;  %v904_v13 = vld [vmem:[%s1014_s23 + $0x68] sm:$0xff]  ;;  %v905_v17 = vld [vmem:[%s1014_s23 + $0x70] sm:$0xff] }
  0x13   : > { %910 = vmatpush.bf16.msra.mxu2 %v470_v3  ;;  %911 = vmatpush.bf16.msra.mxu3 %v470_v3  ;;  %v894_v18 = vld [vmem:[%s1014_s23 + $0x18] sm:$0xff] }
  0x14   : > { %v898_v19 = vld [vmem:[%s1014_s23 + $0x38] sm:$0xff] }
  0x15   : > { %v902_v20 = vld [vmem:[%s1014_s23 + $0x58] sm:$0xff] }
  0x16   : > { %478 = vmatpush.bf16.msra.mxu0 %v908_v4  ;;  %912 = vmatpush.bf16.msra.mxu1 %v908_v4  ;;  %v906_v21 = vld [vmem:[%s1014_s23 + $0x78] sm:$0xff] }
  0x17   : > { %913 = vmatpush.bf16.msra.mxu2 %v908_v4  ;;  %914 = vmatpush.bf16.msra.mxu3 %v908_v4 }
  0x1a   : > { %479 = vmatpush.bf16.msra.mxu0 %v907_v5  ;;  %915 = vmatpush.bf16.msra.mxu1 %v907_v5 }
  0x1b   : > { %916 = vmatpush.bf16.msra.mxu2 %v907_v5  ;;  %917 = vmatpush.bf16.msra.mxu3 %v907_v5 }
  0x1d   : > { %873 = vmatmul.msk.bf16.vlgmr.msra.gmra.mxu0 %vm419_vm1, %v891_v6  ;;  %877 = vmatmul.msk.bf16.vlgmr.msra.gmra.mxu1 %vm419_vm1, %v895_v7 }
  0x1e   : > { %881 = vmatmul.msk.bf16.vlgmr.msra.gmra.mxu2 %vm419_vm1, %v899_v8  ;;  %885 = vmatmul.msk.bf16.vlgmr.msra.gmra.mxu3 %vm419_vm1, %v903_v9 }
  0x2d   : > { %874 = vmatmul.msk.bf16.gmra.mxu0 %vm419_vm1, %v892_v10  ;;  %878 = vmatmul.msk.bf16.gmra.mxu1 %vm419_vm1, %v896_v11 }
  0x2e   : > { %882 = vmatmul.msk.bf16.gmra.mxu2 %vm419_vm1, %v900_v12  ;;  %886 = vmatmul.msk.bf16.gmra.mxu3 %vm419_vm1, %v904_v13 }
  0x3d   : > { %875 = vmatmul.msk.bf16.gmra.mxu0 %vm419_vm1, %v893_v14  ;;  %879 = vmatmul.msk.bf16.gmra.mxu1 %vm419_vm1, %v897_v15 }
  0x3e   : > { %883 = vmatmul.msk.bf16.gmra.mxu2 %vm419_vm1, %v901_v16  ;;  %887 = vmatmul.msk.bf16.gmra.mxu3 %vm419_vm1, %v905_v17 }
  0x4d   : > { %876 = vmatmul.msk.bf16.gmra.mxu0 %vm419_vm1, %v894_v18  ;;  %880 = vmatmul.msk.bf16.gmra.mxu1 %vm419_vm1, %v898_v19 }
  0x4e   : > { %884 = vmatmul.msk.bf16.gmra.mxu2 %vm419_vm1, %v902_v20  ;;  %888 = vmatmul.msk.bf16.gmra.mxu3 %vm419_vm1, %v906_v21 }
  0x9a   : > { %v481_v22 = vpop.f32.mrf.mxu0  ;;  %v501_v23 = vpop.f32.mrf.mxu1 }
  0x9b   : > { %660 = vst [vmem:[%s1052_s27] sm:$0xff] %v481_v22 }
  0x9c   : > { %668 = vst [vmem:[%s1052_s27 + $0x40] sm:$0xff] %v501_v23 }
  0xa1   : > { %v521_v24 = vpop.f32.mrf.mxu2  ;;  %v541_v25 = vpop.f32.mrf.mxu3 }
  0xa2   : > { %676 = vst [vmem:[%s1052_s27 + $0x80] sm:$0xff] %v521_v24  ;;  %v483_v26 = vpop.f32.mrf.mxu0  ;;  %v503_v27 = vpop.f32.mrf.mxu1 }
  0xa3   : > { %684 = vst [vmem:[%s1052_s27 + $0xc0] sm:$0xff] %v541_v25 }
  0xa4   : > { %661 = vst [vmem:[%s1052_s27 + $0x8] sm:$0xff] %v483_v26 }
  0xa5   : > { %669 = vst [vmem:[%s1052_s27 + $0x48] sm:$0xff] %v503_v27 }
  0xa9   : > { %v523_v28 = vpop.f32.mrf.mxu2  ;;  %v543_v29 = vpop.f32.mrf.mxu3 }
  0xaa   : > { %677 = vst [vmem:[%s1052_s27 + $0x88] sm:$0xff] %v523_v28  ;;  %v486_v30 = vpop.f32.mrf.mxu0  ;;  %v506_v31 = vpop.f32.mrf.mxu1 }
  0xab   : > { %685 = vst [vmem:[%s1052_s27 + $0xc8] sm:$0xff] %v543_v29 }
  0xac   : > { %662 = vst [vmem:[%s1052_s27 + $0x10] sm:$0xff] %v486_v30 }
  0xad   : > { %670 = vst [vmem:[%s1052_s27 + $0x50] sm:$0xff] %v506_v31 }
  0xb1   : > { %v526_v32 = vpop.f32.mrf.mxu2  ;;  %v546_v33 = vpop.f32.mrf.mxu3 }
  0xb2   : > { %678 = vst [vmem:[%s1052_s27 + $0x90] sm:$0xff] %v526_v32  ;;  %v488_v34 = vpop.f32.mrf.mxu0  ;;  %v508_v35 = vpop.f32.mrf.mxu1 }
  0xb3   : > { %686 = vst [vmem:[%s1052_s27 + $0xd0] sm:$0xff] %v546_v33 }
  0xb4   : > { %663 = vst [vmem:[%s1052_s27 + $0x18] sm:$0xff] %v488_v34 }
  0xb5   : > { %671 = vst [vmem:[%s1052_s27 + $0x58] sm:$0xff] %v508_v35 }
  0xb9   : > { %v528_v36 = vpop.f32.mrf.mxu2  ;;  %v548_v37 = vpop.f32.mrf.mxu3 }
  0xba   : > { %679 = vst [vmem:[%s1052_s27 + $0x98] sm:$0xff] %v528_v36  ;;  %v491_v38 = vpop.f32.mrf.mxu0  ;;  %v511_v39 = vpop.f32.mrf.mxu1 }
  0xbb   : > { %687 = vst [vmem:[%s1052_s27 + $0xd8] sm:$0xff] %v548_v37 }
  0xbc   : > { %664 = vst [vmem:[%s1052_s27 + $0x20] sm:$0xff] %v491_v38 }
  0xbd   : > { %672 = vst [vmem:[%s1052_s27 + $0x60] sm:$0xff] %v511_v39 }
  0xc1   : > { %v531_v40 = vpop.f32.mrf.mxu2  ;;  %v551_v41 = vpop.f32.mrf.mxu3 }
  0xc2   : > { %680 = vst [vmem:[%s1052_s27 + $0xa0] sm:$0xff] %v531_v40  ;;  %v493_v42 = vpop.f32.mrf.mxu0  ;;  %v513_v43 = vpop.f32.mrf.mxu1 }
  0xc3   : > { %688 = vst [vmem:[%s1052_s27 + $0xe0] sm:$0xff] %v551_v41 }
  0xc4   : > { %665 = vst [vmem:[%s1052_s27 + $0x28] sm:$0xff] %v493_v42 }
  0xc5   : > { %673 = vst [vmem:[%s1052_s27 + $0x68] sm:$0xff] %v513_v43 }
  0xc9   : > { %v533_v44 = vpop.f32.mrf.mxu2  ;;  %v553_v45 = vpop.f32.mrf.mxu3 }
  0xca   : > { %681 = vst [vmem:[%s1052_s27 + $0xa8] sm:$0xff] %v533_v44  ;;  %v496_v46 = vpop.f32.mrf.mxu0  ;;  %v516_v47 = vpop.f32.mrf.mxu1 }
  0xcb   : > { %689 = vst [vmem:[%s1052_s27 + $0xe8] sm:$0xff] %v553_v45 }
  0xcc   : > { %666 = vst [vmem:[%s1052_s27 + $0x30] sm:$0xff] %v496_v46 }
  0xcd   : > { %674 = vst [vmem:[%s1052_s27 + $0x70] sm:$0xff] %v516_v47 }
  0xd1   : > { %v536_v48 = vpop.f32.mrf.mxu2  ;;  %v556_v49 = vpop.f32.mrf.mxu3 }
  0xd2   : > { %682 = vst [vmem:[%s1052_s27 + $0xb0] sm:$0xff] %v536_v48  ;;  %v498_v50 = vpop.f32.mrf.mxu0  ;;  %v518_v51 = vpop.f32.mrf.mxu1 }
  0xd3   : > { %690 = vst [vmem:[%s1052_s27 + $0xf0] sm:$0xff] %v556_v49 }
  0xd4   : > { %667 = vst [vmem:[%s1052_s27 + $0x38] sm:$0xff] %v498_v50 }
  0xd5   : > { %675 = vst [vmem:[%s1052_s27 + $0x78] sm:$0xff] %v518_v51 }
  0xd9   : > { %v538_v52 = vpop.f32.mrf.mxu2  ;;  %v558_v53 = vpop.f32.mrf.mxu3 }
  0xda   : > { %683 = vst [vmem:[%s1052_s27 + $0xb8] sm:$0xff] %v538_v52 }
  0xdb   : > { %691 = vst [vmem:[%s1052_s27 + $0xf8] sm:$0xff] %v558_v53 }
  0xdc PF: > { %s12_s11 = sadd.s32 1, %s964_s11   ;;  %s1098_s9 = smov %s960_s10 }
  0xdd   : > { %p9_p5 = scmp.ge.s32.totalorder %s12_s11, 4   ;;  %s1099_s10 = smov %s1101_s12 }
  0xdf   :  { %11 = sbr.rel (!%p9_p5) target bundleno = 2 (0x2), region = 69 }

// kernel: _lambda_.54
= control target key start
LH: loop header
LB: loop body
LE: loop exit
PB: predicated region body
PF: predicated region fallthrough
CT: control target
= control target key end

     0   :  { %s699_s9 = smov 0   ;;  %s1282_s0 = inlined_call_operand.vmem [shape: f32[2,256,8], index: 0, kind: input, shape index: {}]   ;;  %s1283_s1 = inlined_call_operand.vmem [shape: f32[2,256,8], index: 1, kind: input, shape index: {}]   ;;  %s1284_s2 = inlined_call_operand.vmem [shape: f32[2,256,8], index: 2, kind: output, shape index: {}]  }
   0x1 LB: > { %s646_s10 = sadd.s32 4294967295, %s681_s9   ;;  %p650_p0 = scmp.ge.s32.totalorder %s681_s9, 1  ;;  %s681_s9 = sphi %s699_s9, %s12_s9  }
   0x2   : > { %p122_p1 = scmp.lt.s32.totalorder %s681_s9, 3 }
   0x4   : > { %p123_p2 = pnand %p650_p0, %p122_p1 }
   0x5   : > { %p149_p3 = scmp.lt.s32.totalorder (!%p123_p2), %s646_s10, 1 }
   0x6   : > { %126 = sbr.rel (%p123_p2) target bundleno = 231 (0xe7), region = 28 }
   0xb   : > { %s1286_s10 = smov (!%p149_p3, %s646_s10), 1  ;;  %vm196_vm0 = vcmask 64512  }
   0xc   : > { %s707_s11 = sshll.u32 %s1286_s10, 8 }
   0xd   : > { %s713_s14 = scalar_lea.vmem %s1282_s0, %s707_s11  ;;  %s1109_s17 = scalar_lea.vmem %s1283_s1, %s707_s11 }
   0xe   : > { %v716_v0 = vld [vmem:[%s713_s14] sm:$0xff]  ;;  %v719_v1 = vld [vmem:[%s713_s14 + $0x8] sm:$0xff]  ;;  %v722_v2 = vld [vmem:[%s713_s14 + $0x10] sm:$0xff]  ;;  %s1138_s20 = scalar_lea.vmem %s1284_s2, %s707_s11 }
   0xf   : > { %v725_v3 = vld [vmem:[%s713_s14 + $0x18] sm:$0xff]  ;;  %v197_v4 = vsel %vm196_vm0, %v716_v0, 0.0  ;;  %v198_v5 = vsel %vm196_vm0, %v719_v1, 0.0  ;;  %v200_v6 = vsel %vm196_vm0, %v722_v2, 0.0  ;;  %v734_v7 = vld [vmem:[%s713_s14 + $0x20] sm:$0xff]  ;;  %v739_v10 = vld [vmem:[%s713_s14 + $0x28] sm:$0xff] }
  0x10   : > { %v199_v8 = vadd.f32 %v198_v5, %v197_v4  ;;  %v202_v9 = vsel %vm196_vm0, %v725_v3, 0.0  ;;  %v204_v12 = vsel %vm196_vm0, %v734_v7, 0.0  ;;  %v744_v13 = vld [vmem:[%s713_s14 + $0x30] sm:$0xff]  ;;  %v206_v15 = vsel %vm196_vm0, %v739_v10, 0.0  ;;  %v749_v16 = vld [vmem:[%s713_s14 + $0x38] sm:$0xff]  ;;  %v754_v19 = vld [vmem:[%s713_s14 + $0x40] sm:$0xff] }
  0x11   : > { %v208_v18 = vsel %vm196_vm0, %v744_v13, 0.0  ;;  %v210_v21 = vsel %vm196_vm0, %v749_v16, 0.0  ;;  %v759_v22 = vld [vmem:[%s713_s14 + $0x48] sm:$0xff]  ;;  %v212_v24 = vsel %vm196_vm0, %v754_v19, 0.0  ;;  %v764_v25 = vld [vmem:[%s713_s14 + $0x50] sm:$0xff]  ;;  %v769_v28 = vld [vmem:[%s713_s14 + $0x58] sm:$0xff] }
  0x12   : > { %v201_v11 = vadd.f32 %v200_v6, %v199_v8  ;;  %v214_v27 = vsel %vm196_vm0, %v759_v22, 0.0  ;;  %v216_v30 = vsel %vm196_vm0, %v764_v25, 0.0  ;;  %v774_v31 = vld [vmem:[%s713_s14 + $0x60] sm:$0xff]  ;;  %v218_v33 = vsel %vm196_vm0, %v769_v28, 0.0  ;;  %v779_v34 = vld [vmem:[%s713_s14 + $0x68] sm:$0xff]  ;;  %v784_v37 = vld [vmem:[%s713_s14 + $0x70] sm:$0xff] }
  0x13   : > { %v220_v36 = vsel %vm196_vm0, %v774_v31, 0.0  ;;  %v222_v39 = vsel %vm196_vm0, %v779_v34, 0.0  ;;  %v789_v40 = vld [vmem:[%s713_s14 + $0x78] sm:$0xff]  ;;  %v224_v42 = vsel %vm196_vm0, %v784_v37, 0.0  ;;  %v794_v43 = vld [vmem:[%s713_s14 + $0x80] sm:$0xff]  ;;  %v799_v46 = vld [vmem:[%s713_s14 + $0x88] sm:$0xff] }
  0x14   : > { %v203_v14 = vadd.f32 %v202_v9, %v201_v11  ;;  %v226_v45 = vsel %vm196_vm0, %v789_v40, 0.0  ;;  %v228_v48 = vsel %vm196_vm0, %v794_v43, 0.0  ;;  %v804_v49 = vld [vmem:[%s713_s14 + $0x90] sm:$0xff]  ;;  %v230_v51 = vsel %vm196_vm0, %v799_v46, 0.0  ;;  %v809_v52 = vld [vmem:[%s713_s14 + $0x98] sm:$0xff]  ;;  %v814_v55 = vld [vmem:[%s713_s14 + $0xa0] sm:$0xff] }
  0x15   : > { %v232_v54 = vsel %vm196_vm0, %v804_v49, 0.0  ;;  %v234_v57 = vsel %vm196_vm0, %v809_v52, 0.0  ;;  %v819_v58 = vld [vmem:[%s713_s14 + $0xa8] sm:$0xff]  ;;  %v236_v60 = vsel %vm196_vm0, %v814_v55, 0.0  ;;  %v824_v61 = vld [vmem:[%s713_s14 + $0xb0] sm:$0xff]  ;;  %v829_v4 = vld [vmem:[%s713_s14 + $0xb8] sm:$0xff] }
  0x16   : > { %v205_v17 = vadd.f32 %v204_v12, %v203_v14  ;;  %v238_v63 = vsel %vm196_vm0, %v819_v58, 0.0  ;;  %v240_v6 = vsel %vm196_vm0, %v824_v61, 0.0  ;;  %v834_v8 = vld [vmem:[%s713_s14 + $0xc0] sm:$0xff]  ;;  %v242_v11 = vsel %vm196_vm0, %v829_v4, 0.0  ;;  %v839_v12 = vld [vmem:[%s713_s14 + $0xc8] sm:$0xff] }
  0x18   : > { %v207_v20 = vadd.f32 %v206_v15, %v205_v17  ;;  %v244_v15 = vsel %vm196_vm0, %v834_v8, 0.0  ;;  %v844_v17 = vld [vmem:[%s713_s14 + $0xd0] sm:$0xff] }
  0x1a   : > { %v209_v23 = vadd.f32 %v208_v18, %v207_v20  ;;  %v246_v20 = vsel %vm196_vm0, %v839_v12, 0.0 }
  0x1c   : > { %v211_v26 = vadd.f32 %v210_v21, %v209_v23  ;;  %v849_v21 = vld [vmem:[%s713_s14 + $0xd8] sm:$0xff] }
  0x1e   : > { %v213_v29 = vadd.f32 %v212_v24, %v211_v26  ;;  %v248_v24 = vsel %vm196_vm0, %v844_v17, 0.0  ;;  %v854_v26 = vld [vmem:[%s713_s14 + $0xe0] sm:$0xff] }
  0x20   : > { %v215_v32 = vadd.f32 %v214_v27, %v213_v29  ;;  %v250_v29 = vsel %vm196_vm0, %v849_v21, 0.0 }
  0x22   : > { %v217_v35 = vadd.f32 %v216_v30, %v215_v32  ;;  %v859_v30 = vld [vmem:[%s713_s14 + $0xe8] sm:$0xff] }
  0x24   : > { %v219_v38 = vadd.f32 %v218_v33, %v217_v35  ;;  %v252_v33 = vsel %vm196_vm0, %v854_v26, 0.0  ;;  %v864_v35 = vld [vmem:[%s713_s14 + $0xf0] sm:$0xff] }
  0x26   : > { %v221_v41 = vadd.f32 %v220_v36, %v219_v38  ;;  %v683_v38 = vmov 256.0  }
  0x27   : > { %671 = vrcp.f32 %v683_v38 }
  0x28   : > { %v223_v44 = vadd.f32 %v222_v39, %v221_v41  ;;  %v254_v39 = vsel %vm196_vm0, %v859_v30, 0.0  ;;  %v869_v41 = vld [vmem:[%s713_s14 + $0xf8] sm:$0xff] }
  0x2a   : > { %v225_v47 = vadd.f32 %v224_v42, %v223_v44  ;;  %v256_v44 = vsel %vm196_vm0, %v864_v35, 0.0 }
  0x2c   : > { %v227_v50 = vadd.f32 %v226_v45, %v225_v47  ;;  %v258_v47 = vsel %vm196_vm0, %v869_v41, 0.0 }
  0x2e   : > { %v229_v53 = vadd.f32 %v228_v48, %v227_v50  ;;  %v672_v48 = vpop.eup %671 }
  0x2f   : > { %vm271_vm1 = vweird.f32 %v672_v48 }
  0x30   : > { %v231_v56 = vadd.f32 %v230_v51, %v229_v53  ;;  %v267_v53 = vmul.f32 256.0, %v672_v48 }
  0x32   : > { %v233_v59 = vadd.f32 %v232_v54, %v231_v56 }
  0x34   : > { %v235_v62 = vadd.f32 %v234_v57, %v233_v59  ;;  %v268_v57 = vsub.f32 1.0, %v267_v53 }
  0x36   : > { %v237_v5 = vadd.f32 %v236_v60, %v235_v62  ;;  %v269_v62 = vmul.f32 %v672_v48, %v268_v57 }
  0x38   : > { %v239_v9 = vadd.f32 %v238_v63, %v237_v5  ;;  %v270_v5 = vadd.f32 %v672_v48, %v269_v62 }
  0x3a   : > { %v241_v14 = vadd.f32 %v240_v6, %v239_v9  ;;  %v875_v9 = vsel %vm271_vm1, %v672_v48, %v270_v5 }
  0x3c   : > { %v243_v18 = vadd.f32 %v242_v11, %v241_v14 }
  0x3e   : > { %v245_v23 = vadd.f32 %v244_v15, %v243_v18 }
  0x40   : > { %v247_v27 = vadd.f32 %v246_v20, %v245_v23 }
  0x42   : > { %v249_v32 = vadd.f32 %v248_v24, %v247_v27 }
  0x44   : > { %v251_v36 = vadd.f32 %v250_v29, %v249_v32 }
  0x46   : > { %v253_v42 = vadd.f32 %v252_v33, %v251_v36 }
  0x48   : > { %v255_v45 = vadd.f32 %v254_v39, %v253_v42 }
  0x4a   : > { %v257_v50 = vadd.f32 %v256_v44, %v255_v45 }
  0x4c   : > { %v259_v51 = vadd.f32 %v258_v47, %v257_v50 }
  0x4e   : > { %v260_v54 = vrot.slane %v259_v51, 4 }
  0x50   : > { %v261_v56 = vadd.f32 %v260_v54, %v259_v51 }
  0x52   : > { %v262_v59 = vrot.slane %v261_v56, 2 }
  0x54   : > { %v263_v60 = vadd.f32 %v262_v59, %v261_v56 }
  0x56   : > { %v264_v63 = vrot.slane %v263_v60, 1 }
  0x58   : > { %v265_v6 = vadd.f32 %v264_v63, %v263_v60 }
  0x5a   : > { %v878_v11 = vmul.f32 %v875_v9, %v265_v6 }
  0x5c   : > { %v882_v14 = vsub.f32 %v716_v0, %v878_v11  ;;  %v886_v15 = vsub.f32 %v719_v1, %v878_v11  ;;  %v890_v18 = vsub.f32 %v722_v2, %v878_v11  ;;  %v894_v20 = vsub.f32 %v725_v3, %v878_v11 }
  0x5d   : > { %v898_v23 = vsub.f32 %v734_v7, %v878_v11  ;;  %v908_v2 = vsub.f32 %v739_v10, %v878_v11  ;;  %v914_v7 = vsub.f32 %v744_v13, %v878_v11  ;;  %v923_v10 = vsub.f32 %v749_v16, %v878_v11 }
  0x5e   : > { %v306_v0 = vmul.f32 %v882_v14, %v882_v14  ;;  %v307_v24 = vmul.f32 %v886_v15, %v886_v15  ;;  %v308_v1 = vmul.f32 %v890_v18, %v890_v18  ;;  %v309_v3 = vmul.f32 %v894_v20, %v894_v20 }
  0x5f   : > { %v310_v27 = vmul.f32 %v898_v23, %v898_v23  ;;  %v311_v38 = vmul.f32 %v908_v2, %v908_v2  ;;  %v930_v42 = vsub.f32 %v754_v19, %v878_v11  ;;  %v312_v44 = vmul.f32 %v914_v7, %v914_v7 }
  0x60   : > { %v338_v29 = vsel %vm196_vm0, %v306_v0, 0.0  ;;  %v339_v32 = vsel %vm196_vm0, %v307_v24, 0.0  ;;  %v341_v33 = vsel %vm196_vm0, %v308_v1, 0.0  ;;  %v343_v13 = vsel %vm196_vm0, %v309_v3, 0.0 }
  0x61   : > { %v340_v36 = vadd.f32 %v339_v32, %v338_v29  ;;  %v345_v45 = vsel %vm196_vm0, %v310_v27, 0.0  ;;  %v937_v16 = vsub.f32 %v759_v22, %v878_v11  ;;  %v313_v48 = vmul.f32 %v923_v10, %v923_v10 }
  0x62   : > { %v347_v50 = vsel %vm196_vm0, %v311_v38, 0.0  ;;  %v944_v19 = vsub.f32 %v764_v25, %v878_v11  ;;  %v314_v53 = vmul.f32 %v930_v42, %v930_v42  ;;  %v349_v54 = vsel %vm196_vm0, %v312_v44, 0.0 }
  0x63   : > { %v342_v39 = vadd.f32 %v341_v33, %v340_v36  ;;  %v951_v22 = vsub.f32 %v769_v28, %v878_v11  ;;  %v315_v57 = vmul.f32 %v937_v16, %v937_v16  ;;  %v351_v59 = vsel %vm196_vm0, %v313_v48, 0.0 }
  0x64   : > { %v958_v25 = vsub.f32 %v774_v31, %v878_v11  ;;  %v316_v62 = vmul.f32 %v944_v19, %v944_v19  ;;  %v353_v63 = vsel %vm196_vm0, %v314_v53, 0.0  ;;  %v965_v28 = vsub.f32 %v779_v34, %v878_v11 }
  0x65   : > { %v344_v47 = vadd.f32 %v343_v13, %v342_v39  ;;  %v317_v6 = vmul.f32 %v951_v22, %v951_v22  ;;  %v355_v0 = vsel %vm196_vm0, %v315_v57, 0.0  ;;  %v972_v31 = vsub.f32 %v784_v37, %v878_v11 }
  0x66   : > { %v318_v1 = vmul.f32 %v958_v25, %v958_v25  ;;  %v357_v3 = vsel %vm196_vm0, %v316_v62, 0.0  ;;  %v979_v34 = vsub.f32 %v789_v40, %v878_v11  ;;  %v319_v29 = vmul.f32 %v965_v28, %v965_v28 }
  0x67   : > { %v346_v51 = vadd.f32 %v345_v45, %v344_v47  ;;  %v359_v32 = vsel %vm196_vm0, %v317_v6, 0.0  ;;  %v986_v37 = vsub.f32 %v794_v43, %v878_v11  ;;  %v320_v36 = vmul.f32 %v972_v31, %v972_v31 }
  0x68   : > { %v361_v38 = vsel %vm196_vm0, %v318_v1, 0.0  ;;  %v993_v40 = vsub.f32 %v799_v46, %v878_v11  ;;  %v321_v39 = vmul.f32 %v979_v34, %v979_v34  ;;  %v363_v44 = vsel %vm196_vm0, %v319_v29, 0.0 }
  0x69   : > { %v348_v56 = vadd.f32 %v347_v50, %v346_v51  ;;  %v1000_v43 = vsub.f32 %v804_v49, %v878_v11  ;;  %v322_v47 = vmul.f32 %v986_v37, %v986_v37  ;;  %v365_v48 = vsel %vm196_vm0, %v320_v36, 0.0 }
  0x6a   : > { %v1007_v46 = vsub.f32 %v809_v52, %v878_v11  ;;  %v323_v51 = vmul.f32 %v993_v40, %v993_v40  ;;  %v367_v53 = vsel %vm196_vm0, %v321_v39, 0.0  ;;  %v1014_v49 = vsub.f32 %v814_v55, %v878_v11 }
  0x6b   : > { %v350_v60 = vadd.f32 %v349_v54, %v348_v56  ;;  %v324_v56 = vmul.f32 %v1000_v43, %v1000_v43  ;;  %v369_v57 = vsel %vm196_vm0, %v322_v47, 0.0  ;;  %v1021_v52 = vsub.f32 %v819_v58, %v878_v11 }
  0x6c   : > { %v371_v62 = vsel %vm196_vm0, %v323_v51, 0.0  ;;  %v1028_v55 = vsub.f32 %v824_v61, %v878_v11  ;;  %v1035_v58 = vsub.f32 %v829_v4, %v878_v11  ;;  %v1042_v61 = vsub.f32 %v834_v8, %v878_v11 }
  0x6d   : > { %v352_v5 = vadd.f32 %v351_v59, %v350_v60  ;;  %v325_v60 = vmul.f32 %v1007_v46, %v1007_v46  ;;  %v373_v6 = vsel %vm196_vm0, %v324_v56, 0.0  ;;  %v1049_v4 = vsub.f32 %v839_v12, %v878_v11 }
  0x6e   : > { %v1056_v8 = vsub.f32 %v844_v17, %v878_v11  ;;  %v1063_v12 = vsub.f32 %v849_v21, %v878_v11  ;;  %v1070_v17 = vsub.f32 %v854_v26, %v878_v11  ;;  %v1077_v21 = vsub.f32 %v859_v30, %v878_v11 }
  0x6f   : > { %v354_v24 = vadd.f32 %v353_v63, %v352_v5  ;;  %v326_v5 = vmul.f32 %v1014_v49, %v1014_v49  ;;  %v375_v1 = vsel %vm196_vm0, %v325_v60, 0.0  ;;  %v1084_v26 = vsub.f32 %v864_v35, %v878_v11 }
  0x70   : > { %v1091_v30 = vsub.f32 %v869_v41, %v878_v11 }
  0x71   : > { %v356_v27 = vadd.f32 %v355_v0, %v354_v24  ;;  %v327_v24 = vmul.f32 %v1021_v52, %v1021_v52  ;;  %v377_v29 = vsel %vm196_vm0, %v326_v5, 0.0  ;;  %v336_v35 = vmul.f32 %v1084_v26, %v1084_v26 }
  0x73   : > { %v358_v33 = vadd.f32 %v357_v3, %v356_v27  ;;  %v328_v27 = vmul.f32 %v1028_v55, %v1028_v55  ;;  %v379_v36 = vsel %vm196_vm0, %v327_v24, 0.0  ;;  %v397_v41 = vsel %vm196_vm0, %v336_v35, 0.0  ;;  %v485_v35 = vld [vmem:[%s1109_s17 + $0x10] sm:$0xff] }
  0x75   : > { %v360_v13 = vadd.f32 %v359_v32, %v358_v33  ;;  %v329_v33 = vmul.f32 %v1035_v58, %v1035_v58  ;;  %v381_v39 = vsel %vm196_vm0, %v328_v27, 0.0 }
  0x77   : > { %v362_v45 = vadd.f32 %v361_v38, %v360_v13  ;;  %v330_v13 = vmul.f32 %v1042_v61, %v1042_v61  ;;  %v383_v47 = vsel %vm196_vm0, %v329_v33, 0.0 }
  0x79   : > { %v364_v50 = vadd.f32 %v363_v44, %v362_v45  ;;  %v331_v45 = vmul.f32 %v1049_v4, %v1049_v4  ;;  %v385_v51 = vsel %vm196_vm0, %v330_v13, 0.0 }
  0x7b   : > { %v366_v54 = vadd.f32 %v365_v48, %v364_v50  ;;  %v332_v50 = vmul.f32 %v1056_v8, %v1056_v8  ;;  %v387_v56 = vsel %vm196_vm0, %v331_v45, 0.0 }
  0x7d   : > { %v368_v59 = vadd.f32 %v367_v53, %v366_v54  ;;  %v333_v54 = vmul.f32 %v1063_v12, %v1063_v12  ;;  %v389_v60 = vsel %vm196_vm0, %v332_v50, 0.0 }
  0x7f   : > { %v370_v63 = vadd.f32 %v369_v57, %v368_v59  ;;  %v334_v59 = vmul.f32 %v1070_v17, %v1070_v17  ;;  %v391_v5 = vsel %vm196_vm0, %v333_v54, 0.0 }
  0x81   : > { %v372_v0 = vadd.f32 %v371_v62, %v370_v63  ;;  %v335_v63 = vmul.f32 %v1077_v21, %v1077_v21 }
  0x83   : > { %v374_v3 = vadd.f32 %v373_v6, %v372_v0  ;;  %v393_v0 = vsel %vm196_vm0, %v334_v59, 0.0 }
  0x85   : > { %v376_v32 = vadd.f32 %v375_v1, %v374_v3  ;;  %v337_v1 = vmul.f32 %v1091_v30, %v1091_v30  ;;  %v395_v3 = vsel %vm196_vm0, %v335_v63, 0.0 }
  0x87   : > { %v378_v38 = vadd.f32 %v377_v29, %v376_v32  ;;  %v399_v29 = vsel %vm196_vm0, %v337_v1, 0.0 }
  0x89   : > { %v380_v44 = vadd.f32 %v379_v36, %v378_v38 }
  0x8b   : > { %v382_v48 = vadd.f32 %v381_v39, %v380_v44 }
  0x8d   : > { %v384_v53 = vadd.f32 %v383_v47, %v382_v48 }
  0x8f   : > { %v386_v57 = vadd.f32 %v385_v51, %v384_v53 }
  0x91   : > { %v388_v62 = vadd.f32 %v387_v56, %v386_v57 }
  0x93   : > { %v390_v6 = vadd.f32 %v389_v60, %v388_v62 }
  0x95   : > { %v392_v24 = vadd.f32 %v391_v5, %v390_v6  ;;  %v483_v5 = vld [vmem:[%s1109_s17] sm:$0xff]  ;;  %v484_v6 = vld [vmem:[%s1109_s17 + $0x8] sm:$0xff] }
  0x97   : > { %v394_v27 = vadd.f32 %v393_v0, %v392_v24 }
  0x99   : > { %v396_v11 = vadd.f32 %v395_v3, %v394_v27  ;;  %v486_v27 = vld [vmem:[%s1109_s17 + $0x18] sm:$0xff] }
  0x9b   : > { %v398_v32 = vadd.f32 %v397_v41, %v396_v11  ;;  %v487_v41 = vld [vmem:[%s1109_s17 + $0x20] sm:$0xff] }
  0x9d   : > { %v400_v33 = vadd.f32 %v399_v29, %v398_v32  ;;  %v488_v29 = vld [vmem:[%s1109_s17 + $0x28] sm:$0xff] }
  0x9f   : > { %v401_v36 = vrot.slane %v400_v33, 4 }
  0xa1   : > { %v402_v38 = vadd.f32 %v401_v36, %v400_v33 }
  0xa3   : > { %v403_v13 = vrot.slane %v402_v38, 2 }
  0xa5   : > { %v404_v39 = vadd.f32 %v403_v13, %v402_v38  ;;  %v489_v38 = vld [vmem:[%s1109_s17 + $0x30] sm:$0xff] }
  0xa7   : > { %v405_v44 = vrot.slane %v404_v39, 1 }
  0xa9   : > { %v406_v45 = vadd.f32 %v405_v44, %v404_v39  ;;  %v490_v39 = vld [vmem:[%s1109_s17 + $0x38] sm:$0xff] }
  0xab   : > { %v407_v47 = vmul.f32 %v406_v45, %v875_v9 }
  0xad   : > { %v408_v48 = vadd.f32 1e-05, %v407_v47 }
  0xaf   : > { %673 = vrsqrt.f32 %v408_v48  ;;  %vm415_vm2 = vweird.f32 %v408_v48 }
  0xb5   : > { %v674_v50 = vpop.eup %673 }
  0xb6   : > { %v410_v51 = vmul.f32 %v674_v50, %v408_v48  ;;  %vm416_vm3 = vweird.f32 %v674_v50 }
  0xb7   : > { %vm417_vm4 = vmor %vm415_vm2, %vm416_vm3 }
  0xb8   : > { %v411_v53 = vmul.f32 %v674_v50, %v410_v51  ;;  %v491_v51 = vld [vmem:[%s1109_s17 + $0x40] sm:$0xff] }
  0xba   : > { %v412_v54 = vmul.f32 0.5, %v411_v53 }
  0xbc   : > { %v413_v56 = vsub.f32 1.5, %v412_v54 }
  0xbe   : > { %v414_v57 = vmul.f32 %v674_v50, %v413_v56  ;;  %v492_v56 = vld [vmem:[%s1109_s17 + $0x48] sm:$0xff] }
  0xc0   : > { %v1111_v9 = vsel %vm417_vm4, %v674_v50, %v414_v57 }
  0xc1   : > { %v419_v59 = vmul.f32 %v1111_v9, %v882_v14  ;;  %v420_v60 = vmul.f32 %v1111_v9, %v886_v15  ;;  %v421_v62 = vmul.f32 %v1111_v9, %v890_v18  ;;  %v422_v63 = vmul.f32 %v1111_v9, %v894_v20 }
  0xc2   : > { %v423_v0 = vmul.f32 %v1111_v9, %v898_v23  ;;  %v424_v14 = vmul.f32 %v1111_v9, %v908_v2  ;;  %v425_v15 = vmul.f32 %v1111_v9, %v914_v7  ;;  %v426_v24 = vmul.f32 %v1111_v9, %v923_v10 }
  0xc3   : > { %v451_v18 = vmax.f32 %v419_v59, 0.0  ;;  %v452_v1 = vmax.f32 %v420_v60, 0.0  ;;  %v453_v20 = vmax.f32 %v421_v62, 0.0  ;;  %v454_v3 = vmax.f32 %v422_v63, 0.0  ;;  %v493_v59 = vld [vmem:[%s1109_s17 + $0x50] sm:$0xff]  ;;  %v494_v62 = vld [vmem:[%s1109_s17 + $0x58] sm:$0xff] }
  0xc4   : > { %v455_v23 = vmax.f32 %v423_v0, 0.0  ;;  %v456_v2 = vmax.f32 %v424_v14, 0.0  ;;  %v457_v32 = vmax.f32 %v425_v15, 0.0  ;;  %v458_v13 = vmax.f32 %v426_v24, 0.0 }
  0xc5   : > { %v515_v7 = vadd.f32 %v483_v5, %v451_v18  ;;  %v516_v11 = vadd.f32 %v484_v6, %v452_v1  ;;  %v517_v10 = vadd.f32 %v485_v35, %v453_v20  ;;  %v518_v33 = vadd.f32 %v486_v27, %v454_v3  ;;  %v495_v6 = vld [vmem:[%s1109_s17 + $0x60] sm:$0xff]  ;;  %v497_v20 = vld [vmem:[%s1109_s17 + $0x70] sm:$0xff] }
  0xc6   : > { %v519_v36 = vadd.f32 %v487_v41, %v455_v23  ;;  %v427_v44 = vmul.f32 %v1111_v9, %v930_v42  ;;  %v428_v45 = vmul.f32 %v1111_v9, %v937_v16  ;;  %v429_v47 = vmul.f32 %v1111_v9, %v944_v19  ;;  %v498_v41 = vld [vmem:[%s1109_s17 + $0x78] sm:$0xff] }
  0xc7   : > { %547 = vst.msk [vmem:[%s1138_s20] sm:$0xff] %vm196_vm0, %v515_v7  ;;  %v430_v48 = vmul.f32 %v1111_v9, %v951_v22  ;;  %v520_v50 = vadd.f32 %v488_v29, %v456_v2  ;;  %v431_v53 = vmul.f32 %v1111_v9, %v958_v25  ;;  %v432_v42 = vmul.f32 %v1111_v9, %v965_v28  ;;  %v499_v2 = vld [vmem:[%s1109_s17 + $0x80] sm:$0xff] }
  0xc8   : > { %548 = vst.msk [vmem:[%s1138_s20 + $0x8] sm:$0xff] %vm196_vm0, %v516_v11  ;;  %v433_v16 = vmul.f32 %v1111_v9, %v972_v31  ;;  %v521_v19 = vadd.f32 %v489_v38, %v457_v32  ;;  %v459_v22 = vmax.f32 %v427_v44, 0.0  ;;  %v460_v54 = vmax.f32 %v428_v45, 0.0  ;;  %v503_v45 = vld [vmem:[%s1109_s17 + $0xa0] sm:$0xff] }
  0xc9   : > { %549 = vst.msk [vmem:[%s1138_s20 + $0x10] sm:$0xff] %vm196_vm0, %v517_v10  ;;  %v461_v57 = vmax.f32 %v429_v47, 0.0  ;;  %v522_v25 = vadd.f32 %v490_v39, %v458_v13  ;;  %v462_v60 = vmax.f32 %v430_v48, 0.0  ;;  %v434_v28 = vmul.f32 %v1111_v9, %v979_v34  ;;  %v496_v34 = vld [vmem:[%s1109_s17 + $0x68] sm:$0xff]  ;;  %v502_v13 = vld [vmem:[%s1109_s17 + $0x98] sm:$0xff] }
  0xca   : > { %550 = vst.msk [vmem:[%s1138_s20 + $0x18] sm:$0xff] %vm196_vm0, %v518_v33  ;;  %v523_v31 = vadd.f32 %v491_v51, %v459_v22  ;;  %v463_v63 = vmax.f32 %v431_v53, 0.0  ;;  %v524_v5 = vadd.f32 %v492_v56, %v460_v54  ;;  %v464_v35 = vmax.f32 %v432_v42, 0.0  ;;  %v500_v10 = vld [vmem:[%s1109_s17 + $0x88] sm:$0xff]  ;;  %v501_v33 = vld [vmem:[%s1109_s17 + $0x90] sm:$0xff]  ;;  %v506_v22 = vld [vmem:[%s1109_s17 + $0xb8] sm:$0xff] }
  0xcb   : > { %551 = vst.msk [vmem:[%s1138_s20 + $0x20] sm:$0xff] %vm196_vm0, %v519_v36  ;;  %v465_v0 = vmax.f32 %v433_v16, 0.0  ;;  %v525_v14 = vadd.f32 %v493_v59, %v461_v57  ;;  %v435_v15 = vmul.f32 %v1111_v9, %v986_v37  ;;  %v436_v24 = vmul.f32 %v1111_v9, %v993_v40  ;;  %v505_v42 = vld [vmem:[%s1109_s17 + $0xb0] sm:$0xff]  ;;  %v507_v57 = vld [vmem:[%s1109_s17 + $0xc0] sm:$0xff] }
  0xcc   : > { %552 = vst.msk [vmem:[%s1138_s20 + $0x28] sm:$0xff] %vm196_vm0, %v520_v50  ;;  %v437_v18 = vmul.f32 %v1111_v9, %v1000_v43  ;;  %v526_v1 = vadd.f32 %v494_v62, %v462_v60  ;;  %v466_v3 = vmax.f32 %v434_v28, 0.0  ;;  %v438_v27 = vmul.f32 %v1111_v9, %v1007_v46  ;;  %v504_v50 = vld [vmem:[%s1109_s17 + $0xa8] sm:$0xff]  ;;  %v509_v62 = vld [vmem:[%s1109_s17 + $0xd0] sm:$0xff] }
  0xcd   : > { %553 = vst.msk [vmem:[%s1138_s20 + $0x30] sm:$0xff] %vm196_vm0, %v521_v19  ;;  %v527_v37 = vadd.f32 %v495_v6, %v463_v63  ;;  %v467_v40 = vmax.f32 %v435_v15, 0.0  ;;  %v439_v43 = vmul.f32 %v1111_v9, %v1014_v49  ;;  %v528_v23 = vadd.f32 %v496_v34, %v464_v35  ;;  %v508_v60 = vld [vmem:[%s1109_s17 + $0xc8] sm:$0xff]  ;;  %v510_v6 = vld [vmem:[%s1109_s17 + $0xd8] sm:$0xff] }
  0xce   : > { %554 = vst.msk [vmem:[%s1138_s20 + $0x38] sm:$0xff] %vm196_vm0, %v522_v25  ;;  %v468_v7 = vmax.f32 %v436_v24, 0.0  ;;  %v440_v46 = vmul.f32 %v1111_v9, %v1021_v52  ;;  %v529_v11 = vadd.f32 %v497_v20, %v465_v0  ;;  %v469_v29 = vmax.f32 %v437_v18, 0.0  ;;  %v511_v0 = vld [vmem:[%s1109_s17 + $0xe0] sm:$0xff]  ;;  %v513_v24 = vld [vmem:[%s1109_s17 + $0xf0] sm:$0xff]  ;;  %v514_v20 = vld [vmem:[%s1109_s17 + $0xf8] sm:$0xff] }
  0xcf   : > { %555 = vst.msk [vmem:[%s1138_s20 + $0x40] sm:$0xff] %vm196_vm0, %v523_v31  ;;  %v441_v49 = vmul.f32 %v1111_v9, %v1028_v55  ;;  %v530_v32 = vadd.f32 %v498_v41, %v466_v3  ;;  %v470_v36 = vmax.f32 %v438_v27, 0.0  ;;  %v442_v52 = vmul.f32 %v1111_v9, %v1035_v58 }
  0xd0   : > { %556 = vst.msk [vmem:[%s1138_s20 + $0x48] sm:$0xff] %vm196_vm0, %v524_v5  ;;  %v531_v38 = vadd.f32 %v499_v2, %v467_v40  ;;  %v471_v39 = vmax.f32 %v439_v43, 0.0  ;;  %v443_v55 = vmul.f32 %v1111_v9, %v1042_v61  ;;  %v532_v44 = vadd.f32 %v500_v10, %v468_v7 }
  0xd1   : > { %557 = vst.msk [vmem:[%s1138_s20 + $0x50] sm:$0xff] %vm196_vm0, %v525_v14  ;;  %v472_v47 = vmax.f32 %v440_v46, 0.0  ;;  %v444_v58 = vmul.f32 %v1111_v9, %v1049_v4  ;;  %v533_v48 = vadd.f32 %v501_v33, %v469_v29  ;;  %v473_v51 = vmax.f32 %v441_v49, 0.0 }
  0xd2   : > { %558 = vst.msk [vmem:[%s1138_s20 + $0x58] sm:$0xff] %vm196_vm0, %v526_v1  ;;  %v445_v61 = vmul.f32 %v1111_v9, %v1056_v8  ;;  %v534_v53 = vadd.f32 %v502_v13, %v470_v36  ;;  %v474_v16 = vmax.f32 %v442_v52, 0.0  ;;  %v446_v4 = vmul.f32 %v1111_v9, %v1063_v12 }
  0xd3   : > { %559 = vst.msk [vmem:[%s1138_s20 + $0x60] sm:$0xff] %vm196_vm0, %v527_v37  ;;  %v535_v19 = vadd.f32 %v503_v45, %v471_v39  ;;  %v475_v54 = vmax.f32 %v443_v55, 0.0  ;;  %v447_v8 = vmul.f32 %v1111_v9, %v1070_v17  ;;  %v536_v56 = vadd.f32 %v504_v50, %v472_v47 }
  0xd4   : > { %560 = vst.msk [vmem:[%s1138_s20 + $0x68] sm:$0xff] %vm196_vm0, %v528_v23  ;;  %v476_v25 = vmax.f32 %v444_v58, 0.0  ;;  %v448_v12 = vmul.f32 %v1111_v9, %v1077_v21  ;;  %v537_v59 = vadd.f32 %v505_v42, %v473_v51  ;;  %v477_v28 = vmax.f32 %v445_v61, 0.0 }
  0xd5   : > { %561 = vst.msk [vmem:[%s1138_s20 + $0x70] sm:$0xff] %vm196_vm0, %v529_v11  ;;  %v449_v17 = vmul.f32 %v1111_v9, %v1084_v26  ;;  %v538_v31 = vadd.f32 %v506_v22, %v474_v16  ;;  %v478_v63 = vmax.f32 %v446_v4, 0.0  ;;  %v450_v21 = vmul.f32 %v1111_v9, %v1091_v30  ;;  %v512_v30 = vld [vmem:[%s1109_s17 + $0xe8] sm:$0xff] }
  0xd6   : > { %562 = vst.msk [vmem:[%s1138_s20 + $0x78] sm:$0xff] %vm196_vm0, %v530_v32  ;;  %v539_v5 = vadd.f32 %v507_v57, %v475_v54  ;;  %v479_v35 = vmax.f32 %v447_v8, 0.0  ;;  %v540_v26 = vadd.f32 %v508_v60, %v476_v25  ;;  %v480_v14 = vmax.f32 %v448_v12, 0.0 }
  0xd7   : > { %563 = vst.msk [vmem:[%s1138_s20 + $0x80] sm:$0xff] %vm196_vm0, %v531_v38  ;;  %v541_v34 = vadd.f32 %v509_v62, %v477_v28  ;;  %v481_v9 = vmax.f32 %v449_v17, 0.0  ;;  %v542_v15 = vadd.f32 %v510_v6, %v478_v63  ;;  %v482_v18 = vmax.f32 %v450_v21, 0.0 }
  0xd8   : > { %564 = vst.msk [vmem:[%s1138_s20 + $0x88] sm:$0xff] %vm196_vm0, %v532_v44  ;;  %v543_v1 = vadd.f32 %v511_v0, %v479_v35  ;;  %v544_v3 = vadd.f32 %v512_v30, %v480_v14 }
  0xd9   : > { %565 = vst.msk [vmem:[%s1138_s20 + $0x90] sm:$0xff] %vm196_vm0, %v533_v48  ;;  %v545_v27 = vadd.f32 %v513_v24, %v481_v9  ;;  %v546_v37 = vadd.f32 %v514_v20, %v482_v18 }
  0xda   : > { %566 = vst.msk [vmem:[%s1138_s20 + $0x98] sm:$0xff] %vm196_vm0, %v534_v53 }
  0xdb   : > { %567 = vst.msk [vmem:[%s1138_s20 + $0xa0] sm:$0xff] %vm196_vm0, %v535_v19 }
  0xdc   : > { %568 = vst.msk [vmem:[%s1138_s20 + $0xa8] sm:$0xff] %vm196_vm0, %v536_v56 }
  0xdd   : > { %569 = vst.msk [vmem:[%s1138_s20 + $0xb0] sm:$0xff] %vm196_vm0, %v537_v59 }
  0xde   : > { %570 = vst.msk [vmem:[%s1138_s20 + $0xb8] sm:$0xff] %vm196_vm0, %v538_v31 }
  0xdf   : > { %571 = vst.msk [vmem:[%s1138_s20 + $0xc0] sm:$0xff] %vm196_vm0, %v539_v5 }
  0xe0   : > { %572 = vst.msk [vmem:[%s1138_s20 + $0xc8] sm:$0xff] %vm196_vm0, %v540_v26 }
  0xe1   : > { %573 = vst.msk [vmem:[%s1138_s20 + $0xd0] sm:$0xff] %vm196_vm0, %v541_v34 }
  0xe2   : > { %574 = vst.msk [vmem:[%s1138_s20 + $0xd8] sm:$0xff] %vm196_vm0, %v542_v15 }
  0xe3   : > { %575 = vst.msk [vmem:[%s1138_s20 + $0xe0] sm:$0xff] %vm196_vm0, %v543_v1 }
  0xe4   : > { %576 = vst.msk [vmem:[%s1138_s20 + $0xe8] sm:$0xff] %vm196_vm0, %v544_v3 }
  0xe5   : > { %577 = vst.msk [vmem:[%s1138_s20 + $0xf0] sm:$0xff] %vm196_vm0, %v545_v27 }
  0xe6   : > { %578 = vst.msk [vmem:[%s1138_s20 + $0xf8] sm:$0xff] %vm196_vm0, %v546_v37 }
  0xe7 PF: > { %s12_s9 = sadd.s32 1, %s681_s9  }
  0xe8   : > { %p9_p4 = scmp.ge.s32.totalorder %s12_s9, 4  }
  0xea   :  { %11 = sbr.rel (!%p9_p4) target bundleno = 1 (0x1), region = 61 }

// kernel: _lambda_.55
= control target key start
LH: loop header
LB: loop body
LE: loop exit
PB: predicated region body
PF: predicated region fallthrough
CT: control target
= control target key end

     0   :  { %s1013_s9 = smov 0   ;;  %s1015_s10 = smov 0   ;;  %s1133_s0 = inlined_call_operand.vmem [shape: bf16[512,72], index: 0, kind: input, shape index: {}]   ;;  %s1134_s1 = inlined_call_operand.vmem [shape: bf16[72,128], index: 1, kind: input, shape index: {}]   ;;  %s1135_s2 = inlined_call_operand.vmem [shape: f32[512,128], index: 2, kind: output, shape index: {}]  }
   0x1   :  { %s1017_s11 = smov 0  }
   0x2 LB: > { %s31_s12 = sadd.s32 1, %s992_s10  ;;  %p812_p0 = scmp.ge.s32.totalorder %s996_s11, 1  ;;  %s996_s11 = sphi %s1017_s11, %s12_s11   ;;  %s992_s10 = sphi %s1015_s10, %s1137_s10   ;;  %s988_s9 = sphi %s1013_s9, %s1136_s9  }
   0x3   : > { %p33_p1 = scmp.ge.s32.totalorder %s31_s12, 2  ;;  %p155_p2 = scmp.lt.s32.totalorder %s996_s11, 3 }
   0x5   : > { %s1139_s12 = smov (%p33_p1, %s31_s12), 0  ;;  %p156_p3 = pnand %p812_p0, %p155_p2 }
   0x6   : > { %s813_s15 = sshll.u32 (!%p156_p3), %s988_s9, 5 }
   0x7   : > { %159 = sbr.rel (%p156_p3) target bundleno = 228 (0xe4), region = 28  ;;  %p192_p4 = scmp.lt.s32.totalorder (!%p156_p3), %s813_s15, 63 }
   0xc   : > { %v327_v0 = vld [vmem:[%s1134_s1 + $0x20] sm:$0xf]  ;;  %vm484_vm0 = vcmask 1043456   ;;  %v934_v4 = vld [vmem:[%s1134_s1 + $0x18] sm:$0xff]  ;;  %v933_v5 = vld [vmem:[%s1134_s1 + $0x10] sm:$0xff]  ;;  %s1141_s15 = smov (!%p192_p4, %s813_s15), 63 }
   0xd   : > { %v425_v1 = vunpack.c.l.b16 %v327_v0  ;;  %v932_v6 = vld [vmem:[%s1134_s1 + $0x8] sm:$0xff]  ;;  %s814_s22 = sshll.u32 %s1141_s15, 2  ;;  %v931_v7 = vld [vmem:[%s1134_s1] sm:$0xff]  ;;  %vm435_vm1 = vcmask 588800   ;;  %s816_s28 = sshll.u32 %s1141_s15, 3 }
   0xe   : > { %s1052_s27 = scalar_lea.vmem %s1133_s0, %s814_s22  ;;  %s1090_s3 = scalar_lea.vmem %s1135_s2, %s816_s28 }
   0xf   : > { %v430_v2 = vpack.c.b16 %v425_v1, %v425_v1  ;;  %v915_v8 = vld [vmem:[%s1052_s27] sm:$0xff]  ;;  %v916_v12 = vld [vmem:[%s1052_s27 + $0x8] sm:$0xff]  ;;  %v917_v16 = vld [vmem:[%s1052_s27 + $0x10] sm:$0xff] }
  0x10   : > { %v919_v9 = vld [vmem:[%s1052_s27 + $0x20] sm:$0xff]  ;;  %v920_v13 = vld [vmem:[%s1052_s27 + $0x28] sm:$0xff]  ;;  %v921_v17 = vld [vmem:[%s1052_s27 + $0x30] sm:$0xff] }
  0x11   : > { %v486_v3 = vsel %vm484_vm0, %v430_v2, 0  ;;  %v923_v10 = vld [vmem:[%s1052_s27 + $0x40] sm:$0xff]  ;;  %v924_v14 = vld [vmem:[%s1052_s27 + $0x48] sm:$0xff]  ;;  %v925_v18 = vld [vmem:[%s1052_s27 + $0x50] sm:$0xff] }
  0x12   : > { %491 = vmatpush.bf16.msra.mxu0 %v486_v3  ;;  %935 = vmatpush.bf16.msra.mxu1 %v486_v3  ;;  %v927_v11 = vld [vmem:[%s1052_s27 + $0x60] sm:$0xff]  ;;  %v928_v15 = vld [vmem:[%s1052_s27 + $0x68] sm:$0xff]  ;;  %v929_v19 = vld [vmem:[%s1052_s27 + $0x70] sm:$0xff] }
  0x13   : > { %936 = vmatpush.bf16.msra.mxu2 %v486_v3  ;;  %937 = vmatpush.bf16.msra.mxu3 %v486_v3  ;;  %v918_v20 = vld [vmem:[%s1052_s27 + $0x18] sm:$0xff] }
  0x14   : > { %v922_v21 = vld [vmem:[%s1052_s27 + $0x38] sm:$0xff] }
  0x15   : > { %v926_v22 = vld [vmem:[%s1052_s27 + $0x58] sm:$0xff] }
  0x16   : > { %492 = vmatpush.bf16.msra.mxu0 %v934_v4  ;;  %938 = vmatpush.bf16.msra.mxu1 %v934_v4  ;;  %v930_v23 = vld [vmem:[%s1052_s27 + $0x78] sm:$0xff] }
  0x17   : > { %939 = vmatpush.bf16.msra.mxu2 %v934_v4  ;;  %940 = vmatpush.bf16.msra.mxu3 %v934_v4 }
  0x1a   : > { %493 = vmatpush.bf16.msra.mxu0 %v933_v5  ;;  %941 = vmatpush.bf16.msra.mxu1 %v933_v5 }
  0x1b   : > { %942 = vmatpush.bf16.msra.mxu2 %v933_v5  ;;  %943 = vmatpush.bf16.msra.mxu3 %v933_v5 }
  0x1e   : > { %494 = vmatpush.bf16.msra.mxu0 %v932_v6  ;;  %944 = vmatpush.bf16.msra.mxu1 %v932_v6 }
  0x1f   : > { %945 = vmatpush.bf16.msra.mxu2 %v932_v6  ;;  %946 = vmatpush.bf16.msra.mxu3 %v932_v6 }
  0x22   : > { %495 = vmatpush.bf16.msra.mxu0 %v931_v7  ;;  %947 = vmatpush.bf16.msra.mxu1 %v931_v7 }
  0x23   : > { %948 = vmatpush.bf16.msra.mxu2 %v931_v7  ;;  %949 = vmatpush.bf16.msra.mxu3 %v931_v7 }
  0x25   : > { %897 = vmatmul.msk.bf16.vlgmr.msra.gmra.mxu0 %vm435_vm1, %v915_v8  ;;  %901 = vmatmul.msk.bf16.vlgmr.msra.gmra.mxu1 %vm435_vm1, %v919_v9 }
  0x26   : > { %905 = vmatmul.msk.bf16.vlgmr.msra.gmra.mxu2 %vm435_vm1, %v923_v10  ;;  %909 = vmatmul.msk.bf16.vlgmr.msra.gmra.mxu3 %vm435_vm1, %v927_v11 }
  0x35   : > { %898 = vmatmul.msk.bf16.gmra.mxu0 %vm435_vm1, %v916_v12  ;;  %902 = vmatmul.msk.bf16.gmra.mxu1 %vm435_vm1, %v920_v13 }
  0x36   : > { %906 = vmatmul.msk.bf16.gmra.mxu2 %vm435_vm1, %v924_v14  ;;  %910 = vmatmul.msk.bf16.gmra.mxu3 %vm435_vm1, %v928_v15 }
  0x45   : > { %899 = vmatmul.msk.bf16.gmra.mxu0 %vm435_vm1, %v917_v16  ;;  %903 = vmatmul.msk.bf16.gmra.mxu1 %vm435_vm1, %v921_v17 }
  0x46   : > { %907 = vmatmul.msk.bf16.gmra.mxu2 %vm435_vm1, %v925_v18  ;;  %911 = vmatmul.msk.bf16.gmra.mxu3 %vm435_vm1, %v929_v19 }
  0x55   : > { %900 = vmatmul.msk.bf16.gmra.mxu0 %vm435_vm1, %v918_v20  ;;  %904 = vmatmul.msk.bf16.gmra.mxu1 %vm435_vm1, %v922_v21 }
  0x56   : > { %908 = vmatmul.msk.bf16.gmra.mxu2 %vm435_vm1, %v926_v22  ;;  %912 = vmatmul.msk.bf16.gmra.mxu3 %vm435_vm1, %v930_v23 }
  0xa2   : > { %v497_v24 = vpop.f32.mrf.mxu0  ;;  %v517_v25 = vpop.f32.mrf.mxu1 }
  0xa3   : > { %676 = vst [vmem:[%s1090_s3] sm:$0xff] %v497_v24 }
  0xa4   : > { %684 = vst [vmem:[%s1090_s3 + $0x40] sm:$0xff] %v517_v25 }
  0xa9   : > { %v537_v26 = vpop.f32.mrf.mxu2  ;;  %v557_v27 = vpop.f32.mrf.mxu3 }
  0xaa   : > { %692 = vst [vmem:[%s1090_s3 + $0x80] sm:$0xff] %v537_v26  ;;  %v499_v28 = vpop.f32.mrf.mxu0  ;;  %v519_v29 = vpop.f32.mrf.mxu1 }
  0xab   : > { %700 = vst [vmem:[%s1090_s3 + $0xc0] sm:$0xff] %v557_v27 }
  0xac   : > { %677 = vst [vmem:[%s1090_s3 + $0x8] sm:$0xff] %v499_v28 }
  0xad   : > { %685 = vst [vmem:[%s1090_s3 + $0x48] sm:$0xff] %v519_v29 }
  0xb1   : > { %v539_v30 = vpop.f32.mrf.mxu2  ;;  %v559_v31 = vpop.f32.mrf.mxu3 }
  0xb2   : > { %693 = vst [vmem:[%s1090_s3 + $0x88] sm:$0xff] %v539_v30  ;;  %v502_v32 = vpop.f32.mrf.mxu0  ;;  %v522_v33 = vpop.f32.mrf.mxu1 }
  0xb3   : > { %701 = vst [vmem:[%s1090_s3 + $0xc8] sm:$0xff] %v559_v31 }
  0xb4   : > { %678 = vst [vmem:[%s1090_s3 + $0x10] sm:$0xff] %v502_v32 }
  0xb5   : > { %686 = vst [vmem:[%s1090_s3 + $0x50] sm:$0xff] %v522_v33 }
  0xb9   : > { %v542_v34 = vpop.f32.mrf.mxu2  ;;  %v562_v35 = vpop.f32.mrf.mxu3 }
  0xba   : > { %694 = vst [vmem:[%s1090_s3 + $0x90] sm:$0xff] %v542_v34  ;;  %v504_v36 = vpop.f32.mrf.mxu0  ;;  %v524_v37 = vpop.f32.mrf.mxu1 }
  0xbb   : > { %702 = vst [vmem:[%s1090_s3 + $0xd0] sm:$0xff] %v562_v35 }
  0xbc   : > { %679 = vst [vmem:[%s1090_s3 + $0x18] sm:$0xff] %v504_v36 }
  0xbd   : > { %687 = vst [vmem:[%s1090_s3 + $0x58] sm:$0xff] %v524_v37 }
  0xc1   : > { %v544_v38 = vpop.f32.mrf.mxu2  ;;  %v564_v39 = vpop.f32.mrf.mxu3 }
  0xc2   : > { %695 = vst [vmem:[%s1090_s3 + $0x98] sm:$0xff] %v544_v38  ;;  %v507_v40 = vpop.f32.mrf.mxu0  ;;  %v527_v41 = vpop.f32.mrf.mxu1 }
  0xc3   : > { %703 = vst [vmem:[%s1090_s3 + $0xd8] sm:$0xff] %v564_v39 }
  0xc4   : > { %680 = vst [vmem:[%s1090_s3 + $0x20] sm:$0xff] %v507_v40 }
  0xc5   : > { %688 = vst [vmem:[%s1090_s3 + $0x60] sm:$0xff] %v527_v41 }
  0xc9   : > { %v547_v42 = vpop.f32.mrf.mxu2  ;;  %v567_v43 = vpop.f32.mrf.mxu3 }
  0xca   : > { %696 = vst [vmem:[%s1090_s3 + $0xa0] sm:$0xff] %v547_v42  ;;  %v509_v44 = vpop.f32.mrf.mxu0  ;;  %v529_v45 = vpop.f32.mrf.mxu1 }
  0xcb   : > { %704 = vst [vmem:[%s1090_s3 + $0xe0] sm:$0xff] %v567_v43 }
  0xcc   : > { %681 = vst [vmem:[%s1090_s3 + $0x28] sm:$0xff] %v509_v44 }
  0xcd   : > { %689 = vst [vmem:[%s1090_s3 + $0x68] sm:$0xff] %v529_v45 }
  0xd1   : > { %v549_v46 = vpop.f32.mrf.mxu2  ;;  %v569_v47 = vpop.f32.mrf.mxu3 }
  0xd2   : > { %697 = vst [vmem:[%s1090_s3 + $0xa8] sm:$0xff] %v549_v46  ;;  %v512_v48 = vpop.f32.mrf.mxu0  ;;  %v532_v49 = vpop.f32.mrf.mxu1 }
  0xd3   : > { %705 = vst [vmem:[%s1090_s3 + $0xe8] sm:$0xff] %v569_v47 }
  0xd4   : > { %682 = vst [vmem:[%s1090_s3 + $0x30] sm:$0xff] %v512_v48 }
  0xd5   : > { %690 = vst [vmem:[%s1090_s3 + $0x70] sm:$0xff] %v532_v49 }
  0xd9   : > { %v552_v50 = vpop.f32.mrf.mxu2  ;;  %v572_v51 = vpop.f32.mrf.mxu3 }
  0xda   : > { %698 = vst [vmem:[%s1090_s3 + $0xb0] sm:$0xff] %v552_v50  ;;  %v514_v52 = vpop.f32.mrf.mxu0  ;;  %v534_v53 = vpop.f32.mrf.mxu1 }
  0xdb   : > { %706 = vst [vmem:[%s1090_s3 + $0xf0] sm:$0xff] %v572_v51 }
  0xdc   : > { %683 = vst [vmem:[%s1090_s3 + $0x38] sm:$0xff] %v514_v52 }
  0xdd   : > { %691 = vst [vmem:[%s1090_s3 + $0x78] sm:$0xff] %v534_v53 }
  0xe1   : > { %v554_v54 = vpop.f32.mrf.mxu2  ;;  %v574_v55 = vpop.f32.mrf.mxu3 }
  0xe2   : > { %699 = vst [vmem:[%s1090_s3 + $0xb8] sm:$0xff] %v554_v54 }
  0xe3   : > { %707 = vst [vmem:[%s1090_s3 + $0xf8] sm:$0xff] %v574_v55 }
  0xe4 PF: > { %s12_s11 = sadd.s32 1, %s996_s11   ;;  %s1136_s9 = smov %s992_s10 }
  0xe5   : > { %p9_p5 = scmp.ge.s32.totalorder %s12_s11, 4   ;;  %s1137_s10 = smov %s1139_s12 }
  0xe7   :  { %11 = sbr.rel (!%p9_p5) target bundleno = 2 (0x2), region = 69 }

// kernel: _lambda_.58
= control target key start
LH: loop header
LB: loop body
LE: loop exit
PB: predicated region body
PF: predicated region fallthrough
CT: control target
= control target key end

     0   :  { %s667_s9 = smov 0   ;;  %s1250_s0 = inlined_call_operand.vmem [shape: f32[2,256,8], index: 0, kind: input, shape index: {}]   ;;  %s1251_s1 = inlined_call_operand.vmem [shape: f32[2,256,8], index: 1, kind: input, shape index: {}]   ;;  %s1252_s2 = inlined_call_operand.vmem [shape: f32[2,256,8], index: 2, kind: output, shape index: {}]  }
   0x1 LB: > { %s614_s10 = sadd.s32 4294967295, %s649_s9   ;;  %p618_p0 = scmp.ge.s32.totalorder %s649_s9, 1  ;;  %s649_s9 = sphi %s667_s9, %s12_s9  }
   0x2   : > { %p122_p1 = scmp.lt.s32.totalorder %s649_s9, 3 }
   0x4   : > { %p123_p2 = pnand %p618_p0, %p122_p1 }
   0x5   : > { %p149_p3 = scmp.lt.s32.totalorder (!%p123_p2), %s614_s10, 1 }
   0x6   : > { %126 = sbr.rel (%p123_p2) target bundleno = 229 (0xe5), region = 28 }
   0xb   : > { %s1254_s10 = smov (!%p149_p3, %s614_s10), 1  ;;  %vm196_vm0 = vcmask 64512  }
   0xc   : > { %s675_s11 = sshll.u32 %s1254_s10, 8 }
   0xd   : > { %s681_s14 = scalar_lea.vmem %s1250_s0, %s675_s11  ;;  %s1077_s17 = scalar_lea.vmem %s1251_s1, %s675_s11 }
   0xe   : > { %v684_v0 = vld [vmem:[%s681_s14] sm:$0xff]  ;;  %v687_v1 = vld [vmem:[%s681_s14 + $0x8] sm:$0xff]  ;;  %v690_v2 = vld [vmem:[%s681_s14 + $0x10] sm:$0xff]  ;;  %s1097_s20 = scalar_lea.vmem %s1252_s2, %s675_s11 }
   0xf   : > { %v693_v3 = vld [vmem:[%s681_s14 + $0x18] sm:$0xff]  ;;  %v197_v4 = vsel %vm196_vm0, %v684_v0, 0.0  ;;  %v198_v5 = vsel %vm196_vm0, %v687_v1, 0.0  ;;  %v200_v6 = vsel %vm196_vm0, %v690_v2, 0.0  ;;  %v702_v7 = vld [vmem:[%s681_s14 + $0x20] sm:$0xff]  ;;  %v707_v10 = vld [vmem:[%s681_s14 + $0x28] sm:$0xff] }
  0x10   : > { %v199_v8 = vadd.f32 %v198_v5, %v197_v4  ;;  %v202_v9 = vsel %vm196_vm0, %v693_v3, 0.0  ;;  %v204_v12 = vsel %vm196_vm0, %v702_v7, 0.0  ;;  %v712_v13 = vld [vmem:[%s681_s14 + $0x30] sm:$0xff]  ;;  %v206_v15 = vsel %vm196_vm0, %v707_v10, 0.0  ;;  %v717_v16 = vld [vmem:[%s681_s14 + $0x38] sm:$0xff]  ;;  %v722_v19 = vld [vmem:[%s681_s14 + $0x40] sm:$0xff] }
  0x11   : > { %v208_v18 = vsel %vm196_vm0, %v712_v13, 0.0  ;;  %v210_v21 = vsel %vm196_vm0, %v717_v16, 0.0  ;;  %v727_v22 = vld [vmem:[%s681_s14 + $0x48] sm:$0xff]  ;;  %v212_v24 = vsel %vm196_vm0, %v722_v19, 0.0  ;;  %v732_v25 = vld [vmem:[%s681_s14 + $0x50] sm:$0xff]  ;;  %v737_v28 = vld [vmem:[%s681_s14 + $0x58] sm:$0xff] }
  0x12   : > { %v201_v11 = vadd.f32 %v200_v6, %v199_v8  ;;  %v214_v27 = vsel %vm196_vm0, %v727_v22, 0.0  ;;  %v216_v30 = vsel %vm196_vm0, %v732_v25, 0.0  ;;  %v742_v31 = vld [vmem:[%s681_s14 + $0x60] sm:$0xff]  ;;  %v218_v33 = vsel %vm196_vm0, %v737_v28, 0.0  ;;  %v747_v34 = vld [vmem:[%s681_s14 + $0x68] sm:$0xff]  ;;  %v752_v37 = vld [vmem:[%s681_s14 + $0x70] sm:$0xff] }
  0x13   : > { %v220_v36 = vsel %vm196_vm0, %v742_v31, 0.0  ;;  %v222_v39 = vsel %vm196_vm0, %v747_v34, 0.0  ;;  %v757_v40 = vld [vmem:[%s681_s14 + $0x78] sm:$0xff]  ;;  %v224_v42 = vsel %vm196_vm0, %v752_v37, 0.0  ;;  %v762_v43 = vld [vmem:[%s681_s14 + $0x80] sm:$0xff]  ;;  %v767_v46 = vld [vmem:[%s681_s14 + $0x88] sm:$0xff] }
  0x14   : > { %v203_v14 = vadd.f32 %v202_v9, %v201_v11  ;;  %v226_v45 = vsel %vm196_vm0, %v757_v40, 0.0  ;;  %v228_v48 = vsel %vm196_vm0, %v762_v43, 0.0  ;;  %v772_v49 = vld [vmem:[%s681_s14 + $0x90] sm:$0xff]  ;;  %v230_v51 = vsel %vm196_vm0, %v767_v46, 0.0  ;;  %v777_v52 = vld [vmem:[%s681_s14 + $0x98] sm:$0xff]  ;;  %v782_v55 = vld [vmem:[%s681_s14 + $0xa0] sm:$0xff] }
  0x15   : > { %v232_v54 = vsel %vm196_vm0, %v772_v49, 0.0  ;;  %v234_v57 = vsel %vm196_vm0, %v777_v52, 0.0  ;;  %v787_v58 = vld [vmem:[%s681_s14 + $0xa8] sm:$0xff]  ;;  %v236_v60 = vsel %vm196_vm0, %v782_v55, 0.0  ;;  %v792_v61 = vld [vmem:[%s681_s14 + $0xb0] sm:$0xff]  ;;  %v797_v4 = vld [vmem:[%s681_s14 + $0xb8] sm:$0xff] }
  0x16   : > { %v205_v17 = vadd.f32 %v204_v12, %v203_v14  ;;  %v238_v63 = vsel %vm196_vm0, %v787_v58, 0.0  ;;  %v240_v6 = vsel %vm196_vm0, %v792_v61, 0.0  ;;  %v802_v8 = vld [vmem:[%s681_s14 + $0xc0] sm:$0xff]  ;;  %v242_v11 = vsel %vm196_vm0, %v797_v4, 0.0  ;;  %v807_v12 = vld [vmem:[%s681_s14 + $0xc8] sm:$0xff] }
  0x18   : > { %v207_v20 = vadd.f32 %v206_v15, %v205_v17  ;;  %v244_v15 = vsel %vm196_vm0, %v802_v8, 0.0  ;;  %v812_v17 = vld [vmem:[%s681_s14 + $0xd0] sm:$0xff] }
  0x1a   : > { %v209_v23 = vadd.f32 %v208_v18, %v207_v20  ;;  %v246_v20 = vsel %vm196_vm0, %v807_v12, 0.0 }
  0x1c   : > { %v211_v26 = vadd.f32 %v210_v21, %v209_v23  ;;  %v817_v21 = vld [vmem:[%s681_s14 + $0xd8] sm:$0xff] }
  0x1e   : > { %v213_v29 = vadd.f32 %v212_v24, %v211_v26  ;;  %v248_v24 = vsel %vm196_vm0, %v812_v17, 0.0  ;;  %v822_v26 = vld [vmem:[%s681_s14 + $0xe0] sm:$0xff] }
  0x20   : > { %v215_v32 = vadd.f32 %v214_v27, %v213_v29  ;;  %v250_v29 = vsel %vm196_vm0, %v817_v21, 0.0 }
  0x22   : > { %v217_v35 = vadd.f32 %v216_v30, %v215_v32  ;;  %v827_v30 = vld [vmem:[%s681_s14 + $0xe8] sm:$0xff] }
  0x24   : > { %v219_v38 = vadd.f32 %v218_v33, %v217_v35  ;;  %v252_v33 = vsel %vm196_vm0, %v822_v26, 0.0  ;;  %v832_v35 = vld [vmem:[%s681_s14 + $0xf0] sm:$0xff] }
  0x26   : > { %v221_v41 = vadd.f32 %v220_v36, %v219_v38  ;;  %v651_v38 = vmov 256.0  }
  0x27   : > { %639 = vrcp.f32 %v651_v38 }
  0x28   : > { %v223_v44 = vadd.f32 %v222_v39, %v221_v41  ;;  %v254_v39 = vsel %vm196_vm0, %v827_v30, 0.0  ;;  %v837_v41 = vld [vmem:[%s681_s14 + $0xf8] sm:$0xff] }
  0x2a   : > { %v225_v47 = vadd.f32 %v224_v42, %v223_v44  ;;  %v256_v44 = vsel %vm196_vm0, %v832_v35, 0.0 }
  0x2c   : > { %v227_v50 = vadd.f32 %v226_v45, %v225_v47  ;;  %v258_v47 = vsel %vm196_vm0, %v837_v41, 0.0 }
  0x2e   : > { %v229_v53 = vadd.f32 %v228_v48, %v227_v50  ;;  %v640_v48 = vpop.eup %639 }
  0x2f   : > { %vm271_vm1 = vweird.f32 %v640_v48 }
  0x30   : > { %v231_v56 = vadd.f32 %v230_v51, %v229_v53  ;;  %v267_v53 = vmul.f32 256.0, %v640_v48 }
  0x32   : > { %v233_v59 = vadd.f32 %v232_v54, %v231_v56 }
  0x34   : > { %v235_v62 = vadd.f32 %v234_v57, %v233_v59  ;;  %v268_v57 = vsub.f32 1.0, %v267_v53 }
  0x36   : > { %v237_v5 = vadd.f32 %v236_v60, %v235_v62  ;;  %v269_v62 = vmul.f32 %v640_v48, %v268_v57 }
  0x38   : > { %v239_v9 = vadd.f32 %v238_v63, %v237_v5  ;;  %v270_v5 = vadd.f32 %v640_v48, %v269_v62 }
  0x3a   : > { %v241_v14 = vadd.f32 %v240_v6, %v239_v9  ;;  %v843_v9 = vsel %vm271_vm1, %v640_v48, %v270_v5 }
  0x3c   : > { %v243_v18 = vadd.f32 %v242_v11, %v241_v14 }
  0x3e   : > { %v245_v23 = vadd.f32 %v244_v15, %v243_v18 }
  0x40   : > { %v247_v27 = vadd.f32 %v246_v20, %v245_v23 }
  0x42   : > { %v249_v32 = vadd.f32 %v248_v24, %v247_v27 }
  0x44   : > { %v251_v36 = vadd.f32 %v250_v29, %v249_v32 }
  0x46   : > { %v253_v42 = vadd.f32 %v252_v33, %v251_v36 }
  0x48   : > { %v255_v45 = vadd.f32 %v254_v39, %v253_v42 }
  0x4a   : > { %v257_v50 = vadd.f32 %v256_v44, %v255_v45 }
  0x4c   : > { %v259_v51 = vadd.f32 %v258_v47, %v257_v50 }
  0x4e   : > { %v260_v54 = vrot.slane %v259_v51, 4 }
  0x50   : > { %v261_v56 = vadd.f32 %v260_v54, %v259_v51 }
  0x52   : > { %v262_v59 = vrot.slane %v261_v56, 2 }
  0x54   : > { %v263_v60 = vadd.f32 %v262_v59, %v261_v56 }
  0x56   : > { %v264_v63 = vrot.slane %v263_v60, 1 }
  0x58   : > { %v265_v6 = vadd.f32 %v264_v63, %v263_v60 }
  0x5a   : > { %v846_v11 = vmul.f32 %v843_v9, %v265_v6 }
  0x5c   : > { %v850_v14 = vsub.f32 %v684_v0, %v846_v11  ;;  %v854_v15 = vsub.f32 %v687_v1, %v846_v11  ;;  %v858_v18 = vsub.f32 %v690_v2, %v846_v11  ;;  %v862_v20 = vsub.f32 %v693_v3, %v846_v11 }
  0x5d   : > { %v866_v23 = vsub.f32 %v702_v7, %v846_v11  ;;  %v876_v2 = vsub.f32 %v707_v10, %v846_v11  ;;  %v882_v7 = vsub.f32 %v712_v13, %v846_v11  ;;  %v891_v10 = vsub.f32 %v717_v16, %v846_v11 }
  0x5e   : > { %v306_v0 = vmul.f32 %v850_v14, %v850_v14  ;;  %v307_v24 = vmul.f32 %v854_v15, %v854_v15  ;;  %v308_v1 = vmul.f32 %v858_v18, %v858_v18  ;;  %v309_v3 = vmul.f32 %v862_v20, %v862_v20 }
  0x5f   : > { %v310_v27 = vmul.f32 %v866_v23, %v866_v23  ;;  %v311_v38 = vmul.f32 %v876_v2, %v876_v2  ;;  %v898_v42 = vsub.f32 %v722_v19, %v846_v11  ;;  %v312_v44 = vmul.f32 %v882_v7, %v882_v7 }
  0x60   : > { %v338_v29 = vsel %vm196_vm0, %v306_v0, 0.0  ;;  %v339_v32 = vsel %vm196_vm0, %v307_v24, 0.0  ;;  %v341_v33 = vsel %vm196_vm0, %v308_v1, 0.0  ;;  %v343_v13 = vsel %vm196_vm0, %v309_v3, 0.0 }
  0x61   : > { %v340_v36 = vadd.f32 %v339_v32, %v338_v29  ;;  %v345_v45 = vsel %vm196_vm0, %v310_v27, 0.0  ;;  %v905_v16 = vsub.f32 %v727_v22, %v846_v11  ;;  %v313_v48 = vmul.f32 %v891_v10, %v891_v10 }
  0x62   : > { %v347_v50 = vsel %vm196_vm0, %v311_v38, 0.0  ;;  %v912_v19 = vsub.f32 %v732_v25, %v846_v11  ;;  %v314_v53 = vmul.f32 %v898_v42, %v898_v42  ;;  %v349_v54 = vsel %vm196_vm0, %v312_v44, 0.0 }
  0x63   : > { %v342_v39 = vadd.f32 %v341_v33, %v340_v36  ;;  %v919_v22 = vsub.f32 %v737_v28, %v846_v11  ;;  %v315_v57 = vmul.f32 %v905_v16, %v905_v16  ;;  %v351_v59 = vsel %vm196_vm0, %v313_v48, 0.0 }
  0x64   : > { %v926_v25 = vsub.f32 %v742_v31, %v846_v11  ;;  %v316_v62 = vmul.f32 %v912_v19, %v912_v19  ;;  %v353_v63 = vsel %vm196_vm0, %v314_v53, 0.0  ;;  %v933_v28 = vsub.f32 %v747_v34, %v846_v11 }
  0x65   : > { %v344_v47 = vadd.f32 %v343_v13, %v342_v39  ;;  %v317_v6 = vmul.f32 %v919_v22, %v919_v22  ;;  %v355_v0 = vsel %vm196_vm0, %v315_v57, 0.0  ;;  %v940_v31 = vsub.f32 %v752_v37, %v846_v11 }
  0x66   : > { %v318_v1 = vmul.f32 %v926_v25, %v926_v25  ;;  %v357_v3 = vsel %vm196_vm0, %v316_v62, 0.0  ;;  %v947_v34 = vsub.f32 %v757_v40, %v846_v11  ;;  %v319_v29 = vmul.f32 %v933_v28, %v933_v28 }
  0x67   : > { %v346_v51 = vadd.f32 %v345_v45, %v344_v47  ;;  %v359_v32 = vsel %vm196_vm0, %v317_v6, 0.0  ;;  %v954_v37 = vsub.f32 %v762_v43, %v846_v11  ;;  %v320_v36 = vmul.f32 %v940_v31, %v940_v31 }
  0x68   : > { %v361_v38 = vsel %vm196_vm0, %v318_v1, 0.0  ;;  %v961_v40 = vsub.f32 %v767_v46, %v846_v11  ;;  %v321_v39 = vmul.f32 %v947_v34, %v947_v34  ;;  %v363_v44 = vsel %vm196_vm0, %v319_v29, 0.0 }
  0x69   : > { %v348_v56 = vadd.f32 %v347_v50, %v346_v51  ;;  %v968_v43 = vsub.f32 %v772_v49, %v846_v11  ;;  %v322_v47 = vmul.f32 %v954_v37, %v954_v37  ;;  %v365_v48 = vsel %vm196_vm0, %v320_v36, 0.0 }
  0x6a   : > { %v975_v46 = vsub.f32 %v777_v52, %v846_v11  ;;  %v323_v51 = vmul.f32 %v961_v40, %v961_v40  ;;  %v367_v53 = vsel %vm196_vm0, %v321_v39, 0.0  ;;  %v982_v49 = vsub.f32 %v782_v55, %v846_v11 }
  0x6b   : > { %v350_v60 = vadd.f32 %v349_v54, %v348_v56  ;;  %v324_v56 = vmul.f32 %v968_v43, %v968_v43  ;;  %v369_v57 = vsel %vm196_vm0, %v322_v47, 0.0  ;;  %v989_v52 = vsub.f32 %v787_v58, %v846_v11 }
  0x6c   : > { %v371_v62 = vsel %vm196_vm0, %v323_v51, 0.0  ;;  %v996_v55 = vsub.f32 %v792_v61, %v846_v11  ;;  %v1003_v58 = vsub.f32 %v797_v4, %v846_v11  ;;  %v1010_v61 = vsub.f32 %v802_v8, %v846_v11 }
  0x6d   : > { %v352_v5 = vadd.f32 %v351_v59, %v350_v60  ;;  %v325_v60 = vmul.f32 %v975_v46, %v975_v46  ;;  %v373_v6 = vsel %vm196_vm0, %v324_v56, 0.0  ;;  %v1017_v4 = vsub.f32 %v807_v12, %v846_v11 }
  0x6e   : > { %v1024_v8 = vsub.f32 %v812_v17, %v846_v11  ;;  %v1031_v12 = vsub.f32 %v817_v21, %v846_v11  ;;  %v1038_v17 = vsub.f32 %v822_v26, %v846_v11  ;;  %v1045_v21 = vsub.f32 %v827_v30, %v846_v11 }
  0x6f   : > { %v354_v24 = vadd.f32 %v353_v63, %v352_v5  ;;  %v326_v5 = vmul.f32 %v982_v49, %v982_v49  ;;  %v375_v1 = vsel %vm196_vm0, %v325_v60, 0.0  ;;  %v1052_v26 = vsub.f32 %v832_v35, %v846_v11 }
  0x70   : > { %v1059_v30 = vsub.f32 %v837_v41, %v846_v11 }
  0x71   : > { %v356_v27 = vadd.f32 %v355_v0, %v354_v24  ;;  %v327_v24 = vmul.f32 %v989_v52, %v989_v52  ;;  %v377_v29 = vsel %vm196_vm0, %v326_v5, 0.0  ;;  %v336_v35 = vmul.f32 %v1052_v26, %v1052_v26 }
  0x73   : > { %v358_v33 = vadd.f32 %v357_v3, %v356_v27  ;;  %v328_v27 = vmul.f32 %v996_v55, %v996_v55  ;;  %v379_v36 = vsel %vm196_vm0, %v327_v24, 0.0  ;;  %v397_v41 = vsel %vm196_vm0, %v336_v35, 0.0 }
  0x75   : > { %v360_v13 = vadd.f32 %v359_v32, %v358_v33  ;;  %v329_v33 = vmul.f32 %v1003_v58, %v1003_v58  ;;  %v381_v39 = vsel %vm196_vm0, %v328_v27, 0.0 }
  0x77   : > { %v362_v45 = vadd.f32 %v361_v38, %v360_v13  ;;  %v330_v13 = vmul.f32 %v1010_v61, %v1010_v61  ;;  %v383_v47 = vsel %vm196_vm0, %v329_v33, 0.0 }
  0x79   : > { %v364_v50 = vadd.f32 %v363_v44, %v362_v45  ;;  %v331_v45 = vmul.f32 %v1017_v4, %v1017_v4  ;;  %v385_v51 = vsel %vm196_vm0, %v330_v13, 0.0 }
  0x7b   : > { %v366_v54 = vadd.f32 %v365_v48, %v364_v50  ;;  %v332_v50 = vmul.f32 %v1024_v8, %v1024_v8  ;;  %v387_v56 = vsel %vm196_vm0, %v331_v45, 0.0 }
  0x7d   : > { %v368_v59 = vadd.f32 %v367_v53, %v366_v54  ;;  %v333_v54 = vmul.f32 %v1031_v12, %v1031_v12  ;;  %v389_v60 = vsel %vm196_vm0, %v332_v50, 0.0 }
  0x7f   : > { %v370_v63 = vadd.f32 %v369_v57, %v368_v59  ;;  %v334_v59 = vmul.f32 %v1038_v17, %v1038_v17  ;;  %v391_v5 = vsel %vm196_vm0, %v333_v54, 0.0 }
  0x81   : > { %v372_v0 = vadd.f32 %v371_v62, %v370_v63  ;;  %v335_v63 = vmul.f32 %v1045_v21, %v1045_v21 }
  0x83   : > { %v374_v3 = vadd.f32 %v373_v6, %v372_v0  ;;  %v393_v0 = vsel %vm196_vm0, %v334_v59, 0.0  ;;  %v451_v59 = vld [vmem:[%s1077_s17] sm:$0xff] }
  0x85   : > { %v376_v32 = vadd.f32 %v375_v1, %v374_v3  ;;  %v337_v1 = vmul.f32 %v1059_v30, %v1059_v30  ;;  %v395_v3 = vsel %vm196_vm0, %v335_v63, 0.0 }
  0x87   : > { %v378_v38 = vadd.f32 %v377_v29, %v376_v32  ;;  %v399_v29 = vsel %vm196_vm0, %v337_v1, 0.0 }
  0x89   : > { %v380_v44 = vadd.f32 %v379_v36, %v378_v38 }
  0x8b   : > { %v382_v48 = vadd.f32 %v381_v39, %v380_v44 }
  0x8d   : > { %v384_v53 = vadd.f32 %v383_v47, %v382_v48 }
  0x8f   : > { %v386_v57 = vadd.f32 %v385_v51, %v384_v53 }
  0x91   : > { %v388_v62 = vadd.f32 %v387_v56, %v386_v57 }
  0x93   : > { %v390_v6 = vadd.f32 %v389_v60, %v388_v62  ;;  %v452_v60 = vld [vmem:[%s1077_s17 + $0x8] sm:$0xff]  ;;  %v453_v62 = vld [vmem:[%s1077_s17 + $0x10] sm:$0xff] }
  0x95   : > { %v392_v24 = vadd.f32 %v391_v5, %v390_v6 }
  0x97   : > { %v394_v27 = vadd.f32 %v393_v0, %v392_v24  ;;  %v454_v0 = vld [vmem:[%s1077_s17 + $0x18] sm:$0xff]  ;;  %v455_v24 = vld [vmem:[%s1077_s17 + $0x20] sm:$0xff] }
  0x99   : > { %v396_v11 = vadd.f32 %v395_v3, %v394_v27  ;;  %v456_v3 = vld [vmem:[%s1077_s17 + $0x28] sm:$0xff] }
  0x9b   : > { %v398_v32 = vadd.f32 %v397_v41, %v396_v11  ;;  %v457_v11 = vld [vmem:[%s1077_s17 + $0x30] sm:$0xff] }
  0x9d   : > { %v400_v33 = vadd.f32 %v399_v29, %v398_v32  ;;  %v458_v29 = vld [vmem:[%s1077_s17 + $0x38] sm:$0xff] }
  0x9f   : > { %v401_v36 = vrot.slane %v400_v33, 4 }
  0xa1   : > { %v402_v38 = vadd.f32 %v401_v36, %v400_v33  ;;  %v459_v33 = vld [vmem:[%s1077_s17 + $0x40] sm:$0xff] }
  0xa3   : > { %v403_v13 = vrot.slane %v402_v38, 2 }
  0xa5   : > { %v404_v39 = vadd.f32 %v403_v13, %v402_v38  ;;  %v460_v38 = vld [vmem:[%s1077_s17 + $0x48] sm:$0xff] }
  0xa7   : > { %v405_v44 = vrot.slane %v404_v39, 1 }
  0xa9   : > { %v406_v45 = vadd.f32 %v405_v44, %v404_v39  ;;  %v461_v39 = vld [vmem:[%s1077_s17 + $0x50] sm:$0xff] }
  0xab   : > { %v407_v47 = vmul.f32 %v406_v45, %v843_v9  ;;  %v462_v45 = vld [vmem:[%s1077_s17 + $0x58] sm:$0xff] }
  0xad   : > { %v408_v48 = vadd.f32 1e-05, %v407_v47 }
  0xaf   : > { %641 = vrsqrt.f32 %v408_v48  ;;  %vm415_vm2 = vweird.f32 %v408_v48 }
  0xb5   : > { %v642_v50 = vpop.eup %641 }
  0xb6   : > { %v410_v51 = vmul.f32 %v642_v50, %v408_v48  ;;  %vm416_vm3 = vweird.f32 %v642_v50  ;;  %v463_v48 = vld [vmem:[%s1077_s17 + $0x60] sm:$0xff] }
  0xb7   : > { %vm417_vm4 = vmor %vm415_vm2, %vm416_vm3 }
  0xb8   : > { %v411_v53 = vmul.f32 %v642_v50, %v410_v51  ;;  %v464_v51 = vld [vmem:[%s1077_s17 + $0x68] sm:$0xff] }
  0xba   : > { %v412_v54 = vmul.f32 0.5, %v411_v53 }
  0xbc   : > { %v413_v56 = vsub.f32 1.5, %v412_v54  ;;  %v465_v54 = vld [vmem:[%s1077_s17 + $0x70] sm:$0xff] }
  0xbe   : > { %v414_v9 = vmul.f32 %v642_v50, %v413_v56 }
  0xc0   : > { %v1079_v57 = vsel %vm417_vm4, %v642_v50, %v414_v9  ;;  %v466_v9 = vld [vmem:[%s1077_s17 + $0x78] sm:$0xff] }
  0xc1   : > { %v419_v63 = vmul.f32 %v1079_v57, %v850_v14  ;;  %v420_v5 = vmul.f32 %v1079_v57, %v854_v15  ;;  %v421_v6 = vmul.f32 %v1079_v57, %v858_v18  ;;  %v422_v35 = vmul.f32 %v1079_v57, %v862_v20 }
  0xc2   : > { %v423_v14 = vmul.f32 %v1079_v57, %v866_v23  ;;  %v424_v15 = vmul.f32 %v1079_v57, %v876_v2  ;;  %v425_v27 = vmul.f32 %v1079_v57, %v882_v7  ;;  %v426_v23 = vmul.f32 %v1079_v57, %v891_v10 }
  0xc3   : > { %v483_v18 = vadd.f32 %v451_v59, %v419_v63  ;;  %v484_v20 = vadd.f32 %v452_v60, %v420_v5  ;;  %v485_v1 = vadd.f32 %v453_v62, %v421_v6  ;;  %v486_v41 = vadd.f32 %v454_v0, %v422_v35  ;;  %v467_v60 = vld [vmem:[%s1077_s17 + $0x80] sm:$0xff]  ;;  %v468_v63 = vld [vmem:[%s1077_s17 + $0x88] sm:$0xff]  ;;  %v469_v6 = vld [vmem:[%s1077_s17 + $0x90] sm:$0xff] }
  0xc4   : > { %v487_v2 = vadd.f32 %v455_v24, %v423_v14  ;;  %v427_v32 = vmul.f32 %v1079_v57, %v898_v42  ;;  %v488_v7 = vadd.f32 %v456_v3, %v424_v15  ;;  %v428_v36 = vmul.f32 %v1079_v57, %v905_v16  ;;  %v470_v0 = vld [vmem:[%s1077_s17 + $0x98] sm:$0xff]  ;;  %v471_v24 = vld [vmem:[%s1077_s17 + $0xa0] sm:$0xff] }
  0xc5   : > { %515 = vst.msk [vmem:[%s1097_s20] sm:$0xff] %vm196_vm0, %v483_v18  ;;  %v489_v10 = vadd.f32 %v457_v11, %v425_v27  ;;  %v429_v13 = vmul.f32 %v1079_v57, %v912_v19  ;;  %v490_v42 = vadd.f32 %v458_v29, %v426_v23  ;;  %v430_v44 = vmul.f32 %v1079_v57, %v919_v22  ;;  %v472_v18 = vld [vmem:[%s1077_s17 + $0xa8] sm:$0xff]  ;;  %v474_v27 = vld [vmem:[%s1077_s17 + $0xb8] sm:$0xff]  ;;  %v475_v11 = vld [vmem:[%s1077_s17 + $0xc0] sm:$0xff] }
  0xc6   : > { %516 = vst.msk [vmem:[%s1097_s20 + $0x8] sm:$0xff] %vm196_vm0, %v484_v20  ;;  %v491_v16 = vadd.f32 %v459_v33, %v427_v32  ;;  %v431_v47 = vmul.f32 %v1079_v57, %v926_v25  ;;  %v492_v19 = vadd.f32 %v460_v38, %v428_v36  ;;  %v432_v50 = vmul.f32 %v1079_v57, %v933_v28  ;;  %v477_v32 = vld [vmem:[%s1077_s17 + $0xd0] sm:$0xff]  ;;  %v478_v33 = vld [vmem:[%s1077_s17 + $0xd8] sm:$0xff] }
  0xc7   : > { %517 = vst.msk [vmem:[%s1097_s20 + $0x10] sm:$0xff] %vm196_vm0, %v485_v1  ;;  %v493_v22 = vadd.f32 %v461_v39, %v429_v13  ;;  %v433_v53 = vmul.f32 %v1079_v57, %v940_v31  ;;  %v494_v25 = vadd.f32 %v462_v45, %v430_v44  ;;  %v434_v56 = vmul.f32 %v1079_v57, %v947_v34  ;;  %v473_v1 = vld [vmem:[%s1077_s17 + $0xb0] sm:$0xff]  ;;  %v480_v13 = vld [vmem:[%s1077_s17 + $0xe8] sm:$0xff] }
  0xc8   : > { %518 = vst.msk [vmem:[%s1097_s20 + $0x18] sm:$0xff] %vm196_vm0, %v486_v41  ;;  %v495_v28 = vadd.f32 %v463_v48, %v431_v47  ;;  %v435_v59 = vmul.f32 %v1079_v57, %v954_v37  ;;  %v496_v31 = vadd.f32 %v464_v51, %v432_v50  ;;  %v436_v62 = vmul.f32 %v1079_v57, %v961_v40  ;;  %v481_v39 = vld [vmem:[%s1077_s17 + $0xf0] sm:$0xff] }
  0xc9   : > { %519 = vst.msk [vmem:[%s1097_s20 + $0x20] sm:$0xff] %vm196_vm0, %v487_v2  ;;  %v497_v34 = vadd.f32 %v465_v54, %v433_v53  ;;  %v437_v5 = vmul.f32 %v1079_v57, %v968_v43  ;;  %v498_v37 = vadd.f32 %v466_v9, %v434_v56  ;;  %v438_v35 = vmul.f32 %v1079_v57, %v975_v46  ;;  %v476_v2 = vld [vmem:[%s1077_s17 + $0xc8] sm:$0xff] }
  0xca   : > { %520 = vst.msk [vmem:[%s1097_s20 + $0x28] sm:$0xff] %vm196_vm0, %v488_v7  ;;  %v499_v40 = vadd.f32 %v467_v60, %v435_v59  ;;  %v439_v14 = vmul.f32 %v1079_v57, %v982_v49  ;;  %v500_v43 = vadd.f32 %v468_v63, %v436_v62  ;;  %v440_v15 = vmul.f32 %v1079_v57, %v989_v52 }
  0xcb   : > { %521 = vst.msk [vmem:[%s1097_s20 + $0x30] sm:$0xff] %vm196_vm0, %v489_v10  ;;  %v501_v46 = vadd.f32 %v469_v6, %v437_v5  ;;  %v441_v20 = vmul.f32 %v1079_v57, %v996_v55  ;;  %v502_v49 = vadd.f32 %v470_v0, %v438_v35  ;;  %v442_v3 = vmul.f32 %v1079_v57, %v1003_v58  ;;  %v479_v10 = vld [vmem:[%s1077_s17 + $0xe0] sm:$0xff] }
  0xcc   : > { %522 = vst.msk [vmem:[%s1097_s20 + $0x38] sm:$0xff] %vm196_vm0, %v490_v42  ;;  %v503_v52 = vadd.f32 %v471_v24, %v439_v14  ;;  %v443_v41 = vmul.f32 %v1079_v57, %v1010_v61  ;;  %v504_v55 = vadd.f32 %v472_v18, %v440_v15  ;;  %v444_v23 = vmul.f32 %v1079_v57, %v1017_v4 }
  0xcd   : > { %523 = vst.msk [vmem:[%s1097_s20 + $0x40] sm:$0xff] %vm196_vm0, %v491_v16  ;;  %v505_v58 = vadd.f32 %v473_v1, %v441_v20  ;;  %v445_v29 = vmul.f32 %v1079_v57, %v1024_v8  ;;  %v506_v61 = vadd.f32 %v474_v27, %v442_v3  ;;  %v446_v7 = vmul.f32 %v1079_v57, %v1031_v12  ;;  %v482_v16 = vld [vmem:[%s1077_s17 + $0xf8] sm:$0xff] }
  0xce   : > { %524 = vst.msk [vmem:[%s1097_s20 + $0x48] sm:$0xff] %vm196_vm0, %v492_v19  ;;  %v507_v4 = vadd.f32 %v475_v11, %v443_v41  ;;  %v447_v36 = vmul.f32 %v1079_v57, %v1038_v17  ;;  %v508_v8 = vadd.f32 %v476_v2, %v444_v23  ;;  %v448_v38 = vmul.f32 %v1079_v57, %v1045_v21 }
  0xcf   : > { %525 = vst.msk [vmem:[%s1097_s20 + $0x50] sm:$0xff] %vm196_vm0, %v493_v22  ;;  %v509_v12 = vadd.f32 %v477_v32, %v445_v29  ;;  %v449_v42 = vmul.f32 %v1079_v57, %v1052_v26  ;;  %v510_v17 = vadd.f32 %v478_v33, %v446_v7  ;;  %v450_v44 = vmul.f32 %v1079_v57, %v1059_v30 }
  0xd0   : > { %526 = vst.msk [vmem:[%s1097_s20 + $0x58] sm:$0xff] %vm196_vm0, %v494_v25  ;;  %v511_v21 = vadd.f32 %v479_v10, %v447_v36  ;;  %v512_v45 = vadd.f32 %v480_v13, %v448_v38 }
  0xd1   : > { %527 = vst.msk [vmem:[%s1097_s20 + $0x60] sm:$0xff] %vm196_vm0, %v495_v28  ;;  %v513_v47 = vadd.f32 %v481_v39, %v449_v42  ;;  %v514_v26 = vadd.f32 %v482_v16, %v450_v44 }
  0xd2   : > { %528 = vst.msk [vmem:[%s1097_s20 + $0x68] sm:$0xff] %vm196_vm0, %v496_v31 }
  0xd3   : > { %529 = vst.msk [vmem:[%s1097_s20 + $0x70] sm:$0xff] %vm196_vm0, %v497_v34 }
  0xd4   : > { %530 = vst.msk [vmem:[%s1097_s20 + $0x78] sm:$0xff] %vm196_vm0, %v498_v37 }
  0xd5   : > { %531 = vst.msk [vmem:[%s1097_s20 + $0x80] sm:$0xff] %vm196_vm0, %v499_v40 }
  0xd6   : > { %532 = vst.msk [vmem:[%s1097_s20 + $0x88] sm:$0xff] %vm196_vm0, %v500_v43 }
  0xd7   : > { %533 = vst.msk [vmem:[%s1097_s20 + $0x90] sm:$0xff] %vm196_vm0, %v501_v46 }
  0xd8   : > { %534 = vst.msk [vmem:[%s1097_s20 + $0x98] sm:$0xff] %vm196_vm0, %v502_v49 }
  0xd9   : > { %535 = vst.msk [vmem:[%s1097_s20 + $0xa0] sm:$0xff] %vm196_vm0, %v503_v52 }
  0xda   : > { %536 = vst.msk [vmem:[%s1097_s20 + $0xa8] sm:$0xff] %vm196_vm0, %v504_v55 }
  0xdb   : > { %537 = vst.msk [vmem:[%s1097_s20 + $0xb0] sm:$0xff] %vm196_vm0, %v505_v58 }
  0xdc   : > { %538 = vst.msk [vmem:[%s1097_s20 + $0xb8] sm:$0xff] %vm196_vm0, %v506_v61 }
  0xdd   : > { %539 = vst.msk [vmem:[%s1097_s20 + $0xc0] sm:$0xff] %vm196_vm0, %v507_v4 }
  0xde   : > { %540 = vst.msk [vmem:[%s1097_s20 + $0xc8] sm:$0xff] %vm196_vm0, %v508_v8 }
  0xdf   : > { %541 = vst.msk [vmem:[%s1097_s20 + $0xd0] sm:$0xff] %vm196_vm0, %v509_v12 }
  0xe0   : > { %542 = vst.msk [vmem:[%s1097_s20 + $0xd8] sm:$0xff] %vm196_vm0, %v510_v17 }
  0xe1   : > { %543 = vst.msk [vmem:[%s1097_s20 + $0xe0] sm:$0xff] %vm196_vm0, %v511_v21 }
  0xe2   : > { %544 = vst.msk [vmem:[%s1097_s20 + $0xe8] sm:$0xff] %vm196_vm0, %v512_v45 }
  0xe3   : > { %545 = vst.msk [vmem:[%s1097_s20 + $0xf0] sm:$0xff] %vm196_vm0, %v513_v47 }
  0xe4   : > { %546 = vst.msk [vmem:[%s1097_s20 + $0xf8] sm:$0xff] %vm196_vm0, %v514_v26 }
  0xe5 PF: > { %s12_s9 = sadd.s32 1, %s649_s9  }
  0xe6   : > { %p9_p4 = scmp.ge.s32.totalorder %s12_s9, 4  }
  0xe8   :  { %11 = sbr.rel (!%p9_p4) target bundleno = 1 (0x1), region = 61 }

// kernel: _lambda_.63
= control target key start
LH: loop header
LB: loop body
LE: loop exit
PB: predicated region body
PF: predicated region fallthrough
CT: control target
= control target key end

     0   :  { %s970_s9 = smov 0   ;;  %s972_s10 = smov 0   ;;  %s1081_s0 = inlined_call_operand.vmem [shape: bf16[512,32], index: 0, kind: input, shape index: {}]   ;;  %s1082_s1 = inlined_call_operand.vmem [shape: bf16[32,128], index: 1, kind: input, shape index: {}]   ;;  %s1083_s2 = inlined_call_operand.vmem [shape: f32[512,128], index: 2, kind: output, shape index: {}]  }
   0x1   :  { %s974_s11 = smov 0  }
   0x2 LB: > { %s31_s12 = sadd.s32 1, %s949_s10  ;;  %p788_p0 = scmp.ge.s32.totalorder %s953_s11, 1  ;;  %s953_s11 = sphi %s974_s11, %s12_s11   ;;  %s949_s10 = sphi %s972_s10, %s1085_s10   ;;  %s945_s9 = sphi %s970_s9, %s1084_s9  }
   0x3   : > { %p33_p1 = scmp.ge.s32.totalorder %s31_s12, 2  ;;  %p155_p2 = scmp.lt.s32.totalorder %s953_s11, 3 }
   0x5   : > { %s1087_s12 = smov (%p33_p1, %s31_s12), 0  ;;  %p156_p3 = pnand %p788_p0, %p155_p2 }
   0x6   : > { %s789_s15 = sshll.u32 (!%p156_p3), %s945_s9, 5 }
   0x7   : > { %159 = sbr.rel (%p156_p3) target bundleno = 211 (0xd3), region = 28  ;;  %p192_p4 = scmp.lt.s32.totalorder (!%p156_p3), %s789_s15, 63 }
   0xc   : > { %v900_v0 = vld [vmem:[%s1082_s1 + $0x8] sm:$0xff]  ;;  %v899_v1 = vld [vmem:[%s1082_s1] sm:$0xff]  ;;  %s1089_s15 = smov (!%p192_p4, %s789_s15), 63  ;;  %vm415_vm0 = vcmask 261120  }
   0xd   : > { %470 = vmatpush.bf16.msra.mxu0 %v900_v0  ;;  %901 = vmatpush.bf16.msra.mxu1 %v900_v0  ;;  %s790_s18 = sshll.u32 %s1089_s15, 2  ;;  %s792_s22 = sshll.u32 %s1089_s15, 3 }
   0xe   : > { %902 = vmatpush.bf16.msra.mxu2 %v900_v0  ;;  %903 = vmatpush.bf16.msra.mxu3 %v900_v0  ;;  %s1000_s21 = scalar_lea.vmem %s1081_s0, %s790_s18  ;;  %s1038_s25 = scalar_lea.vmem %s1083_s2, %s792_s22 }
   0xf   : > { %v883_v2 = vld [vmem:[%s1000_s21] sm:$0xff]  ;;  %v884_v6 = vld [vmem:[%s1000_s21 + $0x8] sm:$0xff]  ;;  %v885_v10 = vld [vmem:[%s1000_s21 + $0x10] sm:$0xff] }
  0x10   : > { %v887_v3 = vld [vmem:[%s1000_s21 + $0x20] sm:$0xff]  ;;  %v888_v7 = vld [vmem:[%s1000_s21 + $0x28] sm:$0xff]  ;;  %v889_v11 = vld [vmem:[%s1000_s21 + $0x30] sm:$0xff] }
  0x11   : > { %471 = vmatpush.bf16.msra.mxu0 %v899_v1  ;;  %904 = vmatpush.bf16.msra.mxu1 %v899_v1  ;;  %v891_v4 = vld [vmem:[%s1000_s21 + $0x40] sm:$0xff]  ;;  %v892_v8 = vld [vmem:[%s1000_s21 + $0x48] sm:$0xff]  ;;  %v893_v12 = vld [vmem:[%s1000_s21 + $0x50] sm:$0xff] }
  0x12   : > { %905 = vmatpush.bf16.msra.mxu2 %v899_v1  ;;  %906 = vmatpush.bf16.msra.mxu3 %v899_v1  ;;  %v895_v5 = vld [vmem:[%s1000_s21 + $0x60] sm:$0xff]  ;;  %v896_v9 = vld [vmem:[%s1000_s21 + $0x68] sm:$0xff]  ;;  %v897_v13 = vld [vmem:[%s1000_s21 + $0x70] sm:$0xff] }
  0x13   : > { %v886_v14 = vld [vmem:[%s1000_s21 + $0x18] sm:$0xff] }
  0x14   : > { %865 = vmatmul.msk.bf16.vlgmr.msra.gmra.mxu0 %vm415_vm0, %v883_v2  ;;  %869 = vmatmul.msk.bf16.vlgmr.msra.gmra.mxu1 %vm415_vm0, %v887_v3  ;;  %v890_v15 = vld [vmem:[%s1000_s21 + $0x38] sm:$0xff] }
  0x15   : > { %873 = vmatmul.msk.bf16.vlgmr.msra.gmra.mxu2 %vm415_vm0, %v891_v4  ;;  %877 = vmatmul.msk.bf16.vlgmr.msra.gmra.mxu3 %vm415_vm0, %v895_v5  ;;  %v894_v16 = vld [vmem:[%s1000_s21 + $0x58] sm:$0xff] }
  0x16   : > { %v898_v17 = vld [vmem:[%s1000_s21 + $0x78] sm:$0xff] }
  0x24   : > { %866 = vmatmul.msk.bf16.gmra.mxu0 %vm415_vm0, %v884_v6  ;;  %870 = vmatmul.msk.bf16.gmra.mxu1 %vm415_vm0, %v888_v7 }
  0x25   : > { %874 = vmatmul.msk.bf16.gmra.mxu2 %vm415_vm0, %v892_v8  ;;  %878 = vmatmul.msk.bf16.gmra.mxu3 %vm415_vm0, %v896_v9 }
  0x34   : > { %867 = vmatmul.msk.bf16.gmra.mxu0 %vm415_vm0, %v885_v10  ;;  %871 = vmatmul.msk.bf16.gmra.mxu1 %vm415_vm0, %v889_v11 }
  0x35   : > { %875 = vmatmul.msk.bf16.gmra.mxu2 %vm415_vm0, %v893_v12  ;;  %879 = vmatmul.msk.bf16.gmra.mxu3 %vm415_vm0, %v897_v13 }
  0x44   : > { %868 = vmatmul.msk.bf16.gmra.mxu0 %vm415_vm0, %v886_v14  ;;  %872 = vmatmul.msk.bf16.gmra.mxu1 %vm415_vm0, %v890_v15 }
  0x45   : > { %876 = vmatmul.msk.bf16.gmra.mxu2 %vm415_vm0, %v894_v16  ;;  %880 = vmatmul.msk.bf16.gmra.mxu3 %vm415_vm0, %v898_v17 }
  0x91   : > { %v473_v18 = vpop.f32.mrf.mxu0  ;;  %v493_v19 = vpop.f32.mrf.mxu1 }
  0x92   : > { %652 = vst [vmem:[%s1038_s25] sm:$0xff] %v473_v18 }
  0x93   : > { %660 = vst [vmem:[%s1038_s25 + $0x40] sm:$0xff] %v493_v19 }
  0x98   : > { %v513_v20 = vpop.f32.mrf.mxu2  ;;  %v533_v21 = vpop.f32.mrf.mxu3 }
  0x99   : > { %668 = vst [vmem:[%s1038_s25 + $0x80] sm:$0xff] %v513_v20  ;;  %v475_v22 = vpop.f32.mrf.mxu0  ;;  %v495_v23 = vpop.f32.mrf.mxu1 }
  0x9a   : > { %676 = vst [vmem:[%s1038_s25 + $0xc0] sm:$0xff] %v533_v21 }
  0x9b   : > { %653 = vst [vmem:[%s1038_s25 + $0x8] sm:$0xff] %v475_v22 }
  0x9c   : > { %661 = vst [vmem:[%s1038_s25 + $0x48] sm:$0xff] %v495_v23 }
  0xa0   : > { %v515_v24 = vpop.f32.mrf.mxu2  ;;  %v535_v25 = vpop.f32.mrf.mxu3 }
  0xa1   : > { %669 = vst [vmem:[%s1038_s25 + $0x88] sm:$0xff] %v515_v24  ;;  %v478_v26 = vpop.f32.mrf.mxu0  ;;  %v498_v27 = vpop.f32.mrf.mxu1 }
  0xa2   : > { %677 = vst [vmem:[%s1038_s25 + $0xc8] sm:$0xff] %v535_v25 }
  0xa3   : > { %654 = vst [vmem:[%s1038_s25 + $0x10] sm:$0xff] %v478_v26 }
  0xa4   : > { %662 = vst [vmem:[%s1038_s25 + $0x50] sm:$0xff] %v498_v27 }
  0xa8   : > { %v518_v28 = vpop.f32.mrf.mxu2  ;;  %v538_v29 = vpop.f32.mrf.mxu3 }
  0xa9   : > { %670 = vst [vmem:[%s1038_s25 + $0x90] sm:$0xff] %v518_v28  ;;  %v480_v30 = vpop.f32.mrf.mxu0  ;;  %v500_v31 = vpop.f32.mrf.mxu1 }
  0xaa   : > { %678 = vst [vmem:[%s1038_s25 + $0xd0] sm:$0xff] %v538_v29 }
  0xab   : > { %655 = vst [vmem:[%s1038_s25 + $0x18] sm:$0xff] %v480_v30 }
  0xac   : > { %663 = vst [vmem:[%s1038_s25 + $0x58] sm:$0xff] %v500_v31 }
  0xb0   : > { %v520_v32 = vpop.f32.mrf.mxu2  ;;  %v540_v33 = vpop.f32.mrf.mxu3 }
  0xb1   : > { %671 = vst [vmem:[%s1038_s25 + $0x98] sm:$0xff] %v520_v32  ;;  %v483_v34 = vpop.f32.mrf.mxu0  ;;  %v503_v35 = vpop.f32.mrf.mxu1 }
  0xb2   : > { %679 = vst [vmem:[%s1038_s25 + $0xd8] sm:$0xff] %v540_v33 }
  0xb3   : > { %656 = vst [vmem:[%s1038_s25 + $0x20] sm:$0xff] %v483_v34 }
  0xb4   : > { %664 = vst [vmem:[%s1038_s25 + $0x60] sm:$0xff] %v503_v35 }
  0xb8   : > { %v523_v36 = vpop.f32.mrf.mxu2  ;;  %v543_v37 = vpop.f32.mrf.mxu3 }
  0xb9   : > { %672 = vst [vmem:[%s1038_s25 + $0xa0] sm:$0xff] %v523_v36  ;;  %v485_v38 = vpop.f32.mrf.mxu0  ;;  %v505_v39 = vpop.f32.mrf.mxu1 }
  0xba   : > { %680 = vst [vmem:[%s1038_s25 + $0xe0] sm:$0xff] %v543_v37 }
  0xbb   : > { %657 = vst [vmem:[%s1038_s25 + $0x28] sm:$0xff] %v485_v38 }
  0xbc   : > { %665 = vst [vmem:[%s1038_s25 + $0x68] sm:$0xff] %v505_v39 }
  0xc0   : > { %v525_v40 = vpop.f32.mrf.mxu2  ;;  %v545_v41 = vpop.f32.mrf.mxu3 }
  0xc1   : > { %673 = vst [vmem:[%s1038_s25 + $0xa8] sm:$0xff] %v525_v40  ;;  %v488_v42 = vpop.f32.mrf.mxu0  ;;  %v508_v43 = vpop.f32.mrf.mxu1 }
  0xc2   : > { %681 = vst [vmem:[%s1038_s25 + $0xe8] sm:$0xff] %v545_v41 }
  0xc3   : > { %658 = vst [vmem:[%s1038_s25 + $0x30] sm:$0xff] %v488_v42 }
  0xc4   : > { %666 = vst [vmem:[%s1038_s25 + $0x70] sm:$0xff] %v508_v43 }
  0xc8   : > { %v528_v44 = vpop.f32.mrf.mxu2  ;;  %v548_v45 = vpop.f32.mrf.mxu3 }
  0xc9   : > { %674 = vst [vmem:[%s1038_s25 + $0xb0] sm:$0xff] %v528_v44  ;;  %v490_v46 = vpop.f32.mrf.mxu0  ;;  %v510_v47 = vpop.f32.mrf.mxu1 }
  0xca   : > { %682 = vst [vmem:[%s1038_s25 + $0xf0] sm:$0xff] %v548_v45 }
  0xcb   : > { %659 = vst [vmem:[%s1038_s25 + $0x38] sm:$0xff] %v490_v46 }
  0xcc   : > { %667 = vst [vmem:[%s1038_s25 + $0x78] sm:$0xff] %v510_v47 }
  0xd0   : > { %v530_v48 = vpop.f32.mrf.mxu2  ;;  %v550_v49 = vpop.f32.mrf.mxu3 }
  0xd1   : > { %675 = vst [vmem:[%s1038_s25 + $0xb8] sm:$0xff] %v530_v48 }
  0xd2   : > { %683 = vst [vmem:[%s1038_s25 + $0xf8] sm:$0xff] %v550_v49 }
  0xd3 PF: > { %s12_s11 = sadd.s32 1, %s953_s11   ;;  %s1084_s9 = smov %s949_s10 }
  0xd4   : > { %p9_p5 = scmp.ge.s32.totalorder %s12_s11, 4   ;;  %s1085_s10 = smov %s1087_s12 }
  0xd6   :  { %11 = sbr.rel (!%p9_p5) target bundleno = 2 (0x2), region = 69 }

// kernel: _lambda_.65
= control target key start
LH: loop header
LB: loop body
LE: loop exit
PB: predicated region body
PF: predicated region fallthrough
CT: control target
= control target key end

     0   :  { %s1553_s12 = smov 0   ;;  %s1555_s13 = smov 0   ;;  %s1791_s0 = inlined_call_operand.vmem [shape: bf16[2048,196], index: 0, kind: input, shape index: {}]   ;;  %s1792_s1 = inlined_call_operand.vmem [shape: bf16[196,128], index: 1, kind: input, shape index: {}]   ;;  %s1793_s2 = inlined_call_operand.vmem [shape: f32[1,128], index: 2, kind: input, shape index: {}]   ;;  %s1794_s3 = inlined_call_operand.vmem [shape: f32[2048,128], index: 3, kind: output, shape index: {}]  }
   0x1   :  { %s1557_s14 = smov 0  }
   0x2 LB: > { %s32_s15 = sadd.s32 1, %s1527_s13  ;;  %p1162_p0 = scmp.ge.s32.totalorder %s1531_s14, 1  ;;  %s1531_s14 = sphi %s1557_s14, %s13_s14   ;;  %s1527_s13 = sphi %s1555_s13, %s1796_s13   ;;  %s1523_s12 = sphi %s1553_s12, %s1795_s12  }
   0x3   : > { %p34_p1 = scmp.ge.s32.totalorder %s32_s15, 8  ;;  %p191_p2 = scmp.lt.s32.totalorder %s1531_s14, 9 }
   0x5   : > { %s1798_s15 = smov (%p34_p1, %s32_s15), 0  ;;  %p192_p3 = pnand %p1162_p0, %p191_p2 }
   0x6   : > { %s1163_s20 = sshll.u32 (!%p192_p3), %s1523_s12, 5 }
   0x7   : > { %195 = sbr.rel (%p192_p3) target bundleno = 311 (0x137), region = 32  ;;  %p236_p4 = scmp.lt.s32.totalorder (!%p192_p3), %s1163_s20, 255 }
   0xc   : > { %v1402_v0 = vld [vmem:[%s1792_s1 + $0x38] sm:$0xff]  ;;  %v392_v1 = vld [vmem:[%s1792_s1 + $0x60] sm:$0x3]  ;;  %vm661_vm0 = vcmask 1041408   ;;  %v1401_v3 = vld [vmem:[%s1792_s1 + $0x30] sm:$0xff]  ;;  %s1800_s20 = smov (!%p236_p4, %s1163_s20), 255 }
   0xd   : > { %v586_v2 = vunpack.c.l.b16 %v392_v1  ;;  %665 = vmatpush.bf16.msra.mxu0 %v1402_v0  ;;  %1407 = vmatpush.bf16.msra.mxu2 %v1402_v0  ;;  %v1406_v6 = vld [vmem:[%s1792_s1 + $0x58] sm:$0xff]  ;;  %v1400_v7 = vld [vmem:[%s1792_s1 + $0x28] sm:$0xff]  ;;  %v1405_v8 = vld [vmem:[%s1792_s1 + $0x50] sm:$0xff]  ;;  %s1362_s4 = sshll.u32 %s1800_s20, 3  ;;  %vm612_vm1 = vcmask 556032  }
   0xe   : > { %v1399_v9 = vld [vmem:[%s1792_s1 + $0x20] sm:$0xff]  ;;  %v1404_v10 = vld [vmem:[%s1792_s1 + $0x48] sm:$0xff]  ;;  %v1398_v11 = vld [vmem:[%s1792_s1 + $0x18] sm:$0xff]  ;;  %s1606_s11 = scalar_lea.vmem %s1791_s0, %s1362_s4  ;;  %s1713_s28 = scalar_lea.vmem %s1794_s3, %s1362_s4 }
   0xf   : > { %v599_v4 = vpack.c.b16 %v586_v2, %v586_v2  ;;  %v1403_v12 = vld [vmem:[%s1792_s1 + $0x40] sm:$0xff]  ;;  %v1397_v13 = vld [vmem:[%s1792_s1 + $0x10] sm:$0xff]  ;;  %v1172_v15 = vld [vmem:[%s1606_s11 + $0x8] sm:$0xf0] }
  0x10   : > { %v1363_v14 = vld [vmem:[%s1606_s11 + $0x4] sm:$0xf]  ;;  %v1381_v16 = vld [vmem:[%s1606_s11 + $0x94] sm:$0xf]  ;;  %v1244_v17 = vld [vmem:[%s1606_s11 + $0x98] sm:$0xf0] }
  0x11   : > { %v663_v5 = vsel %vm661_vm0, %v599_v4, 0  ;;  %666 = vmatpush.bf16.msra.mxu0 %v1401_v3  ;;  %1408 = vmatpush.bf16.msra.mxu2 %v1401_v3  ;;  %v1175_v18 = vor.u32 %v1363_v14, %v1172_v15  ;;  %v1396_v19 = vld [vmem:[%s1792_s1 + $0x8] sm:$0xff]  ;;  %v1247_v20 = vor.u32 %v1381_v16, %v1244_v17  ;;  %v1395_v21 = vld [vmem:[%s1792_s1] sm:$0xff]  ;;  %v1365_v28 = vld [vmem:[%s1606_s11 + $0x14] sm:$0xf] }
  0x12   : > { %757 = vmatpush.bf16.msra.mxu1 %v663_v5  ;;  %1415 = vmatpush.bf16.msra.mxu3 %v663_v5  ;;  %v1170_v22 = vld [vmem:[%s1606_s11] sm:$0xf]  ;;  %v1364_v23 = vld [vmem:[%s1606_s11 + $0x4] sm:$0xf0]  ;;  %v1180_v29 = vld [vmem:[%s1606_s11 + $0x18] sm:$0xf0] }
  0x13   : > { %v1234_v24 = vld [vmem:[%s1606_s11 + $0x80] sm:$0xf]  ;;  %v1380_v25 = vld [vmem:[%s1606_s11 + $0x84] sm:$0xf0]  ;;  %v1171_v26 = vor.u32 %v1364_v23, %v1170_v22  ;;  %v1383_v30 = vld [vmem:[%s1606_s11 + $0xa4] sm:$0xf]  ;;  %v1183_v32 = vor.u32 %v1365_v28, %v1180_v29 }
  0x14   : > { %v1235_v27 = vor.u32 %v1380_v25, %v1234_v24  ;;  %v1252_v31 = vld [vmem:[%s1606_s11 + $0xa8] sm:$0xf0]  ;;  %v1178_v34 = vld [vmem:[%s1606_s11 + $0x10] sm:$0xf]  ;;  %v1366_v35 = vld [vmem:[%s1606_s11 + $0x14] sm:$0xf0] }
  0x15   : > { %667 = vmatpush.bf16.msra.mxu0 %v1400_v7  ;;  %1409 = vmatpush.bf16.msra.mxu2 %v1400_v7  ;;  %v1255_v33 = vor.u32 %v1383_v30, %v1252_v31  ;;  %v1242_v36 = vld [vmem:[%s1606_s11 + $0x90] sm:$0xf]  ;;  %v1382_v37 = vld [vmem:[%s1606_s11 + $0x94] sm:$0xf0]  ;;  %v1179_v38 = vor.u32 %v1366_v35, %v1178_v34  ;;  %v1367_v40 = vld [vmem:[%s1606_s11 + $0x24] sm:$0xf] }
  0x16   : > { %758 = vmatpush.bf16.msra.mxu1 %v1406_v6  ;;  %1416 = vmatpush.bf16.msra.mxu3 %v1406_v6  ;;  %v1243_v39 = vor.u32 %v1382_v37, %v1242_v36  ;;  %v1188_v41 = vld [vmem:[%s1606_s11 + $0x28] sm:$0xf0]  ;;  %v1385_v42 = vld [vmem:[%s1606_s11 + $0xb4] sm:$0xf]  ;;  %v1260_v43 = vld [vmem:[%s1606_s11 + $0xb8] sm:$0xf0] }
  0x17   : > { %v1191_v44 = vor.u32 %v1367_v40, %v1188_v41  ;;  %v1263_v45 = vor.u32 %v1385_v42, %v1260_v43  ;;  %v1186_v46 = vld [vmem:[%s1606_s11 + $0x20] sm:$0xf]  ;;  %v1368_v47 = vld [vmem:[%s1606_s11 + $0x24] sm:$0xf0]  ;;  %v1369_v52 = vld [vmem:[%s1606_s11 + $0x34] sm:$0xf] }
  0x18   : > { %v1250_v48 = vld [vmem:[%s1606_s11 + $0xa0] sm:$0xf]  ;;  %v1384_v49 = vld [vmem:[%s1606_s11 + $0xa4] sm:$0xf0]  ;;  %v1187_v50 = vor.u32 %v1368_v47, %v1186_v46  ;;  %v1196_v53 = vld [vmem:[%s1606_s11 + $0x38] sm:$0xf0] }
  0x19   : > { %668 = vmatpush.bf16.msra.mxu0 %v1399_v9  ;;  %1410 = vmatpush.bf16.msra.mxu2 %v1399_v9  ;;  %v1251_v51 = vor.u32 %v1384_v49, %v1250_v48  ;;  %v1387_v54 = vld [vmem:[%s1606_s11 + $0xc4] sm:$0xf]  ;;  %v1268_v55 = vld [vmem:[%s1606_s11 + $0xc8] sm:$0xf0]  ;;  %v1199_v56 = vor.u32 %v1369_v52, %v1196_v53  ;;  %v1194_v58 = vld [vmem:[%s1606_s11 + $0x30] sm:$0xf] }
  0x1a   : > { %759 = vmatpush.bf16.msra.mxu1 %v1405_v8  ;;  %1417 = vmatpush.bf16.msra.mxu3 %v1405_v8  ;;  %v1271_v57 = vor.u32 %v1387_v54, %v1268_v55  ;;  %v1370_v59 = vld [vmem:[%s1606_s11 + $0x34] sm:$0xf0]  ;;  %v1258_v60 = vld [vmem:[%s1606_s11 + $0xb0] sm:$0xf]  ;;  %v1371_v0 = vld [vmem:[%s1606_s11 + $0x44] sm:$0xf] }
  0x1b   : > { %v1386_v61 = vld [vmem:[%s1606_s11 + $0xb4] sm:$0xf0]  ;;  %v1195_v62 = vor.u32 %v1370_v59, %v1194_v58  ;;  %v1204_v1 = vld [vmem:[%s1606_s11 + $0x48] sm:$0xf0]  ;;  %v1389_v2 = vld [vmem:[%s1606_s11 + $0xd4] sm:$0xf] }
  0x1c   : > { %v1259_v63 = vor.u32 %v1386_v61, %v1258_v60  ;;  %v1276_v3 = vld [vmem:[%s1606_s11 + $0xd8] sm:$0xf0]  ;;  %v1207_v4 = vor.u32 %v1371_v0, %v1204_v1  ;;  %v1202_v6 = vld [vmem:[%s1606_s11 + $0x40] sm:$0xf]  ;;  %v1372_v7 = vld [vmem:[%s1606_s11 + $0x44] sm:$0xf0] }
  0x1d   : > { %669 = vmatpush.bf16.msra.mxu0 %v1398_v11  ;;  %1411 = vmatpush.bf16.msra.mxu2 %v1398_v11  ;;  %v1279_v5 = vor.u32 %v1389_v2, %v1276_v3  ;;  %v1266_v8 = vld [vmem:[%s1606_s11 + $0xc0] sm:$0xf]  ;;  %v1388_v9 = vld [vmem:[%s1606_s11 + $0xc4] sm:$0xf0]  ;;  %v1391_v14 = vld [vmem:[%s1606_s11 + $0xe4] sm:$0xf] }
  0x1e   : > { %760 = vmatpush.bf16.msra.mxu1 %v1404_v10  ;;  %1418 = vmatpush.bf16.msra.mxu3 %v1404_v10  ;;  %v1203_v10 = vor.u32 %v1372_v7, %v1202_v6  ;;  %v1267_v11 = vor.u32 %v1388_v9, %v1266_v8  ;;  %v1284_v15 = vld [vmem:[%s1606_s11 + $0xe8] sm:$0xf0]  ;;  %v1375_v24 = vld [vmem:[%s1606_s11 + $0x64] sm:$0xf]  ;;  %v1218_v30 = vld [vmem:[%s1606_s11 + $0x60] sm:$0xf] }
  0x1f   : > { %v1287_v17 = vor.u32 %v1391_v14, %v1284_v15  ;;  %v1220_v25 = vld [vmem:[%s1606_s11 + $0x68] sm:$0xf0]  ;;  %v1376_v31 = vld [vmem:[%s1606_s11 + $0x64] sm:$0xf0]  ;;  %v1377_v36 = vld [vmem:[%s1606_s11 + $0x74] sm:$0xf] }
  0x20   : > { %v1223_v28 = vor.u32 %v1375_v24, %v1220_v25  ;;  %v1219_v34 = vor.u32 %v1376_v31, %v1218_v30  ;;  %v1228_v37 = vld [vmem:[%s1606_s11 + $0x78] sm:$0xf0]  ;;  %v1378_v40 = vld [vmem:[%s1606_s11 + $0x74] sm:$0xf0]  ;;  %v1290_v41 = vld [vmem:[%s1606_s11 + $0xf0] sm:$0xf] }
  0x21   : > { %670 = vmatpush.bf16.msra.mxu0 %v1397_v13  ;;  %1412 = vmatpush.bf16.msra.mxu2 %v1397_v13  ;;  %v1212_v13 = vld [vmem:[%s1606_s11 + $0x58] sm:$0xf0]  ;;  %v1394_v42 = vld [vmem:[%s1606_s11 + $0xf4] sm:$0xf0]  ;;  %v1236_v46 = vld [vmem:[%s1606_s11 + $0x88] sm:$0xf0] }
  0x22   : > { %761 = vmatpush.bf16.msra.mxu1 %v1403_v12  ;;  %1419 = vmatpush.bf16.msra.mxu3 %v1403_v12  ;;  %v1373_v12 = vld [vmem:[%s1606_s11 + $0x54] sm:$0xf]  ;;  %v1703_v49 = vld [vmem:[%s1793_s2] ss:$0 sm:$0xff] }
  0x23   : > { %v1215_v16 = vor.u32 %v1373_v12, %v1212_v13 }
  0x25   : > { %1344 = vmatmul.msk.bf16.vlgmr.msra.gmra.mxu1 %vm612_vm1, %v1175_v18  ;;  %671 = vmatpush.bf16.msra.mxu0 %v1396_v19  ;;  %v1210_v18 = vld [vmem:[%s1606_s11 + $0x50] sm:$0xf] }
  0x26   : > { %1353 = vmatmul.msk.bf16.vlgmr.msra.gmra.mxu3 %vm612_vm1, %v1247_v20  ;;  %1413 = vmatpush.bf16.msra.mxu2 %v1396_v19  ;;  %v1374_v19 = vld [vmem:[%s1606_s11 + $0x54] sm:$0xf0]  ;;  %v1274_v20 = vld [vmem:[%s1606_s11 + $0xd0] sm:$0xf] }
  0x27   : > { %v1211_v22 = vor.u32 %v1374_v19, %v1210_v18 }
  0x29   : > { %672 = vmatpush.bf16.msra.mxu0 %v1395_v21 }
  0x2a   : > { %1414 = vmatpush.bf16.msra.mxu2 %v1395_v21  ;;  %v1390_v21 = vld [vmem:[%s1606_s11 + $0xd4] sm:$0xf0] }
  0x2b   : > { %v1275_v23 = vor.u32 %v1390_v21, %v1274_v20 }
  0x2c   : > { %673 = vmatmul.bf16.vlgmr.msra.gmra.mxu0 %v1171_v26  ;;  %v1393_v26 = vld [vmem:[%s1606_s11 + $0xf4] sm:$0xf] }
  0x2d   : > { %713 = vmatmul.bf16.vlgmr.msra.gmra.mxu2 %v1235_v27  ;;  %v1292_v27 = vld [vmem:[%s1606_s11 + $0xf8] sm:$0xf0] }
  0x2e   : > { %v1295_v29 = vor.u32 %v1393_v26, %v1292_v27 }
  0x35   : > { %1345 = vmatmul.msk.bf16.gmra.mxu1 %vm612_vm1, %v1183_v32  ;;  %v1282_v32 = vld [vmem:[%s1606_s11 + $0xe0] sm:$0xf] }
  0x36   : > { %1354 = vmatmul.msk.bf16.gmra.mxu3 %vm612_vm1, %v1255_v33  ;;  %v1392_v33 = vld [vmem:[%s1606_s11 + $0xe4] sm:$0xf0] }
  0x37   : > { %v1283_v35 = vor.u32 %v1392_v33, %v1282_v32 }
  0x3c   : > { %678 = vmatmul.bf16.gmra.mxu0 %v1179_v38  ;;  %v1231_v38 = vor.u32 %v1377_v36, %v1228_v37 }
  0x3d   : > { %718 = vmatmul.bf16.gmra.mxu2 %v1243_v39  ;;  %v1226_v39 = vld [vmem:[%s1606_s11 + $0x70] sm:$0xf] }
  0x3e   : > { %v1227_v43 = vor.u32 %v1378_v40, %v1226_v39 }
  0x45   : > { %1346 = vmatmul.msk.bf16.gmra.mxu1 %vm612_vm1, %v1191_v44  ;;  %v1291_v44 = vor.u32 %v1394_v42, %v1290_v41 }
  0x46   : > { %1355 = vmatmul.msk.bf16.gmra.mxu3 %vm612_vm1, %v1263_v45  ;;  %v1379_v45 = vld [vmem:[%s1606_s11 + $0x84] sm:$0xf] }
  0x47   : > { %v1239_v47 = vor.u32 %v1379_v45, %v1236_v46 }
  0x4c   : > { %683 = vmatmul.bf16.gmra.mxu0 %v1187_v50 }
  0x4d   : > { %723 = vmatmul.bf16.gmra.mxu2 %v1251_v51 }
  0x55   : > { %1347 = vmatmul.msk.bf16.gmra.mxu1 %vm612_vm1, %v1199_v56 }
  0x56   : > { %1356 = vmatmul.msk.bf16.gmra.mxu3 %vm612_vm1, %v1271_v57 }
  0x5c   : > { %688 = vmatmul.bf16.gmra.mxu0 %v1195_v62 }
  0x5d   : > { %728 = vmatmul.bf16.gmra.mxu2 %v1259_v63 }
  0x65   : > { %1348 = vmatmul.msk.bf16.gmra.mxu1 %vm612_vm1, %v1207_v4 }
  0x66   : > { %1357 = vmatmul.msk.bf16.gmra.mxu3 %vm612_vm1, %v1279_v5 }
  0x6c   : > { %693 = vmatmul.bf16.gmra.mxu0 %v1203_v10 }
  0x6d   : > { %733 = vmatmul.bf16.gmra.mxu2 %v1267_v11 }
  0x75   : > { %1349 = vmatmul.msk.bf16.gmra.mxu1 %vm612_vm1, %v1215_v16 }
  0x76   : > { %1358 = vmatmul.msk.bf16.gmra.mxu3 %vm612_vm1, %v1287_v17 }
  0x7c   : > { %698 = vmatmul.bf16.gmra.mxu0 %v1211_v22 }
  0x7d   : > { %738 = vmatmul.bf16.gmra.mxu2 %v1275_v23 }
  0x85   : > { %1350 = vmatmul.msk.bf16.gmra.mxu1 %vm612_vm1, %v1223_v28 }
  0x86   : > { %1359 = vmatmul.msk.bf16.gmra.mxu3 %vm612_vm1, %v1295_v29 }
  0x8c   : > { %703 = vmatmul.bf16.gmra.mxu0 %v1219_v34 }
  0x8d   : > { %743 = vmatmul.bf16.gmra.mxu2 %v1283_v35 }
  0x95   : > { %1351 = vmatmul.msk.bf16.gmra.mxu1 %vm612_vm1, %v1231_v38 }
  0x9c   : > { %708 = vmatmul.bf16.gmra.mxu0 %v1227_v43 }
  0x9d   : > { %748 = vmatmul.bf16.gmra.mxu2 %v1291_v44 }
  0xa2   : > { %v763_v48 = vpop.f32.mrf.mxu1 }
  0xa5   : > { %1352 = vmatmul.msk.bf16.gmra.mxu1 %vm612_vm1, %v1239_v47 }
  0xa9   : > { %v808_v50 = vpop.f32.mrf.mxu3  ;;  %v674_v52 = vpop.f32.mrf.mxu0 }
  0xaa   : > { %v765_v51 = vpop.f32.mrf.mxu1  ;;  %v764_v53 = vadd.f32 %v763_v48, %v674_v52 }
  0xac   : > { %v946_v54 = vadd.f32 %v1703_v49, %v764_v53 }
  0xae   : > { %1445 = vtanh.f32 %v946_v54 }
  0xb0   : > { %v1706_v55 = vpop.f32.mrf.mxu2 }
  0xb1   : > { %v810_v56 = vpop.f32.mrf.mxu3  ;;  %v676_v58 = vpop.f32.mrf.mxu0 }
  0xb2   : > { %v768_v57 = vpop.f32.mrf.mxu1  ;;  %v766_v59 = vadd.f32 %v765_v51, %v676_v58 }
  0xb4   : > { %v1446_v60 = vpop.eup %1445  ;;  %v947_v61 = vadd.f32 %v1703_v49, %v766_v59 }
  0xb5   : > { %1010 = vst [vmem:[%s1713_s28] sm:$0xff] %v1446_v60 }
  0xb6   : > { %1447 = vtanh.f32 %v947_v61 }
  0xb8   : > { %v1717_v62 = vpop.f32.mrf.mxu2 }
  0xb9   : > { %v679_v0 = vpop.f32.mrf.mxu0  ;;  %v813_v2 = vpop.f32.mrf.mxu3 }
  0xba   : > { %v770_v63 = vpop.f32.mrf.mxu1  ;;  %v769_v1 = vadd.f32 %v768_v57, %v679_v0 }
  0xbc   : > { %v1448_v3 = vpop.eup %1447  ;;  %v948_v4 = vadd.f32 %v1703_v49, %v769_v1 }
  0xbd   : > { %1011 = vst [vmem:[%s1713_s28 + $0x8] sm:$0xff] %v1448_v3 }
  0xbe   : > { %1449 = vtanh.f32 %v948_v4 }
  0xc0   : > { %v719_v5 = vpop.f32.mrf.mxu2 }
  0xc1   : > { %v809_v6 = vadd.f32 %v808_v50, %v719_v5  ;;  %v681_v8 = vpop.f32.mrf.mxu0  ;;  %v815_v13 = vpop.f32.mrf.mxu3 }
  0xc2   : > { %v773_v7 = vpop.f32.mrf.mxu1  ;;  %v771_v9 = vadd.f32 %v770_v63, %v681_v8 }
  0xc3   : > { %v964_v10 = vadd.f32 %v1703_v49, %v809_v6 }
  0xc4   : > { %v1450_v11 = vpop.eup %1449  ;;  %v949_v12 = vadd.f32 %v1703_v49, %v771_v9 }
  0xc5   : > { %1012 = vst [vmem:[%s1713_s28 + $0x10] sm:$0xff] %v1450_v11  ;;  %1451 = vtanh.f32 %v964_v10 }
  0xc6   : > { %1453 = vtanh.f32 %v949_v12 }
  0xc8   : > { %v721_v14 = vpop.f32.mrf.mxu2 }
  0xc9   : > { %v811_v15 = vadd.f32 %v810_v56, %v721_v14  ;;  %v684_v17 = vpop.f32.mrf.mxu0  ;;  %v818_v23 = vpop.f32.mrf.mxu3 }
  0xca   : > { %v775_v16 = vpop.f32.mrf.mxu1  ;;  %v774_v18 = vadd.f32 %v773_v7, %v684_v17 }
  0xcb   : > { %v1452_v19 = vpop.eup %1451  ;;  %v965_v20 = vadd.f32 %v1703_v49, %v811_v15 }
  0xcc   : > { %v1454_v21 = vpop.eup %1453  ;;  %1028 = vst [vmem:[%s1713_s28 + $0x90] sm:$0xff] %v1452_v19  ;;  %v950_v22 = vadd.f32 %v1703_v49, %v774_v18 }
  0xcd   : > { %1013 = vst [vmem:[%s1713_s28 + $0x18] sm:$0xff] %v1454_v21  ;;  %1455 = vtanh.f32 %v965_v20 }
  0xce   : > { %1457 = vtanh.f32 %v950_v22 }
  0xd0   : > { %v724_v24 = vpop.f32.mrf.mxu2 }
  0xd1   : > { %v814_v25 = vadd.f32 %v813_v2, %v724_v24  ;;  %v686_v27 = vpop.f32.mrf.mxu0  ;;  %v820_v34 = vpop.f32.mrf.mxu3 }
  0xd2   : > { %v778_v26 = vpop.f32.mrf.mxu1  ;;  %v776_v28 = vadd.f32 %v775_v16, %v686_v27 }
  0xd3   : > { %v1456_v29 = vpop.eup %1455  ;;  %v966_v30 = vadd.f32 %v1703_v49, %v814_v25 }
  0xd4   : > { %v1458_v31 = vpop.eup %1457  ;;  %1029 = vst [vmem:[%s1713_s28 + $0x98] sm:$0xff] %v1456_v29  ;;  %v951_v32 = vadd.f32 %v1703_v49, %v776_v28 }
  0xd5   : > { %1014 = vst [vmem:[%s1713_s28 + $0x20] sm:$0xff] %v1458_v31  ;;  %1459 = vtanh.f32 %v966_v30 }
  0xd6   : > { %1461 = vtanh.f32 %v951_v32 }
  0xd8   : > { %v726_v33 = vpop.f32.mrf.mxu2 }
  0xd9   : > { %v816_v35 = vadd.f32 %v815_v13, %v726_v33  ;;  %v689_v37 = vpop.f32.mrf.mxu0  ;;  %v823_v48 = vpop.f32.mrf.mxu3 }
  0xda   : > { %v780_v36 = vpop.f32.mrf.mxu1  ;;  %v779_v38 = vadd.f32 %v778_v26, %v689_v37 }
  0xdb   : > { %v1460_v39 = vpop.eup %1459  ;;  %v967_v40 = vadd.f32 %v1703_v49, %v816_v35 }
  0xdc   : > { %v1462_v41 = vpop.eup %1461  ;;  %1030 = vst [vmem:[%s1713_s28 + $0xa0] sm:$0xff] %v1460_v39  ;;  %v952_v42 = vadd.f32 %v1703_v49, %v779_v38 }
  0xdd   : > { %1015 = vst [vmem:[%s1713_s28 + $0x28] sm:$0xff] %v1462_v41  ;;  %1463 = vtanh.f32 %v967_v40 }
  0xde   : > { %1465 = vtanh.f32 %v952_v42 }
  0xe0   : > { %v729_v43 = vpop.f32.mrf.mxu2 }
  0xe1   : > { %v819_v44 = vadd.f32 %v818_v23, %v729_v43  ;;  %v691_v46 = vpop.f32.mrf.mxu0  ;;  %v825_v1 = vpop.f32.mrf.mxu3 }
  0xe2   : > { %v783_v45 = vpop.f32.mrf.mxu1  ;;  %v781_v47 = vadd.f32 %v780_v36, %v691_v46 }
  0xe3   : > { %v1464_v50 = vpop.eup %1463  ;;  %v968_v51 = vadd.f32 %v1703_v49, %v819_v44 }
  0xe4   : > { %v1466_v52 = vpop.eup %1465  ;;  %1031 = vst [vmem:[%s1713_s28 + $0xa8] sm:$0xff] %v1464_v50  ;;  %v953_v53 = vadd.f32 %v1703_v49, %v781_v47 }
  0xe5   : > { %1016 = vst [vmem:[%s1713_s28 + $0x30] sm:$0xff] %v1466_v52  ;;  %1467 = vtanh.f32 %v968_v51 }
  0xe6   : > { %1469 = vtanh.f32 %v953_v53 }
  0xe8   : > { %v731_v54 = vpop.f32.mrf.mxu2 }
  0xe9   : > { %v821_v56 = vadd.f32 %v820_v34, %v731_v54  ;;  %v694_v58 = vpop.f32.mrf.mxu0  ;;  %v828_v11 = vpop.f32.mrf.mxu3 }
  0xea   : > { %v785_v57 = vpop.f32.mrf.mxu1  ;;  %v784_v59 = vadd.f32 %v783_v45, %v694_v58 }
  0xeb   : > { %v1468_v60 = vpop.eup %1467  ;;  %v969_v61 = vadd.f32 %v1703_v49, %v821_v56 }
  0xec   : > { %v1470_v63 = vpop.eup %1469  ;;  %1032 = vst [vmem:[%s1713_s28 + $0xb0] sm:$0xff] %v1468_v60  ;;  %v954_v0 = vadd.f32 %v1703_v49, %v784_v59 }
  0xed   : > { %1017 = vst [vmem:[%s1713_s28 + $0x38] sm:$0xff] %v1470_v63  ;;  %1471 = vtanh.f32 %v969_v61 }
  0xee   : > { %1473 = vtanh.f32 %v954_v0 }
  0xf0   : > { %v734_v2 = vpop.f32.mrf.mxu2 }
  0xf1   : > { %v824_v3 = vadd.f32 %v823_v48, %v734_v2  ;;  %v696_v5 = vpop.f32.mrf.mxu0  ;;  %v830_v22 = vpop.f32.mrf.mxu3 }
  0xf2   : > { %v788_v4 = vpop.f32.mrf.mxu1  ;;  %v786_v6 = vadd.f32 %v785_v57, %v696_v5 }
  0xf3   : > { %v1472_v7 = vpop.eup %1471  ;;  %v970_v8 = vadd.f32 %v1703_v49, %v824_v3 }
  0xf4   : > { %v1474_v9 = vpop.eup %1473  ;;  %1033 = vst [vmem:[%s1713_s28 + $0xb8] sm:$0xff] %v1472_v7  ;;  %v955_v10 = vadd.f32 %v1703_v49, %v786_v6 }
  0xf5   : > { %1018 = vst [vmem:[%s1713_s28 + $0x40] sm:$0xff] %v1474_v9  ;;  %1475 = vtanh.f32 %v970_v8 }
  0xf6   : > { %1477 = vtanh.f32 %v955_v10 }
  0xf8   : > { %v736_v12 = vpop.f32.mrf.mxu2 }
  0xf9   : > { %v826_v13 = vadd.f32 %v825_v1, %v736_v12  ;;  %v699_v15 = vpop.f32.mrf.mxu0  ;;  %v833_v35 = vpop.f32.mrf.mxu3 }
  0xfa   : > { %v790_v14 = vpop.f32.mrf.mxu1  ;;  %v789_v16 = vadd.f32 %v788_v4, %v699_v15 }
  0xfb   : > { %v1476_v17 = vpop.eup %1475  ;;  %v971_v18 = vadd.f32 %v1703_v49, %v826_v13 }
  0xfc   : > { %v1478_v19 = vpop.eup %1477  ;;  %1034 = vst [vmem:[%s1713_s28 + $0xc0] sm:$0xff] %v1476_v17  ;;  %v956_v20 = vadd.f32 %v1703_v49, %v789_v16 }
  0xfd   : > { %1019 = vst [vmem:[%s1713_s28 + $0x48] sm:$0xff] %v1478_v19  ;;  %1479 = vtanh.f32 %v971_v18 }
  0xfe   : > { %1481 = vtanh.f32 %v956_v20 }
 0x100   : > { %v739_v21 = vpop.f32.mrf.mxu2 }
 0x101   : > { %v829_v23 = vadd.f32 %v828_v11, %v739_v21  ;;  %v701_v25 = vpop.f32.mrf.mxu0  ;;  %v835_v50 = vpop.f32.mrf.mxu3 }
 0x102   : > { %v793_v24 = vpop.f32.mrf.mxu1  ;;  %v791_v26 = vadd.f32 %v790_v14, %v701_v25 }
 0x103   : > { %v1480_v27 = vpop.eup %1479  ;;  %v972_v28 = vadd.f32 %v1703_v49, %v829_v23 }
 0x104   : > { %v1482_v29 = vpop.eup %1481  ;;  %1035 = vst [vmem:[%s1713_s28 + $0xc8] sm:$0xff] %v1480_v27  ;;  %v957_v30 = vadd.f32 %v1703_v49, %v791_v26 }
 0x105   : > { %1020 = vst [vmem:[%s1713_s28 + $0x50] sm:$0xff] %v1482_v29  ;;  %1483 = vtanh.f32 %v972_v28 }
 0x106   : > { %1485 = vtanh.f32 %v957_v30 }
 0x108   : > { %v741_v31 = vpop.f32.mrf.mxu2 }
 0x109   : > { %v831_v32 = vadd.f32 %v830_v22, %v741_v31  ;;  %v704_v34 = vpop.f32.mrf.mxu0  ;;  %v838_v63 = vpop.f32.mrf.mxu3 }
 0x10a   : > { %v795_v33 = vpop.f32.mrf.mxu1  ;;  %v794_v36 = vadd.f32 %v793_v24, %v704_v34 }
 0x10b   : > { %v1484_v37 = vpop.eup %1483  ;;  %v973_v38 = vadd.f32 %v1703_v49, %v831_v32 }
 0x10c   : > { %v1486_v39 = vpop.eup %1485  ;;  %1036 = vst [vmem:[%s1713_s28 + $0xd0] sm:$0xff] %v1484_v37  ;;  %v958_v40 = vadd.f32 %v1703_v49, %v794_v36 }
 0x10d   : > { %1021 = vst [vmem:[%s1713_s28 + $0x58] sm:$0xff] %v1486_v39  ;;  %1487 = vtanh.f32 %v973_v38 }
 0x10e   : > { %1489 = vtanh.f32 %v958_v40 }
 0x110   : > { %v744_v41 = vpop.f32.mrf.mxu2 }
 0x111   : > { %v834_v42 = vadd.f32 %v833_v35, %v744_v41  ;;  %v706_v44 = vpop.f32.mrf.mxu0  ;;  %v840_v11 = vpop.f32.mrf.mxu3 }
 0x112   : > { %v798_v43 = vpop.f32.mrf.mxu1  ;;  %v796_v45 = vadd.f32 %v795_v33, %v706_v44 }
 0x113   : > { %v1488_v46 = vpop.eup %1487  ;;  %v974_v47 = vadd.f32 %v1703_v49, %v834_v42 }
 0x114   : > { %v1490_v48 = vpop.eup %1489  ;;  %1037 = vst [vmem:[%s1713_s28 + $0xd8] sm:$0xff] %v1488_v46  ;;  %v959_v51 = vadd.f32 %v1703_v49, %v796_v45 }
 0x115   : > { %1022 = vst [vmem:[%s1713_s28 + $0x60] sm:$0xff] %v1490_v48  ;;  %1491 = vtanh.f32 %v974_v47 }
 0x116   : > { %1493 = vtanh.f32 %v959_v51 }
 0x118   : > { %v746_v52 = vpop.f32.mrf.mxu2 }
 0x119   : > { %v836_v53 = vadd.f32 %v835_v50, %v746_v52  ;;  %v709_v56 = vpop.f32.mrf.mxu0 }
 0x11a   : > { %v800_v54 = vpop.f32.mrf.mxu1  ;;  %v799_v57 = vadd.f32 %v798_v43, %v709_v56 }
 0x11b   : > { %v1492_v58 = vpop.eup %1491  ;;  %v975_v59 = vadd.f32 %v1703_v49, %v836_v53 }
 0x11c   : > { %v1494_v60 = vpop.eup %1493  ;;  %1038 = vst [vmem:[%s1713_s28 + $0xe0] sm:$0xff] %v1492_v58  ;;  %v960_v61 = vadd.f32 %v1703_v49, %v799_v57 }
 0x11d   : > { %1023 = vst [vmem:[%s1713_s28 + $0x68] sm:$0xff] %v1494_v60  ;;  %1495 = vtanh.f32 %v975_v59 }
 0x11e   : > { %1497 = vtanh.f32 %v960_v61 }
 0x120   : > { %v749_v0 = vpop.f32.mrf.mxu2 }
 0x121   : > { %v839_v1 = vadd.f32 %v838_v63, %v749_v0  ;;  %v711_v3 = vpop.f32.mrf.mxu0 }
 0x122   : > { %v803_v2 = vpop.f32.mrf.mxu1  ;;  %v801_v5 = vadd.f32 %v800_v54, %v711_v3 }
 0x123   : > { %v804_v4 = vadd.f32 %v803_v2, %v1706_v55  ;;  %v1496_v6 = vpop.eup %1495  ;;  %v976_v7 = vadd.f32 %v1703_v49, %v839_v1 }
 0x124   : > { %v1498_v8 = vpop.eup %1497  ;;  %1039 = vst [vmem:[%s1713_s28 + $0xe8] sm:$0xff] %v1496_v6  ;;  %v961_v10 = vadd.f32 %v1703_v49, %v801_v5 }
 0x125   : > { %v962_v9 = vadd.f32 %v1703_v49, %v804_v4  ;;  %1024 = vst [vmem:[%s1713_s28 + $0x70] sm:$0xff] %v1498_v8  ;;  %1499 = vtanh.f32 %v976_v7 }
 0x127   : > { %1501 = vtanh.f32 %v962_v9 }
 0x128   : > { %1503 = vtanh.f32 %v961_v10  ;;  %v751_v12 = vpop.f32.mrf.mxu2 }
 0x129   : > { %v841_v55 = vadd.f32 %v840_v11, %v751_v12 }
 0x12a   : > { %v805_v13 = vpop.f32.mrf.mxu1 }
 0x12b   : > { %v806_v14 = vadd.f32 %v805_v13, %v1717_v62  ;;  %v1500_v15 = vpop.eup %1499  ;;  %v977_v16 = vadd.f32 %v1703_v49, %v841_v55 }
 0x12c   : > { %1040 = vst [vmem:[%s1713_s28 + $0xf0] sm:$0xff] %v1500_v15 }
 0x12d   : > { %v1502_v17 = vpop.eup %1501  ;;  %v963_v18 = vadd.f32 %v1703_v49, %v806_v14  ;;  %1505 = vtanh.f32 %v977_v16 }
 0x12e   : > { %v1504_v19 = vpop.eup %1503  ;;  %1026 = vst [vmem:[%s1713_s28 + $0x80] sm:$0xff] %v1502_v17 }
 0x12f   : > { %1025 = vst [vmem:[%s1713_s28 + $0x78] sm:$0xff] %v1504_v19  ;;  %1507 = vtanh.f32 %v963_v18 }
 0x133   : > { %v1506_v20 = vpop.eup %1505 }
 0x134   : > { %1041 = vst [vmem:[%s1713_s28 + $0xf8] sm:$0xff] %v1506_v20 }
 0x135   : > { %v1508_v21 = vpop.eup %1507 }
 0x136   : > { %1027 = vst [vmem:[%s1713_s28 + $0x88] sm:$0xff] %v1508_v21 }
 0x137 PF: > { %s13_s14 = sadd.s32 1, %s1531_s14   ;;  %s1795_s12 = smov %s1527_s13 }
 0x138   : > { %p10_p5 = scmp.ge.s32.totalorder %s13_s14, 10   ;;  %s1796_s13 = smov %s1798_s15 }
 0x13a   :  { %12 = sbr.rel (!%p10_p5) target bundleno = 2 (0x2), region = 76 }

</bundles_post_ra>
